<compile_context>
chip_gen: v6e
topology: v6e:2x2x1
jax: 0.10.0
libtpu: 0.0.40
codegen_flags: <defaults>
</compile_context>

<pallas_src>
import functools

import jax
import jax.numpy as jnp
from jax.experimental import pallas as pl
from jax.experimental.pallas import tpu as pltpu

_BN_EPS = 1e-5
_FAT_K_THRESHOLD = 32          # use the concatenated fat-K matmul only below this Cin


# --------------------------------------------------------------------------- #
# Pallas kernel
# --------------------------------------------------------------------------- #
def _psp_upsample_kernel(x_ref, w_ref, scale_ref, shift_ref, alpha_ref, o_ref,
                         *, fat_k):
    """Fused 2x bilinear upsample + 3x3 conv (pad=1) + BatchNorm(eval) + PReLU.

    x_ref     : (1, H+2, W+2, Cin) bf16   replicate-padded original-res input
    w_ref     : fat_k  -> (12*Cin, 2*Cout) bf16
                else   -> (12, Cin, 2*Cout) bf16    (index = dy*4 + column-tap)
    scale_ref : (1, 2*Cout) f32   folded BN scale           (tiled over parity)
    shift_ref : (1, 2*Cout) f32   folded conv-bias+BN shift (tiled over parity)
    alpha_ref : (1,) f32 in SMEM  PReLU slope
    o_ref     : (1, TH*W, 2*Cout) out dtype; flat (row, col-pair) x (parity, co)
                layout -> a free metadata reshape outside recovers NHWC.
    """
    r = pl.program_id(1)
    nr = pl.num_programs(1)
    TH_W = o_ref.shape[1]
    Cout2 = o_ref.shape[2]
    Wp2 = x_ref.shape[2]                  # W + 2
    W = Wp2 - 2
    Cin = x_ref.shape[3]
    TH = TH_W // W
    TH2 = TH // 2

    # ---- vertical 2x bilinear upsample (bf16 stencil math) ----------------
    i0 = pl.multiple_of(r * TH2, TH2)
    xs = x_ref[0, pl.ds(i0, TH2 + 2), :, :]          # (TH2+2, W+2, Cin) bf16
    xa = xs[0:TH2 + 1]
    xb = xs[1:TH2 + 2]
    ev = 0.25 * xa + 0.75 * xb                       # up rows r0 + 2j
    od = 0.75 * xa + 0.25 * xb                       # up rows r0 - 1 + 2j
    # interleave -> up rows r0-1 .. r0+TH (leading-dim merge only, no relayout)
    rows = jnp.stack([od, ev], axis=1).reshape(TH + 2, Wp2, Cin)

    # conv zero-padding of up-row -1 / up-row 2H (first / last tile only):
    # masked select instead of boundary concatenate copies.
    ridx = jax.lax.broadcasted_iota(jnp.int32, (TH + 2, 1, 1), 0)
    kill = ((ridx == 0) & (r == 0)) | ((ridx == TH + 1) & (r == nr - 1))
    rows = jnp.where(kill, 0.0, rows)

    # ---- horizontal 2x bilinear upsample: two FMA passes over width W+1 ----
    # ce_ext[:, k] = up col 2k   (k = 0..W), column W only used as the 2W tap -> 0
    # co_ext[:, k] = up col 2k-1 (k = 0..W), column 0 only used as the -1 tap -> 0
    ra = rows[:, 0:W + 1, :]
    rb = rows[:, 1:W + 2, :]
    cidx = jax.lax.broadcasted_iota(jnp.int32, (1, W + 1, 1), 1)
    ce_ext = jnp.where(cidx == W, 0.0, 0.25 * ra + 0.75 * rb)
    co_ext = jnp.where(cidx == 0, 0.0, 0.75 * ra + 0.25 * rb)
    # column tap ct reads upsampled column 2b - 1 + ct (plain slices, no copies)
    col_taps = (co_ext[:, 0:W], ce_ext[:, 0:W],
                co_ext[:, 1:W + 1], ce_ext[:, 1:W + 1])

    # ---- conv as matmul(s): M = TH*W, N = 2*Cout (column parity folded in) --
    if fat_k:
        # toy-channel path: single MXU contraction over K = 12*Cin
        pieces = [col_taps[ct][dy:dy + TH] for dy in range(3) for ct in range(4)]
        lhs = jnp.concatenate(pieces, axis=-1).reshape(TH_W, 12 * Cin)
        acc = jnp.dot(lhs, w_ref[...], preferred_element_type=jnp.float32)
    else:
        # production path: accumulate 12 per-tap matmuls (K = Cin each); only
        # one (TH*W, Cin) bf16 tap is live at a time instead of a 12x fat LHS.
        acc = jnp.zeros((TH_W, Cout2), jnp.float32)
        for dy in range(3):
            for ct in range(4):
                tap = col_taps[ct][dy:dy + TH].reshape(TH_W, Cin)
                acc = acc + jnp.dot(tap, w_ref[dy * 4 + ct],
                                    preferred_element_type=jnp.float32)

    # ---- f32 epilogue: folded conv-bias + BatchNorm (eval), then PReLU ------
    y = acc * scale_ref[...] + shift_ref[...]
    alpha = alpha_ref[0]
    y = jnp.where(y > 0, y, alpha * y)
    # TODO(synk): for tiny Cout (2*Cout < 128) a lane-packed out block
    # (1, TH, W*2*Cout) would be denser, but costs an in-kernel relayout.
    o_ref[0] = y.astype(o_ref.dtype)


# --------------------------------------------------------------------------- #
# Host-side parameter folding, tiling heuristics & wrappers
# --------------------------------------------------------------------------- #
def _fold_conv_weights(w):
    """(Cout, Cin, 3, 3) conv weight -> (3, 4, Cin, 2, Cout) f32.

    Index order: (dy, column-tap ct, cin, column-parity q, cout); output column
    2b+q uses conv tap dx through column tap ct = q + dx (other entries zero).
    """
    c_out, c_in = int(w.shape[0]), int(w.shape[1])
    w = jnp.asarray(w, jnp.float32)
    w12 = jnp.zeros((3, 4, c_in, 2, c_out), jnp.float32)
    for q in range(2):
        for dx in range(3):
            ct = q + dx
            w12 = w12.at[:, ct, :, q, :].set(
                jnp.transpose(w[:, :, :, dx], (2, 1, 0)))
    return w12


def _pick_vmem_limit():
    cap = 128 * 1024 * 1024
    try:
        info = pltpu.get_tpu_info()
        cap = int(getattr(info, "vmem_capacity_bytes", cap))
    except Exception:
        pass
    # never request the full part; leave headroom for Mosaic internal scratch
    return max(32 * 1024 * 1024, int(min(0.75 * cap, 100 * 1024 * 1024)))


def _estimate_vmem(th, h, w, cin, cout, out_bytes, fat_k):
    """Rough per-tile VMEM footprint (bytes), incl. default double buffering."""
    th2 = th // 2
    bpe = 2                                            # bf16 activations
    x_blk = (h + 2) * (w + 2) * cin * bpe * 2          # input block (2 bufs)
    w_blk = 12 * cin * 2 * cout * bpe * 2              # weights (2 bufs)
    o_blk = th * w * 2 * cout * out_bytes * 2          # output block (2 bufs)
    interp = ((th2 + 2) + 2 * (th2 + 1) + (th + 2)) * (w + 2) * cin * bpe
    ext = 2 * (th + 2) * (w + 1) * cin * bpe           # ce_ext + co_ext
    lhs = th * w * (12 * cin if fat_k else cin) * bpe  # materialized matmul LHS
    acc = 2 * th * w * 2 * cout * 4                    # f32 acc + epilogue
    return x_blk + w_blk + o_blk + interp + ext + lhs + acc


def _choose_row_block(oh, w, cin, cout, out_bytes, fat_k, budget, requested=None):
    def legal(th):
        return th % 2 == 0 and oh % th == 0 and ((th * w) % 8 == 0 or th == oh)

    if requested is not None:
        if not legal(requested):
            raise ValueError(
                "row_block must be even, divide 2*H, and keep row_block*W % 8 == 0")
        return requested
    cands = sorted(t for t in range(2, oh + 1, 2) if legal(t))
    if not cands:
        return oh
    h = oh // 2
    best = cands[0]
    for t in cands:
        if t > 128:                    # grid overhead fully amortized past this
            break
        if _estimate_vmem(t, h, w, cin, cout, out_bytes, fat_k) <= budget:
            best = t
    return best


def psp_upsample_nhwc(x_nhwc, params, *, row_block=None, out_dtype=jnp.bfloat16,
                      force_accumulate=False):
    """PSPUpsample forward, NHWC in / NHWC out (composition-friendly entry point)."""
    N, H, W, Cin = x_nhwc.shape
    w = params["w"]
    Cout = int(w.shape[0])
    OH, OW = 2 * H, 2 * W
    fat_k = (Cin <= _FAT_K_THRESHOLD) and (not force_accumulate)

    vmem_limit = _pick_vmem_limit()
    out_bytes = jnp.dtype(out_dtype).itemsize
    TH = _choose_row_block(OH, W, Cin, Cout, out_bytes, fat_k,
                           budget=int(0.75 * vmem_limit), requested=row_block)
    n_row_tiles = OH // TH

    # Replicate pad by 1 reproduces the align_corners=False boundary clamping;
    # activations stay bf16 end-to-end.
    # TODO(synk): build the replicate halo inside the kernel to drop this extra
    # HBM pad pass when chaining several PSPUpsample stages.
    xpad = jnp.pad(x_nhwc.astype(jnp.bfloat16),
                   ((0, 0), (1, 1), (1, 1), (0, 0)), mode="edge")

    w12 = _fold_conv_weights(w)                          # (3, 4, Cin, 2, Cout)
    if fat_k:
        w_k = w12.reshape(12 * Cin, 2 * Cout).astype(jnp.bfloat16)
        w_spec = pl.BlockSpec((12 * Cin, 2 * Cout), lambda n, r: (0, 0))
    else:
        w_k = w12.reshape(12, Cin, 2 * Cout).astype(jnp.bfloat16)
        w_spec = pl.BlockSpec((12, Cin, 2 * Cout), lambda n, r: (0, 0, 0))

    scale = (params["gamma"] / jnp.sqrt(params["var"] + _BN_EPS)).astype(jnp.float32)
    shift = ((params["b"] - params["mean"]) * scale + params["beta"]).astype(jnp.float32)
    scale2 = jnp.tile(scale.reshape(1, Cout), (1, 2))    # matmul N = (parity, Cout)
    shift2 = jnp.tile(shift.reshape(1, Cout), (1, 2))
    alpha = jnp.asarray(params["alpha"], jnp.float32).reshape(1)

    kernel = functools.partial(_psp_upsample_kernel, fat_k=fat_k)

    # TODO(synk): mark the grid-invariant x / w blocks with pl.Buffered(1) to
    # reclaim their second pipeline buffer on VMEM-tight parts (v7x).
    out = pl.pallas_call(
        kernel,
        out_shape=jax.ShapeDtypeStruct((N, OH * W, 2 * Cout), out_dtype),
        grid=(N, n_row_tiles),
        in_specs=[
            # whole (small) original-resolution image per batch element; the
            # block index is constant along r so it stays VMEM-resident.
            pl.BlockSpec((1, H + 2, W + 2, Cin), lambda n, r: (n, 0, 0, 0)),
            w_spec,
            pl.BlockSpec((1, 2 * Cout), lambda n, r: (0, 0)),
            pl.BlockSpec((1, 2 * Cout), lambda n, r: (0, 0)),
            pl.BlockSpec(memory_space=pltpu.MemorySpace.SMEM),
        ],
        out_specs=pl.BlockSpec((1, TH * W, 2 * Cout), lambda n, r: (n, r, 0)),
        compiler_params=pltpu.CompilerParams(
            dimension_semantics=("parallel", "parallel"),
            vmem_limit_bytes=vmem_limit),
    )(xpad, w_k, scale2, shift2, alpha)

    # (N, OH*W, 2*Cout) -> (N, OH, OW, Cout) is a pure metadata reshape (free).
    return out.reshape(N, OH, OW, Cout)


def psp_upsample(x_nchw, params, *, row_block=None, out_dtype=jnp.bfloat16,
                 force_accumulate=False):
    """PyTorch-parity wrapper: NCHW in / NCHW out (transposes are interface glue;
    keep activations NHWC end-to-end via psp_upsample_nhwc in a real pipeline)."""
    x_nhwc = jnp.transpose(x_nchw, (0, 2, 3, 1))
    out = psp_upsample_nhwc(x_nhwc, params, row_block=row_block,
                            out_dtype=out_dtype, force_accumulate=force_accumulate)
    return jnp.transpose(out, (0, 3, 1, 2))


# --------------------------------------------------------------------------- #
# Pure-JAX reference (verification only, not the hot path)
# --------------------------------------------------------------------------- #
def _bilinear_upsample_2x_nhwc(x):
    """Exact PyTorch F.interpolate(mode='bilinear', align_corners=False), scale 2."""
    N, H, W, C = x.shape

    def src_idx(out_size, in_size):
        scale = in_size / out_size
        j = jnp.arange(out_size, dtype=jnp.float32)
        src = jnp.maximum(scale * (j + 0.5) - 0.5, 0.0)
        i0 = jnp.floor(src).astype(jnp.int32)
        i1 = jnp.minimum(i0 + 1, in_size - 1)
        w1 = src - i0.astype(jnp.float32)
        return i0, i1, 1.0 - w1, w1

    y0, y1, wy0, wy1 = src_idx(2 * H, H)
    x0, x1, wx0, wx1 = src_idx(2 * W, W)
    rows = (x[:, y0, :, :] * wy0[None, :, None, None]
            + x[:, y1, :, :] * wy1[None, :, None, None])
    out = (rows[:, :, x0, :] * wx0[None, None, :, None]
           + rows[:, :, x1, :] * wx1[None, None, :, None])
    return out


def _reference(x_nchw, params):
    x = jnp.transpose(x_nchw, (0, 2, 3, 1)).astype(jnp.float32)
    up = _bilinear_upsample_2x_nhwc(x)
    w_hwio = jnp.transpose(params["w"], (2, 3, 1, 0)).astype(jnp.float32)
    y = jax.lax.conv_general_dilated(
        up, w_hwio, window_strides=(1, 1), padding=((1, 1), (1, 1)),
        dimension_numbers=("NHWC", "HWIO", "NHWC"))
    scale = params["gamma"] / jnp.sqrt(params["var"] + _BN_EPS)
    shift = (params["b"] - params["mean"]) * scale + params["beta"]
    y = y * scale + shift
    y = jnp.where(y > 0, y, params["alpha"] * y)
    return jnp.transpose(y, (0, 3, 1, 2))


def init_params(key, in_channels, out_channels):
    k_w, k_b, k_g, k_be, k_m, k_v = jax.random.split(key, 6)
    return {
        "w": 0.1 * jax.random.normal(k_w, (out_channels, in_channels, 3, 3), jnp.float32),
        "b": 0.1 * jax.random.normal(k_b, (out_channels,), jnp.float32),
        "gamma": 1.0 + 0.1 * jax.random.normal(k_g, (out_channels,), jnp.float32),
        "beta": 0.1 * jax.random.normal(k_be, (out_channels,), jnp.float32),
        "mean": 0.1 * jax.random.normal(k_m, (out_channels,), jnp.float32),
        "var": 1.0 + 0.1 * jax.random.uniform(k_v, (out_channels,), jnp.float32),
        "alpha": jnp.float32(0.25),   # nn.PReLU() default single slope
    }


def _check(out, ref, tag):
    out_f32 = jnp.asarray(out, jnp.float32)
    err = float(jnp.max(jnp.abs(out_f32 - ref)))
    tol = 0.03 * float(jnp.max(jnp.abs(ref))) + 0.05   # bf16-aware tolerance
    assert err < tol, f"{tag}: max abs error {err} exceeds tol {tol}"


if __name__ == "__main__":
    key = jax.random.PRNGKey(0)
    k1, k2, k3, k4 = jax.random.split(key, 4)

    # case 1: toy channels -> fat-K path, auto row-tile choice (single tile)
    cin, cout = 4, 8
    x = jax.random.normal(k1, (2, cin, 16, 16), jnp.float32)
    params = init_params(k2, cin, cout)
    out = jax.block_until_ready(jax.jit(psp_upsample)(x, params))
    assert out.shape == (2, cout, 32, 32)
    ref = _reference(x, params)
    _check(out, ref, "case1 (fat-K, auto tile)")

    # case 1b: same shapes, multiple row tiles (exercises the boundary masking)
    fwd_b = jax.jit(functools.partial(psp_upsample, row_block=8))
    out_b = jax.block_until_ready(fwd_b(x, params))
    _check(out_b, ref, "case1b (fat-K, 4 row tiles)")

    # case 2: Cin above the fat-K threshold -> per-tap accumulate path, 2 tiles
    cin2, cout2 = 64, 16
    x2 = jax.random.normal(k3, (1, cin2, 8, 8), jnp.float32)
    params2 = init_params(k4, cin2, cout2)
    fwd2 = jax.jit(functools.partial(psp_upsample, row_block=8))
    out2 = jax.block_until_ready(fwd2(x2, params2))
    assert out2.shape == (1, cout2, 16, 16)
    ref2 = _reference(x2, params2)
    _check(out2, ref2, "case2 (per-tap accumulate, 2 row tiles)")

    print("KERNEL_OK")
</pallas_src>

<mosaic_0001>
module attributes {stable_mosaic.version = 11 : i64} {
  func.func @_psp_upsample_kernel(%arg0: i32, %arg1: i32, %arg2: memref<1x18x18x4xbf16, #tpu.memory_space<vmem>>, %arg3: memref<48x16xbf16, #tpu.memory_space<vmem>>, %arg4: memref<1x16xf32, #tpu.memory_space<vmem>>, %arg5: memref<1x16xf32, #tpu.memory_space<vmem>>, %arg6: memref<1xf32, #tpu.memory_space<smem>>, %arg7: memref<1x512x16xbf16, #tpu.memory_space<vmem>>) attributes {dimension_semantics = [#tpu.dimension_semantics<parallel>, #tpu.dimension_semantics<parallel>], iteration_bounds = array<i64: 2, 1>, scalar_prefetch = 0 : i64, scratch_operands = 0 : i64, tpu.core_type = #tpu.core_type<tc>, window_params = [{transform_indices = @transform_0, window_bounds = array<i64: 1, 18, 18, 4>}, {pipeline_mode = #tpu.pipeline_mode<synchronous>, transform_indices = @transform_1, window_bounds = array<i64: 48, 16>}, {pipeline_mode = #tpu.pipeline_mode<synchronous>, transform_indices = @transform_2, window_bounds = array<i64: 1, 16>}, {pipeline_mode = #tpu.pipeline_mode<synchronous>, transform_indices = @transform_3, window_bounds = array<i64: 1, 16>}, {transform_indices = @transform_4, window_bounds = array<i64: 1>}, {transform_indices = @transform_5, window_bounds = array<i64: 1, 512, 16>}]} {
    %c16_i32 = arith.constant 16 : i32
    %0 = arith.muli %arg1, %c16_i32 : i32
    %1 = tpu.assume_multiple %0, 16 : i32
    %c0 = arith.constant 0 : index
    %2 = arith.index_cast %1 : i32 to index
    %c0_0 = arith.constant 0 : index
    %c0_1 = arith.constant 0 : index
    %3 = vector.load %arg2[%c0, %2, %c0_0, %c0_1] : memref<1x18x18x4xbf16, #tpu.memory_space<vmem>>, vector<1x18x18x4xbf16>
    %4 = vector.shape_cast %3 : vector<1x18x18x4xbf16> to vector<18x18x4xbf16>
    %5 = vector.extract_strided_slice %4 {offsets = [0, 0, 0], sizes = [17, 18, 4], strides = [1, 1, 1]} : vector<18x18x4xbf16> to vector<17x18x4xbf16>
    %6 = vector.extract_strided_slice %4 {offsets = [1, 0, 0], sizes = [17, 18, 4], strides = [1, 1, 1]} : vector<18x18x4xbf16> to vector<17x18x4xbf16>
    %cst = arith.constant 2.500000e-01 : bf16
    %7 = vector.broadcast %cst : bf16 to vector<17x18x4xbf16>
    %8 = arith.mulf %7, %5 : vector<17x18x4xbf16>
    %cst_2 = arith.constant 7.500000e-01 : bf16
    %9 = vector.broadcast %cst_2 : bf16 to vector<17x18x4xbf16>
    %10 = arith.mulf %9, %6 : vector<17x18x4xbf16>
    %11 = arith.addf %8, %10 : vector<17x18x4xbf16>
    %cst_3 = arith.constant 7.500000e-01 : bf16
    %12 = vector.broadcast %cst_3 : bf16 to vector<17x18x4xbf16>
    %13 = arith.mulf %12, %5 : vector<17x18x4xbf16>
    %cst_4 = arith.constant 2.500000e-01 : bf16
    %14 = vector.broadcast %cst_4 : bf16 to vector<17x18x4xbf16>
    %15 = arith.mulf %14, %6 : vector<17x18x4xbf16>
    %16 = arith.addf %13, %15 : vector<17x18x4xbf16>
    %17 = vector.shape_cast %16 : vector<17x18x4xbf16> to vector<17x1x18x4xbf16>
    %18 = vector.shape_cast %11 : vector<17x18x4xbf16> to vector<17x1x18x4xbf16>
    %19 = tpu.concatenate %17, %18 in 1 : vector<17x1x18x4xbf16>, vector<17x1x18x4xbf16> -> vector<17x2x18x4xbf16>
    %20 = vector.shape_cast %19 : vector<17x2x18x4xbf16> to vector<34x18x4xbf16>
    %21 = tpu.iota {dimensions = array<i32: 0>} : vector<34x1x1xi32>
    %c0_i32 = arith.constant 0 : i32
    %22 = vector.broadcast %c0_i32 : i32 to vector<34x1x1xi32>
    %23 = arith.cmpi eq, %21, %22 : vector<34x1x1xi32>
    %c0_i32_5 = arith.constant 0 : i32
    %24 = arith.cmpi eq, %arg1, %c0_i32_5 : i32
    %25 = vector.broadcast %24 : i1 to vector<34x1x1xi1>
    %26 = arith.andi %23, %25 : vector<34x1x1xi1>
    %c33_i32 = arith.constant 33 : i32
    %27 = vector.broadcast %c33_i32 : i32 to vector<34x1x1xi32>
    %28 = arith.cmpi eq, %21, %27 : vector<34x1x1xi32>
    %c0_i32_6 = arith.constant 0 : i32
    %29 = arith.cmpi eq, %arg1, %c0_i32_6 : i32
    %30 = vector.broadcast %29 : i1 to vector<34x1x1xi1>
    %31 = arith.andi %28, %30 : vector<34x1x1xi1>
    %32 = arith.ori %26, %31 : vector<34x1x1xi1>
    %cst_7 = arith.constant 0.000000e+00 : f32
    %33 = arith.truncf %cst_7 : f32 to bf16
    %34 = vector.shape_cast %32 : vector<34x1x1xi1> to vector<34x1x1xi1>
    %35 = vector.broadcast %34 : vector<34x1x1xi1> to vector<34x18x4xi1>
    %36 = vector.broadcast %33 : bf16 to vector<34x18x4xbf16>
    %37 = arith.select %35, %36, %20 : vector<34x18x4xi1>, vector<34x18x4xbf16>
    %38 = vector.extract_strided_slice %37 {offsets = [0, 0, 0], sizes = [34, 17, 4], strides = [1, 1, 1]} : vector<34x18x4xbf16> to vector<34x17x4xbf16>
    %39 = vector.extract_strided_slice %37 {offsets = [0, 1, 0], sizes = [34, 17, 4], strides = [1, 1, 1]} : vector<34x18x4xbf16> to vector<34x17x4xbf16>
    %40 = tpu.iota {dimensions = array<i32: 1>} : vector<1x17x1xi32>
    %c16_i32_8 = arith.constant 16 : i32
    %41 = vector.broadcast %c16_i32_8 : i32 to vector<1x17x1xi32>
    %42 = arith.cmpi eq, %40, %41 : vector<1x17x1xi32>
    %cst_9 = arith.constant 2.500000e-01 : bf16
    %43 = vector.broadcast %cst_9 : bf16 to vector<34x17x4xbf16>
    %44 = arith.mulf %43, %38 : vector<34x17x4xbf16>
    %cst_10 = arith.constant 7.500000e-01 : bf16
    %45 = vector.broadcast %cst_10 : bf16 to vector<34x17x4xbf16>
    %46 = arith.mulf %45, %39 : vector<34x17x4xbf16>
    %47 = arith.addf %44, %46 : vector<34x17x4xbf16>
    %cst_11 = arith.constant 0.000000e+00 : f32
    %48 = arith.truncf %cst_11 : f32 to bf16
    %49 = vector.shape_cast %42 : vector<1x17x1xi1> to vector<1x17x1xi1>
    %50 = vector.broadcast %49 : vector<1x17x1xi1> to vector<34x17x4xi1>
    %51 = vector.broadcast %48 : bf16 to vector<34x17x4xbf16>
    %52 = arith.select %50, %51, %47 : vector<34x17x4xi1>, vector<34x17x4xbf16>
    %c0_i32_12 = arith.constant 0 : i32
    %53 = vector.broadcast %c0_i32_12 : i32 to vector<1x17x1xi32>
    %54 = arith.cmpi eq, %40, %53 : vector<1x17x1xi32>
    %cst_13 = arith.constant 7.500000e-01 : bf16
    %55 = vector.broadcast %cst_13 : bf16 to vector<34x17x4xbf16>
    %56 = arith.mulf %55, %38 : vector<34x17x4xbf16>
    %cst_14 = arith.constant 2.500000e-01 : bf16
    %57 = vector.broadcast %cst_14 : bf16 to vector<34x17x4xbf16>
    %58 = arith.mulf %57, %39 : vector<34x17x4xbf16>
    %59 = arith.addf %56, %58 : vector<34x17x4xbf16>
    %cst_15 = arith.constant 0.000000e+00 : f32
    %60 = arith.truncf %cst_15 : f32 to bf16
    %61 = vector.shape_cast %54 : vector<1x17x1xi1> to vector<1x17x1xi1>
    %62 = vector.broadcast %61 : vector<1x17x1xi1> to vector<34x17x4xi1>
    %63 = vector.broadcast %60 : bf16 to vector<34x17x4xbf16>
    %64 = arith.select %62, %63, %59 : vector<34x17x4xi1>, vector<34x17x4xbf16>
    %65 = vector.extract_strided_slice %64 {offsets = [0, 0, 0], sizes = [34, 16, 4], strides = [1, 1, 1]} : vector<34x17x4xbf16> to vector<34x16x4xbf16>
    %66 = vector.extract_strided_slice %52 {offsets = [0, 0, 0], sizes = [34, 16, 4], strides = [1, 1, 1]} : vector<34x17x4xbf16> to vector<34x16x4xbf16>
    %67 = vector.extract_strided_slice %64 {offsets = [0, 1, 0], sizes = [34, 16, 4], strides = [1, 1, 1]} : vector<34x17x4xbf16> to vector<34x16x4xbf16>
    %68 = vector.extract_strided_slice %52 {offsets = [0, 1, 0], sizes = [34, 16, 4], strides = [1, 1, 1]} : vector<34x17x4xbf16> to vector<34x16x4xbf16>
    %69 = vector.extract_strided_slice %65 {offsets = [0, 0, 0], sizes = [32, 16, 4], strides = [1, 1, 1]} : vector<34x16x4xbf16> to vector<32x16x4xbf16>
    %70 = vector.extract_strided_slice %66 {offsets = [0, 0, 0], sizes = [32, 16, 4], strides = [1, 1, 1]} : vector<34x16x4xbf16> to vector<32x16x4xbf16>
    %71 = vector.extract_strided_slice %67 {offsets = [0, 0, 0], sizes = [32, 16, 4], strides = [1, 1, 1]} : vector<34x16x4xbf16> to vector<32x16x4xbf16>
    %72 = vector.extract_strided_slice %68 {offsets = [0, 0, 0], sizes = [32, 16, 4], strides = [1, 1, 1]} : vector<34x16x4xbf16> to vector<32x16x4xbf16>
    %73 = vector.extract_strided_slice %65 {offsets = [1, 0, 0], sizes = [32, 16, 4], strides = [1, 1, 1]} : vector<34x16x4xbf16> to vector<32x16x4xbf16>
    %74 = vector.extract_strided_slice %66 {offsets = [1, 0, 0], sizes = [32, 16, 4], strides = [1, 1, 1]} : vector<34x16x4xbf16> to vector<32x16x4xbf16>
    %75 = vector.extract_strided_slice %67 {offsets = [1, 0, 0], sizes = [32, 16, 4], strides = [1, 1, 1]} : vector<34x16x4xbf16> to vector<32x16x4xbf16>
    %76 = vector.extract_strided_slice %68 {offsets = [1, 0, 0], sizes = [32, 16, 4], strides = [1, 1, 1]} : vector<34x16x4xbf16> to vector<32x16x4xbf16>
    %77 = vector.extract_strided_slice %65 {offsets = [2, 0, 0], sizes = [32, 16, 4], strides = [1, 1, 1]} : vector<34x16x4xbf16> to vector<32x16x4xbf16>
    %78 = vector.extract_strided_slice %66 {offsets = [2, 0, 0], sizes = [32, 16, 4], strides = [1, 1, 1]} : vector<34x16x4xbf16> to vector<32x16x4xbf16>
    %79 = vector.extract_strided_slice %67 {offsets = [2, 0, 0], sizes = [32, 16, 4], strides = [1, 1, 1]} : vector<34x16x4xbf16> to vector<32x16x4xbf16>
    %80 = vector.extract_strided_slice %68 {offsets = [2, 0, 0], sizes = [32, 16, 4], strides = [1, 1, 1]} : vector<34x16x4xbf16> to vector<32x16x4xbf16>
    %81 = tpu.concatenate %69, %70, %71, %72, %73, %74, %75, %76, %77, %78, %79, %80 in 2 : vector<32x16x4xbf16>, vector<32x16x4xbf16>, vector<32x16x4xbf16>, vector<32x16x4xbf16>, vector<32x16x4xbf16>, vector<32x16x4xbf16>, vector<32x16x4xbf16>, vector<32x16x4xbf16>, vector<32x16x4xbf16>, vector<32x16x4xbf16>, vector<32x16x4xbf16>, vector<32x16x4xbf16> -> vector<32x16x48xbf16>
    %82 = vector.shape_cast %81 : vector<32x16x48xbf16> to vector<512x48xbf16>
    %c0_16 = arith.constant 0 : index
    %c0_17 = arith.constant 0 : index
    %83 = vector.load %arg3[%c0_16, %c0_17] : memref<48x16xbf16, #tpu.memory_space<vmem>>, vector<48x16xbf16>
    %cst_18 = arith.constant dense<0.000000e+00> : vector<512x16xf32>
    %84 = tpu.matmul %82, %83, %cst_18 {dimension_numbers = #tpu.dot_dimension_numbers<[1], [0], [0], [1], [0, 0, 1, 1], [], []>} : vector<512x48xbf16>, vector<48x16xbf16>, vector<512x16xf32> -> vector<512x16xf32>
    %c0_19 = arith.constant 0 : index
    %c0_20 = arith.constant 0 : index
    %85 = vector.load %arg4[%c0_19, %c0_20] : memref<1x16xf32, #tpu.memory_space<vmem>>, vector<1x16xf32>
    %86 = vector.broadcast %85 : vector<1x16xf32> to vector<512x16xf32>
    %87 = arith.mulf %84, %86 : vector<512x16xf32>
    %c0_21 = arith.constant 0 : index
    %c0_22 = arith.constant 0 : index
    %88 = vector.load %arg5[%c0_21, %c0_22] : memref<1x16xf32, #tpu.memory_space<vmem>>, vector<1x16xf32>
    %89 = vector.broadcast %88 : vector<1x16xf32> to vector<512x16xf32>
    %90 = arith.addf %87, %89 : vector<512x16xf32>
    %c0_23 = arith.constant 0 : index
    %91 = memref.load %arg6[%c0_23] : memref<1xf32, #tpu.memory_space<smem>>
    %cst_24 = arith.constant 0.000000e+00 : f32
    %92 = vector.broadcast %cst_24 : f32 to vector<512x16xf32>
    %93 = arith.cmpf ogt, %90, %92 : vector<512x16xf32>
    %94 = vector.broadcast %91 : f32 to vector<512x16xf32>
    %95 = arith.mulf %94, %90 : vector<512x16xf32>
    %96 = arith.select %93, %90, %95 : vector<512x16xi1>, vector<512x16xf32>
    %97 = arith.truncf %96 : vector<512x16xf32> to vector<512x16xbf16>
    %c0_25 = arith.constant 0 : index
    %c0_26 = arith.constant 0 : index
    %c0_27 = arith.constant 0 : index
    %98 = vector.load %arg7[%c0_25, %c0_26, %c0_27] : memref<1x512x16xbf16, #tpu.memory_space<vmem>>, vector<1x512x16xbf16>
    %99 = vector.shape_cast %98 : vector<1x512x16xbf16> to vector<512x16xbf16>
    %100 = vector.shape_cast %97 : vector<512x16xbf16> to vector<1x512x16xbf16>
    tpu.vector_store %arg7[%c0_25, %c0_26, %c0_27], %100 {strides = array<i32>} : memref<1x512x16xbf16, #tpu.memory_space<vmem>>, vector<1x512x16xbf16>,
    return
  }
  func.func @transform_0(%arg0: i32, %arg1: i32) -> (i32, i32, i32, i32) {
    %c0_i32 = arith.constant 0 : i32
    %c0_i32_0 = arith.constant 0 : i32
    %c0_i32_1 = arith.constant 0 : i32
    %c0_i32_2 = arith.constant 0 : i32
    return %arg0, %c0_i32, %c0_i32_0, %c0_i32_1 : i32, i32, i32, i32
  }
  func.func @transform_1(%arg0: i32, %arg1: i32) -> (i32, i32) {
    %c0_i32 = arith.constant 0 : i32
    %c0_i32_0 = arith.constant 0 : i32
    %c0_i32_1 = arith.constant 0 : i32
    return %c0_i32, %c0_i32_0 : i32, i32
  }
  func.func @transform_2(%arg0: i32, %arg1: i32) -> (i32, i32) {
    %c0_i32 = arith.constant 0 : i32
    %c0_i32_0 = arith.constant 0 : i32
    %c0_i32_1 = arith.constant 0 : i32
    return %c0_i32, %c0_i32_0 : i32, i32
  }
  func.func @transform_3(%arg0: i32, %arg1: i32) -> (i32, i32) {
    %c0_i32 = arith.constant 0 : i32
    %c0_i32_0 = arith.constant 0 : i32
    %c0_i32_1 = arith.constant 0 : i32
    return %c0_i32, %c0_i32_0 : i32, i32
  }
  func.func @transform_4(%arg0: i32, %arg1: i32) -> i32 {
    %c0_i32 = arith.constant 0 : i32
    %c0_i32_0 = arith.constant 0 : i32
    return %c0_i32 : i32
  }
  func.func @transform_5(%arg0: i32, %arg1: i32) -> (i32, i32, i32) {
    %c0_i32 = arith.constant 0 : i32
    %c0_i32_0 = arith.constant 0 : i32
    return %arg0, %arg1, %c0_i32 : i32, i32, i32
  }
}

</mosaic_0001>

<bundles_post_ra>
// kernel: psp_upsample.1
= control target key start
LH: loop header
LB: loop body
LE: loop exit
PB: predicated region body
PF: predicated region fallthrough
CT: control target
= control target key end

     0   :  { %s7883_s20 = smov 0   ;;  %s7885_s21 = smov 0   ;;  %s12835_s0 = inlined_call_operand.vmem [shape: bf16[2,18,18,4], index: 0, kind: input, shape index: {}]   ;;  %s12836_s1 = inlined_call_operand.vmem [shape: bf16[48,16], index: 1, kind: input, shape index: {}]   ;;  %s12837_s2 = inlined_call_operand.vmem [shape: f32[1,16], index: 2, kind: input, shape index: {}]   ;;  %s12838_s3 = inlined_call_operand.vmem [shape: f32[1,16], index: 3, kind: input, shape index: {}]   ;;  %s12839_s4 = inlined_call_operand.<no memory space> [shape: f32[1], index: 4, kind: input, shape index: {}]   ;;  %s12840_s5 = inlined_call_operand.vmem [shape: bf16[2,512,16], index: 5, kind: output, shape index: {}]  }
   0x1   :  { %10 = sst [smem:[#allocation2]] %s12839_s4  ;;  %s7887_s22 = smov 0  }
   0x2 LB: > { %s28_s4 = sadd.s32 1, %s7830_s21  ;;  %p7281_p0 = scmp.ge.s32.totalorder %s7834_s22, 1  ;;  %s7834_s22 = sphi %s7887_s22, %s16_s22   ;;  %s7830_s21 = sphi %s7885_s21, %s14489_s21   ;;  %s7826_s20 = sphi %s7883_s20, %s14488_s20  }
   0x3   : > { %p30_p1 = scmp.ge.s32.totalorder %s28_s4, 2  ;;  %p202_p2 = scmp.lt.s32.totalorder %s7834_s22, 3 }
   0x5   : > { %s14491_s4 = smov (%p30_p1, %s28_s4), 0  ;;  %p203_p3 = pnand %p7281_p0, %p202_p2 }
   0x7   : > { %206 = sbr.rel (%p203_p3) target bundleno = 1485 (0x5cd), region = 40 }
   0xc   : > { %v7836_v0 = vmov 1061175104   ;;  %p234_p4 = scmp.lt.s32.totalorder %s7826_s20, 1  ;;  %vm839_vm0 = vsmask.f32 3328  ;;  %vm7838_vm3 = vmmov 0  }
   0xd   : > { %v7901_v1 = vmul.bf16 0, %v7836_v0  ;;  %vm840_vm1 = vsmask.f32 7440  ;;  %v7837_v7 = vmov 1048592000   ;;  %vm7938_vm4 = vmpackc.low %vm7838_vm3, %vm7838_vm3  ;;  %v13343_v17 = vmov 0 }
   0xe   : > { %s14493_s20 = smov (!%p234_p4, %s7826_s20), 1  ;;  %v7910_v8 = vmul.bf16 0, %v7837_v7  ;;  %vm7912_vm2 = vmor %vm839_vm0, %vm840_vm1  ;;  %v13344_v17 = vsel %vm7938_vm4, 4294967295, %v13343_v17  ;;  %s7839_s27 = smov 4   ;;  %vm3859_vm7 = vsmask.f32 7424 }
   0xf   : > { %v12841_v2 = vshrl.u32 %v7901_v1, 16  ;;  %v846_v3 = vshll.u32 %v7901_v1, 16  ;;  %s7768_s23 = smul.u32 216, %s14493_s20  ;;  %13345 = vst [vmem:[#allocation3_spill] sm:$0xff] %v13344_v17  ;;  %s7840_s28 = smov 8   ;;  %vm5444_vm10 = vcmask 31744  }
  0x10   : > { %s7841_s29 = smov 12   ;;  %s7842_s30 = smov 16   ;;  %vm5509_vm11 = vcmask 64512   ;;  %vm5574_vm12 = vcmask 97280   ;;  %vm5639_vm13 = vcmask 130048   ;;  %vm5704_vm14 = vcmask 162816  }
  0x11   : > { %v845_v4 = vrot.slane %v12841_v2, 4  ;;  %v848_v5 = vrot.slane %v846_v3, 5  ;;  %s7919_s26 = scalar_lea.vmem %s12835_s0, %s7768_s23  ;;  %s7843_s6 = smov 20   ;;  %vm5769_vm15 = vcmask 195584   ;;  %vm5834_vm0 = vcmask 228352  }
  0x12   : > { %v7922_v11 = vld [vmem:[%s7919_s26 + $0xc] sm:$0xf]  ;;  %v7925_v12 = vld [vmem:[%s7919_s26 + $0x10] sm:$0xf]  ;;  %v7928_v13 = vld [vmem:[%s7919_s26 + $0x14] sm:$0x1] }
  0x13   : > { %v849_v6 = vor.u32 %v848_v5, %v845_v4  ;;  %v7931_v14 = vld [vmem:[%s7919_s26 + $0x18] sm:$0xf]  ;;  %v7934_v15 = vld [vmem:[%s7919_s26 + $0x1c] sm:$0xf]  ;;  %v7943_v18 = vld [vmem:[%s7919_s26 + $0x20] sm:$0x1] }
  0x14   : > { %v316_v19 = vmul.bf16 1048592000, %v7931_v14  ;;  %v12846_v20 = vmul.bf16 1048592000, %v7934_v15  ;;  %v12845_v22 = vmul.bf16 1048592000, %v7943_v18 }
  0x15   : > { %v850_v10 = vrot.slane %v849_v6, 4  ;;  %v361_v23 = vmul.bf16 1061175104, %v7922_v11  ;;  %v362_v24 = vmul.bf16 1061175104, %v7925_v12  ;;  %s7844_s7 = smov 24  }
  0x16   : > { %v363_v25 = vmul.bf16 1061175104, %v7928_v13  ;;  %v256_v26 = vld [vmem:[%s7919_s26] sm:$0xf]  ;;  %v257_v27 = vld [vmem:[%s7919_s26 + $0x4] sm:$0xf] }
  0x17   : > { %v855_v16 = vsel %vm7912_vm2, %v850_v10, %v848_v5  ;;  %v472_v29 = vadd.bf16 %v361_v23, %v316_v19  ;;  %v473_v30 = vadd.bf16 %v362_v24, %v12846_v20  ;;  %v258_v31 = vld [vmem:[%s7919_s26 + $0x8] sm:$0x1]  ;;  %v310_v32 = vmul.bf16 1048592000, %v256_v26  ;;  %s7845_s8 = smov 28   ;;  %s7846_s9 = smov 32  }
  0x18   : > { %v1896_v21 = vadd.bf16 %v855_v16, %v7910_v8  ;;  %v7965_v34 = vadd.bf16 %v363_v25, %v12845_v22  ;;  %v311_v35 = vmul.bf16 1048592000, %v257_v27  ;;  %v312_v37 = vmul.bf16 1048592000, %v258_v31  ;;  %s7847_s12 = smov 36   ;;  %s7848_s17 = smov 40  }
  0x19   : > { %v7967_v36 = vmul.bf16 1061175104, %v472_v29  ;;  %v7971_v38 = vmul.bf16 1061175104, %v473_v30  ;;  %v412_v42 = vadd.bf16 %v361_v23, %v310_v32  ;;  %v641_v52 = vmul.bf16 1048592000, %v472_v29 }
  0x1a   : > { %v2007_v28 = vsel %vm7938_vm4, 0, %v1896_v21  ;;  %v7974_v39 = vmul.bf16 1061175104, %v7965_v34  ;;  %v413_v46 = vadd.bf16 %v362_v24, %v311_v35  ;;  %v7981_v49 = vadd.bf16 %v363_v25, %v312_v37  ;;  %s7849_s18 = smov 44   ;;  %s12211_s19 = sld [smem:[#allocation2]] }
  0x1b   : > { %v7961_v33 = vcombine.low %v2007_v28, %v2007_v28  ;;  %v899_v40 = vshrl.u32 %v7967_v36, 16  ;;  %v902_v41 = vshll.u32 %v7967_v36, 16  ;;  %v908_v43 = vshll.u32 %v7971_v38, 16 }
  0x1c   : > { %v912_v44 = vshrl.u32 %v7971_v38, 16  ;;  %v918_v45 = vshll.u32 %v7974_v39, 16  ;;  %v642_v53 = vmul.bf16 1048592000, %v473_v30  ;;  %v7983_v57 = vmul.bf16 1061175104, %v412_v42 }
  0x1d   : > { %13346 = vst [vmem:[#allocation4_spill] sm:$0xff] %v7961_v33  ;;  %3699 = vrot.lane.b32.xlu0 %v7961_v33, %s7839_s27  ;;  %v901_v47 = vrot.slane %v899_v40, 4  ;;  %v904_v48 = vrot.slane %v902_v41, 5  ;;  %v910_v50 = vrot.slane %v908_v43, 5  ;;  %v7985_v58 = vmul.bf16 1061175104, %v413_v46 }
  0x1e   : > { %v914_v51 = vrot.slane %v912_v44, 4  ;;  %v920_v56 = vrot.slane %v918_v45, 5  ;;  %v2169_v60 = vshrl.u32 %v641_v52, 16  ;;  %v2172_v61 = vshll.u32 %v641_v52, 16 }
  0x1f   : > { %v905_v54 = vor.u32 %v904_v48, %v901_v47  ;;  %v7988_v62 = vmul.bf16 1061175104, %v7981_v49  ;;  %v871_v0 = vshrl.u32 %v7983_v57, 16  ;;  %v874_v3 = vshll.u32 %v7983_v57, 16 }
  0x20   : > { %v915_v55 = vor.u32 %v914_v51, %v910_v50  ;;  %v880_v4 = vshll.u32 %v7985_v58, 16  ;;  %v2178_v6 = vshll.u32 %v642_v53, 16  ;;  %v884_v7 = vshrl.u32 %v7985_v58, 16 }
  0x21   : > { %v906_v59 = vrot.slane %v905_v54, 4  ;;  %v890_v10 = vshll.u32 %v7988_v62, 16  ;;  %v873_v23 = vrot.slane %v871_v0, 4  ;;  %v876_v24 = vrot.slane %v874_v3, 5 }
  0x22   : > { %v916_v63 = vrot.slane %v915_v55, 4  ;;  %v2182_v26 = vshrl.u32 %v642_v53, 16  ;;  %v882_v27 = vrot.slane %v880_v4, 5  ;;  %v886_v28 = vrot.slane %v884_v7, 4 }
  0x23   : > { %v911_v5 = vsel %vm7912_vm2, %v906_v59, %v910_v50  ;;  %v2171_v30 = vrot.slane %v2169_v60, 4  ;;  %v2174_v31 = vrot.slane %v2172_v61, 5  ;;  %v877_v32 = vor.u32 %v876_v24, %v873_v23 }
  0x24   : > { %v921_v16 = vsel %vm7912_vm2, %v916_v63, %v920_v56  ;;  %v1902_v21 = vadd.bf16 %v911_v5, %v641_v52  ;;  %v638_v37 = vmul.bf16 1048592000, %v412_v42  ;;  %v887_v40 = vor.u32 %v886_v28, %v882_v27 }
  0x25   : > { %v1903_v25 = vadd.bf16 %v921_v16, %v642_v53  ;;  %v892_v41 = vrot.slane %v890_v10, 5  ;;  %v8003_v43 = vrot.slane %v2178_v6, 5  ;;  %v639_v45 = vmul.bf16 1048592000, %v413_v46  ;;  %v8030_v16 = vld [vmem:[%s7919_s26 + $0x28] sm:$0xf] }
  0x26   : > { %v2013_v29 = vsel %vm7938_vm4, 0, %v1902_v21  ;;  %v878_v47 = vrot.slane %v877_v32, 4  ;;  %v2184_v48 = vrot.slane %v2182_v26, 4  ;;  %v888_v50 = vrot.slane %v887_v40, 4 }
  0x27   : > { %v2014_v35 = vsel %vm7938_vm4, 0, %v1903_v25  ;;  %v2141_v51 = vshrl.u32 %v638_v37, 16  ;;  %v313_v52 = vmul.bf16 1048592000, %v7922_v11  ;;  %v2144_v53 = vshll.u32 %v638_v37, 16 }
  0x28   : > { %v8005_v44 = vcombine.low %v2013_v29, %v2014_v35  ;;  %v883_v42 = vsel %vm7912_vm2, %v878_v47, %v882_v27  ;;  %v314_v54 = vmul.bf16 1048592000, %v7925_v12  ;;  %v315_v55 = vmul.bf16 1048592000, %v7928_v13  ;;  %v8018_v11 = vld [vmem:[%s7919_s26 + $0x24] sm:$0xf] }
  0x29   : > { %v893_v46 = vsel %vm7912_vm2, %v888_v50, %v892_v41  ;;  %v1899_v56 = vadd.bf16 %v883_v42, %v638_v37  ;;  %v2150_v59 = vshll.u32 %v639_v45, 16  ;;  %v364_v60 = vmul.bf16 1061175104, %v7931_v14  ;;  %v8061_v47 = vld [vmem:[%s7919_s26 + $0x2c] sm:$0x1] }
  0x2a   : > { %13347 = vst [vmem:[#allocation5_spill] sm:$0xff] %v8005_v44  ;;  %3703 = vrot.lane.b32.xlu1 %v8005_v44, %s7839_s27  ;;  %v1900_v61 = vadd.bf16 %v893_v46, %v639_v45  ;;  %v2154_v63 = vshrl.u32 %v639_v45, 16  ;;  %v365_v0 = vmul.bf16 1061175104, %v7934_v15  ;;  %v366_v3 = vmul.bf16 1061175104, %v7943_v18 }
  0x2b   : > { %v2175_v4 = vor.u32 %v2174_v31, %v2171_v30  ;;  %v2185_v12 = vor.u32 %v2184_v48, %v8003_v43  ;;  %v2010_v13 = vsel %vm7938_vm4, 0, %v1899_v56  ;;  %v415_v5 = vadd.bf16 %v364_v60, %v313_v52 }
  0x2c   : > { %v2011_v6 = vsel %vm7938_vm4, 0, %v1900_v61  ;;  %v416_v7 = vadd.bf16 %v365_v0, %v314_v54  ;;  %v8027_v10 = vadd.bf16 %v366_v3, %v315_v55  ;;  %v12844_v21 = vmul.bf16 1048592000, %v8018_v11 }
  0x2d   : > { %v8033_v23 = vrot.slane %v2141_v51, 4  ;;  %v8035_v24 = vrot.slane %v2144_v53, 5  ;;  %v8037_v25 = vcombine.low %v2010_v13, %v2011_v6  ;;  %v8039_v26 = vmul.bf16 1061175104, %v415_v5 }
  0x2e   : > { %v8041_v27 = vrot.slane %v2150_v59, 5  ;;  %v8043_v28 = vrot.slane %v2154_v63, 4  ;;  %v8045_v29 = vmul.bf16 1061175104, %v416_v7  ;;  %v8048_v30 = vmul.bf16 1061175104, %v8027_v10 }
  0x2f   : > { %13348 = vst [vmem:[#allocation6_spill] sm:$0xff] %v8037_v25  ;;  %v8050_v31 = vrot.slane %v2175_v4, 4  ;;  %3701 = vrot.lane.b32.xlu0 %v8037_v25, %s7839_s27  ;;  %v927_v32 = vshrl.u32 %v8039_v26, 16  ;;  %v930_v35 = vshll.u32 %v8039_v26, 16  ;;  %v12843_v37 = vmul.bf16 1048592000, %v8030_v16 }
  0x30   : > { %v936_v40 = vshll.u32 %v8045_v29, 16  ;;  %v940_v41 = vshrl.u32 %v8045_v29, 16  ;;  %v946_v45 = vshll.u32 %v8048_v30, 16  ;;  %v475_v48 = vadd.bf16 %v364_v60, %v12844_v21 }
  0x31   : > { %v8065_v50 = vrot.slane %v2185_v12, 4  ;;  %v644_v51 = vmul.bf16 1048592000, %v415_v5  ;;  %v929_v52 = vrot.slane %v927_v32, 4  ;;  %v932_v42 = vrot.slane %v930_v35, 5 }
  0x32   : > { %v2147_v53 = vor.u32 %v8035_v24, %v8033_v23  ;;  %v938_v55 = vrot.slane %v936_v40, 5  ;;  %v942_v46 = vrot.slane %v940_v41, 4  ;;  %v645_v56 = vmul.bf16 1048592000, %v416_v7 }
  0x33   : > { %v933_v59 = vor.u32 %v932_v42, %v929_v52  ;;  %v2197_v61 = vshrl.u32 %v644_v51, 16  ;;  %v12842_v63 = vmul.bf16 1048592000, %v8061_v47  ;;  %v948_v60 = vrot.slane %v946_v45, 5 }
  0x34   : > { %v943_v4 = vor.u32 %v942_v46, %v938_v55  ;;  %v476_v12 = vadd.bf16 %v365_v0, %v12843_v37  ;;  %v8074_v13 = vmul.bf16 1061175104, %v475_v48  ;;  %v2200_v6 = vshll.u32 %v644_v51, 16 }
  0x35   : > { %v934_v5 = vrot.slane %v933_v59, 4  ;;  %v2206_v23 = vshll.u32 %v645_v56, 16  ;;  %v8078_v24 = vadd.bf16 %v366_v3, %v12842_v63  ;;  %v2210_v7 = vshrl.u32 %v645_v56, 16 }
  0x36   : > { %13349 = vst [vmem:[#allocation7_spill] sm:$0xff] %v8074_v13  ;;  %v944_v32 = vrot.slane %v943_v4, 4  ;;  %v8080_v35 = vmul.bf16 1061175104, %v476_v12  ;;  %v955_v40 = vshrl.u32 %v8074_v13, 16  ;;  %v958_v52 = vshll.u32 %v8074_v13, 16 }
  0x37   : > { %v939_v41 = vsel %vm7912_vm2, %v934_v5, %v938_v55  ;;  %v647_v45 = vmul.bf16 1048592000, %v475_v48  ;;  %v8086_v0 = vmul.bf16 1061175104, %v8078_v24  ;;  %v648_v2 = vmul.bf16 1048592000, %v476_v12 }
  0x38   : > { %13350 = vst [vmem:[#allocation8_spill] sm:$0xff] %v8080_v35  ;;  %v949_v42 = vsel %vm7912_vm2, %v944_v32, %v948_v60  ;;  %v1905_v3 = vadd.bf16 %v939_v41, %v644_v51  ;;  %v957_v46 = vrot.slane %v955_v40, 4  ;;  %v964_v59 = vshll.u32 %v8080_v35, 16 }
  0x39   : > { %13351 = vst [vmem:[#allocation9_spill] sm:$0xff] %v8086_v0  ;;  %v1906_v4 = vadd.bf16 %v949_v42, %v645_v56  ;;  %v960_v63 = vrot.slane %v958_v52, 5  ;;  %v968_v37 = vshrl.u32 %v8080_v35, 16  ;;  %v974_v5 = vshll.u32 %v8086_v0, 16 }
  0x3a   : > { %v2016_v48 = vsel %vm7938_vm4, 0, %v1905_v3  ;;  %v966_v55 = vrot.slane %v964_v59, 5  ;;  %v2225_v21 = vshrl.u32 %v647_v45, 16  ;;  %v2228_v32 = vshll.u32 %v647_v45, 16 }
  0x3b   : > { %v2017_v22 = vsel %vm7938_vm4, 0, %v1906_v4  ;;  %v961_v60 = vor.u32 %v960_v63, %v957_v46  ;;  %v970_v51 = vrot.slane %v968_v37, 4  ;;  %v2199_v40 = vrot.slane %v2197_v61, 4 }
  0x3c   : > { %v2202_v41 = vrot.slane %v2200_v6, 5  ;;  %v8098_v56 = vcombine.low %v2016_v48, %v2017_v22  ;;  %v976_v12 = vrot.slane %v974_v5, 5  ;;  %v2234_v54 = vshll.u32 %v648_v2, 16 }
  0x3d   : > { %v962_v52 = vrot.slane %v961_v60, 4  ;;  %v971_v42 = vor.u32 %v970_v51, %v966_v55  ;;  %v2238_v3 = vshrl.u32 %v648_v2, 16  ;;  %v8100_v59 = vrot.slane %v2206_v23, 5  ;;  %v8114_v60 = vld [vmem:[%s7919_s26 + $0x30] sm:$0xf] }
  0x3e   : > { %13352 = vst [vmem:[#allocation10_spill] sm:$0xff] %v8098_v56  ;;  %v2212_v20 = vrot.slane %v2210_v7, 4  ;;  %3705 = vrot.lane.b32.xlu1 %v8098_v56, %s7839_s27  ;;  %v367_v63 = vmul.bf16 1061175104, %v8018_v11  ;;  %v368_v37 = vmul.bf16 1061175104, %v8030_v16 }
  0x3f   : > { %v967_v22 = vsel %vm7912_vm2, %v962_v52, %v966_v55  ;;  %v972_v61 = vrot.slane %v971_v42, 4  ;;  %v2227_v6 = vrot.slane %v2225_v21, 4  ;;  %v2230_v46 = vrot.slane %v2228_v32, 5 }
  0x40   : > { %v1908_v4 = vadd.bf16 %v967_v22, %v647_v45  ;;  %v369_v48 = vmul.bf16 1061175104, %v8061_v47  ;;  %v418_v23 = vadd.bf16 %v367_v63, %v316_v19  ;;  %v13353_v7 = vmul.bf16 1048592000, %v7934_v15 }
  0x41   : > { %v8116_v51 = vrot.slane %v2147_v53, 4  ;;  %v977_v56 = vsel %vm7912_vm2, %v972_v61, %v976_v12  ;;  %v8120_v55 = vrot.slane %v2234_v54, 5  ;;  %v2240_v21 = vrot.slane %v2238_v3, 4 }
  0x42   : > { %v419_v5 = vadd.bf16 %v368_v37, %v13353_v7  ;;  %v13355_v45 = vor.u32 %v8043_v28, %v8041_v27  ;;  %v1909_v14 = vadd.bf16 %v977_v56, %v648_v2  ;;  %v2019_v15 = vsel %vm7938_vm4, 0, %v1908_v4 }
  0x43   : > { %13354 = vst [vmem:[#allocation11_spill] sm:$0xff] %v8120_v55  ;;  %v13356_v19 = vmul.bf16 1048592000, %v7943_v18  ;;  %v2203_v52 = vor.u32 %v2202_v41, %v2199_v40  ;;  %v2213_v12 = vor.u32 %v2212_v20, %v8100_v59  ;;  %v8134_v54 = vmul.bf16 1061175104, %v418_v23 }
  0x44   : > { %v8125_v32 = vrot.slane %v13355_v45, 4  ;;  %v12864_v42 = vmul.bf16 1048592000, %v8114_v60  ;;  %v2020_v28 = vsel %vm7938_vm4, 0, %v1909_v14  ;;  %v2231_v3 = vor.u32 %v2230_v46, %v2227_v6  ;;  %v8150_v41 = vld [vmem:[%s7919_s26 + $0x34] sm:$0xf] }
  0x45   : > { %v8131_v53 = vadd.bf16 %v369_v48, %v13356_v19  ;;  %13358 = vst [vmem:[#allocation13_spill] sm:$0xff] %v8134_v54  ;;  %v8139_v2 = vmul.bf16 1061175104, %v419_v5  ;;  %v2241_v18 = vor.u32 %v2240_v21, %v8120_v55  ;;  %v8145_v22 = vcombine.low %v2019_v15, %v2020_v28  ;;  %v8160_v14 = vld [vmem:[%s7919_s26 + $0x38] sm:$0x1] }
  0x46   : > { %v983_v20 = vshrl.u32 %v8134_v54, 16  ;;  %v986_v40 = vshll.u32 %v8134_v54, 16  ;;  %v650_v61 = vmul.bf16 1048592000, %v418_v23  ;;  %v8155_v7 = vrot.slane %v2203_v52, 4 }
  0x47   : > { %13357 = vst [vmem:[#allocation12_spill] sm:$0xff] %v8131_v53  ;;  %13359 = vst [vmem:[#allocation14_spill] sm:$0xff] %v8139_v2  ;;  %v8142_v56 = vmul.bf16 1061175104, %v8131_v53  ;;  %v992_v4 = vshll.u32 %v8139_v2, 16  ;;  %v996_v6 = vshrl.u32 %v8139_v2, 16  ;;  %3707 = vrot.lane.b32.xlu0 %v8145_v22, %s7839_s27  ;;  %v478_v15 = vadd.bf16 %v367_v63, %v12864_v42 }
  0x48   : > { %13361 = vst [vmem:[#allocation16_spill] sm:$0xff] %v8145_v22  ;;  %v985_v21 = vrot.slane %v983_v20, 4  ;;  %v988_v45 = vrot.slane %v986_v40, 5  ;;  %v2253_v28 = vshrl.u32 %v650_v61, 16  ;;  %v2256_v25 = vshll.u32 %v650_v61, 16 }
  0x49   : > { %13360 = vst [vmem:[#allocation15_spill] sm:$0xff] %v8142_v56  ;;  %v1002_v46 = vshll.u32 %v8142_v56, 16  ;;  %v994_v19 = vrot.slane %v992_v4, 5  ;;  %v998_v23 = vrot.slane %v996_v6, 4  ;;  %v8164_v44 = vrot.slane %v2213_v12, 4 }
  0x4a   : > { %v8166_v33 = vrot.slane %v2231_v3, 4  ;;  %v989_v52 = vor.u32 %v988_v45, %v985_v21  ;;  %v12863_v2 = vmul.bf16 1048592000, %v8150_v41  ;;  %v8169_v56 = vrot.slane %v2241_v18, 4 }
  0x4b   : > { %v999_v20 = vor.u32 %v998_v23, %v994_v19  ;;  %v1004_v40 = vrot.slane %v1002_v46, 5  ;;  %v12862_v22 = vmul.bf16 1048592000, %v8160_v14  ;;  %v651_v54 = vmul.bf16 1048592000, %v419_v5 }
  0x4c   : > { %13362 = vst [vmem:[#allocation17_spill] sm:$0xff] %v8166_v33  ;;  %13363 = vst [vmem:[#allocation18_spill] sm:$0xff] %v8169_v56  ;;  %v990_v35 = vrot.slane %v989_v52, 4  ;;  %v479_v63 = vadd.bf16 %v368_v37, %v12863_v2  ;;  %v8174_v4 = vmul.bf16 1061175104, %v478_v15  ;;  %v2255_v6 = vrot.slane %v2253_v28, 4 }
  0x4d   : > { %v1000_v12 = vrot.slane %v999_v20, 4  ;;  %v2258_v3 = vrot.slane %v2256_v25, 5  ;;  %v8178_v21 = vadd.bf16 %v369_v48, %v12862_v22  ;;  %v2262_v46 = vshll.u32 %v651_v54, 16 }
  0x4e   : > { %13364 = vst [vmem:[#allocation19_spill] sm:$0xff] %v8174_v4  ;;  %v995_v18 = vsel %vm7912_vm2, %v990_v35, %v994_v19  ;;  %v8182_v45 = vmul.bf16 1061175104, %v479_v63  ;;  %v1011_v5 = vshrl.u32 %v8174_v4, 16  ;;  %v2266_v52 = vshrl.u32 %v651_v54, 16 }
  0x4f   : > { %13365 = vst [vmem:[#allocation20_spill] sm:$0xff] %v8178_v21  ;;  %v1005_v37 = vsel %vm7912_vm2, %v1000_v12, %v1004_v40  ;;  %v1911_v23 = vadd.bf16 %v995_v18, %v650_v61  ;;  %v8188_v28 = vmul.bf16 1061175104, %v8178_v21  ;;  %v1014_v48 = vshll.u32 %v8174_v4, 16 }
  0x50   : > { %13366 = vst [vmem:[#allocation21_spill] sm:$0xff] %v8182_v45  ;;  %v1912_v25 = vadd.bf16 %v1005_v37, %v651_v54  ;;  %v1013_v20 = vrot.slane %v1011_v5, 4  ;;  %v1020_v22 = vshll.u32 %v8182_v45, 16  ;;  %v653_v19 = vmul.bf16 1048592000, %v478_v15 }
  0x51   : > { %13367 = vst [vmem:[#allocation22_spill] sm:$0xff] %v8188_v28  ;;  %v2022_v35 = vsel %vm7938_vm4, 0, %v1911_v23  ;;  %v1024_v2 = vshrl.u32 %v8182_v45, 16  ;;  %v1030_v42 = vshll.u32 %v8188_v28, 16  ;;  %v2259_v40 = vor.u32 %v2258_v3, %v2255_v6 }
  0x52   : > { %v2023_v61 = vsel %vm7938_vm4, 0, %v1912_v25  ;;  %v1016_v12 = vrot.slane %v1014_v48, 5  ;;  %v1022_v18 = vrot.slane %v1020_v22, 5  ;;  %v654_v5 = vmul.bf16 1048592000, %v479_v63 }
  0x53   : > { %v8198_v54 = vcombine.low %v2022_v35, %v2023_v61  ;;  %v1026_v37 = vrot.slane %v1024_v2, 4  ;;  %v2281_v4 = vshrl.u32 %v653_v19, 16  ;;  %v1032_v56 = vrot.slane %v1030_v42, 5 }
  0x54   : > { %v1017_v21 = vor.u32 %v1016_v12, %v1013_v20  ;;  %v2284_v23 = vshll.u32 %v653_v19, 16  ;;  %v370_v15 = vmul.bf16 1061175104, %v8114_v60  ;;  %v2290_v28 = vshll.u32 %v654_v5, 16 }
  0x55   : > { %13368 = vst [vmem:[#allocation23_spill] sm:$0xff] %v8198_v54  ;;  %3709 = vrot.lane.b32.xlu1 %v8198_v54, %s7839_s27  ;;  %v1027_v45 = vor.u32 %v1026_v37, %v1022_v18  ;;  %v371_v6 = vmul.bf16 1061175104, %v8150_v41  ;;  %v372_v22 = vmul.bf16 1061175104, %v8160_v14  ;;  %v8205_v3 = vrot.slane %v2262_v46, 5 }
  0x56   : > { %v8207_v63 = vrot.slane %v2266_v52, 4  ;;  %v1018_v2 = vrot.slane %v1017_v21, 4  ;;  %v13370_v42 = vmul.bf16 1048592000, %v8018_v11  ;;  %v8211_v20 = vrot.slane %v2259_v40, 4 }
  0x57   : > { %13369 = vst [vmem:[#allocation24_spill] sm:$0xff] %v8205_v3  ;;  %v1028_v48 = vrot.slane %v1027_v45, 4  ;;  %v13372_v35 = vmul.bf16 1048592000, %v8030_v16  ;;  %v13373_v12 = vmul.bf16 1048592000, %v8061_v47 }
  0x58   : > { %v421_v25 = vadd.bf16 %v370_v15, %v13370_v42  ;;  %13371 = vst [vmem:[#allocation25_spill] sm:$0xff] %v8211_v20  ;;  %v8220_v54 = vld [vmem:[%s7919_s26 + $0x3c] sm:$0xf]  ;;  %v1023_v46 = vsel %vm7912_vm2, %v1018_v2, %v1022_v18  ;;  %v8224_v52 = vrot.slane %v2281_v4, 4  ;;  %v8226_v21 = vrot.slane %v2284_v23, 5 }
  0x59   : > { %v422_v61 = vadd.bf16 %v371_v6, %v13372_v35  ;;  %v8217_v37 = vadd.bf16 %v372_v22, %v13373_v12  ;;  %v2294_v11 = vshrl.u32 %v654_v5, 16  ;;  %v1033_v45 = vsel %vm7912_vm2, %v1028_v48, %v1032_v56 }
  0x5a   : > { %v1914_v16 = vadd.bf16 %v1023_v46, %v653_v19  ;;  %v8230_v40 = vrot.slane %v2290_v28, 5  ;;  %v8232_v47 = vmul.bf16 1061175104, %v421_v25  ;;  %v1915_v42 = vadd.bf16 %v1033_v45, %v654_v5  ;;  %v8250_v46 = vld [vmem:[%s7919_s26 + $0x40] sm:$0xf] }
  0x5b   : > { %13374 = vst [vmem:[#allocation26_spill] sm:$0xff] %v8217_v37  ;;  %v8234_v35 = vmul.bf16 1061175104, %v422_v61  ;;  %v8237_v18 = vmul.bf16 1061175104, %v8217_v37  ;;  %v8252_v45 = vrot.slane %v2294_v11, 4 }
  0x5c   : > { %13375 = vst [vmem:[#allocation27_spill] sm:$0xff] %v8230_v40  ;;  %13376 = vst [vmem:[#allocation28_spill] sm:$0xff] %v8232_v47  ;;  %v2025_v23 = vsel %vm7938_vm4, 0, %v1914_v16  ;;  %v656_v2 = vmul.bf16 1048592000, %v421_v25  ;;  %v1039_v56 = vshrl.u32 %v8232_v47, 16 }
  0x5d   : > { %13377 = vst [vmem:[#allocation29_spill] sm:$0xff] %v8234_v35  ;;  %13378 = vst [vmem:[#allocation30_spill] sm:$0xff] %v8237_v18  ;;  %v1042_v28 = vshll.u32 %v8232_v47, 16  ;;  %v2026_v19 = vsel %vm7938_vm4, 0, %v1915_v42  ;;  %v1048_v5 = vshll.u32 %v8234_v35, 16  ;;  %v1052_v48 = vshrl.u32 %v8234_v35, 16 }
  0x5e   : > { %v1058_v12 = vshll.u32 %v8237_v18, 16  ;;  %v8254_v4 = vcombine.low %v2025_v23, %v2026_v19  ;;  %v1041_v25 = vrot.slane %v1039_v56, 4  ;;  %v8257_v37 = vld [vmem:[%s7919_s26 + $0x44] sm:$0x1]  ;;  %v657_v47 = vmul.bf16 1048592000, %v422_v61 }
  0x5f   : > { %v1044_v16 = vrot.slane %v1042_v28, 5  ;;  %v1050_v20 = vrot.slane %v1048_v5, 5  ;;  %v1054_v0 = vrot.slane %v1052_v48, 4  ;;  %v2309_v42 = vshrl.u32 %v656_v2, 16 }
  0x60   : > { %13379 = vst [vmem:[#allocation31_spill] sm:$0xff] %v8254_v4  ;;  %3711 = vrot.lane.b32.xlu0 %v8254_v4, %s7839_s27  ;;  %v1060_v53 = vrot.slane %v1058_v12, 5  ;;  %v2312_v18 = vshll.u32 %v656_v2, 16  ;;  %v12882_v13 = vmul.bf16 1048592000, %v8250_v46  ;;  %v2318_v33 = vshll.u32 %v657_v47, 16 }
  0x61   : > { %v1045_v35 = vor.u32 %v1044_v16, %v1041_v25  ;;  %v1055_v11 = vor.u32 %v1054_v0, %v1050_v20  ;;  %v12881_v23 = vmul.bf16 1048592000, %v8257_v37  ;;  %v13380_v56 = vmul.bf16 1048592000, %v8220_v54 }
  0x62   : > { %v2269_v61 = vor.u32 %v8207_v63, %v8205_v3  ;;  %v2287_v19 = vor.u32 %v8226_v21, %v8224_v52  ;;  %v482_v48 = vadd.bf16 %v371_v6, %v12882_v13  ;;  %v2297_v12 = vor.u32 %v8252_v45, %v8230_v40 }
  0x63   : > { %v481_v28 = vadd.bf16 %v370_v15, %v13380_v56  ;;  %v1046_v5 = vrot.slane %v1045_v35, 4  ;;  %v1056_v0 = vrot.slane %v1055_v11, 4  ;;  %v8273_v25 = vrot.slane %v2309_v42, 4 }
  0x64   : > { %v8277_v16 = vadd.bf16 %v372_v22, %v12881_v23  ;;  %v8281_v63 = vrot.slane %v2312_v18, 5  ;;  %v2322_v52 = vshrl.u32 %v657_v47, 16  ;;  %v8287_v45 = vrot.slane %v2318_v33, 5 }
  0x65   : > { %v1051_v15 = vsel %vm7912_vm2, %v1046_v5, %v1050_v20  ;;  %v8283_v21 = vmul.bf16 1061175104, %v481_v28  ;;  %v1061_v6 = vsel %vm7912_vm2, %v1056_v0, %v1060_v53  ;;  %v8289_v42 = vmul.bf16 1061175104, %v482_v48 }
  0x66   : > { %13381 = vst [vmem:[#allocation32_spill] sm:$0xff] %v8277_v16  ;;  %v1917_v35 = vadd.bf16 %v1051_v15, %v656_v2  ;;  %13383 = vst [vmem:[#allocation34_spill] sm:$0xff] %v8287_v45  ;;  %v1918_v11 = vadd.bf16 %v1061_v6, %v657_v47  ;;  %v659_v56 = vmul.bf16 1048592000, %v481_v28  ;;  %v8292_v22 = vmul.bf16 1061175104, %v8277_v16 }
  0x67   : > { %13382 = vst [vmem:[#allocation33_spill] sm:$0xff] %v8283_v21  ;;  %13384 = vst [vmem:[#allocation35_spill] sm:$0xff] %v8289_v42  ;;  %v1067_v20 = vshrl.u32 %v8283_v21, 16  ;;  %v1070_v5 = vshll.u32 %v8283_v21, 16  ;;  %v1076_v23 = vshll.u32 %v8289_v42, 16  ;;  %v1080_v53 = vshrl.u32 %v8289_v42, 16 }
  0x68   : > { %13385 = vst [vmem:[#allocation36_spill] sm:$0xff] %v8292_v22  ;;  %v2028_v18 = vsel %vm7938_vm4, 0, %v1917_v35  ;;  %v2029_v33 = vsel %vm7938_vm4, 0, %v1918_v11  ;;  %v1086_v47 = vshll.u32 %v8292_v22, 16  ;;  %v2337_v28 = vshrl.u32 %v659_v56, 16 }
  0x69   : > { %v1069_v2 = vrot.slane %v1067_v20, 4  ;;  %v8303_v0 = vcombine.low %v2028_v18, %v2029_v33  ;;  %v1072_v15 = vrot.slane %v1070_v5, 5  ;;  %v1078_v6 = vrot.slane %v1076_v23, 5 }
  0x6a   : > { %v1082_v13 = vrot.slane %v1080_v53, 4  ;;  %v2324_v4 = vrot.slane %v2322_v52, 4  ;;  %v660_v35 = vmul.bf16 1048592000, %v482_v48  ;;  %v1088_v16 = vrot.slane %v1086_v47, 5 }
  0x6b   : > { %13386 = vst [vmem:[#allocation37_spill] sm:$0xff] %v8303_v0  ;;  %v2340_v21 = vshll.u32 %v659_v56, 16  ;;  %3713 = vrot.lane.b32.xlu1 %v8303_v0, %s7839_s27  ;;  %v1073_v42 = vor.u32 %v1072_v15, %v1069_v2  ;;  %v2339_v3 = vrot.slane %v2337_v28, 4  ;;  %v373_v11 = vmul.bf16 1061175104, %v8220_v54 }
  0x6c   : > { %v1083_v40 = vor.u32 %v1082_v13, %v1078_v6  ;;  %v2346_v20 = vshll.u32 %v660_v35, 16  ;;  %v2350_v22 = vshrl.u32 %v660_v35, 16  ;;  %v374_v18 = vmul.bf16 1061175104, %v8250_v46 }
  0x6d   : > { %v375_v5 = vmul.bf16 1061175104, %v8257_v37  ;;  %v1074_v23 = vrot.slane %v1073_v42, 4  ;;  %v2342_v48 = vrot.slane %v2340_v21, 5  ;;  %v13387_v53 = vmul.bf16 1048592000, %v8114_v60 }
  0x6e   : > { %v1084_v52 = vrot.slane %v1083_v40, 4  ;;  %v8312_v47 = vrot.slane %v2269_v61, 4  ;;  %v8314_v2 = vrot.slane %v2287_v19, 4  ;;  %v13389_v13 = vmul.bf16 1048592000, %v8150_v41 }
  0x6f   : > { %v424_v33 = vadd.bf16 %v373_v11, %v13387_v53  ;;  %v13390_v15 = vmul.bf16 1048592000, %v8160_v14  ;;  %v8322_v55 = vrot.slane %v2297_v12, 4  ;;  %v2315_v40 = vor.u32 %v8281_v63, %v8273_v25  ;;  %v8334_v42 = vld [vmem:[%s7919_s26 + $0x48] sm:$0xf] }
  0x70   : > { %13388 = vst [vmem:[#allocation38_spill] sm:$0xff] %v8314_v2  ;;  %v425_v28 = vadd.bf16 %v374_v18, %v13389_v13  ;;  %v1079_v60 = vsel %vm7912_vm2, %v1074_v23, %v1078_v6  ;;  %v1089_v61 = vsel %vm7912_vm2, %v1084_v52, %v1088_v16  ;;  %v2325_v19 = vor.u32 %v2324_v4, %v8287_v45  ;;  %v8358_v52 = vld [vmem:[%s7919_s26 + $0x50] sm:$0x1] }
  0x71   : > { %v8320_v0 = vadd.bf16 %v375_v5, %v13390_v15  ;;  %13392 = vst [vmem:[#allocation40_spill] sm:$0xff] %v8322_v55  ;;  %v1920_v41 = vadd.bf16 %v1079_v60, %v659_v56  ;;  %v1921_v21 = vadd.bf16 %v1089_v61, %v660_v35  ;;  %v8331_v14 = vrot.slane %v2346_v20, 5  ;;  %v8350_v35 = vld [vmem:[%s7919_s26 + $0x4c] sm:$0xf] }
  0x72   : > { %v2343_v12 = vor.u32 %v2342_v48, %v2339_v3  ;;  %v8336_v53 = vrot.slane %v2350_v22, 4  ;;  %v8338_v25 = vmul.bf16 1061175104, %v424_v33  ;;  %v8340_v63 = vmul.bf16 1061175104, %v425_v28 }
  0x73   : > { %13391 = vst [vmem:[#allocation39_spill] sm:$0xff] %v8320_v0  ;;  %13393 = vst [vmem:[#allocation41_spill] sm:$0xff] %v8331_v14  ;;  %v2031_v6 = vsel %vm7938_vm4, 0, %v1920_v41  ;;  %v2032_v4 = vsel %vm7938_vm4, 0, %v1921_v21  ;;  %v662_v16 = vmul.bf16 1048592000, %v424_v33 }
  0x74   : > { %13394 = vst [vmem:[#allocation42_spill] sm:$0xff] %v8338_v25  ;;  %13395 = vst [vmem:[#allocation43_spill] sm:$0xff] %v8340_v63  ;;  %v8347_v56 = vmul.bf16 1061175104, %v8320_v0  ;;  %v8352_v20 = vcombine.low %v2031_v6, %v2032_v4  ;;  %v1095_v3 = vshrl.u32 %v8338_v25, 16  ;;  %v1098_v22 = vshll.u32 %v8338_v25, 16 }
  0x75   : > { %v1104_v23 = vshll.u32 %v8340_v63, 16  ;;  %v8360_v48 = vrot.slane %v2315_v40, 4  ;;  %v1108_v13 = vshrl.u32 %v8340_v63, 16  ;;  %v2365_v21 = vshrl.u32 %v662_v16, 16 }
  0x76   : > { %13396 = vst [vmem:[#allocation44_spill] sm:$0xff] %v8347_v56  ;;  %13397 = vst [vmem:[#allocation45_spill] sm:$0xff] %v8352_v20  ;;  %v1114_v33 = vshll.u32 %v8347_v56, 16  ;;  %3715 = vrot.lane.b32.xlu0 %v8352_v20, %s7839_s27  ;;  %v1097_v60 = vrot.slane %v1095_v3, 4  ;;  %v1100_v61 = vrot.slane %v1098_v22, 5  ;;  %v8367_v6 = vrot.slane %v2325_v19, 4 }
  0x77   : > { %13398 = vst [vmem:[#allocation46_spill] sm:$0xff] %v8360_v48  ;;  %v1106_v41 = vrot.slane %v1104_v23, 5  ;;  %v2353_v4 = vor.u32 %v8336_v53, %v8331_v14  ;;  %v1110_v40 = vrot.slane %v1108_v13, 4  ;;  %v2368_v25 = vshll.u32 %v662_v16, 16 }
  0x78   : > { %13399 = vst [vmem:[#allocation47_spill] sm:$0xff] %v8367_v6  ;;  %v8371_v0 = vrot.slane %v2343_v12, 4  ;;  %v1101_v63 = vor.u32 %v1100_v61, %v1097_v60  ;;  %v12903_v56 = vmul.bf16 1048592000, %v8350_v35  ;;  %v12902_v15 = vmul.bf16 1048592000, %v8358_v52 }
  0x79   : > { %v663_v48 = vmul.bf16 1048592000, %v425_v28  ;;  %v1111_v20 = vor.u32 %v1110_v40, %v1106_v41  ;;  %v1116_v3 = vrot.slane %v1114_v33, 5  ;;  %v13401_v22 = vmul.bf16 1048592000, %v8334_v42 }
  0x7a   : > { %13400 = vst [vmem:[#allocation48_spill] sm:$0xff] %v8371_v0  ;;  %v1102_v19 = vrot.slane %v1101_v63, 4  ;;  %v2367_v6 = vrot.slane %v2365_v21, 4  ;;  %v485_v53 = vadd.bf16 %v374_v18, %v12903_v56  ;;  %v8381_v12 = vadd.bf16 %v375_v5, %v12902_v15 }
  0x7b   : > { %v484_v23 = vadd.bf16 %v373_v11, %v13401_v22  ;;  %v1112_v13 = vrot.slane %v1111_v20, 4  ;;  %v2370_v60 = vrot.slane %v2368_v25, 5  ;;  %v2374_v61 = vshll.u32 %v663_v48, 16 }
  0x7c   : > { %13402 = vst [vmem:[#allocation49_spill] sm:$0xff] %v8381_v12  ;;  %v1107_v28 = vsel %vm7912_vm2, %v1102_v19, %v1106_v41  ;;  %v2378_v33 = vshrl.u32 %v663_v48, 16  ;;  %v8387_v40 = vmul.bf16 1061175104, %v485_v53  ;;  %v8390_v11 = vmul.bf16 1061175104, %v8381_v12 }
  0x7d   : > { %v8383_v0 = vmul.bf16 1061175104, %v484_v23  ;;  %v1117_v18 = vsel %vm7912_vm2, %v1112_v13, %v1116_v3  ;;  %v1923_v63 = vadd.bf16 %v1107_v28, %v662_v16  ;;  %v665_v15 = vmul.bf16 1048592000, %v484_v23 }
  0x7e   : > { %13404 = vst [vmem:[#allocation51_spill] sm:$0xff] %v8387_v40  ;;  %13405 = vst [vmem:[#allocation52_spill] sm:$0xff] %v8390_v11  ;;  %v1924_v20 = vadd.bf16 %v1117_v18, %v663_v48  ;;  %v1132_v22 = vshll.u32 %v8387_v40, 16  ;;  %v1136_v41 = vshrl.u32 %v8387_v40, 16  ;;  %v1142_v12 = vshll.u32 %v8390_v11, 16 }
  0x7f   : > { %13403 = vst [vmem:[#allocation50_spill] sm:$0xff] %v8383_v0  ;;  %v1123_v5 = vshrl.u32 %v8383_v0, 16  ;;  %v1126_v21 = vshll.u32 %v8383_v0, 16  ;;  %v2034_v19 = vsel %vm7938_vm4, 0, %v1923_v63  ;;  %v2371_v48 = vor.u32 %v2370_v60, %v2367_v6 }
  0x80   : > { %v2035_v16 = vsel %vm7938_vm4, 0, %v1924_v20  ;;  %v1134_v13 = vrot.slane %v1132_v22, 5  ;;  %v1138_v28 = vrot.slane %v1136_v41, 4  ;;  %v8404_v18 = vrot.slane %v2374_v61, 5 }
  0x81   : > { %v1125_v56 = vrot.slane %v1123_v5, 4  ;;  %v1128_v3 = vrot.slane %v1126_v21, 5  ;;  %v8406_v25 = vrot.slane %v2378_v33, 4  ;;  %v8408_v0 = vcombine.low %v2034_v19, %v2035_v16 }
  0x82   : > { %13406 = vst [vmem:[#allocation53_spill] sm:$0xff] %v8404_v18  ;;  %v1139_v14 = vor.u32 %v1138_v28, %v1134_v13  ;;  %v1144_v63 = vrot.slane %v1142_v12, 5  ;;  %v2393_v23 = vshrl.u32 %v665_v15, 16  ;;  %v666_v5 = vmul.bf16 1048592000, %v485_v53 }
  0x83   : > { %13407 = vst [vmem:[#allocation54_spill] sm:$0xff] %v8408_v0  ;;  %v1129_v40 = vor.u32 %v1128_v3, %v1125_v56  ;;  %3717 = vrot.lane.b32.xlu1 %v8408_v0, %s7839_s27  ;;  %v377_v20 = vmul.bf16 1061175104, %v8350_v35  ;;  %v378_v21 = vmul.bf16 1061175104, %v8358_v52  ;;  %v8418_v33 = vrot.slane %v2353_v4, 4 }
  0x84   : > { %v13408_v6 = vmul.bf16 1048592000, %v8220_v54  ;;  %v13409_v60 = vmul.bf16 1061175104, %v8334_v42  ;;  %v1140_v56 = vrot.slane %v1139_v14, 4  ;;  %v2396_v41 = vshll.u32 %v665_v15, 16 }
  0x85   : > { %13410 = vst [vmem:[#allocation55_spill] sm:$0xff] %v8418_v33  ;;  %v1130_v22 = vrot.slane %v1129_v40, 4  ;;  %v8420_v12 = vrot.slane %v2371_v48, 4  ;;  %v2381_v53 = vor.u32 %v8406_v25, %v8404_v18  ;;  %v13412_v19 = vmul.bf16 1048592000, %v8250_v46 }
  0x86   : > { %v427_v61 = vadd.bf16 %v13409_v60, %v13408_v6  ;;  %v13413_v3 = vmul.bf16 1048592000, %v8257_v37  ;;  %v1145_v14 = vsel %vm7912_vm2, %v1140_v56, %v1144_v63  ;;  %v2395_v40 = vrot.slane %v2393_v23, 4  ;;  %v8461_v33 = vld [vmem:[%s7919_s26 + $0x5c] sm:$0x1] }
  0x87   : > { %13411 = vst [vmem:[#allocation56_spill] sm:$0xff] %v8420_v12  ;;  %v428_v16 = vadd.bf16 %v377_v20, %v13412_v19  ;;  %v1135_v4 = vsel %vm7912_vm2, %v1130_v22, %v1134_v13  ;;  %v1927_v6 = vadd.bf16 %v1145_v14, %v666_v5  ;;  %v2402_v25 = vshll.u32 %v666_v5, 16  ;;  %v8443_v22 = vld [vmem:[%s7919_s26 + $0x54] sm:$0xf]  ;;  %v8455_v14 = vld [vmem:[%s7919_s26 + $0x58] sm:$0xf] }
  0x88   : > { %v8428_v54 = vadd.bf16 %v378_v21, %v13413_v3  ;;  %v8434_v28 = vmul.bf16 1061175104, %v427_v61  ;;  %v1926_v48 = vadd.bf16 %v1135_v4, %v665_v15  ;;  %v2406_v60 = vshrl.u32 %v666_v5, 16 }
  0x89   : > { %v2398_v46 = vrot.slane %v2396_v41, 5  ;;  %v8436_v19 = vmul.bf16 1061175104, %v428_v16  ;;  %v2038_v15 = vsel %vm7938_vm4, 0, %v1927_v6  ;;  %v668_v23 = vmul.bf16 1048592000, %v427_v61 }
  0x8a   : > { %13414 = vst [vmem:[#allocation57_spill] sm:$0xff] %v8428_v54  ;;  %13415 = vst [vmem:[#allocation58_spill] sm:$0xff] %v8434_v28  ;;  %v8439_v37 = vmul.bf16 1061175104, %v8428_v54  ;;  %v1151_v13 = vshrl.u32 %v8434_v28, 16  ;;  %v2037_v63 = vsel %vm7938_vm4, 0, %v1926_v48 }
  0x8b   : > { %13416 = vst [vmem:[#allocation59_spill] sm:$0xff] %v8436_v19  ;;  %v1154_v5 = vshll.u32 %v8434_v28, 16  ;;  %v8450_v56 = vcombine.low %v2037_v63, %v2038_v15  ;;  %v1160_v3 = vshll.u32 %v8436_v19, 16  ;;  %v1164_v4 = vshrl.u32 %v8436_v19, 16 }
  0x8c   : > { %13417 = vst [vmem:[#allocation60_spill] sm:$0xff] %v8439_v37  ;;  %v1153_v41 = vrot.slane %v1151_v13, 4  ;;  %v8457_v0 = vrot.slane %v2402_v25, 5  ;;  %v1170_v48 = vshll.u32 %v8439_v37, 16  ;;  %v2421_v11 = vshrl.u32 %v668_v23, 16 }
  0x8d   : > { %13418 = vst [vmem:[#allocation61_spill] sm:$0xff] %v8450_v56  ;;  %v1156_v54 = vrot.slane %v1154_v5, 5  ;;  %3719 = vrot.lane.b32.xlu0 %v8450_v56, %s7839_s27  ;;  %v669_v61 = vmul.bf16 1048592000, %v428_v16  ;;  %v1162_v6 = vrot.slane %v1160_v3, 5  ;;  %v1166_v13 = vrot.slane %v1164_v4, 4 }
  0x8e   : > { %13419 = vst [vmem:[#allocation62_spill] sm:$0xff] %v8457_v0  ;;  %v2424_v63 = vshll.u32 %v668_v23, 16  ;;  %v2399_v15 = vor.u32 %v2398_v46, %v2395_v40  ;;  %v2408_v28 = vrot.slane %v2406_v60, 4  ;;  %v12921_v12 = vmul.bf16 1048592000, %v8443_v22 }
  0x8f   : > { %v1157_v19 = vor.u32 %v1156_v54, %v1153_v41  ;;  %v1167_v25 = vor.u32 %v1166_v13, %v1162_v6  ;;  %v1172_v18 = vrot.slane %v1170_v48, 5  ;;  %v2430_v5 = vshll.u32 %v669_v61, 16 }
  0x90   : > { %v12920_v37 = vmul.bf16 1048592000, %v8455_v14  ;;  %v2423_v55 = vrot.slane %v2421_v11, 4  ;;  %v12919_v2 = vmul.bf16 1048592000, %v8461_v33  ;;  %v2426_v40 = vrot.slane %v2424_v63, 5 }
  0x91   : > { %v1158_v45 = vrot.slane %v1157_v19, 4  ;;  %v13420_v16 = vmul.bf16 1061175104, %v8334_v42  ;;  %v1168_v4 = vrot.slane %v1167_v25, 4  ;;  %v2434_v60 = vshrl.u32 %v669_v61, 16 }
  0x92   : > { %v488_v54 = vadd.bf16 %v377_v20, %v12920_v37  ;;  %v8474_v46 = vrot.slane %v2381_v53, 4  ;;  %v2409_v41 = vor.u32 %v2408_v28, %v8457_v0  ;;  %v8481_v19 = vadd.bf16 %v378_v21, %v12919_v2 }
  0x93   : > { %v487_v3 = vadd.bf16 %v13420_v16, %v12921_v12  ;;  %v1163_v11 = vsel %vm7912_vm2, %v1158_v45, %v1162_v6  ;;  %v8483_v48 = vrot.slane %v2399_v15, 4  ;;  %v1173_v13 = vsel %vm7912_vm2, %v1168_v4, %v1172_v18 }
  0x94   : > { %13421 = vst [vmem:[#allocation63_spill] sm:$0xff] %v8474_v46  ;;  %13422 = vst [vmem:[#allocation64_spill] sm:$0xff] %v8481_v19  ;;  %v1929_v63 = vadd.bf16 %v1163_v11, %v668_v23  ;;  %v8487_v25 = vrot.slane %v2430_v5, 5  ;;  %v1930_v20 = vadd.bf16 %v1173_v13, %v669_v61  ;;  %v8491_v16 = vmul.bf16 1061175104, %v488_v54 }
  0x95   : > { %13423 = vst [vmem:[#allocation65_spill] sm:$0xff] %v8483_v48  ;;  %v8489_v53 = vmul.bf16 1061175104, %v487_v3  ;;  %v8494_v28 = vmul.bf16 1061175104, %v8481_v19  ;;  %v2427_v21 = vor.u32 %v2426_v40, %v2423_v55  ;;  %v8498_v6 = vrot.slane %v2434_v60, 4 }
  0x96   : > { %13424 = vst [vmem:[#allocation66_spill] sm:$0xff] %v8487_v25  ;;  %13426 = vst [vmem:[#allocation68_spill] sm:$0xff] %v8491_v16  ;;  %v2040_v45 = vsel %vm7938_vm4, 0, %v1929_v63  ;;  %v2041_v18 = vsel %vm7938_vm4, 0, %v1930_v20  ;;  %v1188_v5 = vshll.u32 %v8491_v16, 16  ;;  %v1192_v13 = vshrl.u32 %v8491_v16, 16 }
  0x97   : > { %13425 = vst [vmem:[#allocation67_spill] sm:$0xff] %v8489_v53  ;;  %13427 = vst [vmem:[#allocation69_spill] sm:$0xff] %v8494_v28  ;;  %v1179_v23 = vshrl.u32 %v8489_v53, 16  ;;  %v1182_v61 = vshll.u32 %v8489_v53, 16  ;;  %v8506_v4 = vcombine.low %v2040_v45, %v2041_v18  ;;  %v671_v11 = vmul.bf16 1048592000, %v487_v3 }
  0x98   : > { %v1198_v55 = vshll.u32 %v8494_v28, 16  ;;  %v8510_v40 = vrot.slane %v2409_v41, 4  ;;  %v1190_v2 = vrot.slane %v1188_v5, 5  ;;  %v2437_v20 = vor.u32 %v8498_v6, %v8487_v25 }
  0x99   : > { %13428 = vst [vmem:[#allocation70_spill] sm:$0xff] %v8506_v4  ;;  %v1181_v60 = vrot.slane %v1179_v23, 4  ;;  %v1184_v63 = vrot.slane %v1182_v61, 5  ;;  %3721 = vrot.lane.b32.xlu1 %v8506_v4, %s7839_s27  ;;  %v1194_v37 = vrot.slane %v1192_v13, 4  ;;  %v2449_v45 = vshrl.u32 %v671_v11, 16 }
  0x9a   : > { %13429 = vst [vmem:[#allocation71_spill] sm:$0xff] %v8510_v40  ;;  %v2452_v18 = vshll.u32 %v671_v11, 16  ;;  %v672_v3 = vmul.bf16 1048592000, %v488_v54  ;;  %v380_v15 = vmul.bf16 1061175104, %v8455_v14 }
  0x9b   : > { %v1185_v12 = vor.u32 %v1184_v63, %v1181_v60  ;;  %v381_v41 = vmul.bf16 1061175104, %v8461_v33  ;;  %v8518_v56 = vrot.slane %v2427_v21, 4  ;;  %v1195_v23 = vor.u32 %v1194_v37, %v1190_v2  ;;  %v8531_v63 = vld [vmem:[%s7919_s26 + $0x60] sm:$0xf] }
  0x9c   : > { %v1200_v61 = vrot.slane %v1198_v55, 5  ;;  %v13431_v5 = vmul.bf16 1048592000, %v8334_v42  ;;  %v13432_v6 = vmul.bf16 1061175104, %v8443_v22  ;;  %v2458_v28 = vshll.u32 %v672_v3, 16 }
  0x9d   : > { %13430 = vst [vmem:[#allocation72_spill] sm:$0xff] %v8518_v56  ;;  %v1186_v4 = vrot.slane %v1185_v12, 4  ;;  %v13433_v13 = vmul.bf16 1048592000, %v8350_v35  ;;  %v13434_v54 = vmul.bf16 1048592000, %v8358_v52 }
  0x9e   : > { %v430_v16 = vadd.bf16 %v13432_v6, %v13431_v5  ;;  %v1196_v21 = vrot.slane %v1195_v23, 4  ;;  %v2451_v37 = vrot.slane %v2449_v45, 4  ;;  %v2454_v55 = vrot.slane %v2452_v18, 5  ;;  %v8558_v45 = vld [vmem:[%s7919_s26 + $0x68] sm:$0x1] }
  0x9f   : > { %v431_v53 = vadd.bf16 %v380_v15, %v13433_v13  ;;  %v8528_v60 = vadd.bf16 %v381_v41, %v13434_v54  ;;  %v1191_v42 = vsel %vm7912_vm2, %v1186_v4, %v1190_v2  ;;  %v2462_v12 = vshrl.u32 %v672_v3, 16  ;;  %v8550_v54 = vld [vmem:[%s7919_s26 + $0x64] sm:$0xf] }
  0xa0   : > { %v8533_v19 = vmul.bf16 1061175104, %v430_v16  ;;  %v1201_v52 = vsel %vm7912_vm2, %v1196_v21, %v1200_v61  ;;  %v1932_v6 = vadd.bf16 %v1191_v42, %v671_v11  ;;  %v674_v56 = vmul.bf16 1048592000, %v430_v16 }
  0xa1   : > { %13435 = vst [vmem:[#allocation73_spill] sm:$0xff] %v8528_v60  ;;  %v8537_v5 = vmul.bf16 1061175104, %v431_v53  ;;  %v8540_v35 = vmul.bf16 1061175104, %v8528_v60  ;;  %v1933_v18 = vadd.bf16 %v1201_v52, %v672_v3  ;;  %v8560_v25 = vrot.slane %v2458_v28, 5 }
  0xa2   : > { %13436 = vst [vmem:[#allocation74_spill] sm:$0xff] %v8533_v19  ;;  %v1207_v23 = vshrl.u32 %v8533_v19, 16  ;;  %v1210_v13 = vshll.u32 %v8533_v19, 16  ;;  %v2043_v60 = vsel %vm7938_vm4, 0, %v1932_v6  ;;  %v2455_v19 = vor.u32 %v2454_v55, %v2451_v37 }
  0xa3   : > { %13437 = vst [vmem:[#allocation75_spill] sm:$0xff] %v8537_v5  ;;  %13438 = vst [vmem:[#allocation76_spill] sm:$0xff] %v8540_v35  ;;  %v1216_v2 = vshll.u32 %v8537_v5, 16  ;;  %v1220_v4 = vshrl.u32 %v8537_v5, 16  ;;  %v1226_v11 = vshll.u32 %v8540_v35, 16  ;;  %v2044_v21 = vsel %vm7938_vm4, 0, %v1933_v18 }
  0xa4   : > { %v1209_v61 = vrot.slane %v1207_v23, 4  ;;  %v1212_v42 = vrot.slane %v1210_v13, 5  ;;  %13439 = vst [vmem:[#allocation77_spill] sm:$0xff] %v8560_v25  ;;  %v8562_v5 = vrot.slane %v2462_v12, 4  ;;  %v8564_v40 = vcombine.low %v2043_v60, %v2044_v21 }
  0xa5   : > { %v1218_v3 = vrot.slane %v1216_v2, 5  ;;  %v1222_v52 = vrot.slane %v1220_v4, 4  ;;  %v1228_v23 = vrot.slane %v1226_v11, 5  ;;  %v2477_v48 = vshrl.u32 %v674_v56, 16 }
  0xa6   : > { %13440 = vst [vmem:[#allocation78_spill] sm:$0xff] %v8564_v40  ;;  %v1213_v6 = vor.u32 %v1212_v42, %v1209_v61  ;;  %3723 = vrot.lane.b32.xlu0 %v8564_v40, %s7839_s27  ;;  %v675_v18 = vmul.bf16 1048592000, %v431_v53  ;;  %v12940_v13 = vmul.bf16 1048592000, %v8550_v54  ;;  %v8574_v12 = vrot.slane %v2437_v20, 4 }
  0xa7   : > { %v1223_v16 = vor.u32 %v1222_v52, %v1218_v3  ;;  %v12939_v2 = vmul.bf16 1048592000, %v8558_v45  ;;  %v13441_v37 = vmul.bf16 1048592000, %v8531_v63  ;;  %v13442_v28 = vmul.bf16 1061175104, %v8443_v22 }
  0xa8   : > { %13443 = vst [vmem:[#allocation79_spill] sm:$0xff] %v8574_v12  ;;  %v1214_v60 = vrot.slane %v1213_v6, 4  ;;  %v2480_v61 = vshll.u32 %v674_v56, 16  ;;  %v8576_v11 = vrot.slane %v2455_v19, 4  ;;  %v2465_v21 = vor.u32 %v8562_v5, %v8560_v25 }
  0xa9   : > { %v490_v55 = vadd.bf16 %v13442_v28, %v13441_v37  ;;  %v1224_v4 = vrot.slane %v1223_v16, 4  ;;  %v491_v53 = vadd.bf16 %v380_v15, %v12940_v13  ;;  %v8584_v42 = vadd.bf16 %v381_v41, %v12939_v2 }
  0xaa   : > { %13444 = vst [vmem:[#allocation80_spill] sm:$0xff] %v8576_v11  ;;  %v1219_v52 = vsel %vm7912_vm2, %v1214_v60, %v1218_v3  ;;  %v2479_v6 = vrot.slane %v2477_v48, 4  ;;  %v2486_v28 = vshll.u32 %v675_v18, 16  ;;  %v2490_v5 = vshrl.u32 %v675_v18, 16 }
  0xab   : > { %13445 = vst [vmem:[#allocation81_spill] sm:$0xff] %v8584_v42  ;;  %v1229_v20 = vsel %vm7912_vm2, %v1224_v4, %v1228_v23  ;;  %v8590_v16 = vmul.bf16 1061175104, %v490_v55  ;;  %v1935_v19 = vadd.bf16 %v1219_v52, %v674_v56  ;;  %v2482_v40 = vrot.slane %v2480_v61, 5 }
  0xac   : > { %v1936_v37 = vadd.bf16 %v1229_v20, %v675_v18  ;;  %v8592_v35 = vmul.bf16 1061175104, %v491_v53  ;;  %v8595_v15 = vmul.bf16 1061175104, %v8584_v42  ;;  %v677_v23 = vmul.bf16 1048592000, %v490_v55 }
  0xad   : > { %13446 = vst [vmem:[#allocation82_spill] sm:$0xff] %v8590_v16  ;;  %v1235_v41 = vshrl.u32 %v8590_v16, 16  ;;  %v2046_v3 = vsel %vm7938_vm4, 0, %v1935_v19  ;;  %v1238_v56 = vshll.u32 %v8590_v16, 16  ;;  %v8607_v52 = vrot.slane %v2486_v28, 5 }
  0xae   : > { %13447 = vst [vmem:[#allocation83_spill] sm:$0xff] %v8592_v35  ;;  %13448 = vst [vmem:[#allocation84_spill] sm:$0xff] %v8595_v15  ;;  %v2047_v48 = vsel %vm7938_vm4, 0, %v1936_v37  ;;  %v1244_v4 = vshll.u32 %v8592_v35, 16  ;;  %v1248_v61 = vshrl.u32 %v8592_v35, 16  ;;  %v1254_v2 = vshll.u32 %v8595_v15, 16 }
  0xaf   : > { %v8603_v60 = vcombine.low %v2046_v3, %v2047_v48  ;;  %v1237_v18 = vrot.slane %v1235_v41, 4  ;;  %13450 = vst [vmem:[#allocation86_spill] sm:$0xff] %v8607_v52  ;;  %v1240_v20 = vrot.slane %v1238_v56, 5  ;;  %v2505_v13 = vshrl.u32 %v677_v23, 16 }
  0xb0   : > { %v678_v19 = vmul.bf16 1048592000, %v491_v53  ;;  %v1246_v55 = vrot.slane %v1244_v4, 5  ;;  %v1250_v37 = vrot.slane %v1248_v61, 4  ;;  %v2508_v16 = vshll.u32 %v677_v23, 16 }
  0xb1   : > { %13449 = vst [vmem:[#allocation85_spill] sm:$0xff] %v8603_v60  ;;  %3725 = vrot.lane.b32.xlu1 %v8603_v60, %s7839_s27  ;;  %v2483_v3 = vor.u32 %v2482_v40, %v2479_v6  ;;  %v2492_v48 = vrot.slane %v2490_v5, 4  ;;  %v1241_v41 = vor.u32 %v1240_v20, %v1237_v18  ;;  %v382_v42 = vmul.bf16 1061175104, %v8531_v63 }
  0xb2   : > { %v1251_v11 = vor.u32 %v1250_v37, %v1246_v55  ;;  %v1256_v28 = vrot.slane %v1254_v2, 5  ;;  %v2514_v35 = vshll.u32 %v678_v19, 16  ;;  %v383_v56 = vmul.bf16 1061175104, %v8550_v54 }
  0xb3   : > { %v1242_v15 = vrot.slane %v1241_v41, 4  ;;  %v2507_v25 = vrot.slane %v2505_v13, 4  ;;  %v384_v12 = vmul.bf16 1061175104, %v8558_v45  ;;  %v13451_v53 = vmul.bf16 1048592000, %v8443_v22 }
  0xb4   : > { %v1252_v61 = vrot.slane %v1251_v11, 4  ;;  %v2510_v60 = vrot.slane %v2508_v16, 5  ;;  %v2518_v40 = vshrl.u32 %v678_v19, 16  ;;  %v13452_v6 = vmul.bf16 1048592000, %v8455_v14 }
  0xb5   : > { %v433_v4 = vadd.bf16 %v382_v42, %v13451_v53  ;;  %v8619_v18 = vrot.slane %v2465_v21, 4  ;;  %v2493_v2 = vor.u32 %v2492_v48, %v8607_v52  ;;  %v1247_v20 = vsel %vm7912_vm2, %v1242_v15, %v1246_v55  ;;  %v8629_v41 = vld [vmem:[%s7919_s26 + $0x6c] sm:$0xf] }
  0xb6   : > { %v434_v5 = vadd.bf16 %v383_v56, %v13452_v6  ;;  %v13454_v13 = vmul.bf16 1048592000, %v8461_v33  ;;  %v8631_v22 = vrot.slane %v2483_v3, 4  ;;  %v1257_v14 = vsel %vm7912_vm2, %v1252_v61, %v1256_v28  ;;  %v8655_v6 = vld [vmem:[%s7919_s26 + $0x70] sm:$0xf] }
  0xb7   : > { %13453 = vst [vmem:[#allocation87_spill] sm:$0xff] %v8619_v18  ;;  %v1938_v11 = vadd.bf16 %v1247_v20, %v677_v23  ;;  %v8635_v21 = vrot.slane %v2514_v35, 5  ;;  %v1939_v16 = vadd.bf16 %v1257_v14, %v678_v19  ;;  %v8637_v48 = vmul.bf16 1061175104, %v433_v4 }
  0xb8   : > { %v8626_v37 = vadd.bf16 %v384_v12, %v13454_v13  ;;  %13456 = vst [vmem:[#allocation89_spill] sm:$0xff] %v8631_v22  ;;  %v8639_v15 = vmul.bf16 1061175104, %v434_v5  ;;  %v2511_v3 = vor.u32 %v2510_v60, %v2507_v25  ;;  %v8646_v53 = vrot.slane %v2518_v40, 4  ;;  %v8662_v40 = vld [vmem:[%s7919_s26 + $0x74] sm:$0x1] }
  0xb9   : > { %13457 = vst [vmem:[#allocation90_spill] sm:$0xff] %v8635_v21  ;;  %13458 = vst [vmem:[#allocation91_spill] sm:$0xff] %v8637_v48  ;;  %v2049_v55 = vsel %vm7938_vm4, 0, %v1938_v11  ;;  %v2050_v35 = vsel %vm7938_vm4, 0, %v1939_v16  ;;  %v1263_v23 = vshrl.u32 %v8637_v48, 16  ;;  %v1266_v19 = vshll.u32 %v8637_v48, 16 }
  0xba   : > { %13455 = vst [vmem:[#allocation88_spill] sm:$0xff] %v8626_v37  ;;  %13459 = vst [vmem:[#allocation92_spill] sm:$0xff] %v8639_v15  ;;  %v8642_v33 = vmul.bf16 1061175104, %v8626_v37  ;;  %v1272_v61 = vshll.u32 %v8639_v15, 16  ;;  %v8657_v20 = vcombine.low %v2049_v55, %v2050_v35  ;;  %v1276_v25 = vshrl.u32 %v8639_v15, 16 }
  0xbb   : > { %v680_v13 = vmul.bf16 1048592000, %v433_v4  ;;  %v8664_v14 = vrot.slane %v2493_v2, 4  ;;  %v1265_v11 = vrot.slane %v1263_v23, 4  ;;  %v1268_v16 = vrot.slane %v1266_v19, 5 }
  0xbc   : > { %13460 = vst [vmem:[#allocation93_spill] sm:$0xff] %v8642_v33  ;;  %13461 = vst [vmem:[#allocation94_spill] sm:$0xff] %v8657_v20  ;;  %v1282_v60 = vshll.u32 %v8642_v33, 16  ;;  %v1274_v28 = vrot.slane %v1272_v61, 5  ;;  %v2521_v48 = vor.u32 %v8646_v53, %v8635_v21  ;;  %3727 = vrot.lane.b32.xlu0 %v8657_v20, %s7839_s27  ;;  %v1278_v55 = vrot.slane %v1276_v25, 4 }
  0xbd   : > { %13462 = vst [vmem:[#allocation95_spill] sm:$0xff] %v8664_v14  ;;  %v2533_v35 = vshrl.u32 %v680_v13, 16  ;;  %v2536_v4 = vshll.u32 %v680_v13, 16  ;;  %v681_v37 = vmul.bf16 1048592000, %v434_v5  ;;  %v1269_v15 = vor.u32 %v1268_v16, %v1265_v11 }
  0xbe   : > { %v12958_v33 = vmul.bf16 1048592000, %v8655_v6  ;;  %v12957_v18 = vmul.bf16 1048592000, %v8662_v40  ;;  %v8672_v2 = vrot.slane %v2511_v3, 4  ;;  %v1279_v23 = vor.u32 %v1278_v55, %v1274_v28 }
  0xbf   : > { %v1284_v19 = vrot.slane %v1282_v60, 5  ;;  %v13464_v61 = vmul.bf16 1048592000, %v8629_v41  ;;  %v1270_v53 = vrot.slane %v1269_v15, 4  ;;  %v2542_v21 = vshll.u32 %v681_v37, 16 }
  0xc0   : > { %13463 = vst [vmem:[#allocation96_spill] sm:$0xff] %v8672_v2  ;;  %v494_v25 = vadd.bf16 %v383_v56, %v12958_v33  ;;  %v8680_v5 = vadd.bf16 %v384_v12, %v12957_v18  ;;  %v1280_v11 = vrot.slane %v1279_v23, 4  ;;  %v2535_v16 = vrot.slane %v2533_v35, 4 }
  0xc1   : > { %v493_v14 = vadd.bf16 %v382_v42, %v13464_v61  ;;  %v2538_v20 = vrot.slane %v2536_v4, 5  ;;  %v1275_v3 = vsel %vm7912_vm2, %v1270_v53, %v1274_v28  ;;  %v2546_v60 = vshrl.u32 %v681_v37, 16 }
  0xc2   : > { %13465 = vst [vmem:[#allocation97_spill] sm:$0xff] %v8680_v5  ;;  %v8686_v55 = vmul.bf16 1061175104, %v494_v25  ;;  %v8689_v42 = vmul.bf16 1061175104, %v8680_v5  ;;  %v1285_v56 = vsel %vm7912_vm2, %v1280_v11, %v1284_v19  ;;  %v1941_v15 = vadd.bf16 %v1275_v3, %v680_v13 }
  0xc3   : > { %v8682_v22 = vmul.bf16 1061175104, %v493_v14  ;;  %v1942_v4 = vadd.bf16 %v1285_v56, %v681_v37  ;;  %v683_v18 = vmul.bf16 1048592000, %v493_v14  ;;  %v2539_v37 = vor.u32 %v2538_v20, %v2535_v16 }
  0xc4   : > { %13467 = vst [vmem:[#allocation99_spill] sm:$0xff] %v8686_v55  ;;  %13468 = vst [vmem:[#allocation100_spill] sm:$0xff] %v8689_v42  ;;  %v1300_v61 = vshll.u32 %v8686_v55, 16  ;;  %v1304_v28 = vshrl.u32 %v8686_v55, 16  ;;  %v2052_v53 = vsel %vm7938_vm4, 0, %v1941_v15  ;;  %v1310_v5 = vshll.u32 %v8689_v42, 16 }
  0xc5   : > { %13466 = vst [vmem:[#allocation98_spill] sm:$0xff] %v8682_v22  ;;  %v1291_v12 = vshrl.u32 %v8682_v22, 16  ;;  %v1294_v23 = vshll.u32 %v8682_v22, 16  ;;  %v2053_v13 = vsel %vm7938_vm4, 0, %v1942_v4  ;;  %v8703_v56 = vrot.slane %v2542_v21, 5 }
  0xc6   : > { %v1302_v11 = vrot.slane %v1300_v61, 5  ;;  %v1306_v3 = vrot.slane %v1304_v28, 4  ;;  %v8705_v35 = vrot.slane %v2546_v60, 4  ;;  %v8707_v22 = vcombine.low %v2052_v53, %v2053_v13 }
  0xc7   : > { %v1293_v33 = vrot.slane %v1291_v12, 4  ;;  %v1296_v19 = vrot.slane %v1294_v23, 5  ;;  %13469 = vst [vmem:[#allocation101_spill] sm:$0xff] %v8703_v56  ;;  %v1312_v15 = vrot.slane %v1310_v5, 5  ;;  %v2561_v14 = vshrl.u32 %v683_v18, 16 }
  0xc8   : > { %13470 = vst [vmem:[#allocation102_spill] sm:$0xff] %v8707_v22  ;;  %v1307_v2 = vor.u32 %v1306_v3, %v1302_v11  ;;  %3729 = vrot.lane.b32.xlu1 %v8707_v22, %s7839_s27  ;;  %v684_v12 = vmul.bf16 1048592000, %v494_v25  ;;  %v386_v4 = vmul.bf16 1061175104, %v8655_v6  ;;  %v8717_v60 = vrot.slane %v2521_v48, 4 }
  0xc9   : > { %v1297_v55 = vor.u32 %v1296_v19, %v1293_v33  ;;  %v387_v23 = vmul.bf16 1061175104, %v8662_v40  ;;  %v13471_v20 = vmul.bf16 1048592000, %v8531_v63  ;;  %v13472_v21 = vmul.bf16 1061175104, %v8629_v41 }
  0xca   : > { %13473 = vst [vmem:[#allocation103_spill] sm:$0xff] %v8717_v60  ;;  %v1308_v33 = vrot.slane %v1307_v2, 4  ;;  %v2564_v28 = vshll.u32 %v683_v18, 16  ;;  %v8719_v5 = vrot.slane %v2539_v37, 4  ;;  %v2549_v25 = vor.u32 %v8705_v35, %v8703_v56 }
  0xcb   : > { %v436_v16 = vadd.bf16 %v13472_v21, %v13471_v20  ;;  %v1298_v61 = vrot.slane %v1297_v55, 4  ;;  %v13475_v53 = vmul.bf16 1048592000, %v8550_v54  ;;  %v13476_v19 = vmul.bf16 1048592000, %v8558_v45 }
  0xcc   : > { %13474 = vst [vmem:[#allocation104_spill] sm:$0xff] %v8719_v5  ;;  %v1313_v2 = vsel %vm7912_vm2, %v1308_v33, %v1312_v15  ;;  %v2563_v55 = vrot.slane %v2561_v14, 4  ;;  %v2570_v35 = vshll.u32 %v684_v12, 16  ;;  %v2574_v21 = vshrl.u32 %v684_v12, 16  ;;  %v8760_v5 = vld [vmem:[%s7919_s26 + $0x80] sm:$0x1] }
  0xcd   : > { %v437_v13 = vadd.bf16 %v386_v4, %v13475_v53  ;;  %v8727_v63 = vadd.bf16 %v387_v23, %v13476_v19  ;;  %v1303_v48 = vsel %vm7912_vm2, %v1298_v61, %v1302_v11  ;;  %v8733_v3 = vmul.bf16 1061175104, %v436_v16  ;;  %v8742_v61 = vld [vmem:[%s7919_s26 + $0x78] sm:$0xf] }
  0xce   : > { %v1944_v37 = vadd.bf16 %v1303_v48, %v683_v18  ;;  %v1945_v20 = vadd.bf16 %v1313_v2, %v684_v12  ;;  %v2566_v54 = vrot.slane %v2564_v28, 5  ;;  %v686_v14 = vmul.bf16 1048592000, %v436_v16  ;;  %v8754_v2 = vld [vmem:[%s7919_s26 + $0x7c] sm:$0xf] }
  0xcf   : > { %13477 = vst [vmem:[#allocation105_spill] sm:$0xff] %v8727_v63  ;;  %13478 = vst [vmem:[#allocation106_spill] sm:$0xff] %v8733_v3  ;;  %v8735_v53 = vmul.bf16 1061175104, %v437_v13  ;;  %v8738_v45 = vmul.bf16 1061175104, %v8727_v63 }
  0xd0   : > { %v1319_v11 = vshrl.u32 %v8733_v3, 16  ;;  %v2055_v15 = vsel %vm7938_vm4, 0, %v1944_v37  ;;  %v2056_v18 = vsel %vm7938_vm4, 0, %v1945_v20  ;;  %v1322_v12 = vshll.u32 %v8733_v3, 16 }
  0xd1   : > { %13479 = vst [vmem:[#allocation107_spill] sm:$0xff] %v8735_v53  ;;  %13480 = vst [vmem:[#allocation108_spill] sm:$0xff] %v8738_v45  ;;  %v8749_v33 = vcombine.low %v2055_v15, %v2056_v18  ;;  %v1328_v19 = vshll.u32 %v8735_v53, 16  ;;  %v1332_v48 = vshrl.u32 %v8735_v53, 16  ;;  %v8756_v22 = vrot.slane %v2570_v35, 5 }
  0xd2   : > { %v1321_v28 = vrot.slane %v1319_v11, 4  ;;  %v1324_v63 = vrot.slane %v1322_v12, 5  ;;  %v1338_v37 = vshll.u32 %v8738_v45, 16  ;;  %v2589_v42 = vshrl.u32 %v686_v14, 16 }
  0xd3   : > { %13481 = vst [vmem:[#allocation109_spill] sm:$0xff] %v8749_v33  ;;  %13482 = vst [vmem:[#allocation110_spill] sm:$0xff] %v8756_v22  ;;  %3731 = vrot.lane.b32.xlu0 %v8749_v33, %s7839_s27  ;;  %v687_v16 = vmul.bf16 1048592000, %v437_v13  ;;  %v1330_v20 = vrot.slane %v1328_v19, 5  ;;  %v1334_v11 = vrot.slane %v1332_v48, 4  ;;  %v2567_v18 = vor.u32 %v2566_v54, %v2563_v55 }
  0xd4   : > { %v2592_v15 = vshll.u32 %v686_v14, 16  ;;  %v2576_v3 = vrot.slane %v2574_v21, 4  ;;  %v1325_v53 = vor.u32 %v1324_v63, %v1321_v28  ;;  %v12976_v56 = vmul.bf16 1048592000, %v8742_v61 }
  0xd5   : > { %v1335_v35 = vor.u32 %v1334_v11, %v1330_v20  ;;  %v1340_v60 = vrot.slane %v1338_v37, 5  ;;  %v2598_v12 = vshll.u32 %v687_v16, 16  ;;  %v12975_v45 = vmul.bf16 1048592000, %v8754_v2 }
  0xd6   : > { %v1326_v52 = vrot.slane %v1325_v53, 4  ;;  %v2591_v0 = vrot.slane %v2589_v42, 4  ;;  %v12974_v46 = vmul.bf16 1048592000, %v8760_v5  ;;  %v13483_v13 = vmul.bf16 1061175104, %v8629_v41 }
  0xd7   : > { %v1336_v48 = vrot.slane %v1335_v35, 4  ;;  %v2594_v55 = vrot.slane %v2592_v15, 5  ;;  %v2602_v21 = vshrl.u32 %v687_v16, 16  ;;  %v497_v63 = vadd.bf16 %v386_v4, %v12975_v45 }
  0xd8   : > { %v496_v19 = vadd.bf16 %v13483_v13, %v12976_v56  ;;  %v8773_v54 = vrot.slane %v2549_v25, 4  ;;  %v2577_v28 = vor.u32 %v2576_v3, %v8756_v22  ;;  %v1331_v42 = vsel %vm7912_vm2, %v1326_v52, %v1330_v20 }
  0xd9   : > { %v8780_v53 = vadd.bf16 %v387_v23, %v12974_v46  ;;  %v8782_v37 = vrot.slane %v2567_v18, 4  ;;  %v1341_v11 = vsel %vm7912_vm2, %v1336_v48, %v1340_v60  ;;  %v1947_v15 = vadd.bf16 %v1331_v42, %v686_v14 }
  0xda   : > { %13484 = vst [vmem:[#allocation111_spill] sm:$0xff] %v8773_v54  ;;  %v8786_v35 = vrot.slane %v2598_v12, 5  ;;  %v1948_v4 = vadd.bf16 %v1341_v11, %v687_v16  ;;  %v8788_v25 = vmul.bf16 1061175104, %v496_v19  ;;  %v8790_v13 = vmul.bf16 1061175104, %v497_v63 }
  0xdb   : > { %13485 = vst [vmem:[#allocation112_spill] sm:$0xff] %v8780_v53  ;;  %13486 = vst [vmem:[#allocation113_spill] sm:$0xff] %v8782_v37  ;;  %v8793_v3 = vmul.bf16 1061175104, %v8780_v53  ;;  %v2058_v52 = vsel %vm7938_vm4, 0, %v1947_v15  ;;  %v2595_v23 = vor.u32 %v2594_v55, %v2591_v0  ;;  %v8797_v20 = vrot.slane %v2602_v21, 4 }
  0xdc   : > { %13487 = vst [vmem:[#allocation114_spill] sm:$0xff] %v8786_v35  ;;  %13488 = vst [vmem:[#allocation115_spill] sm:$0xff] %v8788_v25  ;;  %v2059_v60 = vsel %vm7938_vm4, 0, %v1948_v4  ;;  %v1347_v14 = vshrl.u32 %v8788_v25, 16  ;;  %v1350_v16 = vshll.u32 %v8788_v25, 16  ;;  %v1356_v12 = vshll.u32 %v8790_v13, 16 }
  0xdd   : > { %13489 = vst [vmem:[#allocation116_spill] sm:$0xff] %v8790_v13  ;;  %13490 = vst [vmem:[#allocation117_spill] sm:$0xff] %v8793_v3  ;;  %v8805_v48 = vcombine.low %v2058_v52, %v2059_v60  ;;  %v689_v42 = vmul.bf16 1048592000, %v496_v19  ;;  %v1360_v11 = vshrl.u32 %v8790_v13, 16  ;;  %v1366_v0 = vshll.u32 %v8793_v3, 16 }
  0xde   : > { %v8809_v55 = vrot.slane %v2577_v28, 4  ;;  %v1349_v21 = vrot.slane %v1347_v14, 4  ;;  %v1352_v15 = vrot.slane %v1350_v16, 5  ;;  %v1358_v46 = vrot.slane %v1356_v12, 5 }
  0xdf   : > { %13491 = vst [vmem:[#allocation118_spill] sm:$0xff] %v8805_v48  ;;  %v2605_v4 = vor.u32 %v8797_v20, %v8786_v35  ;;  %3733 = vrot.lane.b32.xlu1 %v8805_v48, %s7839_s27  ;;  %v1362_v45 = vrot.slane %v1360_v11, 4  ;;  %v2617_v52 = vshrl.u32 %v689_v42, 16  ;;  %v2620_v60 = vshll.u32 %v689_v42, 16 }
  0xe0   : > { %13492 = vst [vmem:[#allocation119_spill] sm:$0xff] %v8809_v55  ;;  %v690_v19 = vmul.bf16 1048592000, %v497_v63  ;;  %v1353_v56 = vor.u32 %v1352_v15, %v1349_v21  ;;  %v389_v18 = vmul.bf16 1061175104, %v8754_v2  ;;  %v8817_v33 = vrot.slane %v2595_v23, 4 }
  0xe1   : > { %v390_v28 = vmul.bf16 1061175104, %v8760_v5  ;;  %v1363_v14 = vor.u32 %v1362_v45, %v1358_v46  ;;  %v1368_v16 = vrot.slane %v1366_v0, 5  ;;  %v13494_v12 = vmul.bf16 1048592000, %v8629_v41 }
  0xe2   : > { %13493 = vst [vmem:[#allocation120_spill] sm:$0xff] %v8817_v33  ;;  %v13495_v20 = vmul.bf16 1061175104, %v8742_v61  ;;  %v1354_v48 = vrot.slane %v1353_v56, 4  ;;  %v2626_v3 = vshll.u32 %v690_v19, 16  ;;  %v2619_v45 = vrot.slane %v2617_v52, 4 }
  0xe3   : > { %v13496_v11 = vmul.bf16 1048592000, %v8655_v6  ;;  %v13497_v63 = vmul.bf16 1048592000, %v8662_v40  ;;  %v8830_v15 = vld [vmem:[%s7919_s26 + $0x84] sm:$0xf] }
  0xe4   : > { %v439_v13 = vadd.bf16 %v13495_v20, %v13494_v12  ;;  %v1364_v23 = vrot.slane %v1363_v14, 4  ;;  %v2622_v0 = vrot.slane %v2620_v60, 5  ;;  %v1359_v41 = vsel %vm7912_vm2, %v1354_v48, %v1358_v46  ;;  %v8857_v52 = vld [vmem:[%s7919_s26 + $0x8c] sm:$0x1] }
  0xe5   : > { %v440_v25 = vadd.bf16 %v389_v18, %v13496_v11  ;;  %v8827_v21 = vadd.bf16 %v390_v28, %v13497_v63  ;;  %v2630_v56 = vshrl.u32 %v690_v19, 16  ;;  %v1950_v20 = vadd.bf16 %v1359_v41, %v689_v42  ;;  %v8849_v63 = vld [vmem:[%s7919_s26 + $0x88] sm:$0xf] }
  0xe6   : > { %v8832_v53 = vmul.bf16 1061175104, %v439_v13  ;;  %v1369_v40 = vsel %vm7912_vm2, %v1364_v23, %v1368_v16  ;;  %v692_v33 = vmul.bf16 1048592000, %v439_v13  ;;  %v8859_v35 = vrot.slane %v2626_v3, 5 }
  0xe7   : > { %13498 = vst [vmem:[#allocation121_spill] sm:$0xff] %v8827_v21  ;;  %v8836_v12 = vmul.bf16 1061175104, %v440_v25  ;;  %v8839_v6 = vmul.bf16 1061175104, %v8827_v21  ;;  %v1951_v60 = vadd.bf16 %v1369_v40, %v690_v19  ;;  %v2061_v21 = vsel %vm7938_vm4, 0, %v1950_v20 }
  0xe8   : > { %13499 = vst [vmem:[#allocation122_spill] sm:$0xff] %v8832_v53  ;;  %v1375_v14 = vshrl.u32 %v8832_v53, 16  ;;  %v1378_v11 = vshll.u32 %v8832_v53, 16  ;;  %v2623_v53 = vor.u32 %v2622_v0, %v2619_v45  ;;  %13502 = vst [vmem:[#allocation125_spill] sm:$0xff] %v8859_v35  ;;  %v2645_v54 = vshrl.u32 %v692_v33, 16 }
  0xe9   : > { %13500 = vst [vmem:[#allocation123_spill] sm:$0xff] %v8836_v12  ;;  %13501 = vst [vmem:[#allocation124_spill] sm:$0xff] %v8839_v6  ;;  %v1384_v46 = vshll.u32 %v8836_v12, 16  ;;  %v1388_v48 = vshrl.u32 %v8836_v12, 16  ;;  %v1394_v42 = vshll.u32 %v8839_v6, 16  ;;  %v2062_v23 = vsel %vm7938_vm4, 0, %v1951_v60 }
  0xea   : > { %v1377_v16 = vrot.slane %v1375_v14, 4  ;;  %v1380_v41 = vrot.slane %v1378_v11, 5  ;;  %v8861_v12 = vrot.slane %v2630_v56, 4  ;;  %v8863_v55 = vcombine.low %v2061_v21, %v2062_v23 }
  0xeb   : > { %v1386_v19 = vrot.slane %v1384_v46, 5  ;;  %v1390_v40 = vrot.slane %v1388_v48, 4  ;;  %v1396_v14 = vrot.slane %v1394_v42, 5  ;;  %v693_v60 = vmul.bf16 1048592000, %v440_v25 }
  0xec   : > { %13503 = vst [vmem:[#allocation126_spill] sm:$0xff] %v8863_v55  ;;  %v1381_v20 = vor.u32 %v1380_v41, %v1377_v16  ;;  %3735 = vrot.lane.b32.xlu0 %v8863_v55, %s7839_s27  ;;  %v12995_v11 = vmul.bf16 1048592000, %v8849_v63  ;;  %v12994_v46 = vmul.bf16 1048592000, %v8857_v52  ;;  %v8873_v56 = vrot.slane %v2605_v4, 4 }
  0xed   : > { %v1391_v13 = vor.u32 %v1390_v40, %v1386_v19  ;;  %v13504_v45 = vmul.bf16 1048592000, %v8830_v15  ;;  %v13505_v3 = vmul.bf16 1061175104, %v8742_v61  ;;  %v2648_v16 = vshll.u32 %v692_v33, 16 }
  0xee   : > { %13506 = vst [vmem:[#allocation127_spill] sm:$0xff] %v8873_v56  ;;  %v1382_v21 = vrot.slane %v1381_v20, 4  ;;  %v8875_v42 = vrot.slane %v2623_v53, 4  ;;  %v2633_v23 = vor.u32 %v8861_v12, %v8859_v35  ;;  %v500_v25 = vadd.bf16 %v389_v18, %v12995_v11 }
  0xef   : > { %v499_v0 = vadd.bf16 %v13505_v3, %v13504_v45  ;;  %v1392_v48 = vrot.slane %v1391_v13, 4  ;;  %v8883_v41 = vadd.bf16 %v390_v28, %v12994_v46  ;;  %v2647_v20 = vrot.slane %v2645_v54, 4 }
  0xf0   : > { %13507 = vst [vmem:[#allocation128_spill] sm:$0xff] %v8875_v42  ;;  %v1387_v40 = vsel %vm7912_vm2, %v1382_v21, %v1386_v19  ;;  %v2654_v3 = vshll.u32 %v693_v60, 16  ;;  %v2658_v12 = vshrl.u32 %v693_v60, 16  ;;  %v2650_v55 = vrot.slane %v2648_v16, 5 }
  0xf1   : > { %13508 = vst [vmem:[#allocation129_spill] sm:$0xff] %v8883_v41  ;;  %v1397_v4 = vsel %vm7912_vm2, %v1392_v48, %v1396_v14  ;;  %v8889_v13 = vmul.bf16 1061175104, %v499_v0  ;;  %v1953_v53 = vadd.bf16 %v1387_v40, %v692_v33  ;;  %v8891_v6 = vmul.bf16 1061175104, %v500_v25 }
  0xf2   : > { %v1954_v45 = vadd.bf16 %v1397_v4, %v693_v60  ;;  %v8894_v18 = vmul.bf16 1061175104, %v8883_v41  ;;  %v695_v14 = vmul.bf16 1048592000, %v499_v0  ;;  %v8906_v40 = vrot.slane %v2654_v3, 5 }
  0xf3   : > { %13509 = vst [vmem:[#allocation130_spill] sm:$0xff] %v8889_v13  ;;  %13510 = vst [vmem:[#allocation131_spill] sm:$0xff] %v8891_v6  ;;  %v1403_v28 = vshrl.u32 %v8889_v13, 16  ;;  %v2064_v19 = vsel %vm7938_vm4, 0, %v1953_v53  ;;  %v1406_v33 = vshll.u32 %v8889_v13, 16  ;;  %v1412_v48 = vshll.u32 %v8891_v6, 16 }
  0xf4   : > { %13511 = vst [vmem:[#allocation132_spill] sm:$0xff] %v8894_v18  ;;  %v2065_v54 = vsel %vm7938_vm4, 0, %v1954_v45  ;;  %v1416_v16 = vshrl.u32 %v8891_v6, 16  ;;  %13513 = vst [vmem:[#allocation134_spill] sm:$0xff] %v8906_v40  ;;  %v1422_v46 = vshll.u32 %v8894_v18, 16  ;;  %v2673_v11 = vshrl.u32 %v695_v14, 16 }
  0xf5   : > { %v8902_v21 = vcombine.low %v2064_v19, %v2065_v54  ;;  %v1405_v60 = vrot.slane %v1403_v28, 4  ;;  %v1408_v4 = vrot.slane %v1406_v33, 5  ;;  %v696_v53 = vmul.bf16 1048592000, %v500_v25 }
  0xf6   : > { %v1414_v0 = vrot.slane %v1412_v48, 5  ;;  %v1418_v45 = vrot.slane %v1416_v16, 4  ;;  %v2676_v13 = vshll.u32 %v695_v14, 16  ;;  %v2651_v19 = vor.u32 %v2650_v55, %v2647_v20 }
  0xf7   : > { %13512 = vst [vmem:[#allocation133_spill] sm:$0xff] %v8902_v21  ;;  %3737 = vrot.lane.b32.xlu1 %v8902_v21, %s7839_s27  ;;  %v2660_v54 = vrot.slane %v2658_v12, 4  ;;  %v1409_v28 = vor.u32 %v1408_v4, %v1405_v60  ;;  %v391_v41 = vmul.bf16 1061175104, %v8830_v15  ;;  %v1424_v3 = vrot.slane %v1422_v46, 5 }
  0xf8   : > { %v1419_v42 = vor.u32 %v1418_v45, %v1414_v0  ;;  %v2682_v6 = vshll.u32 %v696_v53, 16  ;;  %v392_v33 = vmul.bf16 1061175104, %v8849_v63  ;;  %v2675_v35 = vrot.slane %v2673_v11, 4 }
  0xf9   : > { %v1410_v18 = vrot.slane %v1409_v28, 4  ;;  %v393_v56 = vmul.bf16 1061175104, %v8857_v52  ;;  %v13514_v25 = vmul.bf16 1048592000, %v8742_v61  ;;  %v2678_v21 = vrot.slane %v2676_v13, 5 }
  0xfa   : > { %v1420_v16 = vrot.slane %v1419_v42, 4  ;;  %v2686_v55 = vshrl.u32 %v696_v53, 16  ;;  %v13515_v20 = vmul.bf16 1048592000, %v8754_v2  ;;  %v8918_v60 = vrot.slane %v2633_v23, 4 }
  0xfb   : > { %v442_v48 = vadd.bf16 %v391_v41, %v13514_v25  ;;  %v2661_v46 = vor.u32 %v2660_v54, %v8906_v40  ;;  %v1415_v4 = vsel %vm7912_vm2, %v1410_v18, %v1414_v0  ;;  %v13517_v11 = vmul.bf16 1048592000, %v8760_v5  ;;  %v8928_v28 = vld [vmem:[%s7919_s26 + $0x90] sm:$0xf] }
  0xfc   : > { %v443_v12 = vadd.bf16 %v392_v33, %v13515_v20  ;;  %13516 = vst [vmem:[#allocation135_spill] sm:$0xff] %v8918_v60  ;;  %v8930_v61 = vrot.slane %v2651_v19, 4  ;;  %v1425_v2 = vsel %vm7912_vm2, %v1420_v16, %v1424_v3  ;;  %v1956_v42 = vadd.bf16 %v1415_v4, %v695_v14  ;;  %v8954_v20 = vld [vmem:[%s7919_s26 + $0x94] sm:$0xf] }
  0xfd   : > { %v8925_v45 = vadd.bf16 %v393_v56, %v13517_v11  ;;  %v8934_v23 = vrot.slane %v2682_v6, 5  ;;  %v1957_v13 = vadd.bf16 %v1425_v2, %v696_v53  ;;  %v8936_v54 = vmul.bf16 1061175104, %v442_v48 }
  0xfe   : > { %13519 = vst [vmem:[#allocation137_spill] sm:$0xff] %v8930_v61  ;;  %v8938_v18 = vmul.bf16 1061175104, %v443_v12  ;;  %v2067_v0 = vsel %vm7938_vm4, 0, %v1956_v42  ;;  %v2679_v19 = vor.u32 %v2678_v21, %v2675_v35  ;;  %v8945_v25 = vrot.slane %v2686_v55, 4 }
  0xff   : > { %13518 = vst [vmem:[#allocation136_spill] sm:$0xff] %v8925_v45  ;;  %13520 = vst [vmem:[#allocation138_spill] sm:$0xff] %v8934_v23  ;;  %v8941_v5 = vmul.bf16 1061175104, %v8925_v45  ;;  %v2068_v6 = vsel %vm7938_vm4, 0, %v1957_v13  ;;  %v1431_v14 = vshrl.u32 %v8936_v54, 16 }
 0x100   : > { %13521 = vst [vmem:[#allocation139_spill] sm:$0xff] %v8936_v54  ;;  %13522 = vst [vmem:[#allocation140_spill] sm:$0xff] %v8938_v18  ;;  %v1434_v53 = vshll.u32 %v8936_v54, 16  ;;  %v1440_v16 = vshll.u32 %v8938_v18, 16  ;;  %v8956_v4 = vcombine.low %v2067_v0, %v2068_v6  ;;  %v698_v11 = vmul.bf16 1048592000, %v442_v48 }
 0x101   : > { %13523 = vst [vmem:[#allocation141_spill] sm:$0xff] %v8941_v5  ;;  %v1444_v35 = vshrl.u32 %v8938_v18, 16  ;;  %v1450_v21 = vshll.u32 %v8941_v5, 16  ;;  %v8961_v55 = vld [vmem:[%s7919_s26 + $0x98] sm:$0x1]  ;;  %v8963_v2 = vrot.slane %v2661_v46, 4  ;;  %v2689_v54 = vor.u32 %v8945_v25, %v8934_v23 }
 0x102   : > { %13524 = vst [vmem:[#allocation142_spill] sm:$0xff] %v8956_v4  ;;  %v1433_v42 = vrot.slane %v1431_v14, 4  ;;  %v1436_v13 = vrot.slane %v1434_v53, 5  ;;  %v1442_v3 = vrot.slane %v1440_v16, 5  ;;  %3739 = vrot.lane.b32.xlu0 %v8956_v4, %s7839_s27  ;;  %v2701_v6 = vshrl.u32 %v698_v11, 16 }
 0x103   : > { %13525 = vst [vmem:[#allocation143_spill] sm:$0xff] %v8963_v2  ;;  %v1446_v0 = vrot.slane %v1444_v35, 4  ;;  %v2704_v48 = vshll.u32 %v698_v11, 16  ;;  %v699_v45 = vmul.bf16 1048592000, %v443_v12  ;;  %v8971_v46 = vrot.slane %v2679_v19, 4 }
 0x104   : > { %v1437_v18 = vor.u32 %v1436_v13, %v1433_v42  ;;  %v13013_v5 = vmul.bf16 1048592000, %v8954_v20  ;;  %v13012_v60 = vmul.bf16 1048592000, %v8961_v55  ;;  %v1452_v53 = vrot.slane %v1450_v21, 5 }
 0x105   : > { %13526 = vst [vmem:[#allocation144_spill] sm:$0xff] %v8971_v46  ;;  %v1447_v14 = vor.u32 %v1446_v0, %v1442_v3  ;;  %v13527_v16 = vmul.bf16 1048592000, %v8928_v28  ;;  %v2710_v23 = vshll.u32 %v699_v45, 16  ;;  %v2703_v13 = vrot.slane %v2701_v6, 4 }
 0x106   : > { %v1438_v25 = vrot.slane %v1437_v18, 4  ;;  %v503_v35 = vadd.bf16 %v392_v33, %v13013_v5  ;;  %v8979_v12 = vadd.bf16 %v393_v56, %v13012_v60  ;;  %v2706_v4 = vrot.slane %v2704_v48, 5 }
 0x107   : > { %v502_v2 = vadd.bf16 %v391_v41, %v13527_v16  ;;  %v1448_v42 = vrot.slane %v1447_v14, 4  ;;  %v2714_v21 = vshrl.u32 %v699_v45, 16  ;;  %vm5899_vm1 = vcmask 261120  }
 0x108   : > { %13528 = vst [vmem:[#allocation145_spill] sm:$0xff] %v8979_v12  ;;  %v1443_v19 = vsel %vm7912_vm2, %v1438_v25, %v1442_v3  ;;  %v8985_v0 = vmul.bf16 1061175104, %v503_v35  ;;  %v8988_v41 = vmul.bf16 1061175104, %v8979_v12  ;;  %vm6029_vm3 = vcmask 326656  }
 0x109   : > { %v8981_v61 = vmul.bf16 1061175104, %v502_v2  ;;  %v1453_v33 = vsel %vm7912_vm2, %v1448_v42, %v1452_v53  ;;  %v1959_v18 = vadd.bf16 %v1443_v19, %v698_v11  ;;  %v701_v60 = vmul.bf16 1048592000, %v502_v2 }
 0x10a   : > { %13530 = vst [vmem:[#allocation147_spill] sm:$0xff] %v8985_v0  ;;  %13531 = vst [vmem:[#allocation148_spill] sm:$0xff] %v8988_v41  ;;  %v1960_v48 = vadd.bf16 %v1453_v33, %v699_v45  ;;  %v1468_v16 = vshll.u32 %v8985_v0, 16  ;;  %v1472_v3 = vshrl.u32 %v8985_v0, 16  ;;  %v1478_v12 = vshll.u32 %v8988_v41, 16 }
 0x10b   : > { %13529 = vst [vmem:[#allocation146_spill] sm:$0xff] %v8981_v61  ;;  %v1459_v56 = vshrl.u32 %v8981_v61, 16  ;;  %v1462_v14 = vshll.u32 %v8981_v61, 16  ;;  %v2070_v25 = vsel %vm7938_vm4, 0, %v1959_v18  ;;  %v2707_v45 = vor.u32 %v2706_v4, %v2703_v13 }
 0x10c   : > { %v2071_v11 = vsel %vm7938_vm4, 0, %v1960_v48  ;;  %v1470_v42 = vrot.slane %v1468_v16, 5  ;;  %v1474_v19 = vrot.slane %v1472_v3, 4  ;;  %v9002_v33 = vrot.slane %v2710_v23, 5 }
 0x10d   : > { %v1461_v5 = vrot.slane %v1459_v56, 4  ;;  %v1464_v53 = vrot.slane %v1462_v14, 5  ;;  %v9004_v6 = vrot.slane %v2714_v21, 4  ;;  %v9006_v61 = vcombine.low %v2070_v25, %v2071_v11 }
 0x10e   : > { %13532 = vst [vmem:[#allocation149_spill] sm:$0xff] %v9002_v33  ;;  %v1475_v46 = vor.u32 %v1474_v19, %v1470_v42  ;;  %v1480_v18 = vrot.slane %v1478_v12, 5  ;;  %v2729_v2 = vshrl.u32 %v701_v60, 16  ;;  %v702_v56 = vmul.bf16 1048592000, %v503_v35 }
 0x10f   : > { %13533 = vst [vmem:[#allocation150_spill] sm:$0xff] %v9006_v61  ;;  %v1465_v0 = vor.u32 %v1464_v53, %v1461_v5  ;;  %3741 = vrot.lane.b32.xlu1 %v9006_v61, %s7839_s27  ;;  %v395_v48 = vmul.bf16 1061175104, %v8954_v20  ;;  %v396_v14 = vmul.bf16 1061175104, %v8961_v55  ;;  %v9016_v21 = vrot.slane %v2689_v54, 4 }
 0x110   : > { %v13534_v4 = vmul.bf16 1048592000, %v8830_v15  ;;  %v13535_v23 = vmul.bf16 1061175104, %v8928_v28  ;;  %v1476_v5 = vrot.slane %v1475_v46, 4  ;;  %v2732_v3 = vshll.u32 %v701_v60, 16 }
 0x111   : > { %13536 = vst [vmem:[#allocation151_spill] sm:$0xff] %v9016_v21  ;;  %v1466_v16 = vrot.slane %v1465_v0, 4  ;;  %v9018_v12 = vrot.slane %v2707_v45, 4  ;;  %v2717_v35 = vor.u32 %v9004_v6, %v9002_v33  ;;  %v13538_v25 = vmul.bf16 1048592000, %v8849_v63 }
 0x112   : > { %v445_v13 = vadd.bf16 %v13535_v23, %v13534_v4  ;;  %v13539_v53 = vmul.bf16 1048592000, %v8857_v52  ;;  %v1481_v46 = vsel %vm7912_vm2, %v1476_v5, %v1480_v18  ;;  %v2731_v0 = vrot.slane %v2729_v2, 4 }
 0x113   : > { %13537 = vst [vmem:[#allocation152_spill] sm:$0xff] %v9018_v12  ;;  %v446_v11 = vadd.bf16 %v395_v48, %v13538_v25  ;;  %v1471_v54 = vsel %vm7912_vm2, %v1466_v16, %v1470_v42  ;;  %v1963_v4 = vadd.bf16 %v1481_v46, %v702_v56  ;;  %v2738_v6 = vshll.u32 %v702_v56, 16  ;;  %v9041_v16 = vld [vmem:[%s7919_s26 + $0x9c] sm:$0xf]  ;;  %v9053_v46 = vld [vmem:[%s7919_s26 + $0xa0] sm:$0xf] }
 0x114   : > { %v9026_v15 = vadd.bf16 %v396_v14, %v13539_v53  ;;  %v9032_v19 = vmul.bf16 1061175104, %v445_v13  ;;  %v1962_v45 = vadd.bf16 %v1471_v54, %v701_v60  ;;  %v2742_v23 = vshrl.u32 %v702_v56, 16  ;;  %v9059_v12 = vld [vmem:[%s7919_s26 + $0xa4] sm:$0x1] }
 0x115   : > { %v2734_v63 = vrot.slane %v2732_v3, 5  ;;  %v9034_v25 = vmul.bf16 1061175104, %v446_v11  ;;  %v2074_v60 = vsel %vm7938_vm4, 0, %v1963_v4  ;;  %v704_v2 = vmul.bf16 1048592000, %v445_v13 }
 0x116   : > { %13540 = vst [vmem:[#allocation153_spill] sm:$0xff] %v9026_v15  ;;  %13541 = vst [vmem:[#allocation154_spill] sm:$0xff] %v9032_v19  ;;  %v9037_v52 = vmul.bf16 1061175104, %v9026_v15  ;;  %v1487_v42 = vshrl.u32 %v9032_v19, 16  ;;  %v2073_v18 = vsel %vm7938_vm4, 0, %v1962_v45 }
 0x117   : > { %13542 = vst [vmem:[#allocation155_spill] sm:$0xff] %v9034_v25  ;;  %v1490_v56 = vshll.u32 %v9032_v19, 16  ;;  %v9048_v5 = vcombine.low %v2073_v18, %v2074_v60  ;;  %v1496_v53 = vshll.u32 %v9034_v25, 16  ;;  %v1500_v54 = vshrl.u32 %v9034_v25, 16 }
 0x118   : > { %13543 = vst [vmem:[#allocation156_spill] sm:$0xff] %v9037_v52  ;;  %v1489_v3 = vrot.slane %v1487_v42, 4  ;;  %v9055_v61 = vrot.slane %v2738_v6, 5  ;;  %v1506_v45 = vshll.u32 %v9037_v52, 16  ;;  %v2757_v41 = vshrl.u32 %v704_v2, 16 }
 0x119   : > { %13544 = vst [vmem:[#allocation157_spill] sm:$0xff] %v9048_v5  ;;  %v1492_v15 = vrot.slane %v1490_v56, 5  ;;  %3743 = vrot.lane.b32.xlu0 %v9048_v5, %s7839_s27  ;;  %v705_v13 = vmul.bf16 1048592000, %v446_v11  ;;  %v1498_v4 = vrot.slane %v1496_v53, 5  ;;  %v1502_v42 = vrot.slane %v1500_v54, 4 }
 0x11a   : > { %13545 = vst [vmem:[#allocation158_spill] sm:$0xff] %v9055_v61  ;;  %v2760_v18 = vshll.u32 %v704_v2, 16  ;;  %v2735_v60 = vor.u32 %v2734_v63, %v2731_v0  ;;  %v2744_v19 = vrot.slane %v2742_v23, 4  ;;  %v13031_v33 = vmul.bf16 1048592000, %v9041_v16 }
 0x11b   : > { %v1493_v25 = vor.u32 %v1492_v15, %v1489_v3  ;;  %v1503_v6 = vor.u32 %v1502_v42, %v1498_v4  ;;  %v1508_v21 = vrot.slane %v1506_v45, 5  ;;  %v2766_v56 = vshll.u32 %v705_v13, 16 }
 0x11c   : > { %v13030_v52 = vmul.bf16 1048592000, %v9053_v46  ;;  %v2759_v37 = vrot.slane %v2757_v41, 4  ;;  %v13029_v22 = vmul.bf16 1048592000, %v9059_v12  ;;  %v2762_v0 = vrot.slane %v2760_v18, 5 }
 0x11d   : > { %v1494_v40 = vrot.slane %v1493_v25, 4  ;;  %v13546_v11 = vmul.bf16 1061175104, %v8928_v28  ;;  %v1504_v54 = vrot.slane %v1503_v6, 4  ;;  %v2770_v23 = vshrl.u32 %v705_v13, 16 }
 0x11e   : > { %v506_v15 = vadd.bf16 %v395_v48, %v13030_v52  ;;  %v9072_v63 = vrot.slane %v2717_v35, 4  ;;  %v2745_v3 = vor.u32 %v2744_v19, %v9055_v61  ;;  %v9079_v25 = vadd.bf16 %v396_v14, %v13029_v22 }
 0x11f   : > { %v505_v53 = vadd.bf16 %v13546_v11, %v13031_v33  ;;  %v1499_v41 = vsel %vm7912_vm2, %v1494_v40, %v1498_v4  ;;  %v9081_v45 = vrot.slane %v2735_v60, 4  ;;  %v1509_v42 = vsel %vm7912_vm2, %v1504_v54, %v1508_v21 }
 0x120   : > { %13547 = vst [vmem:[#allocation159_spill] sm:$0xff] %v9079_v25  ;;  %v1965_v18 = vadd.bf16 %v1499_v41, %v704_v2  ;;  %v9085_v6 = vrot.slane %v2766_v56, 5  ;;  %v1966_v48 = vadd.bf16 %v1509_v42, %v705_v13  ;;  %v9089_v11 = vmul.bf16 1061175104, %v506_v15 }
 0x121   : > { %13548 = vst [vmem:[#allocation160_spill] sm:$0xff] %v9081_v45  ;;  %v9087_v35 = vmul.bf16 1061175104, %v505_v53  ;;  %v9092_v19 = vmul.bf16 1061175104, %v9079_v25  ;;  %v2763_v14 = vor.u32 %v2762_v0, %v2759_v37  ;;  %v9096_v4 = vrot.slane %v2770_v23, 4 }
 0x122   : > { %13549 = vst [vmem:[#allocation161_spill] sm:$0xff] %v9085_v6  ;;  %13551 = vst [vmem:[#allocation163_spill] sm:$0xff] %v9089_v11  ;;  %v2076_v40 = vsel %vm7938_vm4, 0, %v1965_v18  ;;  %v2077_v21 = vsel %vm7938_vm4, 0, %v1966_v48  ;;  %v1524_v56 = vshll.u32 %v9089_v11, 16  ;;  %v1528_v42 = vshrl.u32 %v9089_v11, 16 }
 0x123   : > { %13550 = vst [vmem:[#allocation162_spill] sm:$0xff] %v9087_v35  ;;  %13552 = vst [vmem:[#allocation164_spill] sm:$0xff] %v9092_v19  ;;  %v1515_v2 = vshrl.u32 %v9087_v35, 16  ;;  %v1518_v13 = vshll.u32 %v9087_v35, 16  ;;  %v9104_v54 = vcombine.low %v2076_v40, %v2077_v21  ;;  %v707_v41 = vmul.bf16 1048592000, %v505_v53 }
 0x124   : > { %v1534_v37 = vshll.u32 %v9092_v19, 16  ;;  %v9108_v0 = vrot.slane %v2745_v3, 4  ;;  %v1526_v22 = vrot.slane %v1524_v56, 5  ;;  %v2773_v48 = vor.u32 %v9096_v4, %v9085_v6 }
 0x125   : > { %13553 = vst [vmem:[#allocation165_spill] sm:$0xff] %v9104_v54  ;;  %v1517_v23 = vrot.slane %v1515_v2, 4  ;;  %v1520_v18 = vrot.slane %v1518_v13, 5  ;;  %3745 = vrot.lane.b32.xlu1 %v9104_v54, %s7839_s27  ;;  %v1530_v52 = vrot.slane %v1528_v42, 4  ;;  %v2785_v40 = vshrl.u32 %v707_v41, 16 }
 0x126   : > { %13554 = vst [vmem:[#allocation166_spill] sm:$0xff] %v9108_v0  ;;  %v2788_v21 = vshll.u32 %v707_v41, 16  ;;  %v708_v53 = vmul.bf16 1048592000, %v506_v15  ;;  %v398_v60 = vmul.bf16 1061175104, %v9053_v46 }
 0x127   : > { %v1521_v33 = vor.u32 %v1520_v18, %v1517_v23  ;;  %v399_v3 = vmul.bf16 1061175104, %v9059_v12  ;;  %v9116_v5 = vrot.slane %v2763_v14, 4  ;;  %v1531_v2 = vor.u32 %v1530_v52, %v1526_v22  ;;  %v9129_v18 = vld [vmem:[%s7919_s26 + $0xa8] sm:$0xf] }
 0x128   : > { %v1536_v13 = vrot.slane %v1534_v37, 5  ;;  %v13556_v56 = vmul.bf16 1048592000, %v8928_v28  ;;  %v13557_v4 = vmul.bf16 1061175104, %v9041_v16  ;;  %v2794_v19 = vshll.u32 %v708_v53, 16 }
 0x129   : > { %13555 = vst [vmem:[#allocation167_spill] sm:$0xff] %v9116_v5  ;;  %v1522_v54 = vrot.slane %v1521_v33, 4  ;;  %v13558_v42 = vmul.bf16 1048592000, %v8954_v20  ;;  %v13559_v15 = vmul.bf16 1048592000, %v8961_v55 }
 0x12a   : > { %v448_v11 = vadd.bf16 %v13557_v4, %v13556_v56  ;;  %v1532_v14 = vrot.slane %v1531_v2, 4  ;;  %v2787_v52 = vrot.slane %v2785_v40, 4  ;;  %v2790_v37 = vrot.slane %v2788_v21, 5  ;;  %v9156_v40 = vld [vmem:[%s7919_s26 + $0xb0] sm:$0x1] }
 0x12b   : > { %v449_v35 = vadd.bf16 %v398_v60, %v13558_v42  ;;  %v9126_v23 = vadd.bf16 %v399_v3, %v13559_v15  ;;  %v1527_v28 = vsel %vm7912_vm2, %v1522_v54, %v1526_v22  ;;  %v2798_v33 = vshrl.u32 %v708_v53, 16  ;;  %v9148_v15 = vld [vmem:[%s7919_s26 + $0xac] sm:$0xf] }
 0x12c   : > { %v9131_v25 = vmul.bf16 1061175104, %v448_v11  ;;  %v1537_v55 = vsel %vm7912_vm2, %v1532_v14, %v1536_v13  ;;  %v1968_v4 = vadd.bf16 %v1527_v28, %v707_v41  ;;  %v710_v0 = vmul.bf16 1048592000, %v448_v11 }
 0x12d   : > { %13560 = vst [vmem:[#allocation168_spill] sm:$0xff] %v9126_v23  ;;  %v9135_v56 = vmul.bf16 1061175104, %v449_v35  ;;  %v9138_v20 = vmul.bf16 1061175104, %v9126_v23  ;;  %v1969_v21 = vadd.bf16 %v1537_v55, %v708_v53  ;;  %v9158_v5 = vrot.slane %v2794_v19, 5 }
 0x12e   : > { %13561 = vst [vmem:[#allocation169_spill] sm:$0xff] %v9131_v25  ;;  %v1543_v2 = vshrl.u32 %v9131_v25, 16  ;;  %v1546_v42 = vshll.u32 %v9131_v25, 16  ;;  %v2079_v23 = vsel %vm7938_vm4, 0, %v1968_v4  ;;  %v2791_v25 = vor.u32 %v2790_v37, %v2787_v52 }
 0x12f   : > { %13562 = vst [vmem:[#allocation170_spill] sm:$0xff] %v9135_v56  ;;  %13563 = vst [vmem:[#allocation171_spill] sm:$0xff] %v9138_v20  ;;  %v1552_v22 = vshll.u32 %v9135_v56, 16  ;;  %v1556_v54 = vshrl.u32 %v9135_v56, 16  ;;  %v1562_v41 = vshll.u32 %v9138_v20, 16  ;;  %v2080_v14 = vsel %vm7938_vm4, 0, %v1969_v21 }
 0x130   : > { %v1545_v13 = vrot.slane %v1543_v2, 4  ;;  %v1548_v28 = vrot.slane %v1546_v42, 5  ;;  %13564 = vst [vmem:[#allocation172_spill] sm:$0xff] %v9158_v5  ;;  %v9160_v56 = vrot.slane %v2798_v33, 4  ;;  %v9162_v6 = vcombine.low %v2079_v23, %v2080_v14 }
 0x131   : > { %v1554_v53 = vrot.slane %v1552_v22, 5  ;;  %v1558_v55 = vrot.slane %v1556_v54, 4  ;;  %v1564_v2 = vrot.slane %v1562_v41, 5  ;;  %v2813_v45 = vshrl.u32 %v710_v0, 16 }
 0x132   : > { %13565 = vst [vmem:[#allocation173_spill] sm:$0xff] %v9162_v6  ;;  %v1549_v4 = vor.u32 %v1548_v28, %v1545_v13  ;;  %3747 = vrot.lane.b32.xlu0 %v9162_v6, %s7839_s27  ;;  %v711_v21 = vmul.bf16 1048592000, %v449_v35  ;;  %v13050_v42 = vmul.bf16 1048592000, %v9148_v15  ;;  %v9172_v33 = vrot.slane %v2773_v48, 4 }
 0x133   : > { %v1559_v11 = vor.u32 %v1558_v55, %v1554_v53  ;;  %v13049_v22 = vmul.bf16 1048592000, %v9156_v40  ;;  %v13566_v52 = vmul.bf16 1048592000, %v9129_v18  ;;  %v13567_v19 = vmul.bf16 1061175104, %v9041_v16 }
 0x134   : > { %13568 = vst [vmem:[#allocation174_spill] sm:$0xff] %v9172_v33  ;;  %v1550_v23 = vrot.slane %v1549_v4, 4  ;;  %v2816_v13 = vshll.u32 %v710_v0, 16  ;;  %v9174_v41 = vrot.slane %v2791_v25, 4  ;;  %v2801_v14 = vor.u32 %v9160_v56, %v9158_v5 }
 0x135   : > { %v508_v37 = vadd.bf16 %v13567_v19, %v13566_v52  ;;  %v1560_v54 = vrot.slane %v1559_v11, 4  ;;  %v509_v35 = vadd.bf16 %v398_v60, %v13050_v42  ;;  %v9182_v28 = vadd.bf16 %v399_v3, %v13049_v22 }
 0x136   : > { %13569 = vst [vmem:[#allocation175_spill] sm:$0xff] %v9174_v41  ;;  %v1555_v55 = vsel %vm7912_vm2, %v1550_v23, %v1554_v53  ;;  %v2815_v4 = vrot.slane %v2813_v45, 4  ;;  %v2822_v19 = vshll.u32 %v711_v21, 16  ;;  %v2826_v56 = vshrl.u32 %v711_v21, 16 }
 0x137   : > { %13570 = vst [vmem:[#allocation176_spill] sm:$0xff] %v9182_v28  ;;  %v1565_v48 = vsel %vm7912_vm2, %v1560_v54, %v1564_v2  ;;  %v9188_v11 = vmul.bf16 1061175104, %v508_v37  ;;  %v1971_v25 = vadd.bf16 %v1555_v55, %v710_v0  ;;  %v2818_v6 = vrot.slane %v2816_v13, 5 }
 0x138   : > { %v1972_v52 = vadd.bf16 %v1565_v48, %v711_v21  ;;  %v9190_v20 = vmul.bf16 1061175104, %v509_v35  ;;  %v9193_v60 = vmul.bf16 1061175104, %v9182_v28  ;;  %v713_v2 = vmul.bf16 1048592000, %v508_v37 }
 0x139   : > { %13571 = vst [vmem:[#allocation177_spill] sm:$0xff] %v9188_v11  ;;  %v1571_v3 = vshrl.u32 %v9188_v11, 16  ;;  %v2082_v53 = vsel %vm7938_vm4, 0, %v1971_v25  ;;  %v1574_v0 = vshll.u32 %v9188_v11, 16  ;;  %v9205_v55 = vrot.slane %v2822_v19, 5 }
 0x13a   : > { %13572 = vst [vmem:[#allocation178_spill] sm:$0xff] %v9190_v20  ;;  %13573 = vst [vmem:[#allocation179_spill] sm:$0xff] %v9193_v60  ;;  %v2083_v45 = vsel %vm7938_vm4, 0, %v1972_v52  ;;  %v1580_v54 = vshll.u32 %v9190_v20, 16  ;;  %v1584_v13 = vshrl.u32 %v9190_v20, 16  ;;  %v1590_v22 = vshll.u32 %v9193_v60, 16 }
 0x13b   : > { %v9201_v23 = vcombine.low %v2082_v53, %v2083_v45  ;;  %v1573_v21 = vrot.slane %v1571_v3, 4  ;;  %13575 = vst [vmem:[#allocation181_spill] sm:$0xff] %v9205_v55  ;;  %v1576_v48 = vrot.slane %v1574_v0, 5  ;;  %v2841_v42 = vshrl.u32 %v713_v2, 16 }
 0x13c   : > { %v714_v25 = vmul.bf16 1048592000, %v509_v35  ;;  %v1582_v37 = vrot.slane %v1580_v54, 5  ;;  %v1586_v52 = vrot.slane %v1584_v13, 4  ;;  %v2844_v11 = vshll.u32 %v713_v2, 16 }
 0x13d   : > { %13574 = vst [vmem:[#allocation180_spill] sm:$0xff] %v9201_v23  ;;  %3749 = vrot.lane.b32.xlu1 %v9201_v23, %s7839_s27  ;;  %v2819_v53 = vor.u32 %v2818_v6, %v2815_v4  ;;  %v2828_v45 = vrot.slane %v2826_v56, 4  ;;  %v1577_v3 = vor.u32 %v1576_v48, %v1573_v21  ;;  %v400_v28 = vmul.bf16 1061175104, %v9129_v18 }
 0x13e   : > { %v1587_v33 = vor.u32 %v1586_v52, %v1582_v37  ;;  %v1592_v19 = vrot.slane %v1590_v22, 5  ;;  %v2850_v20 = vshll.u32 %v714_v25, 16  ;;  %v401_v0 = vmul.bf16 1061175104, %v9148_v15 }
 0x13f   : > { %v1578_v60 = vrot.slane %v1577_v3, 4  ;;  %v2843_v41 = vrot.slane %v2841_v42, 4  ;;  %v402_v5 = vmul.bf16 1061175104, %v9156_v40  ;;  %v13576_v35 = vmul.bf16 1048592000, %v9041_v16 }
 0x140   : > { %v1588_v13 = vrot.slane %v1587_v33, 4  ;;  %v2846_v23 = vrot.slane %v2844_v11, 5  ;;  %v2854_v6 = vshrl.u32 %v714_v25, 16  ;;  %v13577_v4 = vmul.bf16 1048592000, %v9053_v46 }
 0x141   : > { %v451_v54 = vadd.bf16 %v400_v28, %v13576_v35  ;;  %v9217_v21 = vrot.slane %v2801_v14, 4  ;;  %v2829_v22 = vor.u32 %v2828_v45, %v9205_v55  ;;  %v1583_v48 = vsel %vm7912_vm2, %v1578_v60, %v1582_v37  ;;  %v9227_v3 = vld [vmem:[%s7919_s26 + $0xb4] sm:$0xf] }
 0x142   : > { %v452_v56 = vadd.bf16 %v401_v0, %v13577_v4  ;;  %v13579_v42 = vmul.bf16 1048592000, %v9059_v12  ;;  %v9229_v16 = vrot.slane %v2819_v53, 4  ;;  %v1593_v46 = vsel %vm7912_vm2, %v1588_v13, %v1592_v19  ;;  %v9253_v4 = vld [vmem:[%s7919_s26 + $0xb8] sm:$0xf] }
 0x143   : > { %13578 = vst [vmem:[#allocation182_spill] sm:$0xff] %v9217_v21  ;;  %v1974_v33 = vadd.bf16 %v1583_v48, %v713_v2  ;;  %v9233_v14 = vrot.slane %v2850_v20, 5  ;;  %v1975_v11 = vadd.bf16 %v1593_v46, %v714_v25  ;;  %v9235_v45 = vmul.bf16 1061175104, %v451_v54 }
 0x144   : > { %v9224_v52 = vadd.bf16 %v402_v5, %v13579_v42  ;;  %13581 = vst [vmem:[#allocation184_spill] sm:$0xff] %v9229_v16  ;;  %v9237_v60 = vmul.bf16 1061175104, %v452_v56  ;;  %v2847_v53 = vor.u32 %v2846_v23, %v2843_v41  ;;  %v9244_v35 = vrot.slane %v2854_v6, 4  ;;  %v9260_v6 = vld [vmem:[%s7919_s26 + $0xbc] sm:$0x1] }
 0x145   : > { %13582 = vst [vmem:[#allocation185_spill] sm:$0xff] %v9235_v45  ;;  %v2085_v37 = vsel %vm7938_vm4, 0, %v1974_v33  ;;  %v2086_v20 = vsel %vm7938_vm4, 0, %v1975_v11  ;;  %v1599_v2 = vshrl.u32 %v9235_v45, 16  ;;  %v1602_v25 = vshll.u32 %v9235_v45, 16 }
 0x146   : > { %13580 = vst [vmem:[#allocation183_spill] sm:$0xff] %v9224_v52  ;;  %13583 = vst [vmem:[#allocation186_spill] sm:$0xff] %v9237_v60  ;;  %v9240_v12 = vmul.bf16 1061175104, %v9224_v52  ;;  %v1608_v13 = vshll.u32 %v9237_v60, 16  ;;  %v9255_v48 = vcombine.low %v2085_v37, %v2086_v20  ;;  %v1612_v41 = vshrl.u32 %v9237_v60, 16 }
 0x147   : > { %v716_v42 = vmul.bf16 1048592000, %v451_v54  ;;  %v717_v46 = vmul.bf16 1048592000, %v452_v56  ;;  %v1601_v33 = vrot.slane %v1599_v2, 4  ;;  %v1604_v11 = vrot.slane %v1602_v25, 5 }
 0x148   : > { %13584 = vst [vmem:[#allocation187_spill] sm:$0xff] %v9240_v12  ;;  %13585 = vst [vmem:[#allocation188_spill] sm:$0xff] %v9255_v48  ;;  %v1618_v23 = vshll.u32 %v9240_v12, 16  ;;  %v1610_v19 = vrot.slane %v1608_v13, 5  ;;  %v9262_v52 = vrot.slane %v2829_v22, 4  ;;  %3751 = vrot.lane.b32.xlu0 %v9255_v48, %s7839_s27  ;;  %v1614_v45 = vrot.slane %v1612_v41, 4 }
 0x149   : > { %v2869_v16 = vshrl.u32 %v716_v42, 16  ;;  %v2872_v37 = vshll.u32 %v716_v42, 16  ;;  %v1605_v20 = vor.u32 %v1604_v11, %v1601_v33  ;;  %v2878_v54 = vshll.u32 %v717_v46, 16 }
 0x14a   : > { %13586 = vst [vmem:[#allocation189_spill] sm:$0xff] %v9262_v52  ;;  %v13069_v60 = vmul.bf16 1048592000, %v9253_v4  ;;  %v13068_v12 = vmul.bf16 1048592000, %v9260_v6  ;;  %v2857_v56 = vor.u32 %v9244_v35, %v9233_v14  ;;  %v1615_v2 = vor.u32 %v1614_v45, %v1610_v19 }
 0x14b   : > { %v1620_v25 = vrot.slane %v1618_v23, 5  ;;  %v13587_v22 = vmul.bf16 1048592000, %v9227_v3  ;;  %v9272_v52 = vrot.slane %v2847_v53, 4  ;;  %v1606_v48 = vrot.slane %v1605_v20, 4 }
 0x14c   : > { %v512_v41 = vadd.bf16 %v401_v0, %v13069_v60  ;;  %v9278_v33 = vadd.bf16 %v402_v5, %v13068_v12  ;;  %v1616_v11 = vrot.slane %v1615_v2, 4  ;;  %v2871_v55 = vrot.slane %v2869_v16, 4 }
 0x14d   : > { %v511_v13 = vadd.bf16 %v400_v28, %v13587_v22  ;;  %13588 = vst [vmem:[#allocation190_spill] sm:$0xff] %v9272_v52  ;;  %v2874_v21 = vrot.slane %v2872_v37, 5  ;;  %v1611_v45 = vsel %vm7912_vm2, %v1606_v48, %v1610_v19  ;;  %v9284_v35 = vrot.slane %v2878_v54, 5 }
 0x14e   : > { %13589 = vst [vmem:[#allocation191_spill] sm:$0xff] %v9278_v33  ;;  %v9286_v28 = vmul.bf16 1061175104, %v512_v41  ;;  %v9289_v53 = vmul.bf16 1061175104, %v9278_v33  ;;  %v1621_v0 = vsel %vm7912_vm2, %v1616_v11, %v1620_v25  ;;  %v1977_v5 = vadd.bf16 %v1611_v45, %v716_v42 }
 0x14f   : > { %v9280_v61 = vmul.bf16 1061175104, %v511_v13  ;;  %13591 = vst [vmem:[#allocation193_spill] sm:$0xff] %v9284_v35  ;;  %v2882_v23 = vshrl.u32 %v717_v46, 16  ;;  %v1978_v37 = vadd.bf16 %v1621_v0, %v717_v46  ;;  %v2875_v45 = vor.u32 %v2874_v21, %v2871_v55 }
 0x150   : > { %13592 = vst [vmem:[#allocation194_spill] sm:$0xff] %v9286_v28  ;;  %13593 = vst [vmem:[#allocation195_spill] sm:$0xff] %v9289_v53  ;;  %v1636_v2 = vshll.u32 %v9286_v28, 16  ;;  %v1640_v19 = vshrl.u32 %v9286_v28, 16  ;;  %v2088_v48 = vsel %vm7938_vm4, 0, %v1977_v5  ;;  %v1646_v22 = vshll.u32 %v9289_v53, 16 }
 0x151   : > { %13590 = vst [vmem:[#allocation192_spill] sm:$0xff] %v9280_v61  ;;  %v1627_v16 = vshrl.u32 %v9280_v61, 16  ;;  %v1630_v20 = vshll.u32 %v9280_v61, 16  ;;  %v2089_v42 = vsel %vm7938_vm4, 0, %v1978_v37  ;;  %v2884_v0 = vrot.slane %v2882_v23, 4 }
 0x152   : > { %v1638_v11 = vrot.slane %v1636_v2, 5  ;;  %v1642_v46 = vrot.slane %v1640_v19, 4  ;;  %v9303_v60 = vcombine.low %v2088_v48, %v2089_v42  ;;  %v719_v61 = vmul.bf16 1048592000, %v511_v13 }
 0x153   : > { %v1629_v54 = vrot.slane %v1627_v16, 4  ;;  %v1632_v25 = vrot.slane %v1630_v20, 5  ;;  %v720_v28 = vmul.bf16 1048592000, %v512_v41  ;;  %v1648_v5 = vrot.slane %v1646_v22, 5 }
 0x154   : > { %13594 = vst [vmem:[#allocation196_spill] sm:$0xff] %v9303_v60  ;;  %v1643_v52 = vor.u32 %v1642_v46, %v1638_v11  ;;  %3753 = vrot.lane.b32.xlu1 %v9303_v60, %s7839_s27  ;;  %v2897_v16 = vshrl.u32 %v719_v61, 16  ;;  %v404_v12 = vmul.bf16 1061175104, %v9253_v4  ;;  %v405_v37 = vmul.bf16 1061175104, %v9260_v6 }
 0x155   : > { %v1633_v33 = vor.u32 %v1632_v25, %v1629_v54  ;;  %v13595_v20 = vmul.bf16 1048592000, %v9129_v18  ;;  %v13596_v55 = vmul.bf16 1061175104, %v9227_v3  ;;  %v9313_v23 = vrot.slane %v2857_v56, 4 }
 0x156   : > { %v1644_v41 = vrot.slane %v1643_v52, 4  ;;  %v2900_v2 = vshll.u32 %v719_v61, 16  ;;  %v9315_v19 = vrot.slane %v2875_v45, 4  ;;  %v2906_v48 = vshll.u32 %v720_v28, 16 }
 0x157   : > { %v454_v21 = vadd.bf16 %v13596_v55, %v13595_v20  ;;  %13597 = vst [vmem:[#allocation197_spill] sm:$0xff] %v9313_v23  ;;  %v1634_v13 = vrot.slane %v1633_v33, 4  ;;  %v13599_v54 = vmul.bf16 1048592000, %v9148_v15  ;;  %v13600_v42 = vmul.bf16 1048592000, %v9156_v40 }
 0x158   : > { %13598 = vst [vmem:[#allocation198_spill] sm:$0xff] %v9315_v19  ;;  %v2885_v18 = vor.u32 %v2884_v0, %v9284_v35  ;;  %v1649_v52 = vsel %vm7912_vm2, %v1644_v41, %v1648_v5  ;;  %v2899_v15 = vrot.slane %v2897_v16, 4  ;;  %v2910_v20 = vshrl.u32 %v720_v28, 16 }
 0x159   : > { %v455_v22 = vadd.bf16 %v404_v12, %v13599_v54  ;;  %v9321_v25 = vadd.bf16 %v405_v37, %v13600_v42  ;;  %v1639_v56 = vsel %vm7912_vm2, %v1634_v13, %v1638_v11  ;;  %v9328_v33 = vmul.bf16 1061175104, %v454_v21 }
 0x15a   : > { %v1980_v46 = vadd.bf16 %v1639_v56, %v719_v61  ;;  %v1981_v45 = vadd.bf16 %v1649_v52, %v720_v28  ;;  %v2902_v55 = vrot.slane %v2900_v2, 5  ;;  %v9340_v13 = vrot.slane %v2906_v48, 5  ;;  %v9344_v28 = vld [vmem:[%s7919_s26 + $0xc0] sm:$0xf]  ;;  %v9351_v56 = vld [vmem:[%s7919_s26 + $0xc4] sm:$0xf] }
 0x15b   : > { %13601 = vst [vmem:[#allocation199_spill] sm:$0xff] %v9321_v25  ;;  %13602 = vst [vmem:[#allocation200_spill] sm:$0xff] %v9328_v33  ;;  %v9330_v40 = vmul.bf16 1061175104, %v455_v22  ;;  %v9333_v54 = vmul.bf16 1061175104, %v9321_v25 }
 0x15c   : > { %v1655_v0 = vshrl.u32 %v9328_v33, 16  ;;  %v2091_v11 = vsel %vm7938_vm4, 0, %v1980_v46  ;;  %v2092_v5 = vsel %vm7938_vm4, 0, %v1981_v45  ;;  %v1658_v61 = vshll.u32 %v9328_v33, 16  ;;  %13605 = vst [vmem:[#allocation203_spill] sm:$0xff] %v9344_v28  ;;  %13607 = vst [vmem:[#allocation205_spill] sm:$0xff] %v9351_v56 }
 0x15d   : > { %13603 = vst [vmem:[#allocation201_spill] sm:$0xff] %v9330_v40  ;;  %13604 = vst [vmem:[#allocation202_spill] sm:$0xff] %v9333_v54  ;;  %v9346_v16 = vcombine.low %v2091_v11, %v2092_v5  ;;  %v1664_v2 = vshll.u32 %v9330_v40, 16  ;;  %v1668_v42 = vshrl.u32 %v9330_v40, 16  ;;  %v9353_v52 = vrot.slane %v2910_v20, 4 }
 0x15e   : > { %v1657_v41 = vrot.slane %v1655_v0, 4  ;;  %v722_v46 = vmul.bf16 1048592000, %v454_v21  ;;  %v1660_v45 = vrot.slane %v1658_v61, 5  ;;  %v1674_v48 = vshll.u32 %v9333_v54, 16 }
 0x15f   : > { %13606 = vst [vmem:[#allocation204_spill] sm:$0xff] %v9346_v16  ;;  %v2903_v60 = vor.u32 %v2902_v55, %v2899_v15  ;;  %3755 = vrot.lane.b32.xlu0 %v9346_v16, %s7839_s27  ;;  %v723_v33 = vmul.bf16 1048592000, %v455_v22  ;;  %v1666_v11 = vrot.slane %v1664_v2, 5  ;;  %v1670_v5 = vrot.slane %v1668_v42, 4 }
 0x160   : > { %v9359_v0 = vld [vmem:[%s7919_s26 + $0xc8] sm:$0x1]  ;;  %v1661_v25 = vor.u32 %v1660_v45, %v1657_v41  ;;  %v2925_v53 = vshrl.u32 %v722_v46, 16  ;;  %v2928_v40 = vshll.u32 %v722_v46, 16  ;;  %v358_v19 = vmul.bf16 1048592000, %v9344_v28 }
 0x161   : > { %13608 = vst [vmem:[#allocation206_spill] sm:$0xff] %v9359_v0  ;;  %v1671_v20 = vor.u32 %v1670_v5, %v1666_v11  ;;  %v1676_v35 = vrot.slane %v1674_v48, 5  ;;  %v2934_v21 = vshll.u32 %v723_v33, 16  ;;  %v359_v61 = vmul.bf16 1048592000, %v9351_v56 }
 0x162   : > { %v9363_v54 = vrot.slane %v2885_v18, 4  ;;  %v1662_v15 = vrot.slane %v1661_v25, 4  ;;  %v360_v55 = vmul.bf16 1048592000, %v9359_v0  ;;  %v13610_v22 = vmul.bf16 1061175104, %v9227_v3 }
 0x163   : > { %v1672_v42 = vrot.slane %v1671_v20, 4  ;;  %v2938_v45 = vshrl.u32 %v723_v33, 16  ;;  %v515_v16 = vadd.bf16 %v404_v12, %v359_v61  ;;  %v9370_v23 = vrot.slane %v2903_v60, 4 }
 0x164   : > { %13609 = vst [vmem:[#allocation207_spill] sm:$0xff] %v9363_v54  ;;  %v514_v2 = vadd.bf16 %v13610_v22, %v358_v19  ;;  %v1667_v48 = vsel %vm7912_vm2, %v1662_v15, %v1666_v11  ;;  %v9374_v5 = vrot.slane %v2925_v53, 4  ;;  %v9376_v18 = vadd.bf16 %v405_v37, %v360_v55 }
 0x165   : > { %13611 = vst [vmem:[#allocation208_spill] sm:$0xff] %v9370_v23  ;;  %v1677_v25 = vsel %vm7912_vm2, %v1672_v42, %v1676_v35  ;;  %v1983_v54 = vadd.bf16 %v1667_v48, %v722_v46  ;;  %v9380_v19 = vrot.slane %v2928_v40, 5  ;;  %v9382_v22 = vrot.slane %v2934_v21, 5 }
 0x166   : > { %13612 = vst [vmem:[#allocation209_spill] sm:$0xff] %v9376_v18  ;;  %v1984_v20 = vadd.bf16 %v1677_v25, %v723_v33  ;;  %v9384_v41 = vmul.bf16 1061175104, %v514_v2  ;;  %v9386_v60 = vmul.bf16 1061175104, %v515_v16  ;;  %v9393_v37 = vrot.slane %v2938_v45, 4 }
 0x167   : > { %v9389_v12 = vmul.bf16 1061175104, %v9376_v18  ;;  %v2094_v53 = vsel %vm7938_vm4, 0, %v1983_v54  ;;  %v725_v11 = vmul.bf16 1048592000, %v514_v2  ;;  %v2931_v25 = vor.u32 %v9380_v19, %v9374_v5 }
 0x168   : > { %13613 = vst [vmem:[#allocation210_spill] sm:$0xff] %v9384_v41  ;;  %13614 = vst [vmem:[#allocation211_spill] sm:$0xff] %v9386_v60  ;;  %v2095_v40 = vsel %vm7938_vm4, 0, %v1984_v20  ;;  %v1683_v33 = vshrl.u32 %v9384_v41, 16  ;;  %v1686_v46 = vshll.u32 %v9384_v41, 16  ;;  %v1692_v21 = vshll.u32 %v9386_v60, 16 }
 0x169   : > { %13615 = vst [vmem:[#allocation212_spill] sm:$0xff] %v9389_v12  ;;  %v9401_v61 = vcombine.low %v2094_v53, %v2095_v40  ;;  %v726_v15 = vmul.bf16 1048592000, %v515_v16  ;;  %v1696_v55 = vshrl.u32 %v9386_v60, 16  ;;  %v1702_v54 = vshll.u32 %v9389_v12, 16 }
 0x16a   : > { %v1685_v42 = vrot.slane %v1683_v33, 4  ;;  %v1688_v2 = vrot.slane %v1686_v46, 5  ;;  %v1694_v45 = vrot.slane %v1692_v21, 5  ;;  %v2953_v48 = vshrl.u32 %v725_v11, 16 }
 0x16b   : > { %13616 = vst [vmem:[#allocation213_spill] sm:$0xff] %v9401_v61  ;;  %3757 = vrot.lane.b32.xlu1 %v9401_v61, %s7839_s27  ;;  %v1698_v20 = vrot.slane %v1696_v55, 4  ;;  %v2956_v35 = vshll.u32 %v725_v11, 16  ;;  %v2962_v41 = vshll.u32 %v726_v15, 16  ;;  %v2966_v40 = vshrl.u32 %v726_v15, 16 }
 0x16c   : > { %v1689_v53 = vor.u32 %v1688_v2, %v1685_v42  ;;  %v13093_v16 = vmul.bf16 1061175104, %v9351_v56  ;;  %v13092_v60 = vmul.bf16 1061175104, %v9359_v0  ;;  %v2941_v33 = vor.u32 %v9393_v37, %v9382_v22 }
 0x16d   : > { %v1699_v46 = vor.u32 %v1698_v20, %v1694_v45  ;;  %v1704_v21 = vrot.slane %v1702_v54, 5  ;;  %v13617_v12 = vmul.bf16 1048592000, %v9227_v3  ;;  %v13618_v5 = vmul.bf16 1061175104, %v9344_v28 }
 0x16e   : > { %v1690_v61 = vrot.slane %v1689_v53, 4  ;;  %v2955_v55 = vrot.slane %v2953_v48, 4  ;;  %v13619_v18 = vmul.bf16 1048592000, %v9253_v4  ;;  %v13620_v2 = vmul.bf16 1048592000, %v9260_v6 }
 0x16f   : > { %v457_v19 = vadd.bf16 %v13618_v5, %v13617_v12  ;;  %v1700_v37 = vrot.slane %v1699_v46, 4  ;;  %v2958_v54 = vrot.slane %v2956_v35, 5  ;;  %v9427_v20 = vrot.slane %v2962_v41, 5 }
 0x170   : > { %v458_v42 = vadd.bf16 %v13093_v16, %v13619_v18  ;;  %v9425_v23 = vadd.bf16 %v13092_v60, %v13620_v2  ;;  %v1695_v12 = vsel %vm7912_vm2, %v1690_v61, %v1694_v45  ;;  %v2968_v48 = vrot.slane %v2966_v40, 4 }
 0x171   : > { %v9429_v3 = vmul.bf16 1061175104, %v457_v19  ;;  %v1705_v6 = vsel %vm7912_vm2, %v1700_v37, %v1704_v21  ;;  %v1986_v53 = vadd.bf16 %v1695_v12, %v725_v11  ;;  %v628_v35 = vlaneseq }
 0x172   : > { %v9433_v4 = vmul.bf16 1061175104, %v458_v42  ;;  %v9436_v18 = vmul.bf16 1061175104, %v9425_v23  ;;  %v1987_v41 = vadd.bf16 %v1705_v6, %v726_v15  ;;  %v9446_v40 = vmul.bf16 1048592000, %v457_v19 }
 0x173   : > { %v1711_v46 = vshrl.u32 %v9429_v3, 16  ;;  %v1714_v5 = vshll.u32 %v9429_v3, 16  ;;  %v2097_v45 = vsel %vm7938_vm4, 0, %v1986_v53  ;;  %v13623_v12 = vor.u32 %v9353_v52, %v9340_v13 }
 0x174   : > { %13621 = vst [vmem:[#allocation214_spill] sm:$0xff] %v9433_v4  ;;  %13622 = vst [vmem:[#allocation215_spill] sm:$0xff] %v9436_v18  ;;  %v1720_v2 = vshll.u32 %v9433_v4, 16  ;;  %v1724_v61 = vshrl.u32 %v9433_v4, 16  ;;  %v1730_v16 = vshll.u32 %v9436_v18, 16  ;;  %v2098_v11 = vsel %vm7938_vm4, 0, %v1987_v41 }
 0x175   : > { %v1713_v60 = vrot.slane %v1711_v46, 4  ;;  %v1716_v21 = vrot.slane %v1714_v5, 5  ;;  %v9454_v6 = vrot.slane %v13623_v12, 4  ;;  %v2959_v0 = vor.u32 %v2958_v54, %v2955_v55 }
 0x176   : > { %v1722_v37 = vrot.slane %v1720_v2, 5  ;;  %v1726_v15 = vrot.slane %v1724_v61, 4  ;;  %v2969_v56 = vor.u32 %v2968_v48, %v9427_v20  ;;  %v9457_v53 = vcombine.low %v2097_v45, %v2098_v11 }
 0x177   : > { %v1717_v19 = vor.u32 %v1716_v21, %v1713_v60  ;;  %v1732_v28 = vrot.slane %v1730_v16, 5  ;;  %v2981_v4 = vshrl.u32 %v9446_v40, 16  ;;  %v9460_v18 = vrot.slane %v2931_v25, 4 }
 0x178   : > { %13624 = vst [vmem:[#allocation216_spill] sm:$0xff] %v9457_v53  ;;  %v1727_v46 = vor.u32 %v1726_v15, %v1722_v37  ;;  %3759 = vrot.lane.b32.xlu0 %v9457_v53, %s7839_s27  ;;  %v9464_v41 = vmul.bf16 1048592000, %v458_v42  ;;  %v2113_v52 = vshrl.u32 %v7910_v8, 16  ;;  %v2116_v55 = vshll.u32 %v7910_v8, 16  ;;  %v13698_v53 = vld [vmem:[#allocation72_spill] sm:$0xff] }
 0x179   : > { %v9468_v54 = vrot.slane %v2941_v33, 4  ;;  %v1718_v48 = vrot.slane %v1717_v19, 4  ;;  %v9470_v60 = vshrl.u32 %v628_v35, 7  ;;  %v9472_v16 = vrot.slane %v2959_v0, 4 }
 0x17a   : > { %v1728_v5 = vrot.slane %v1727_v46, 4  ;;  %v9474_v2 = vrot.slane %v2969_v56, 4  ;;  %v2115_v25 = vrot.slane %v2113_v52, 4  ;;  %v2118_v61 = vrot.slane %v2116_v55, 5 }
 0x17b   : > { %v1723_v42 = vsel %vm7912_vm2, %v1718_v48, %v1722_v37  ;;  %v9480_v11 = vrot.slane %v2981_v4, 4  ;;  %v3168_v33 = vadd.bf16 %v2113_v52, %v7901_v1  ;;  %vm2109_vm5 = vcmp.eq.s32.totalorder %v9470_v60, 0 }
 0x17c   : > { %v1733_v45 = vsel %vm7912_vm2, %v1728_v5, %v1732_v28  ;;  %v1989_v21 = vadd.bf16 %v1723_v42, %v9446_v40  ;;  %v2119_v56 = vor.u32 %v2118_v61, %v2115_v25  ;;  %v9491_v28 = vmul.bf16 1048592000, %v7981_v49  ;;  %vm9507_vm6 = vmpackc.low %vm2109_vm5, %vm2109_vm5 }
 0x17d   : > { %v1990_v35 = vadd.bf16 %v1733_v45, %v9464_v41  ;;  %v3279_v37 = vsel %vm7938_vm4, 0, %v3168_v33  ;;  %v2153_v55 = vsel %vm7912_vm2, %v8116_v51, %v8041_v27  ;;  %v9513_v33 = vmul.bf16 1048592000, %v7965_v34 }
 0x17e   : > { %v2100_v4 = vsel %vm7938_vm4, 0, %v1989_v21  ;;  %v2120_v19 = vrot.slane %v2119_v56, 4  ;;  %v7417_v46 = vcombine.low %v3279_v37, %v3279_v37  ;;  %v2160_v48 = vshll.u32 %v9491_v28, 16 }
 0x17f   : > { %v2101_v12 = vsel %vm7938_vm4, 0, %v1990_v35  ;;  %v2164_v49 = vshrl.u32 %v9491_v28, 16  ;;  %v3169_v45 = vadd.bf16 %v2153_v55, %v7983_v57  ;;  %v2188_v34 = vshll.u32 %v9513_v33, 16 }
 0x180   : > { %v9497_v52 = vcombine.low %v2100_v4, %v2101_v12  ;;  %v2125_v5 = vsel %vm7912_vm2, %v2120_v19, %v2118_v61  ;;  %v3868_v42 = vshll.u32 %v7417_v46, 16  ;;  %v2162_v51 = vrot.slane %v2160_v48, 5 }
 0x181   : > { %v3166_v27 = vadd.bf16 %v2125_v5, %v7901_v1  ;;  %v3171_v21 = vadd.bf16 %v2164_v49, %v7988_v62  ;;  %v2181_v61 = vsel %vm7912_vm2, %v8050_v31, %v8003_v43  ;;  %v3280_v57 = vsel %vm9507_vm6, 0, %v3169_v45 }
 0x182   : > { %13625 = vst [vmem:[#allocation217_spill] sm:$0xff] %v9497_v52  ;;  %3761 = vrot.lane.b32.xlu1 %v9497_v52, %s7839_s27  ;;  %v3870_v35 = vrot.slane %v3868_v42, 1  ;;  %v2192_v56 = vshrl.u32 %v9513_v33, 16  ;;  %v2163_v12 = vsel %vm7912_vm2, %v8125_v32, %v2162_v51  ;;  %v2190_v55 = vrot.slane %v2188_v34, 5  ;;  %v13695_v52 = vld [vmem:[#allocation71_spill] sm:$0xff]  ;;  %s7592_s27 = sshll.u32 %s14493_s20, 8 }
 0x183   : > { %v3277_v37 = vsel %vm9507_vm6, 0, %v3166_v27  ;;  %v3278_v4 = vsel %vm7938_vm4, 0, %v3166_v27  ;;  %v3282_v43 = vsel %vm7938_vm4, 0, %v3171_v21  ;;  %v3170_v19 = vadd.bf16 %v2163_v12, %v7985_v58 }
 0x184   : > { %v9536_v31 = vcombine.low %v3277_v37, %v3278_v4  ;;  %v7418_v46 = vcombine.low %v3282_v43, %v3282_v43  ;;  %v3172_v48 = vadd.bf16 %v2181_v61, %v7967_v36  ;;  %v3174_v49 = vadd.bf16 %v2192_v56, %v7974_v39 }
 0x185   : > { %v9542_v5 = vmul.bf16 1048592000, %v8027_v10  ;;  %v2209_v32 = vsel %vm7912_vm2, %v8155_v7, %v8100_v59  ;;  %v3281_v58 = vsel %vm7938_vm4, 0, %v3170_v19  ;;  %v2191_v36 = vsel %vm7912_vm2, %v8065_v50, %v2190_v55 }
 0x186   : > { %13628 = vst [vmem:[#allocation218_spill] sm:$0xff] %v9536_v31  ;;  %v3861_v42 = vshrl.u32 %v9536_v31, 16  ;;  %v3863_v45 = vshll.u32 %v9536_v31, 16  ;;  %v3880_v27 = vshll.u32 %v7418_v46, 16  ;;  %v9552_v51 = vcombine.low %v3280_v57, %v3281_v58 }
 0x187   : > { %v3283_v10 = vsel %vm9507_vm6, 0, %v3172_v48  ;;  %v3285_v59 = vsel %vm7938_vm4, 0, %v3174_v49  ;;  %v3173_v61 = vadd.bf16 %v2191_v36, %v7971_v38  ;;  %v2216_v37 = vshll.u32 %v9542_v5, 16 }
 0x188   : > { %13629 = vst [vmem:[#allocation219_spill] sm:$0xff] %v9552_v51  ;;  %v3865_v7 = vrot.slane %v3863_v45, 1  ;;  %v3882_v21 = vrot.slane %v3880_v27, 1  ;;  %v7419_v34 = vcombine.low %v3285_v59, %v3285_v59  ;;  %v3873_v56 = vshrl.u32 %v9552_v51, 16  ;;  %v13633_v59 = vld [vmem:[#allocation17_spill] sm:$0xff] }
 0x189   : > { %v3875_v57 = vshll.u32 %v9552_v51, 16  ;;  %v2220_v4 = vshrl.u32 %v9542_v5, 16  ;;  %v3284_v12 = vsel %vm7938_vm4, 0, %v3173_v61  ;;  %v3175_v19 = vadd.bf16 %v2209_v32, %v8039_v26 }
 0x18a   : > { %v3866_v50 = vor.u32 %v3865_v7, %v3861_v42  ;;  %v3892_v43 = vshll.u32 %v7419_v34, 16  ;;  %v9569_v55 = vcombine.low %v3283_v10, %v3284_v12  ;;  %v2218_v38 = vrot.slane %v2216_v37, 5  ;;  %v13636_v12 = vld [vmem:[#allocation12_spill] sm:$0xff] }
 0x18b   : > { %v3877_v46 = vrot.slane %v3875_v57, 1  ;;  %v3177_v48 = vadd.bf16 %v2220_v4, %v8048_v30  ;;  %v3286_v58 = vsel %vm9507_vm6, 0, %v3175_v19  ;;  %v9578_v42 = vmul.bf16 1048592000, %v8078_v24  ;;  %v13632_v24 = vld [vmem:[#allocation11_spill] sm:$0xff] }
 0x18c   : > { %13630 = vst [vmem:[#allocation220_spill] sm:$0xff] %v9569_v55  ;;  %v9573_v49 = vsel %vm3859_vm7, %v3866_v50, %v3870_v35  ;;  %v3894_v45 = vrot.slane %v3892_v43, 1  ;;  %v3885_v32 = vshrl.u32 %v9569_v55, 16  ;;  %v3887_v27 = vshll.u32 %v9569_v55, 16  ;;  %v13635_v4 = vld [vmem:[#allocation7_spill] sm:$0xff] }
 0x18d   : > { %13631 = vst [vmem:[#allocation221_spill] sm:$0xff] %v9573_v49  ;;  %4244 = vrot.lane.b32.xlu0 %v9573_v49, %s7840_s28  ;;  %v3878_v26 = vor.u32 %v3877_v46, %v3873_v56  ;;  %v2219_v35 = vsel %vm7912_vm2, %v8164_v44, %v2218_v38  ;;  %v3288_v10 = vsel %vm7938_vm4, 0, %v3177_v48  ;;  %v2237_v7 = vsel %vm7912_vm2, %v13633_v59, %v13632_v24  ;;  %v13638_v38 = vld [vmem:[#allocation9_spill] sm:$0xff] }
 0x18e   : > { %v3176_v36 = vadd.bf16 %v2219_v35, %v8045_v29  ;;  %v2244_v61 = vshll.u32 %v9578_v42, 16  ;;  %v3889_v56 = vrot.slane %v3887_v27, 1  ;;  %v7420_v57 = vcombine.low %v3288_v10, %v3288_v10  ;;  %v13641_v10 = vld [vmem:[#allocation25_spill] sm:$0xff] }
 0x18f   : > { %v9596_v34 = vsel %vm3859_vm7, %v3878_v26, %v3882_v21  ;;  %v2248_v37 = vshrl.u32 %v9578_v42, 16  ;;  %v3178_v50 = vadd.bf16 %v2237_v7, %v13635_v4  ;;  %v9605_v43 = vmul.bf16 1048592000, %v13636_v12  ;;  %v13639_v26 = vld [vmem:[#allocation18_spill] sm:$0xff] }
 0x190   : > { %13634 = vst [vmem:[#allocation11_spill] sm:$0xff] %v9596_v34  ;;  %4246 = vrot.lane.b32.xlu1 %v9596_v34, %s7840_s28  ;;  %v3287_v44 = vsel %vm7938_vm4, 0, %v3176_v36  ;;  %v2246_v29 = vrot.slane %v2244_v61, 5  ;;  %v3890_v19 = vor.u32 %v3889_v56, %v3885_v32  ;;  %v3904_v21 = vshll.u32 %v7420_v57, 16  ;;  %v13640_v36 = vld [vmem:[#allocation24_spill] sm:$0xff] }
 0x191   : > { %v9607_v46 = vcombine.low %v3286_v58, %v3287_v44  ;;  %v3180_v48 = vadd.bf16 %v2248_v37, %v13638_v38  ;;  %v3289_v35 = vsel %vm9507_vm6, 0, %v3178_v50  ;;  %v2265_v24 = vsel %vm7912_vm2, %v13641_v10, %v13640_v36  ;;  %v13643_v56 = vld [vmem:[#allocation8_spill] sm:$0xff]  ;;  %v13646_v36 = vld [vmem:[#allocation15_spill] sm:$0xff] }
 0x192   : > { %v2247_v27 = vsel %vm7912_vm2, %v13639_v26, %v2246_v29  ;;  %v2272_v59 = vshll.u32 %v9605_v43, 16  ;;  %v9621_v58 = vsel %vm3859_vm7, %v3890_v19, %v3894_v45  ;;  %v3906_v61 = vrot.slane %v3904_v21, 1  ;;  %v13644_v45 = vld [vmem:[#allocation13_spill] sm:$0xff]  ;;  %v13645_v19 = vld [vmem:[#allocation20_spill] sm:$0xff] }
 0x193   : > { %13637 = vst [vmem:[#allocation17_spill] sm:$0xff] %v9607_v46  ;;  %13642 = vst [vmem:[#allocation7_spill] sm:$0xff] %v9621_v58  ;;  %v3897_v32 = vshrl.u32 %v9607_v46, 16  ;;  %v3899_v7 = vshll.u32 %v9607_v46, 16  ;;  %4248 = vrot.lane.b32.xlu0 %v9621_v58, %s7840_s28  ;;  %v3179_v57 = vadd.bf16 %v2247_v27, %v13643_v56  ;;  %v3291_v37 = vsel %vm7938_vm4, 0, %v3180_v48  ;;  %v13647_v48 = vld [vmem:[#allocation27_spill] sm:$0xff] }
 0x194   : > { %v2274_v44 = vrot.slane %v2272_v59, 5  ;;  %v2276_v29 = vshrl.u32 %v9605_v43, 16  ;;  %v7421_v50 = vcombine.low %v3291_v37, %v3291_v37  ;;  %v3181_v12 = vadd.bf16 %v2265_v24, %v13644_v45  ;;  %v13648_v59 = vld [vmem:[#allocation38_spill] sm:$0xff]  ;;  %v13681_v46 = vld [vmem:[#allocation44_spill] sm:$0xff] }
 0x195   : > { %v3901_v4 = vrot.slane %v3899_v7, 1  ;;  %v9633_v26 = vmul.bf16 1048592000, %v13645_v19  ;;  %v3290_v21 = vsel %vm7938_vm4, 0, %v3179_v57  ;;  %v2293_v7 = vsel %vm7912_vm2, %v13648_v59, %v13647_v48  ;;  %v13650_v45 = vld [vmem:[#allocation14_spill] sm:$0xff] }
 0x196   : > { %v2275_v27 = vsel %vm7912_vm2, %v8312_v47, %v2274_v44  ;;  %v3183_v10 = vadd.bf16 %v2276_v29, %v13646_v36  ;;  %v9645_v37 = vcombine.low %v3289_v35, %v3290_v21  ;;  %v3916_v24 = vshll.u32 %v7421_v50, 16 }
 0x197   : > { %v3902_v56 = vor.u32 %v3901_v4, %v3897_v32  ;;  %v3182_v19 = vadd.bf16 %v2275_v27, %v13650_v45  ;;  %v3292_v57 = vsel %vm9507_vm6, 0, %v3181_v12  ;;  %v2300_v47 = vshll.u32 %v9633_v26, 16  ;;  %v13652_v27 = vld [vmem:[#allocation19_spill] sm:$0xff]  ;;  %v13655_v45 = vld [vmem:[#allocation26_spill] sm:$0xff] }
 0x198   : > { %13649 = vst [vmem:[#allocation12_spill] sm:$0xff] %v9645_v37  ;;  %v3294_v15 = vsel %vm7938_vm4, 0, %v3183_v10  ;;  %v2304_v44 = vshrl.u32 %v9633_v26, 16  ;;  %v3909_v32 = vshrl.u32 %v9645_v37, 16  ;;  %v3911_v35 = vshll.u32 %v9645_v37, 16  ;;  %v13664_v37 = vld [vmem:[#allocation32_spill] sm:$0xff] }
 0x199   : > { %v9655_v29 = vsel %vm3859_vm7, %v3902_v56, %v3906_v61  ;;  %v3918_v4 = vrot.slane %v3916_v24, 1  ;;  %v3293_v50 = vsel %vm7938_vm4, 0, %v3182_v19  ;;  %v7422_v12 = vcombine.low %v3294_v15, %v3294_v15  ;;  %v13654_v61 = vld [vmem:[#allocation22_spill] sm:$0xff]  ;;  %v13656_v24 = vld [vmem:[#allocation40_spill] sm:$0xff] }
 0x19a   : > { %13651 = vst [vmem:[#allocation9_spill] sm:$0xff] %v9655_v29  ;;  %4250 = vrot.lane.b32.xlu1 %v9655_v29, %s7840_s28  ;;  %v2302_v21 = vrot.slane %v2300_v47, 5  ;;  %v3184_v10 = vadd.bf16 %v2293_v7, %v13652_v27  ;;  %v3913_v48 = vrot.slane %v3911_v35, 1  ;;  %v9664_v59 = vcombine.low %v3292_v57, %v3293_v50  ;;  %v13657_v15 = vld [vmem:[#allocation34_spill] sm:$0xff]  ;;  %v13659_v50 = vld [vmem:[#allocation21_spill] sm:$0xff] }
 0x19b   : > { %v3186_v56 = vadd.bf16 %v2304_v44, %v13654_v61  ;;  %v9668_v0 = vmul.bf16 1048592000, %v13655_v45  ;;  %v3928_v49 = vshll.u32 %v7422_v12, 16  ;;  %v13658_v47 = vld [vmem:[#allocation46_spill] sm:$0xff]  ;;  %vm6094_vm5 = vcmask 359424  }
 0x19c   : > { %13653 = vst [vmem:[#allocation18_spill] sm:$0xff] %v9664_v59  ;;  %v2303_v31 = vsel %vm7912_vm2, %v13656_v24, %v2302_v21  ;;  %v3295_v19 = vsel %vm9507_vm6, 0, %v3184_v10  ;;  %v2321_v7 = vsel %vm7912_vm2, %v13658_v47, %v13657_v15  ;;  %v3914_v57 = vor.u32 %v3913_v48, %v3909_v32  ;;  %v13662_v15 = vld [vmem:[#allocation28_spill] sm:$0xff]  ;;  %v13663_v47 = vld [vmem:[#allocation30_spill] sm:$0xff] }
 0x19d   : > { %v3921_v35 = vshrl.u32 %v9664_v59, 16  ;;  %v3923_v44 = vshll.u32 %v9664_v59, 16  ;;  %v3185_v27 = vadd.bf16 %v2303_v31, %v13659_v50  ;;  %v3930_v12 = vrot.slane %v3928_v49, 1 }
 0x19e   : > { %v3297_v45 = vsel %vm7938_vm4, 0, %v3186_v56  ;;  %v2328_v21 = vshll.u32 %v9668_v0, 16  ;;  %v2332_v10 = vshrl.u32 %v9668_v0, 16  ;;  %v9687_v24 = vsel %vm3859_vm7, %v3914_v57, %v3918_v4  ;;  %v13665_v57 = vld [vmem:[#allocation41_spill] sm:$0xff] }
 0x19f   : > { %13660 = vst [vmem:[#allocation24_spill] sm:$0xff] %v9687_v24  ;;  %v3925_v58 = vrot.slane %v3923_v44, 1  ;;  %v3296_v32 = vsel %vm7938_vm4, 0, %v3185_v27  ;;  %v7423_v48 = vcombine.low %v3297_v45, %v3297_v45  ;;  %4252 = vrot.lane.b32.xlu0 %v9687_v24, %s7840_s28  ;;  %v3187_v56 = vadd.bf16 %v2321_v7, %v13662_v15  ;;  %v13666_v44 = vld [vmem:[#allocation48_spill] sm:$0xff] }
 0x1a0   : > { %v9693_v31 = vcombine.low %v3295_v19, %v3296_v32  ;;  %v2330_v49 = vrot.slane %v2328_v21, 5  ;;  %v3189_v50 = vadd.bf16 %v2332_v10, %v13663_v47  ;;  %v9698_v4 = vmul.bf16 1048592000, %v13664_v37  ;;  %v13667_v32 = vld [vmem:[#allocation47_spill] sm:$0xff]  ;;  %v13669_v21 = vld [vmem:[#allocation29_spill] sm:$0xff] }
 0x1a1   : > { %v3926_v29 = vor.u32 %v3925_v58, %v3921_v35  ;;  %v3940_v34 = vshll.u32 %v7423_v48, 16  ;;  %v2349_v27 = vsel %vm7912_vm2, %v13666_v44, %v13665_v57  ;;  %v3298_v58 = vsel %vm9507_vm6, 0, %v3187_v56 }
 0x1a2   : > { %13661 = vst [vmem:[#allocation25_spill] sm:$0xff] %v9693_v31  ;;  %v3933_v45 = vshrl.u32 %v9693_v31, 16  ;;  %v3935_v19 = vshll.u32 %v9693_v31, 16  ;;  %v2331_v7 = vsel %vm7912_vm2, %v13667_v32, %v2330_v49  ;;  %v3300_v48 = vsel %vm7938_vm4, 0, %v3189_v50  ;;  %v13676_v31 = vld [vmem:[#allocation36_spill] sm:$0xff] }
 0x1a3   : > { %v9712_v35 = vsel %vm3859_vm7, %v3926_v29, %v3930_v12  ;;  %v3942_v37 = vrot.slane %v3940_v34, 1  ;;  %v3188_v10 = vadd.bf16 %v2331_v7, %v13669_v21  ;;  %v7424_v57 = vcombine.low %v3300_v48, %v3300_v48  ;;  %v13670_v29 = vld [vmem:[#allocation33_spill] sm:$0xff]  ;;  %v13671_v34 = vld [vmem:[#allocation39_spill] sm:$0xff]  ;;  %v13674_v21 = vld [vmem:[#allocation56_spill] sm:$0xff] }
 0x1a4   : > { %13668 = vst [vmem:[#allocation8_spill] sm:$0xff] %v9712_v35  ;;  %4254 = vrot.lane.b32.xlu1 %v9712_v35, %s7840_s28  ;;  %v3937_v15 = vrot.slane %v3935_v19, 1  ;;  %v2356_v44 = vshll.u32 %v9698_v4, 16  ;;  %v2360_v49 = vshrl.u32 %v9698_v4, 16  ;;  %v3190_v12 = vadd.bf16 %v2349_v27, %v13670_v29  ;;  %v13673_v7 = vld [vmem:[#allocation53_spill] sm:$0xff] }
 0x1a5   : > { %v3299_v56 = vsel %vm7938_vm4, 0, %v3188_v10  ;;  %v9725_v32 = vmul.bf16 1048592000, %v13671_v34  ;;  %v2377_v50 = vsel %vm7912_vm2, %v13674_v21, %v13673_v7  ;;  %v3952_v48 = vshll.u32 %v7424_v57, 16 }
 0x1a6   : > { %v3938_v24 = vor.u32 %v3937_v15, %v3933_v45  ;;  %v9731_v19 = vcombine.low %v3298_v58, %v3299_v56  ;;  %v2358_v35 = vrot.slane %v2356_v44, 5  ;;  %v3192_v59 = vadd.bf16 %v2360_v49, %v13676_v31  ;;  %v13678_v15 = vld [vmem:[#allocation55_spill] sm:$0xff]  ;;  %v13679_v56 = vld [vmem:[#allocation42_spill] sm:$0xff] }
 0x1a7   : > { %13672 = vst [vmem:[#allocation13_spill] sm:$0xff] %v9725_v32  ;;  %v3301_v10 = vsel %vm9507_vm6, 0, %v3190_v12  ;;  %v2384_v27 = vshll.u32 %v9725_v32, 16  ;;  %v2388_v29 = vshrl.u32 %v9725_v32, 16  ;;  %v3954_v58 = vrot.slane %v3952_v48, 1  ;;  %v13682_v48 = vld [vmem:[#allocation63_spill] sm:$0xff] }
 0x1a8   : > { %13675 = vst [vmem:[#allocation20_spill] sm:$0xff] %v9731_v19  ;;  %v9739_v34 = vsel %vm3859_vm7, %v3938_v24, %v3942_v37  ;;  %v3945_v55 = vshrl.u32 %v9731_v19, 16  ;;  %v3947_v45 = vshll.u32 %v9731_v19, 16  ;;  %v2359_v57 = vsel %vm7912_vm2, %v13678_v15, %v2358_v35  ;;  %v13680_v37 = vld [vmem:[#allocation35_spill] sm:$0xff]  ;;  %v13683_v35 = vld [vmem:[#allocation49_spill] sm:$0xff] }
 0x1a9   : > { %13677 = vst [vmem:[#allocation15_spill] sm:$0xff] %v9739_v34  ;;  %4256 = vrot.lane.b32.xlu0 %v9739_v34, %s7840_s28  ;;  %v3303_v44 = vsel %vm7938_vm4, 0, %v3192_v59  ;;  %v2386_v49 = vrot.slane %v2384_v27, 5  ;;  %v3193_v12 = vadd.bf16 %v2377_v50, %v13679_v56  ;;  %v3191_v7 = vadd.bf16 %v2359_v57, %v13680_v37  ;;  %v13685_v59 = vld [vmem:[#allocation62_spill] sm:$0xff]  ;;  %v13686_v27 = vld [vmem:[#allocation65_spill] sm:$0xff] }
 0x1aa   : > { %v3949_v24 = vrot.slane %v3947_v45, 1  ;;  %v7425_v21 = vcombine.low %v3303_v44, %v3303_v44  ;;  %v3195_v19 = vadd.bf16 %v2388_v29, %v13681_v46  ;;  %v9759_v15 = vmul.bf16 1048592000, %v13683_v35  ;;  %v13687_v44 = vld [vmem:[#allocation43_spill] sm:$0xff] }
 0x1ab   : > { %v2387_v34 = vsel %vm7912_vm2, %v13682_v48, %v2386_v49  ;;  %v3304_v51 = vsel %vm9507_vm6, 0, %v3193_v12  ;;  %v2405_v50 = vsel %vm7912_vm2, %v13686_v27, %v13685_v59  ;;  %v3302_v57 = vsel %vm7938_vm4, 0, %v3191_v7  ;;  %v13691_v27 = vld [vmem:[#allocation50_spill] sm:$0xff] }
 0x1ac   : > { %13684 = vst [vmem:[#allocation27_spill] sm:$0xff] %v9759_v15  ;;  %v3950_v45 = vor.u32 %v3949_v24, %v3945_v55  ;;  %v3964_v29 = vshll.u32 %v7425_v21, 16  ;;  %v3194_v56 = vadd.bf16 %v2387_v34, %v13687_v44  ;;  %v9768_v37 = vcombine.low %v3301_v10, %v3302_v57 }
 0x1ad   : > { %v3306_v49 = vsel %vm7938_vm4, 0, %v3195_v19  ;;  %v2412_v12 = vshll.u32 %v9759_v15, 16  ;;  %v2416_v48 = vshrl.u32 %v9759_v15, 16  ;;  %v3196_v57 = vadd.bf16 %v2405_v50, %v13691_v27 }
 0x1ae   : > { %13688 = vst [vmem:[#allocation38_spill] sm:$0xff] %v9768_v37  ;;  %v9775_v35 = vsel %vm3859_vm7, %v3950_v45, %v3954_v58  ;;  %v3966_v59 = vrot.slane %v3964_v29, 1  ;;  %v3305_v55 = vsel %vm7938_vm4, 0, %v3194_v56  ;;  %v7426_v24 = vcombine.low %v3306_v49, %v3306_v49  ;;  %v13692_v58 = vld [vmem:[#allocation52_spill] sm:$0xff]  ;;  %v13693_v29 = vld [vmem:[#allocation57_spill] sm:$0xff] }
 0x1af   : > { %13689 = vst [vmem:[#allocation14_spill] sm:$0xff] %v9775_v35  ;;  %4258 = vrot.lane.b32.xlu1 %v9775_v35, %s7840_s28  ;;  %v3957_v10 = vshrl.u32 %v9768_v37, 16  ;;  %v3959_v34 = vshll.u32 %v9768_v37, 16  ;;  %v9783_v19 = vcombine.low %v3304_v51, %v3305_v55  ;;  %v2414_v7 = vrot.slane %v2412_v12, 5  ;;  %v13696_v55 = vld [vmem:[#allocation51_spill] sm:$0xff] }
 0x1b0   : > { %v3976_v21 = vshll.u32 %v7426_v24, 16  ;;  %v3198_v45 = vadd.bf16 %v2416_v48, %v13692_v58  ;;  %v9788_v44 = vmul.bf16 1048592000, %v13693_v29  ;;  %v3307_v50 = vsel %vm9507_vm6, 0, %v3196_v57  ;;  %v13697_v29 = vld [vmem:[#allocation66_spill] sm:$0xff] }
 0x1b1   : > { %13690 = vst [vmem:[#allocation19_spill] sm:$0xff] %v9783_v19  ;;  %v3961_v56 = vrot.slane %v3959_v34, 1  ;;  %v3969_v49 = vshrl.u32 %v9783_v19, 16  ;;  %v3971_v35 = vshll.u32 %v9783_v19, 16  ;;  %v2415_v37 = vsel %vm7912_vm2, %v13695_v52, %v2414_v7 }
 0x1b2   : > { %13694 = vst [vmem:[#allocation22_spill] sm:$0xff] %v9788_v44  ;;  %v3978_v51 = vrot.slane %v3976_v21, 1  ;;  %v3197_v12 = vadd.bf16 %v2415_v37, %v13696_v55  ;;  %v3309_v48 = vsel %vm7938_vm4, 0, %v3198_v45  ;;  %v2433_v19 = vsel %vm7912_vm2, %v13698_v53, %v13697_v29  ;;  %v13699_v21 = vld [vmem:[#allocation58_spill] sm:$0xff]  ;;  %v13703_v29 = vld [vmem:[#allocation64_spill] sm:$0xff] }
 0x1b3   : > { %v3962_v24 = vor.u32 %v3961_v56, %v3957_v10  ;;  %v3973_v27 = vrot.slane %v3971_v35, 1  ;;  %v7427_v34 = vcombine.low %v3309_v48, %v3309_v48  ;;  %v2440_v7 = vshll.u32 %v9788_v44, 16  ;;  %v13702_v56 = vld [vmem:[#allocation60_spill] sm:$0xff] }
 0x1b4   : > { %v3308_v52 = vsel %vm7938_vm4, 0, %v3197_v12  ;;  %v2444_v37 = vshrl.u32 %v9788_v44, 16  ;;  %v3199_v57 = vadd.bf16 %v2433_v19, %v13699_v21  ;;  %v9820_v44 = vmul.bf16 1048592000, %v13703_v29 }
 0x1b5   : > { %v9810_v55 = vsel %vm3859_vm7, %v3962_v24, %v3966_v59  ;;  %v3974_v10 = vor.u32 %v3973_v27, %v3969_v49  ;;  %v9812_v35 = vcombine.low %v3307_v50, %v3308_v52  ;;  %v3988_v45 = vshll.u32 %v7427_v34, 16  ;;  %v13706_v24 = vld [vmem:[#allocation79_spill] sm:$0xff]  ;;  %v13707_v52 = vld [vmem:[#allocation77_spill] sm:$0xff] }
 0x1b6   : > { %13700 = vst [vmem:[#allocation26_spill] sm:$0xff] %v9810_v55  ;;  %4260 = vrot.lane.b32.xlu0 %v9810_v55, %s7840_s28  ;;  %v2442_v53 = vrot.slane %v2440_v7, 5  ;;  %v3201_v48 = vadd.bf16 %v2444_v37, %v13702_v56  ;;  %v3310_v12 = vsel %vm9507_vm6, 0, %v3199_v57  ;;  %13704 = vst [vmem:[#allocation34_spill] sm:$0xff] %v9820_v44  ;;  %v13708_v7 = vld [vmem:[#allocation80_spill] sm:$0xff]  ;;  %v2468_v37 = vshll.u32 %v9820_v44, 16 }
 0x1b7   : > { %13701 = vst [vmem:[#allocation40_spill] sm:$0xff] %v9812_v35  ;;  %v9823_v19 = vsel %vm3859_vm7, %v3974_v10, %v3978_v51  ;;  %v3981_v59 = vshrl.u32 %v9812_v35, 16  ;;  %v3983_v49 = vshll.u32 %v9812_v35, 16  ;;  %v3990_v50 = vrot.slane %v3988_v45, 1  ;;  %v13709_v57 = vld [vmem:[#allocation59_spill] sm:$0xff]  ;;  %v13714_v56 = vld [vmem:[#allocation89_spill] sm:$0xff] }
 0x1b8   : > { %13705 = vst [vmem:[#allocation46_spill] sm:$0xff] %v9823_v19  ;;  %4262 = vrot.lane.b32.xlu1 %v9823_v19, %s7840_s28  ;;  %v2443_v27 = vsel %vm7912_vm2, %v13706_v24, %v2442_v53  ;;  %v3312_v34 = vsel %vm7938_vm4, 0, %v3201_v48  ;;  %v2461_v51 = vsel %vm7912_vm2, %v13708_v7, %v13707_v52  ;;  %v2472_v29 = vshrl.u32 %v9820_v44, 16  ;;  %v13710_v19 = vld [vmem:[#allocation67_spill] sm:$0xff]  ;;  %v13711_v53 = vld [vmem:[#allocation73_spill] sm:$0xff]  ;;  %v13713_v48 = vld [vmem:[#allocation86_spill] sm:$0xff] }
 0x1b9   : > { %v3985_v21 = vrot.slane %v3983_v49, 1  ;;  %v3200_v10 = vadd.bf16 %v2443_v27, %v13709_v57  ;;  %v7428_v45 = vcombine.low %v3312_v34, %v3312_v34  ;;  %v2470_v55 = vrot.slane %v2468_v37, 5  ;;  %v13715_v27 = vld [vmem:[#allocation69_spill] sm:$0xff]  ;;  %v13717_v37 = vld [vmem:[#allocation87_spill] sm:$0xff]  ;;  %v13726_v44 = vld [vmem:[#allocation76_spill] sm:$0xff] }
 0x1ba   : > { %v3202_v35 = vadd.bf16 %v2461_v51, %v13710_v19  ;;  %v9843_v24 = vmul.bf16 1048592000, %v13711_v53  ;;  %v2489_v32 = vsel %vm7912_vm2, %v13714_v56, %v13713_v48  ;;  %v3204_v34 = vadd.bf16 %v2472_v29, %v13715_v27 }
 0x1bb   : > { %v3986_v52 = vor.u32 %v3985_v21, %v3981_v59  ;;  %v3311_v49 = vsel %vm7938_vm4, 0, %v3200_v10  ;;  %v4000_v7 = vshll.u32 %v7428_v45, 16  ;;  %v2471_v19 = vsel %vm7912_vm2, %v13717_v37, %v2470_v55  ;;  %v13719_v21 = vld [vmem:[#allocation68_spill] sm:$0xff] }
 0x1bc   : > { %13712 = vst [vmem:[#allocation21_spill] sm:$0xff] %v9843_v24  ;;  %v9852_v57 = vcombine.low %v3310_v12, %v3311_v49  ;;  %v3313_v51 = vsel %vm9507_vm6, 0, %v3202_v35  ;;  %v2496_v53 = vshll.u32 %v9843_v24, 16  ;;  %v3203_v10 = vadd.bf16 %v2471_v19, %v13719_v21 }
 0x1bd   : > { %v9861_v56 = vsel %vm3859_vm7, %v3986_v52, %v3990_v50  ;;  %v4002_v59 = vrot.slane %v4000_v7, 1  ;;  %v3315_v45 = vsel %vm7938_vm4, 0, %v3204_v34  ;;  %v2500_v50 = vshrl.u32 %v9843_v24, 16  ;;  %v13720_v52 = vld [vmem:[#allocation74_spill] sm:$0xff]  ;;  %v13721_v7 = vld [vmem:[#allocation81_spill] sm:$0xff] }
 0x1be   : > { %13716 = vst [vmem:[#allocation28_spill] sm:$0xff] %v9852_v57  ;;  %13718 = vst [vmem:[#allocation30_spill] sm:$0xff] %v9861_v56  ;;  %4264 = vrot.lane.b32.xlu0 %v9861_v56, %s7840_s28  ;;  %v3993_v12 = vshrl.u32 %v9852_v57, 16  ;;  %v3995_v55 = vshll.u32 %v9852_v57, 16  ;;  %v7429_v29 = vcombine.low %v3315_v45, %v3315_v45  ;;  %v2498_v35 = vrot.slane %v2496_v53, 5  ;;  %v13724_v56 = vld [vmem:[#allocation95_spill] sm:$0xff] }
 0x1bf   : > { %v3314_v48 = vsel %vm7938_vm4, 0, %v3203_v10  ;;  %v3205_v49 = vadd.bf16 %v2489_v32, %v13720_v52  ;;  %v9875_v37 = vmul.bf16 1048592000, %v13721_v7  ;;  %v13725_v45 = vld [vmem:[#allocation75_spill] sm:$0xff]  ;;  %v3207_v27 = vadd.bf16 %v2500_v50, %v13726_v44  ;;  %v13727_v24 = vld [vmem:[#allocation90_spill] sm:$0xff]  ;;  %v13728_v32 = vld [vmem:[#allocation96_spill] sm:$0xff] }
 0x1c0   : > { %v3997_v34 = vrot.slane %v3995_v55, 1  ;;  %v9877_v19 = vcombine.low %v3313_v51, %v3314_v48  ;;  %v4012_v21 = vshll.u32 %v7429_v29, 16  ;;  %v2499_v57 = vsel %vm7912_vm2, %v13724_v56, %v2498_v35 }
 0x1c1   : > { %13722 = vst [vmem:[#allocation32_spill] sm:$0xff] %v9875_v37  ;;  %v3206_v53 = vadd.bf16 %v2499_v57, %v13725_v45  ;;  %v3316_v10 = vsel %vm9507_vm6, 0, %v3205_v49  ;;  %v2517_v52 = vsel %vm7912_vm2, %v13728_v32, %v13727_v24  ;;  %v3318_v57 = vsel %vm7938_vm4, 0, %v3207_v27  ;;  %v13733_v27 = vld [vmem:[#allocation88_spill] sm:$0xff] }
 0x1c2   : > { %13723 = vst [vmem:[#allocation41_spill] sm:$0xff] %v9877_v19  ;;  %v3998_v55 = vor.u32 %v3997_v34, %v3993_v12  ;;  %v4005_v51 = vshrl.u32 %v9877_v19, 16  ;;  %v4007_v29 = vshll.u32 %v9877_v19, 16  ;;  %v4014_v48 = vrot.slane %v4012_v21, 1  ;;  %v13731_v21 = vld [vmem:[#allocation82_spill] sm:$0xff] }
 0x1c3   : > { %v3317_v56 = vsel %vm7938_vm4, 0, %v3206_v53  ;;  %v2524_v35 = vshll.u32 %v9875_v37, 16  ;;  %v2528_v50 = vshrl.u32 %v9875_v37, 16  ;;  %v7430_v7 = vcombine.low %v3318_v57, %v3318_v57  ;;  %v13732_v53 = vld [vmem:[#allocation84_spill] sm:$0xff]  ;;  %v13736_v57 = vld [vmem:[#allocation101_spill] sm:$0xff] }
 0x1c4   : > { %v9899_v49 = vsel %vm3859_vm7, %v3998_v55, %v4002_v59  ;;  %v4009_v24 = vrot.slane %v4007_v29, 1  ;;  %v9901_v12 = vcombine.low %v3316_v10, %v3317_v56  ;;  %v3208_v45 = vadd.bf16 %v2517_v52, %v13731_v21  ;;  %v13735_v10 = vld [vmem:[#allocation103_spill] sm:$0xff] }
 0x1c5   : > { %13729 = vst [vmem:[#allocation48_spill] sm:$0xff] %v9899_v49  ;;  %4266 = vrot.lane.b32.xlu1 %v9899_v49, %s7840_s28  ;;  %v2526_v34 = vrot.slane %v2524_v35, 5  ;;  %v3210_v32 = vadd.bf16 %v2528_v50, %v13732_v53  ;;  %v9908_v19 = vmul.bf16 1048592000, %v13733_v27  ;;  %v4024_v55 = vshll.u32 %v7430_v7, 16  ;;  %v13737_v35 = vld [vmem:[#allocation104_spill] sm:$0xff] }
 0x1c6   : > { %13730 = vst [vmem:[#allocation47_spill] sm:$0xff] %v9901_v12  ;;  %v4010_v44 = vor.u32 %v4009_v24, %v4005_v51  ;;  %v4017_v37 = vshrl.u32 %v9901_v12, 16  ;;  %v4019_v59 = vshll.u32 %v9901_v12, 16  ;;  %v3319_v56 = vsel %vm9507_vm6, 0, %v3208_v45  ;;  %v13739_v21 = vld [vmem:[#allocation83_spill] sm:$0xff]  ;;  %v13752_v53 = vld [vmem:[#allocation105_spill] sm:$0xff] }
 0x1c7   : > { %13734 = vst [vmem:[#allocation29_spill] sm:$0xff] %v9908_v19  ;;  %v2527_v29 = vsel %vm7912_vm2, %v13735_v10, %v2526_v34  ;;  %v3321_v52 = vsel %vm7938_vm4, 0, %v3210_v32  ;;  %v2545_v51 = vsel %vm7912_vm2, %v13737_v35, %v13736_v57  ;;  %v4026_v7 = vrot.slane %v4024_v55, 1  ;;  %v13740_v10 = vld [vmem:[#allocation91_spill] sm:$0xff]  ;;  %v13744_v55 = vld [vmem:[#allocation113_spill] sm:$0xff] }
 0x1c8   : > { %v9924_v50 = vsel %vm3859_vm7, %v4010_v44, %v4014_v48  ;;  %v4021_v24 = vrot.slane %v4019_v59, 1  ;;  %v3209_v27 = vadd.bf16 %v2527_v29, %v13739_v21  ;;  %v7431_v34 = vcombine.low %v3321_v52, %v3321_v52  ;;  %v13741_v44 = vld [vmem:[#allocation97_spill] sm:$0xff]  ;;  %v13743_v59 = vld [vmem:[#allocation110_spill] sm:$0xff] }
 0x1c9   : > { %13738 = vst [vmem:[#allocation33_spill] sm:$0xff] %v9924_v50  ;;  %4268 = vrot.lane.b32.xlu0 %v9924_v50, %s7840_s28  ;;  %v2552_v45 = vshll.u32 %v9908_v19, 16  ;;  %v2556_v32 = vshrl.u32 %v9908_v19, 16  ;;  %v3211_v49 = vadd.bf16 %v2545_v51, %v13740_v10  ;;  %v9935_v48 = vmul.bf16 1048592000, %v13741_v44  ;;  %v13746_v50 = vld [vmem:[#allocation93_spill] sm:$0xff] }
 0x1ca   : > { %v4022_v12 = vor.u32 %v4021_v24, %v4017_v37  ;;  %v3320_v57 = vsel %vm7938_vm4, 0, %v3209_v27  ;;  %v2573_v29 = vsel %vm7912_vm2, %v13744_v55, %v13743_v59  ;;  %v4036_v52 = vshll.u32 %v7431_v34, 16  ;;  %v13748_v10 = vld [vmem:[#allocation111_spill] sm:$0xff]  ;;  %v13750_v44 = vld [vmem:[#allocation98_spill] sm:$0xff] }
 0x1cb   : > { %13742 = vst [vmem:[#allocation39_spill] sm:$0xff] %v9935_v48  ;;  %v9941_v35 = vcombine.low %v3319_v56, %v3320_v57  ;;  %v2554_v21 = vrot.slane %v2552_v45, 5  ;;  %v3213_v19 = vadd.bf16 %v2556_v32, %v13746_v50  ;;  %v3322_v37 = vsel %vm9507_vm6, 0, %v3211_v49 }
 0x1cc   : > { %v9945_v51 = vsel %vm3859_vm7, %v4022_v12, %v4026_v7  ;;  %v2580_v24 = vshll.u32 %v9935_v48, 16  ;;  %v2584_v27 = vshrl.u32 %v9935_v48, 16  ;;  %v4038_v45 = vrot.slane %v4036_v52, 1  ;;  %v13749_v7 = vld [vmem:[#allocation92_spill] sm:$0xff] }
 0x1cd   : > { %13745 = vst [vmem:[#allocation53_spill] sm:$0xff] %v9941_v35  ;;  %13747 = vst [vmem:[#allocation56_spill] sm:$0xff] %v9945_v51  ;;  %4270 = vrot.lane.b32.xlu1 %v9945_v51, %s7840_s28  ;;  %v4029_v56 = vshrl.u32 %v9941_v35, 16  ;;  %v4031_v34 = vshll.u32 %v9941_v35, 16  ;;  %v2555_v12 = vsel %vm7912_vm2, %v13748_v10, %v2554_v21  ;;  %v3324_v49 = vsel %vm7938_vm4, 0, %v3213_v19  ;;  %v13751_v51 = vld [vmem:[#allocation100_spill] sm:$0xff] }
 0x1ce   : > { %v3212_v32 = vadd.bf16 %v2555_v12, %v13749_v7  ;;  %v2582_v57 = vrot.slane %v2580_v24, 5  ;;  %v3214_v59 = vadd.bf16 %v2573_v29, %v13750_v44  ;;  %v7432_v48 = vcombine.low %v3324_v49, %v3324_v49  ;;  %v13754_v35 = vld [vmem:[#allocation119_spill] sm:$0xff]  ;;  %v13755_v24 = vld [vmem:[#allocation114_spill] sm:$0xff]  ;;  %v13756_v10 = vld [vmem:[#allocation120_spill] sm:$0xff] }
 0x1cf   : > { %v4033_v55 = vrot.slane %v4031_v34, 1  ;;  %v3216_v50 = vadd.bf16 %v2584_v27, %v13751_v51  ;;  %v9964_v15 = vmul.bf16 1048592000, %v13752_v53  ;;  %v2601_v29 = vsel %vm7912_vm2, %v13756_v10, %v13755_v24  ;;  %v13758_v12 = vld [vmem:[#allocation99_spill] sm:$0xff] }
 0x1d0   : > { %v3323_v52 = vsel %vm7938_vm4, 0, %v3212_v32  ;;  %v2583_v21 = vsel %vm7912_vm2, %v13754_v35, %v2582_v57  ;;  %v3325_v19 = vsel %vm9507_vm6, 0, %v3214_v59  ;;  %v4048_v53 = vshll.u32 %v7432_v48, 16  ;;  %v13759_v57 = vld [vmem:[#allocation106_spill] sm:$0xff] }
 0x1d1   : > { %13753 = vst [vmem:[#allocation36_spill] sm:$0xff] %v9964_v15  ;;  %v4034_v34 = vor.u32 %v4033_v55, %v4029_v56  ;;  %v9977_v27 = vcombine.low %v3322_v37, %v3323_v52  ;;  %v3215_v7 = vadd.bf16 %v2583_v21, %v13758_v12  ;;  %v3327_v32 = vsel %vm7938_vm4, 0, %v3216_v50  ;;  %v13761_v52 = vld [vmem:[#allocation108_spill] sm:$0xff] }
 0x1d2   : > { %v2608_v49 = vshll.u32 %v9964_v15, 16  ;;  %v2612_v35 = vshrl.u32 %v9964_v15, 16  ;;  %v3217_v44 = vadd.bf16 %v2601_v29, %v13759_v57  ;;  %v4050_v56 = vrot.slane %v4048_v53, 1  ;;  %v13765_v57 = vld [vmem:[#allocation127_spill] sm:$0xff] }
 0x1d3   : > { %13757 = vst [vmem:[#allocation55_spill] sm:$0xff] %v9977_v27  ;;  %v9986_v59 = vsel %vm3859_vm7, %v4034_v34, %v4038_v45  ;;  %v4041_v24 = vshrl.u32 %v9977_v27, 16  ;;  %v4043_v37 = vshll.u32 %v9977_v27, 16  ;;  %v3326_v50 = vsel %vm7938_vm4, 0, %v3215_v7  ;;  %v13763_v34 = vld [vmem:[#allocation112_spill] sm:$0xff] }
 0x1d4   : > { %13760 = vst [vmem:[#allocation42_spill] sm:$0xff] %v9986_v59  ;;  %4272 = vrot.lane.b32.xlu0 %v9986_v59, %s7840_s28  ;;  %v7433_v48 = vcombine.low %v3327_v32, %v3327_v32  ;;  %v2610_v55 = vrot.slane %v2608_v49, 5  ;;  %v3219_v21 = vadd.bf16 %v2612_v35, %v13761_v52  ;;  %v9995_v29 = vcombine.low %v3325_v19, %v3326_v50  ;;  %v13766_v32 = vld [vmem:[#allocation125_spill] sm:$0xff]  ;;  %v13767_v49 = vld [vmem:[#allocation128_spill] sm:$0xff]  ;;  %v13768_v50 = vld [vmem:[#allocation107_spill] sm:$0xff] }
 0x1d5   : > { %v4045_v10 = vrot.slane %v4043_v37, 1  ;;  %v3328_v45 = vsel %vm9507_vm6, 0, %v3217_v44  ;;  %v10000_v12 = vmul.bf16 1048592000, %v13763_v34  ;;  %v2629_v19 = vsel %vm7912_vm2, %v13767_v49, %v13766_v32 }
 0x1d6   : > { %13762 = vst [vmem:[#allocation35_spill] sm:$0xff] %v9995_v29  ;;  %v4060_v53 = vshll.u32 %v7433_v48, 16  ;;  %v2611_v59 = vsel %vm7912_vm2, %v13765_v57, %v2610_v55  ;;  %v3330_v7 = vsel %vm7938_vm4, 0, %v3219_v21  ;;  %v4053_v37 = vshrl.u32 %v9995_v29, 16 }
 0x1d7   : > { %13764 = vst [vmem:[#allocation44_spill] sm:$0xff] %v10000_v12  ;;  %v4046_v35 = vor.u32 %v4045_v10, %v4041_v24  ;;  %v4055_v44 = vshll.u32 %v9995_v29, 16  ;;  %v3218_v34 = vadd.bf16 %v2611_v59, %v13768_v50  ;;  %v7434_v27 = vcombine.low %v3330_v7, %v3330_v7  ;;  %v13770_v24 = vld [vmem:[#allocation115_spill] sm:$0xff]  ;;  %v13772_v7 = vld [vmem:[#allocation117_spill] sm:$0xff] }
 0x1d8   : > { %v4062_v48 = vrot.slane %v4060_v53, 1  ;;  %v2636_v15 = vshll.u32 %v10000_v12, 16  ;;  %v2640_v55 = vshrl.u32 %v10000_v12, 16  ;;  %v3220_v10 = vadd.bf16 %v2629_v19, %v13770_v24  ;;  %v13775_v12 = vld [vmem:[#allocation134_spill] sm:$0xff] }
 0x1d9   : > { %v10017_v21 = vsel %vm3859_vm7, %v4046_v35, %v4050_v56  ;;  %v4057_v57 = vrot.slane %v4055_v44, 1  ;;  %v3329_v32 = vsel %vm7938_vm4, 0, %v3218_v34  ;;  %v4072_v59 = vshll.u32 %v7434_v27, 16  ;;  %v13773_v35 = vld [vmem:[#allocation121_spill] sm:$0xff] }
 0x1da   : > { %13769 = vst [vmem:[#allocation63_spill] sm:$0xff] %v10017_v21  ;;  %4274 = vrot.lane.b32.xlu1 %v10017_v21, %s7840_s28  ;;  %v10024_v49 = vcombine.low %v3328_v45, %v3329_v32  ;;  %v2638_v53 = vrot.slane %v2636_v15, 5  ;;  %v3222_v50 = vadd.bf16 %v2640_v55, %v13772_v7  ;;  %v3331_v56 = vsel %vm9507_vm6, 0, %v3220_v10  ;;  %v13776_v34 = vld [vmem:[#allocation137_spill] sm:$0xff]  ;;  %v13777_v15 = vld [vmem:[#allocation135_spill] sm:$0xff]  ;;  %v13780_v21 = vld [vmem:[#allocation122_spill] sm:$0xff] }
 0x1db   : > { %v4058_v29 = vor.u32 %v4057_v57, %v4053_v37  ;;  %v10030_v44 = vmul.bf16 1048592000, %v13773_v35  ;;  %v2657_v19 = vsel %vm7912_vm2, %v13776_v34, %v13775_v12  ;;  %v4074_v27 = vrot.slane %v4072_v59, 1  ;;  %v13779_v57 = vld [vmem:[#allocation116_spill] sm:$0xff]  ;;  %v13787_v7 = vld [vmem:[#allocation143_spill] sm:$0xff] }
 0x1dc   : > { %13771 = vst [vmem:[#allocation49_spill] sm:$0xff] %v10024_v49  ;;  %v4065_v24 = vshrl.u32 %v10024_v49, 16  ;;  %v4067_v45 = vshll.u32 %v10024_v49, 16  ;;  %v2639_v37 = vsel %vm7912_vm2, %v13777_v15, %v2638_v53  ;;  %v3333_v10 = vsel %vm7938_vm4, 0, %v3222_v50  ;;  %v13781_v53 = vld [vmem:[#allocation129_spill] sm:$0xff]  ;;  %v13784_v50 = vld [vmem:[#allocation144_spill] sm:$0xff] }
 0x1dd   : > { %13774 = vst [vmem:[#allocation62_spill] sm:$0xff] %v10030_v44  ;;  %v10042_v55 = vsel %vm3859_vm7, %v4058_v29, %v4062_v48  ;;  %v3221_v32 = vadd.bf16 %v2639_v37, %v13779_v57  ;;  %v2664_v35 = vshll.u32 %v10030_v44, 16  ;;  %v7435_v34 = vcombine.low %v3333_v10, %v3333_v10  ;;  %v13783_v37 = vld [vmem:[#allocation138_spill] sm:$0xff]  ;;  %v13786_v10 = vld [vmem:[#allocation124_spill] sm:$0xff] }
 0x1de   : > { %13778 = vst [vmem:[#allocation65_spill] sm:$0xff] %v10042_v55  ;;  %4276 = vrot.lane.b32.xlu0 %v10042_v55, %s7840_s28  ;;  %v4069_v12 = vrot.slane %v4067_v45, 1  ;;  %v2668_v59 = vshrl.u32 %v10030_v44, 16  ;;  %v3223_v49 = vadd.bf16 %v2657_v19, %v13780_v21  ;;  %v10055_v15 = vmul.bf16 1048592000, %v13781_v53  ;;  %v10071_v53 = vpop.permute.xlu0 %3699 }
 0x1df   : > { %v3332_v29 = vsel %vm7938_vm4, 0, %v3221_v32  ;;  %v2666_v48 = vrot.slane %v2664_v35, 5  ;;  %v2685_v57 = vsel %vm7912_vm2, %v13784_v50, %v13783_v37  ;;  %v4084_v45 = vshll.u32 %v7435_v34, 16  ;;  %13788 = vst [vmem:[#allocation52_spill] sm:$0xff] %v10071_v53 }
 0x1e0   : > { %13782 = vst [vmem:[#allocation43_spill] sm:$0xff] %v10055_v15  ;;  %v4070_v52 = vor.u32 %v4069_v12, %v4065_v24  ;;  %v10061_v55 = vcombine.low %v3331_v56, %v3332_v29  ;;  %v3225_v44 = vadd.bf16 %v2668_v59, %v13786_v10  ;;  %v3334_v19 = vsel %vm9507_vm6, 0, %v3223_v49 }
 0x1e1   : > { %v2667_v21 = vsel %vm7912_vm2, %v13787_v7, %v2666_v48  ;;  %v2692_v32 = vshll.u32 %v10055_v15, 16  ;;  %v2696_v35 = vshrl.u32 %v10055_v15, 16  ;;  %v4086_v34 = vrot.slane %v4084_v45, 1  ;;  %v13790_v7 = vld [vmem:[#allocation123_spill] sm:$0xff]  ;;  %v13791_v48 = vld [vmem:[#allocation130_spill] sm:$0xff]  ;;  %v13793_v15 = vld [vmem:[#allocation136_spill] sm:$0xff] }
 0x1e2   : > { %13785 = vst [vmem:[#allocation50_spill] sm:$0xff] %v10061_v55  ;;  %v10074_v24 = vsel %vm3859_vm7, %v4070_v52, %v4074_v27  ;;  %v4077_v56 = vshrl.u32 %v10061_v55, 16  ;;  %v4079_v12 = vshll.u32 %v10061_v55, 16  ;;  %v3224_v59 = vadd.bf16 %v2667_v21, %v13790_v7  ;;  %v13792_v52 = vld [vmem:[#allocation132_spill] sm:$0xff]  ;;  %v13795_v55 = vld [vmem:[#allocation151_spill] sm:$0xff] }
 0x1e3   : > { %13789 = vst [vmem:[#allocation57_spill] sm:$0xff] %v10074_v24  ;;  %4278 = vrot.lane.b32.xlu1 %v10074_v24, %s7840_s28  ;;  %v3336_v49 = vsel %vm7938_vm4, 0, %v3225_v44  ;;  %v2694_v29 = vrot.slane %v2692_v32, 5  ;;  %v3226_v37 = vadd.bf16 %v2685_v57, %v13791_v48  ;;  %v3228_v27 = vadd.bf16 %v2696_v35, %v13792_v52  ;;  %v13796_v32 = vld [vmem:[#allocation149_spill] sm:$0xff]  ;;  %v13797_v7 = vld [vmem:[#allocation152_spill] sm:$0xff]  ;;  %v10107_v52 = vpop.permute.xlu0 %3701 }
 0x1e4   : > { %v4081_v50 = vrot.slane %v4079_v12, 1  ;;  %v7436_v53 = vcombine.low %v3336_v49, %v3336_v49  ;;  %v10086_v10 = vmul.bf16 1048592000, %v13793_v15  ;;  %v3335_v45 = vsel %vm7938_vm4, 0, %v3224_v59  ;;  %v13799_v49 = vld [vmem:[#allocation131_spill] sm:$0xff]  ;;  %13801 = vst [vmem:[#allocation66_spill] sm:$0xff] %v10107_v52 }
 0x1e5   : > { %v2695_v21 = vsel %vm7912_vm2, %v13795_v55, %v2694_v29  ;;  %v3337_v44 = vsel %vm9507_vm6, 0, %v3226_v37  ;;  %v2713_v57 = vsel %vm7912_vm2, %v13797_v7, %v13796_v32  ;;  %v10099_v35 = vcombine.low %v3334_v19, %v3335_v45  ;;  %v13800_v29 = vld [vmem:[#allocation139_spill] sm:$0xff]  ;;  %v10119_v7 = vpop.permute.xlu1 %3703 }
 0x1e6   : > { %13794 = vst [vmem:[#allocation71_spill] sm:$0xff] %v10086_v10  ;;  %v4082_v12 = vor.u32 %v4081_v50, %v4077_v56  ;;  %v4096_v15 = vshll.u32 %v7436_v53, 16  ;;  %v3227_v48 = vadd.bf16 %v2695_v21, %v13799_v49  ;;  %v3339_v59 = vsel %vm7938_vm4, 0, %v3228_v27  ;;  %v13803_v21 = vld [vmem:[#allocation141_spill] sm:$0xff]  ;;  %13804 = vst [vmem:[#allocation58_spill] sm:$0xff] %v10119_v7 }
 0x1e7   : > { %13798 = vst [vmem:[#allocation51_spill] sm:$0xff] %v10099_v35  ;;  %v2720_v24 = vshll.u32 %v10086_v10, 16  ;;  %v2724_v55 = vshrl.u32 %v10086_v10, 16  ;;  %v3229_v37 = vadd.bf16 %v2713_v57, %v13800_v29  ;;  %v4089_v19 = vshrl.u32 %v10099_v35, 16  ;;  %v13806_v49 = vld [vmem:[#allocation145_spill] sm:$0xff]  ;;  %v13831_v10 = vld [vmem:[#allocation156_spill] sm:$0xff] }
 0x1e8   : > { %v10110_v51 = vsel %vm3859_vm7, %v4082_v12, %v4086_v34  ;;  %v4091_v53 = vshll.u32 %v10099_v35, 16  ;;  %v4098_v56 = vrot.slane %v4096_v15, 1  ;;  %v3338_v50 = vsel %vm7938_vm4, 0, %v3227_v48 }
 0x1e9   : > { %13802 = vst [vmem:[#allocation72_spill] sm:$0xff] %v10110_v51  ;;  %4280 = vrot.lane.b32.xlu0 %v10110_v51, %s7840_s28  ;;  %v7437_v27 = vcombine.low %v3339_v59, %v3339_v59  ;;  %v2722_v45 = vrot.slane %v2720_v24, 5  ;;  %v3231_v32 = vadd.bf16 %v2724_v55, %v13803_v21  ;;  %v10121_v34 = vcombine.low %v3337_v44, %v3338_v50  ;;  %v13808_v59 = vld [vmem:[#allocation158_spill] sm:$0xff]  ;;  %v13809_v55 = vld [vmem:[#allocation160_spill] sm:$0xff] }
 0x1ea   : > { %v4093_v57 = vrot.slane %v4091_v53, 1  ;;  %v3340_v12 = vsel %vm9507_vm6, 0, %v3229_v37  ;;  %v10126_v15 = vmul.bf16 1048592000, %v13806_v49  ;;  %v2741_v44 = vsel %vm7912_vm2, %v13809_v55, %v13808_v59  ;;  %v13810_v49 = vld [vmem:[#allocation140_spill] sm:$0xff] }
 0x1eb   : > { %13805 = vst [vmem:[#allocation64_spill] sm:$0xff] %v10121_v34  ;;  %v4108_v29 = vshll.u32 %v7437_v27, 16  ;;  %v2723_v48 = vsel %vm7912_vm2, %v9072_v63, %v2722_v45  ;;  %v3342_v24 = vsel %vm7938_vm4, 0, %v3231_v32  ;;  %v4101_v50 = vshrl.u32 %v10121_v34, 16  ;;  %v10142_v45 = vpop.permute.xlu0 %3707  ;;  %v13815_v55 = vld [vmem:[#allocation148_spill] sm:$0xff] }
 0x1ec   : > { %13807 = vst [vmem:[#allocation79_spill] sm:$0xff] %v10126_v15  ;;  %v4094_v53 = vor.u32 %v4093_v57, %v4089_v19  ;;  %v4103_v37 = vshll.u32 %v10121_v34, 16  ;;  %v3230_v7 = vadd.bf16 %v2723_v48, %v13810_v49  ;;  %v7438_v52 = vcombine.low %v3342_v24, %v3342_v24  ;;  %13811 = vst [vmem:[#allocation77_spill] sm:$0xff] %v10142_v45  ;;  %v13813_v57 = vld [vmem:[#allocation146_spill] sm:$0xff]  ;;  %v10155_v34 = vpop.permute.xlu1 %3705 }
 0x1ed   : > { %v4110_v27 = vrot.slane %v4108_v29, 1  ;;  %v2748_v51 = vshll.u32 %v10126_v15, 16  ;;  %v2752_v63 = vshrl.u32 %v10126_v15, 16  ;;  %v3232_v59 = vadd.bf16 %v2741_v44, %v13813_v57  ;;  %13816 = vst [vmem:[#allocation67_spill] sm:$0xff] %v10155_v34  ;;  %v13820_v44 = vld [vmem:[#allocation167_spill] sm:$0xff] }
 0x1ee   : > { %v10145_v32 = vsel %vm3859_vm7, %v4094_v53, %v4098_v56  ;;  %v4105_v35 = vrot.slane %v4103_v37, 1  ;;  %v3341_v19 = vsel %vm7938_vm4, 0, %v3230_v7  ;;  %v4120_v48 = vshll.u32 %v7438_v52, 16  ;;  %v13817_v53 = vld [vmem:[#allocation153_spill] sm:$0xff] }
 0x1ef   : > { %13812 = vst [vmem:[#allocation80_spill] sm:$0xff] %v10145_v32  ;;  %4282 = vrot.lane.b32.xlu1 %v10145_v32, %s7840_s28  ;;  %v10152_v29 = vcombine.low %v3340_v12, %v3341_v19  ;;  %v2750_v24 = vrot.slane %v2748_v51, 5  ;;  %v3234_v49 = vadd.bf16 %v2752_v63, %v13815_v55  ;;  %v3343_v56 = vsel %vm9507_vm6, 0, %v3232_v59  ;;  %v13819_v7 = vld [vmem:[#allocation161_spill] sm:$0xff]  ;;  %v13821_v63 = vld [vmem:[#allocation166_spill] sm:$0xff]  ;;  %v13823_v19 = vld [vmem:[#allocation147_spill] sm:$0xff] }
 0x1f0   : > { %v4106_v45 = vor.u32 %v4105_v35, %v4101_v50  ;;  %v10160_v37 = vmul.bf16 1048592000, %v13817_v53  ;;  %v2769_v57 = vsel %vm7912_vm2, %v13820_v44, %v13819_v7  ;;  %v4122_v52 = vrot.slane %v4120_v48, 1  ;;  %v13824_v32 = vld [vmem:[#allocation154_spill] sm:$0xff] }
 0x1f1   : > { %13814 = vst [vmem:[#allocation59_spill] sm:$0xff] %v10152_v29  ;;  %v4113_v12 = vshrl.u32 %v10152_v29, 16  ;;  %v4115_v51 = vshll.u32 %v10152_v29, 16  ;;  %v2751_v35 = vsel %vm7912_vm2, %v13821_v63, %v2750_v24  ;;  %v3345_v53 = vsel %vm7938_vm4, 0, %v3234_v49  ;;  %v10182_v24 = vpop.permute.xlu0 %3711  ;;  %v13826_v63 = vld [vmem:[#allocation159_spill] sm:$0xff]  ;;  %v13828_v49 = vld [vmem:[#allocation172_spill] sm:$0xff] }
 0x1f2   : > { %13818 = vst [vmem:[#allocation73_spill] sm:$0xff] %v10160_v37  ;;  %v10172_v50 = vsel %vm3859_vm7, %v4106_v45, %v4110_v27  ;;  %v3233_v59 = vadd.bf16 %v2751_v35, %v13823_v19  ;;  %v2776_v34 = vshll.u32 %v10160_v37, 16  ;;  %v7439_v44 = vcombine.low %v3345_v53, %v3345_v53  ;;  %13825 = vst [vmem:[#allocation89_spill] sm:$0xff] %v10182_v24  ;;  %v13829_v19 = vld [vmem:[#allocation175_spill] sm:$0xff] }
 0x1f3   : > { %13822 = vst [vmem:[#allocation86_spill] sm:$0xff] %v10172_v50  ;;  %4284 = vrot.lane.b32.xlu0 %v10172_v50, %s7840_s28  ;;  %v4117_v7 = vrot.slane %v4115_v51, 1  ;;  %v2780_v48 = vshrl.u32 %v10160_v37, 16  ;;  %v3235_v29 = vadd.bf16 %v2769_v57, %v13824_v32  ;;  %v10187_v35 = vmul.bf16 1048592000, %v13826_v63  ;;  %v10196_v57 = vpop.permute.xlu1 %3709 }
 0x1f4   : > { %v3344_v27 = vsel %vm7938_vm4, 0, %v3233_v59  ;;  %v2778_v45 = vrot.slane %v2776_v34, 5  ;;  %v2797_v50 = vsel %vm7912_vm2, %v13829_v19, %v13828_v49  ;;  %v4132_v37 = vshll.u32 %v7439_v44, 16  ;;  %13832 = vst [vmem:[#allocation74_spill] sm:$0xff] %v10196_v57  ;;  %v13833_v59 = vld [vmem:[#allocation174_spill] sm:$0xff]  ;;  %v13835_v44 = vld [vmem:[#allocation155_spill] sm:$0xff] }
 0x1f5   : > { %13827 = vst [vmem:[#allocation87_spill] sm:$0xff] %v10187_v35  ;;  %v4118_v51 = vor.u32 %v4117_v7, %v4113_v12  ;;  %v10193_v53 = vcombine.low %v3343_v56, %v3344_v27  ;;  %v3237_v32 = vadd.bf16 %v2780_v48, %v13831_v10  ;;  %v2804_v63 = vshll.u32 %v10187_v35, 16  ;;  %v13836_v19 = vld [vmem:[#allocation162_spill] sm:$0xff]  ;;  %v13837_v57 = vld [vmem:[#allocation164_spill] sm:$0xff] }
 0x1f6   : > { %v2779_v34 = vsel %vm7912_vm2, %v13833_v59, %v2778_v45  ;;  %v2808_v15 = vshrl.u32 %v10187_v35, 16  ;;  %v3346_v7 = vsel %vm9507_vm6, 0, %v3235_v29  ;;  %v3238_v59 = vadd.bf16 %v2797_v50, %v13836_v19 }
 0x1f7   : > { %13830 = vst [vmem:[#allocation68_spill] sm:$0xff] %v10193_v53  ;;  %v10205_v49 = vsel %vm3859_vm7, %v4118_v51, %v4122_v52  ;;  %v4125_v56 = vshrl.u32 %v10193_v53, 16  ;;  %v4127_v12 = vshll.u32 %v10193_v53, 16  ;;  %v3236_v48 = vadd.bf16 %v2779_v34, %v13835_v44  ;;  %v10218_v53 = vpop.permute.xlu0 %3715  ;;  %v13840_v44 = vld [vmem:[#allocation182_spill] sm:$0xff]  ;;  %v10234_v19 = vpop.permute.xlu1 %3713 }
 0x1f8   : > { %13834 = vst [vmem:[#allocation81_spill] sm:$0xff] %v10205_v49  ;;  %4286 = vrot.lane.b32.xlu1 %v10205_v49, %s7840_s28  ;;  %v3348_v27 = vsel %vm7938_vm4, 0, %v3237_v32  ;;  %v2806_v45 = vrot.slane %v2804_v63, 5  ;;  %v4134_v51 = vrot.slane %v4132_v37, 1  ;;  %v3240_v35 = vadd.bf16 %v2808_v15, %v13837_v57  ;;  %13838 = vst [vmem:[#allocation95_spill] sm:$0xff] %v10218_v53  ;;  %v13846_v53 = vld [vmem:[#allocation181_spill] sm:$0xff] }
 0x1f9   : > { %v4129_v52 = vrot.slane %v4127_v12, 1  ;;  %v7440_v24 = vcombine.low %v3348_v27, %v3348_v27  ;;  %v13839_v29 = vshll.u32 %v9446_v40, 16  ;;  %v3347_v34 = vsel %vm7938_vm4, 0, %v3236_v48  ;;  %v13842_v12 = vld [vmem:[#allocation163_spill] sm:$0xff]  ;;  %13843 = vst [vmem:[#allocation90_spill] sm:$0xff] %v10234_v19  ;;  %v13847_v49 = vld [vmem:[#allocation184_spill] sm:$0xff] }
 0x1fa   : > { %v2807_v32 = vsel %vm7912_vm2, %v13840_v44, %v2806_v45  ;;  %v3349_v50 = vsel %vm9507_vm6, 0, %v3238_v59  ;;  %v10231_v63 = vcombine.low %v3346_v7, %v3347_v34  ;;  %v3351_v40 = vsel %vm7938_vm4, 0, %v3240_v35  ;;  %v13848_v59 = vld [vmem:[#allocation176_spill] sm:$0xff] }
 0x1fb   : > { %v10222_v10 = vrot.slane %v13839_v29, 5  ;;  %v4130_v37 = vor.u32 %v4129_v52, %v4125_v56  ;;  %v4144_v15 = vshll.u32 %v7440_v24, 16  ;;  %v3239_v27 = vadd.bf16 %v2807_v32, %v13842_v12  ;;  %v13844_v29 = vld [vmem:[#allocation168_spill] sm:$0xff] }
 0x1fc   : > { %13841 = vst [vmem:[#allocation75_spill] sm:$0xff] %v10231_v63  ;;  %v10239_v48 = vmul.bf16 1048592000, %v13844_v29  ;;  %v2825_v45 = vsel %vm7912_vm2, %v13847_v49, %v13846_v53  ;;  %v10246_v56 = vmul.bf16 1048592000, %v13848_v59  ;;  %v4137_v7 = vshrl.u32 %v10231_v63, 16  ;;  %v10266_v59 = vpop.permute.xlu0 %3719 }
 0x1fd   : > { %v10249_v24 = vsel %vm3859_vm7, %v4130_v37, %v4134_v51  ;;  %v4139_v52 = vshll.u32 %v10231_v63, 16  ;;  %v4146_v34 = vrot.slane %v4144_v15, 1  ;;  %v3350_v35 = vsel %vm7938_vm4, 0, %v3239_v27  ;;  %v13852_v51 = vld [vmem:[#allocation169_spill] sm:$0xff]  ;;  %v13853_v29 = vld [vmem:[#allocation190_spill] sm:$0xff]  ;;  %13854 = vst [vmem:[#allocation101_spill] sm:$0xff] %v10266_v59 }
 0x1fe   : > { %13845 = vst [vmem:[#allocation96_spill] sm:$0xff] %v10239_v48  ;;  %13849 = vst [vmem:[#allocation82_spill] sm:$0xff] %v10246_v56  ;;  %4288 = vrot.lane.b32.xlu0 %v10249_v24, %s7840_s28  ;;  %v7441_v44 = vcombine.low %v3351_v40, %v3351_v40  ;;  %v2832_v53 = vshll.u32 %v10239_v48, 16  ;;  %v2836_v49 = vshrl.u32 %v10239_v48, 16  ;;  %v10259_v12 = vcombine.low %v3349_v50, %v3350_v35  ;;  %v13855_v27 = vld [vmem:[#allocation171_spill] sm:$0xff]  ;;  %v10274_v35 = vpop.permute.xlu1 %3717 }
 0x1ff   : > { %13850 = vst [vmem:[#allocation88_spill] sm:$0xff] %v10249_v24  ;;  %v4141_v32 = vrot.slane %v4139_v52, 1  ;;  %v3241_v37 = vadd.bf16 %v2825_v45, %v13852_v51  ;;  %v2853_v15 = vsel %vm7912_vm2, %v13853_v29, %v9233_v14  ;;  %v2860_v63 = vshll.u32 %v10246_v56, 16  ;;  %13856 = vst [vmem:[#allocation104_spill] sm:$0xff] %v10274_v35  ;;  %v13857_v14 = vld [vmem:[#allocation189_spill] sm:$0xff]  ;;  %v13859_v29 = vld [vmem:[#allocation170_spill] sm:$0xff] }
 0x200   : > { %13851 = vst [vmem:[#allocation103_spill] sm:$0xff] %v10259_v12  ;;  %v4156_v19 = vshll.u32 %v7441_v44, 16  ;;  %v2834_v24 = vrot.slane %v2832_v53, 5  ;;  %v3243_v40 = vadd.bf16 %v2836_v49, %v13855_v27  ;;  %v4149_v52 = vshrl.u32 %v10259_v12, 16 }
 0x201   : > { %v4142_v57 = vor.u32 %v4141_v32, %v4137_v7  ;;  %v4151_v50 = vshll.u32 %v10259_v12, 16  ;;  %v3352_v45 = vsel %vm9507_vm6, 0, %v3241_v37  ;;  %v2862_v49 = vrot.slane %v2860_v63, 5 }
 0x202   : > { %v4158_v51 = vrot.slane %v4156_v19, 1  ;;  %v2835_v44 = vsel %vm7912_vm2, %v13857_v14, %v2834_v24  ;;  %v3354_v53 = vsel %vm7938_vm4, 0, %v3243_v40  ;;  %v13860_v37 = vshll.u32 %v9464_v41, 16  ;;  %v13861_v19 = vld [vmem:[#allocation197_spill] sm:$0xff] }
 0x203   : > { %v10282_v7 = vsel %vm3859_vm7, %v4142_v57, %v4146_v34  ;;  %v4153_v32 = vrot.slane %v4151_v50, 1  ;;  %v3242_v59 = vadd.bf16 %v2835_v44, %v13859_v29  ;;  %v7442_v12 = vcombine.low %v3354_v53, %v3354_v53  ;;  %v13862_v40 = vld [vmem:[#allocation177_spill] sm:$0xff]  ;;  %v13863_v44 = vld [vmem:[#allocation178_spill] sm:$0xff]  ;;  %v10299_v29 = vpop.permute.xlu0 %3723 }
 0x204   : > { %13858 = vst [vmem:[#allocation83_spill] sm:$0xff] %v10282_v7  ;;  %v10287_v48 = vrot.slane %v13860_v37, 5  ;;  %4290 = vrot.lane.b32.xlu1 %v10282_v7, %s7840_s28  ;;  %v2863_v24 = vsel %vm7912_vm2, %v13861_v19, %v2862_v49  ;;  %v2864_v63 = vshrl.u32 %v10246_v56, 16  ;;  %v3244_v57 = vadd.bf16 %v2853_v15, %v13862_v40  ;;  %13864 = vst [vmem:[#allocation91_spill] sm:$0xff] %v10299_v29  ;;  %v13867_v49 = vld [vmem:[#allocation179_spill] sm:$0xff] }
 0x205   : > { %v4154_v34 = vor.u32 %v4153_v32, %v4149_v52  ;;  %v3353_v50 = vsel %vm7938_vm4, 0, %v3242_v59  ;;  %v4168_v14 = vshll.u32 %v7442_v12, 16  ;;  %v3245_v53 = vadd.bf16 %v2863_v24, %v13863_v44  ;;  %v13869_v32 = vld [vmem:[#allocation183_spill] sm:$0xff] }
 0x206   : > { %v13865_v37 = vshrl.u32 %v9464_v41, 16  ;;  %v10305_v7 = vcombine.low %v3352_v45, %v3353_v50  ;;  %v3246_v19 = vadd.bf16 %v2864_v63, %v13867_v49  ;;  %v3355_v15 = vsel %vm9507_vm6, 0, %v3244_v57  ;;  %v10318_v41 = vpop.permute.xlu1 %3721  ;;  %v13874_v50 = vld [vmem:[#allocation198_spill] sm:$0xff] }
 0x207   : > { %v10311_v52 = vsel %vm3859_vm7, %v4154_v34, %v4158_v51  ;;  %v4170_v59 = vrot.slane %v4168_v14, 1  ;;  %v3356_v12 = vsel %vm7938_vm4, 0, %v3245_v53  ;;  %v10316_v24 = vmul.bf16 1048592000, %v13869_v32  ;;  %13871 = vst [vmem:[#allocation111_spill] sm:$0xff] %v10318_v41  ;;  %v13873_v34 = vld [vmem:[#allocation193_spill] sm:$0xff]  ;;  %v10341_v27 = vpop.permute.xlu0 %3727 }
 0x208   : > { %v10303_v35 = vrot.slane %v13865_v37, 4  ;;  %13866 = vst [vmem:[#allocation97_spill] sm:$0xff] %v10305_v7  ;;  %13868 = vst [vmem:[#allocation110_spill] sm:$0xff] %v10311_v52  ;;  %4292 = vrot.lane.b32.xlu0 %v10311_v52, %s7840_s28  ;;  %v4161_v45 = vshrl.u32 %v10305_v7, 16  ;;  %v4163_v63 = vshll.u32 %v10305_v7, 16  ;;  %v3357_v51 = vsel %vm7938_vm4, 0, %v3246_v19 }
 0x209   : > { %13870 = vst [vmem:[#allocation113_spill] sm:$0xff] %v10316_v24  ;;  %v10326_v40 = vcombine.low %v3355_v15, %v3356_v12  ;;  %v7443_v57 = vcombine.low %v3357_v51, %v3357_v51  ;;  %v2881_v14 = vsel %vm7912_vm2, %v13874_v50, %v13873_v34  ;;  %v2888_v44 = vshll.u32 %v10316_v24, 16  ;;  %v13875_v41 = vld [vmem:[#allocation185_spill] sm:$0xff]  ;;  %v13876_v12 = vld [vmem:[#allocation187_spill] sm:$0xff]  ;;  %13878 = vst [vmem:[#allocation98_spill] sm:$0xff] %v10341_v27 }
 0x20a   : > { %v2892_v53 = vshrl.u32 %v10316_v24, 16  ;;  %v4165_v37 = vrot.slane %v4163_v63, 1  ;;  %v3247_v52 = vadd.bf16 %v2881_v14, %v13875_v41  ;;  %v13877_v7 = vld [vmem:[#allocation191_spill] sm:$0xff]  ;;  %v13879_v24 = vld [vmem:[#allocation208_spill] sm:$0xff] }
 0x20b   : > { %13872 = vst [vmem:[#allocation92_spill] sm:$0xff] %v10326_v40  ;;  %v4173_v32 = vshrl.u32 %v10326_v40, 16  ;;  %v4175_v29 = vshll.u32 %v10326_v40, 16  ;;  %v4180_v19 = vshll.u32 %v7443_v57, 16  ;;  %v2890_v15 = vrot.slane %v2888_v44, 5  ;;  %v13880_v57 = vld [vmem:[#allocation207_spill] sm:$0xff] }
 0x20c   : > { %v3249_v51 = vadd.bf16 %v2892_v53, %v13876_v12  ;;  %v10339_v56 = vmul.bf16 1048592000, %v13877_v7  ;;  %v4166_v34 = vor.u32 %v4165_v37, %v4161_v45  ;;  %v3358_v63 = vsel %vm9507_vm6, 0, %v3247_v52  ;;  %v10355_v45 = vpop.permute.xlu1 %3725  ;;  %v13883_v53 = vld [vmem:[#allocation186_spill] sm:$0xff] }
 0x20d   : > { %v4177_v50 = vrot.slane %v4175_v29, 1  ;;  %v2909_v40 = vsel %vm7912_vm2, %v13879_v24, %v9340_v13  ;;  %v4182_v41 = vrot.slane %v4180_v19, 1  ;;  %v2891_v14 = vsel %vm7912_vm2, %v13880_v57, %v2890_v15  ;;  %13881 = vst [vmem:[#allocation105_spill] sm:$0xff] %v10355_v45  ;;  %v13884_v15 = vld [vmem:[#allocation192_spill] sm:$0xff] }
 0x20e   : > { %v3360_v7 = vsel %vm7938_vm4, 0, %v3249_v51  ;;  %v2916_v44 = vshll.u32 %v10339_v56, 16  ;;  %v10358_v29 = vsel %vm3859_vm7, %v4166_v34, %v4170_v59  ;;  %v3248_v37 = vadd.bf16 %v2891_v14, %v13883_v53 }
 0x20f   : > { %13882 = vst [vmem:[#allocation119_spill] sm:$0xff] %v10358_v29  ;;  %v4178_v52 = vor.u32 %v4177_v50, %v4173_v32  ;;  %v7444_v27 = vcombine.low %v3360_v7, %v3360_v7  ;;  %v2987_v13 = vor.u32 %v10222_v10, %v9480_v11  ;;  %4294 = vrot.lane.b32.xlu1 %v10358_v29, %s7840_s28  ;;  %v2920_v19 = vshrl.u32 %v10339_v56, 16  ;;  %v13889_v7 = vld [vmem:[#allocation194_spill] sm:$0xff]  ;;  %v13901_v29 = vld [vmem:[#allocation212_spill] sm:$0xff] }
 0x210   : > { %v2918_v24 = vrot.slane %v2916_v44, 5  ;;  %v3250_v51 = vadd.bf16 %v2909_v40, %v13884_v15  ;;  %v2997_v57 = vor.u32 %v10303_v35, %v10287_v48  ;;  %v3359_v32 = vsel %vm7938_vm4, 0, %v3248_v37  ;;  %v13887_v40 = vld [vmem:[#allocation195_spill] sm:$0xff]  ;;  %v10399_v15 = vpop.permute.xlu1 %3729 }
 0x211   : > { %v10370_v59 = vsel %vm3859_vm7, %v4178_v52, %v4182_v41  ;;  %v4192_v34 = vshll.u32 %v7444_v27, 16  ;;  %v10376_v11 = vcombine.low %v3358_v63, %v3359_v32  ;;  %v3252_v50 = vadd.bf16 %v2920_v19, %v13887_v40  ;;  %v10384_v41 = vpop.permute.xlu0 %3731  ;;  %v13890_v27 = vld [vmem:[#allocation199_spill] sm:$0xff]  ;;  %13892 = vst [vmem:[#allocation106_spill] sm:$0xff] %v10399_v15  ;;  %v13895_v15 = vld [vmem:[#allocation202_spill] sm:$0xff] }
 0x212   : > { %13885 = vst [vmem:[#allocation114_spill] sm:$0xff] %v10370_v59  ;;  %4296 = vrot.lane.b32.xlu0 %v10370_v59, %s7840_s28  ;;  %v2919_v10 = vsel %vm7912_vm2, %v9454_v6, %v2918_v24  ;;  %v3361_v35 = vsel %vm9507_vm6, 0, %v3250_v51  ;;  %13888 = vst [vmem:[#allocation99_spill] sm:$0xff] %v10384_v41  ;;  %v10388_v52 = vmul.bf16 1048592000, %v13890_v27  ;;  %v2937_v63 = vsel %vm7912_vm2, %v9460_v18, %v9382_v22  ;;  %v13891_v24 = vld [vmem:[#allocation200_spill] sm:$0xff] }
 0x213   : > { %13886 = vst [vmem:[#allocation120_spill] sm:$0xff] %v10376_v11  ;;  %v4194_v14 = vrot.slane %v4192_v34, 1  ;;  %v3251_v44 = vadd.bf16 %v2919_v10, %v13889_v7  ;;  %v4185_v6 = vshrl.u32 %v10376_v11, 16  ;;  %v4187_v53 = vshll.u32 %v10376_v11, 16  ;;  %v13894_v27 = vld [vmem:[#allocation209_spill] sm:$0xff] }
 0x214   : > { %v3363_v37 = vsel %vm7938_vm4, 0, %v3252_v50  ;;  %v3253_v19 = vadd.bf16 %v2937_v63, %v13891_v24  ;;  %v2944_v34 = vshll.u32 %v10388_v52, 16  ;;  %v2948_v10 = vshrl.u32 %v10388_v52, 16  ;;  %v10432_v59 = vpop.permute.xlu1 %3733 }
 0x215   : > { %v3362_v51 = vsel %vm7938_vm4, 0, %v3251_v44  ;;  %v7445_v32 = vcombine.low %v3363_v37, %v3363_v37  ;;  %v4189_v22 = vrot.slane %v4187_v53, 1  ;;  %v10410_v50 = vmul.bf16 1048592000, %v13894_v27  ;;  %13899 = vst [vmem:[#allocation128_spill] sm:$0xff] %v10432_v59  ;;  %v13958_v59 = vld [vmem:[#allocation22_spill] sm:$0xff] }
 0x216   : > { %v10405_v18 = vcombine.low %v3361_v35, %v3362_v51  ;;  %v3364_v7 = vsel %vm9507_vm6, 0, %v3253_v19  ;;  %v2946_v24 = vrot.slane %v2944_v34, 5  ;;  %v3255_v45 = vadd.bf16 %v2948_v10, %v13895_v15  ;;  %v10420_v19 = vpop.permute.xlu0 %3735 }
 0x217   : > { %v4204_v63 = vshll.u32 %v7445_v32, 16  ;;  %v2965_v44 = vsel %vm7912_vm2, %v9472_v16, %v9427_v20  ;;  %v4190_v37 = vor.u32 %v4189_v22, %v4185_v6  ;;  %v2972_v51 = vshll.u32 %v10410_v50, 16  ;;  %13896 = vst [vmem:[#allocation127_spill] sm:$0xff] %v10420_v19  ;;  %v13898_v6 = vld [vmem:[#allocation201_spill] sm:$0xff] }
 0x218   : > { %13893 = vst [vmem:[#allocation112_spill] sm:$0xff] %v10405_v18  ;;  %v4197_v53 = vshrl.u32 %v10405_v18, 16  ;;  %v4199_v35 = vshll.u32 %v10405_v18, 16  ;;  %v2947_v32 = vsel %vm7912_vm2, %v9468_v54, %v2946_v24  ;;  %v3366_v34 = vsel %vm7938_vm4, 0, %v3255_v45  ;;  %v13900_v54 = vld [vmem:[#allocation210_spill] sm:$0xff] }
 0x219   : > { %v4206_v27 = vrot.slane %v4204_v63, 1  ;;  %v2976_v10 = vshrl.u32 %v10410_v50, 16  ;;  %v10429_v20 = vsel %vm3859_vm7, %v4190_v37, %v4194_v14  ;;  %v3254_v22 = vadd.bf16 %v2947_v32, %v13898_v6 }
 0x21a   : > { %13897 = vst [vmem:[#allocation125_spill] sm:$0xff] %v10429_v20  ;;  %v4201_v16 = vrot.slane %v4199_v35, 1  ;;  %v7446_v41 = vcombine.low %v3366_v34, %v3366_v34  ;;  %v2988_v19 = vrot.slane %v2987_v13, 4  ;;  %4298 = vrot.lane.b32.xlu1 %v10429_v20, %s7840_s28  ;;  %v2974_v63 = vrot.slane %v2972_v51, 5  ;;  %v14016_v20 = vld [vmem:[#allocation73_spill] sm:$0xff] }
 0x21b   : > { %v3256_v24 = vadd.bf16 %v2965_v44, %v13900_v54  ;;  %v3258_v45 = vadd.bf16 %v2976_v10, %v13901_v29  ;;  %v3365_v14 = vsel %vm7938_vm4, 0, %v3254_v22  ;;  %v2998_v35 = vrot.slane %v2997_v57, 4  ;;  %v13904_v44 = vld [vmem:[#allocation211_spill] sm:$0xff] }
 0x21c   : > { %v4202_v18 = vor.u32 %v4201_v16, %v4197_v53  ;;  %v4216_v37 = vshll.u32 %v7446_v41, 16  ;;  %v10440_v11 = vcombine.low %v3364_v7, %v3365_v14  ;;  %v2975_v13 = vsel %vm7912_vm2, %v9474_v2, %v2974_v63  ;;  %v10453_v41 = vpop.permute.xlu0 %3739  ;;  %v10468_v63 = vpop.permute.xlu1 %3737 }
 0x21d   : > { %v3369_v32 = vsel %vm7938_vm4, 0, %v3258_v45  ;;  %v3257_v34 = vadd.bf16 %v2975_v13, %v13904_v44  ;;  %v3367_v53 = vsel %vm9507_vm6, 0, %v3256_v24  ;;  %13905 = vst [vmem:[#allocation121_spill] sm:$0xff] %v10453_v41  ;;  %v10460_v7 = vmul.bf16 1048592000, %v9425_v23  ;;  %13906 = vst [vmem:[#allocation134_spill] sm:$0xff] %v10468_v63 }
 0x21e   : > { %13902 = vst [vmem:[#allocation107_spill] sm:$0xff] %v10440_v11  ;;  %v10448_v51 = vsel %vm3859_vm7, %v4202_v18, %v4206_v27  ;;  %v7447_v10 = vcombine.low %v3369_v32, %v3369_v32  ;;  %v4209_v57 = vshrl.u32 %v10440_v11, 16  ;;  %v4211_v2 = vshll.u32 %v10440_v11, 16 }
 0x21f   : > { %13903 = vst [vmem:[#allocation115_spill] sm:$0xff] %v10448_v51  ;;  %4300 = vrot.lane.b32.xlu0 %v10448_v51, %s7840_s28  ;;  %v2993_v18 = vsel %vm7912_vm2, %v2988_v19, %v10287_v48  ;;  %v4218_v27 = vrot.slane %v4216_v37, 1  ;;  %v3368_v16 = vsel %vm7938_vm4, 0, %v3257_v34  ;;  %v631_v22 = vadd.s32 16, %v9470_v60  ;;  %v13998_v51 = vld [vmem:[#allocation62_spill] sm:$0xff] }
 0x220   : > { %v4228_v6 = vshll.u32 %v7447_v10, 16  ;;  %v4213_v54 = vrot.slane %v4211_v2, 1  ;;  %v10470_v24 = vcombine.low %v3367_v53, %v3368_v16  ;;  %v3000_v45 = vshll.u32 %v10460_v7, 16  ;;  %v13912_v53 = vld [vmem:[#allocation215_spill] sm:$0xff]  ;;  %v13913_v2 = vld [vmem:[#allocation4_spill] sm:$0xff] }
 0x221   : > { %v3004_v23 = vshrl.u32 %v10460_v7, 16  ;;  %v3259_v13 = vadd.bf16 %v2993_v18, %v9429_v3  ;;  %vm634_vm8 = vcmp.eq.s32.totalorder %v631_v22, 16  ;;  %v13908_v48 = vshrl.u32 %v7901_v1, 16 }
 0x222   : > { %13907 = vst [vmem:[#allocation137_spill] sm:$0xff] %v10470_v24  ;;  %v4230_v14 = vrot.slane %v4228_v6, 1  ;;  %v4214_v37 = vor.u32 %v4213_v54, %v4209_v57  ;;  %v4221_v60 = vshrl.u32 %v10470_v24, 16  ;;  %v4223_v32 = vshll.u32 %v10470_v24, 16  ;;  %vm10480_vm9 = vmpackc.low %vm634_vm8, %vm634_vm8  ;;  %v13916_v54 = vld [vmem:[#allocation214_spill] sm:$0xff] }
 0x223   : > { %v1898_v19 = vadd.bf16 %v13908_v48, %v7910_v8  ;;  %v3002_v44 = vrot.slane %v3000_v45, 5  ;;  %v13909_v34 = vmov 0  ;;  %v3261_v10 = vadd.bf16 %v3004_v23, %v13912_v53  ;;  %v10489_v8 = vpop.permute.xlu0 %3743 }
 0x224   : > { %v13910_v34 = vsel %vm10480_vm9, 4294967295, %v13909_v34  ;;  %v4405_v18 = vshrl.u32 %v13913_v2, 16  ;;  %v4407_v1 = vshll.u32 %v13913_v2, 16  ;;  %13914 = vst [vmem:[#allocation116_spill] sm:$0xff] %v10489_v8  ;;  %v10492_v57 = vsel %vm3859_vm7, %v4214_v37, %v4218_v27  ;;  %v10503_v2 = vpop.permute.xlu1 %3741 }
 0x225   : > { %13911 = vst [vmem:[#allocation135_spill] sm:$0xff] %v13910_v34  ;;  %v2009_v3 = vsel %vm10480_vm9, 0, %v1898_v19  ;;  %13915 = vst [vmem:[#allocation122_spill] sm:$0xff] %v10492_v57  ;;  %v4225_v16 = vrot.slane %v4223_v32, 1  ;;  %v3003_v6 = vsel %vm7912_vm2, %v2998_v35, %v3002_v44  ;;  %4302 = vrot.lane.b32.xlu1 %v10492_v57, %s7840_s28  ;;  %v3370_v23 = vsel %vm9507_vm6, 0, %v3259_v13  ;;  %v14055_v34 = vld [vmem:[#allocation205_spill] sm:$0xff] }
 0x226   : > { %v7449_v22 = vcombine.low %v2009_v3, %v2009_v3  ;;  %v3260_v45 = vadd.bf16 %v3003_v6, %v13916_v54  ;;  %v3372_v48 = vsel %vm7938_vm4, 0, %v3261_v10  ;;  %v4409_v19 = vrot.slane %v4407_v1, 1  ;;  %13917 = vst [vmem:[#allocation129_spill] sm:$0xff] %v10503_v2  ;;  %v13920_v10 = vld [vmem:[#allocation5_spill] sm:$0xff]  ;;  %v13956_v2 = vld [vmem:[#allocation34_spill] sm:$0xff] }
 0x227   : > { %v4226_v27 = vor.u32 %v4225_v16, %v4221_v60  ;;  %v7448_v37 = vcombine.low %v3372_v48, %v3372_v48  ;;  %v922_v3 = vshrl.u32 %v7974_v39, 16  ;;  %v4431_v1 = vshll.u32 %v13920_v10, 16 }
 0x228   : > { %v4412_v32 = vshll.u32 %v7449_v22, 16  ;;  %v3371_v35 = vsel %vm7938_vm4, 0, %v3260_v45  ;;  %v4410_v44 = vor.u32 %v4409_v19, %v4405_v18  ;;  %v894_v16 = vshrl.u32 %v7988_v62, 16  ;;  %v10518_v22 = vpop.permute.xlu0 %3747  ;;  %v13923_v19 = vld [vmem:[#allocation6_spill] sm:$0xff]  ;;  %v10530_v62 = vpop.permute.xlu1 %3745 }
 0x229   : > { %v10509_v6 = vsel %vm3859_vm7, %v4226_v27, %v4230_v14  ;;  %v10511_v54 = vcombine.low %v3370_v23, %v3371_v35  ;;  %v4240_v13 = vshll.u32 %v7448_v37, 16  ;;  %v1904_v60 = vadd.bf16 %v922_v3, %v9513_v33  ;;  %13921 = vst [vmem:[#allocation143_spill] sm:$0xff] %v10518_v22  ;;  %13924 = vst [vmem:[#allocation130_spill] sm:$0xff] %v10530_v62 }
 0x22a   : > { %13918 = vst [vmem:[#allocation138_spill] sm:$0xff] %v10509_v6  ;;  %v4414_v8 = vrot.slane %v4412_v32, 1  ;;  %4304 = vrot.lane.b32.xlu0 %v10509_v6, %s7840_s28  ;;  %v4429_v45 = vshrl.u32 %v13920_v10, 16  ;;  %v4433_v48 = vrot.slane %v4431_v1, 1  ;;  %v1901_v33 = vadd.bf16 %v894_v16, %v9491_v28 }
 0x22b   : > { %13919 = vst [vmem:[#allocation144_spill] sm:$0xff] %v10511_v54  ;;  %v4233_v39 = vshrl.u32 %v10511_v54, 16  ;;  %v4235_v14 = vshll.u32 %v10511_v54, 16  ;;  %v2015_v23 = vsel %vm10480_vm9, 0, %v1904_v60  ;;  %v4419_v27 = vshll.u32 %v13923_v19, 16 }
 0x22c   : > { %v10523_v18 = vsel %vm3859_vm7, %v4410_v44, %v4414_v8  ;;  %v4242_v32 = vrot.slane %v4240_v13, 1  ;;  %v7451_v35 = vcombine.low %v2015_v23, %v2015_v23  ;;  %v4417_v3 = vshrl.u32 %v13923_v19, 16  ;;  %v13925_v13 = vld [vmem:[#allocation16_spill] sm:$0xff]  ;;  %v10542_v57 = vpop.permute.xlu0 %3751 }
 0x22d   : > { %13922 = vst [vmem:[#allocation123_spill] sm:$0xff] %v10523_v18  ;;  %v4237_v37 = vrot.slane %v4235_v14, 1  ;;  %v2012_v8 = vsel %vm10480_vm9, 0, %v1901_v33  ;;  %v4421_v44 = vrot.slane %v4419_v27, 1  ;;  %v978_v60 = vshrl.u32 %v13638_v38, 16  ;;  %13926 = vst [vmem:[#allocation136_spill] sm:$0xff] %v10542_v57 }
 0x22e   : > { %4788 = vrot.lane.b32.xlu0 %v10523_v18, %s7841_s29  ;;  %v4434_v1 = vor.u32 %v4433_v48, %v4429_v45  ;;  %v4436_v16 = vshll.u32 %v7451_v35, 16  ;;  %v7450_v22 = vcombine.low %v2012_v8, %v2012_v8  ;;  %v4453_v23 = vshrl.u32 %v13925_v13, 16  ;;  %v13928_v48 = vld [vmem:[#allocation10_spill] sm:$0xff] }
 0x22f   : > { %v4238_v28 = vor.u32 %v4237_v37, %v4233_v39  ;;  %v1910_v14 = vadd.bf16 %v978_v60, %v9578_v42  ;;  %v4455_v62 = vshll.u32 %v13925_v13, 16  ;;  %v950_v6 = vshrl.u32 %v8048_v30, 16  ;;  %v10553_v30 = vpop.permute.xlu1 %3749 }
 0x230   : > { %v4438_v33 = vrot.slane %v4436_v16, 1  ;;  %v4422_v27 = vor.u32 %v4421_v44, %v4417_v3  ;;  %v4424_v38 = vshll.u32 %v7450_v22, 16  ;;  %v4443_v37 = vshll.u32 %v13928_v48, 16  ;;  %13929 = vst [vmem:[#allocation149_spill] sm:$0xff] %v10553_v30  ;;  %v13948_v30 = vld [vmem:[#allocation13_spill] sm:$0xff] }
 0x231   : > { %v10545_v18 = vsel %vm3859_vm7, %v4238_v28, %v4242_v32  ;;  %v2021_v42 = vsel %vm10480_vm9, 0, %v1910_v14  ;;  %v4457_v39 = vrot.slane %v4455_v62, 1  ;;  %v1907_v45 = vadd.bf16 %v950_v6, %v9542_v5 }
 0x232   : > { %13927 = vst [vmem:[#allocation151_spill] sm:$0xff] %v10545_v18  ;;  %4306 = vrot.lane.b32.xlu1 %v10545_v18, %s7840_s28  ;;  %v10556_v35 = vsel %vm3859_vm7, %v4434_v1, %v4438_v33  ;;  %v4426_v32 = vrot.slane %v4424_v38, 1  ;;  %v7453_v8 = vcombine.low %v2021_v42, %v2021_v42  ;;  %v4441_v22 = vshrl.u32 %v13928_v48, 16  ;;  %v13932_v1 = vld [vmem:[#allocation31_spill] sm:$0xff]  ;;  %v10571_v33 = vpop.permute.xlu0 %3755 }
 0x233   : > { %13930 = vst [vmem:[#allocation152_spill] sm:$0xff] %v10556_v35  ;;  %4792 = vrot.lane.b32.xlu0 %v10556_v35, %s7841_s29  ;;  %v4458_v3 = vor.u32 %v4457_v39, %v4453_v23  ;;  %v2018_v62 = vsel %vm10480_vm9, 0, %v1907_v45  ;;  %v4445_v44 = vrot.slane %v4443_v37, 1  ;;  %v1034_v28 = vshrl.u32 %v13654_v61, 16  ;;  %13933 = vst [vmem:[#allocation139_spill] sm:$0xff] %v10571_v33  ;;  %v13934_v61 = vld [vmem:[#allocation23_spill] sm:$0xff] }
 0x234   : > { %v10564_v5 = vsel %vm3859_vm7, %v4422_v27, %v4426_v32  ;;  %v4460_v6 = vshll.u32 %v7453_v8, 16  ;;  %v7452_v60 = vcombine.low %v2018_v62, %v2018_v62  ;;  %v4479_v16 = vshll.u32 %v13932_v1, 16  ;;  %v10577_v8 = vpop.permute.xlu1 %3753 }
 0x235   : > { %13931 = vst [vmem:[#allocation131_spill] sm:$0xff] %v10564_v5  ;;  %v1006_v14 = vshrl.u32 %v13646_v36, 16  ;;  %v4446_v38 = vor.u32 %v4445_v44, %v4441_v22  ;;  %v1916_v39 = vadd.bf16 %v1034_v28, %v9633_v26  ;;  %v4477_v27 = vshrl.u32 %v13932_v1, 16  ;;  %13935 = vst [vmem:[#allocation141_spill] sm:$0xff] %v10577_v8 }
 0x236   : > { %4790 = vrot.lane.b32.xlu1 %v10564_v5, %s7841_s29  ;;  %v4462_v23 = vrot.slane %v4460_v6, 1  ;;  %v4448_v42 = vshll.u32 %v7452_v60, 16  ;;  %v4481_v45 = vrot.slane %v4479_v16, 1  ;;  %v4467_v32 = vshll.u32 %v13934_v61, 16 }
 0x237   : > { %v1913_v37 = vadd.bf16 %v1006_v14, %v9605_v43  ;;  %v2027_v6 = vsel %vm10480_vm9, 0, %v1916_v39  ;;  %v4465_v22 = vshrl.u32 %v13934_v61, 16  ;;  %v1062_v39 = vshrl.u32 %v13663_v47, 16 }
 0x238   : > { %v10580_v62 = vsel %vm3859_vm7, %v4458_v3, %v4462_v23  ;;  %v4450_v36 = vrot.slane %v4448_v42, 1  ;;  %v7455_v26 = vcombine.low %v2027_v6, %v2027_v6  ;;  %v4469_v44 = vrot.slane %v4467_v32, 1  ;;  %v13938_v23 = vld [vmem:[#allocation45_spill] sm:$0xff]  ;;  %v10597_v6 = vpop.permute.xlu0 %3759 }
 0x239   : > { %13936 = vst [vmem:[#allocation145_spill] sm:$0xff] %v10580_v62  ;;  %4796 = vrot.lane.b32.xlu0 %v10580_v62, %s7841_s29  ;;  %v2024_v43 = vsel %vm10480_vm9, 0, %v1913_v37  ;;  %v1090_v3 = vshrl.u32 %v13676_v31, 16  ;;  %v4482_v16 = vor.u32 %v4481_v45, %v4477_v27  ;;  %v4503_v42 = vshll.u32 %v13938_v23, 16  ;;  %13939 = vst [vmem:[#allocation160_spill] sm:$0xff] %v10597_v6  ;;  %v10603_v27 = vpop.permute.xlu1 %3757 }
 0x23a   : > { %v10590_v60 = vsel %vm3859_vm7, %v4446_v38, %v4450_v36  ;;  %v7454_v28 = vcombine.low %v2024_v43, %v2024_v43  ;;  %v4484_v14 = vshll.u32 %v7455_v26, 16  ;;  %v4470_v33 = vor.u32 %v4469_v44, %v4465_v22  ;;  %v13940_v38 = vld [vmem:[#allocation37_spill] sm:$0xff]  ;;  %13941 = vst [vmem:[#allocation140_spill] sm:$0xff] %v10603_v27 }
 0x23b   : > { %13937 = vst [vmem:[#allocation158_spill] sm:$0xff] %v10590_v60  ;;  %4794 = vrot.lane.b32.xlu1 %v10590_v60, %s7841_s29  ;;  %v1922_v32 = vadd.bf16 %v1090_v3, %v9698_v4  ;;  %v4491_v36 = vshll.u32 %v13940_v38, 16  ;;  %v4501_v31 = vshrl.u32 %v13938_v23, 16  ;;  %v4505_v8 = vrot.slane %v4503_v42, 1  ;;  %v13988_v60 = vld [vmem:[#allocation36_spill] sm:$0xff] }
 0x23c   : > { %v4472_v37 = vshll.u32 %v7454_v28, 16  ;;  %v4486_v43 = vrot.slane %v4484_v14, 1  ;;  %v1919_v57 = vadd.bf16 %v1062_v39, %v9668_v0  ;;  %v4489_v26 = vshrl.u32 %v13940_v38, 16 }
 0x23d   : > { %v2033_v47 = vsel %vm10480_vm9, 0, %v1922_v32  ;;  %v4493_v22 = vrot.slane %v4491_v36, 1  ;;  %v1146_v14 = vshrl.u32 %v13692_v58, 16  ;;  %v4506_v42 = vor.u32 %v4505_v8, %v4501_v31  ;;  %v10623_v36 = vpop.permute.xlu0 %4244  ;;  %v10629_v8 = vpop.permute.xlu1 %3761 }
 0x23e   : > { %v4474_v45 = vrot.slane %v4472_v37, 1  ;;  %v10609_v44 = vsel %vm3859_vm7, %v4482_v16, %v4486_v43  ;;  %v7457_v4 = vcombine.low %v2033_v47, %v2033_v47  ;;  %v2030_v28 = vsel %vm10480_vm9, 0, %v1919_v57  ;;  %v13944_v16 = vld [vmem:[#allocation61_spill] sm:$0xff]  ;;  %13945 = vst [vmem:[#allocation153_spill] sm:$0xff] %v10623_v36  ;;  %v13946_v47 = vld [vmem:[#allocation27_spill] sm:$0xff]  ;;  %13949 = vst [vmem:[#allocation161_spill] sm:$0xff] %v10629_v8 }
 0x23f   : > { %13942 = vst [vmem:[#allocation146_spill] sm:$0xff] %v10609_v44  ;;  %4800 = vrot.lane.b32.xlu0 %v10609_v44, %s7841_s29  ;;  %v7456_v3 = vcombine.low %v2030_v28, %v2030_v28  ;;  %v4527_v37 = vshll.u32 %v13944_v16, 16  ;;  %v1118_v32 = vshrl.u32 %v13681_v46, 16  ;;  %v4494_v57 = vor.u32 %v4493_v22, %v4489_v26 }
 0x240   : > { %v10616_v0 = vsel %vm3859_vm7, %v4470_v33, %v4474_v45  ;;  %v4508_v39 = vshll.u32 %v7457_v4, 16  ;;  %v1928_v6 = vadd.bf16 %v1146_v14, %v13946_v47  ;;  %v13947_v33 = vld [vmem:[#allocation54_spill] sm:$0xff]  ;;  %v4525_v58 = vshrl.u32 %v13944_v16, 16 }
 0x241   : > { %13943 = vst [vmem:[#allocation148_spill] sm:$0xff] %v10616_v0  ;;  %4798 = vrot.lane.b32.xlu1 %v10616_v0, %s7841_s29  ;;  %v4496_v43 = vshll.u32 %v7456_v3, 16  ;;  %v4515_v45 = vshll.u32 %v13947_v33, 16  ;;  %v4529_v27 = vrot.slane %v4527_v37, 1  ;;  %v1925_v18 = vadd.bf16 %v1118_v32, %v13948_v30  ;;  %v13952_v37 = vld [vmem:[#allocation69_spill] sm:$0xff] }
 0x242   : > { %v4510_v28 = vrot.slane %v4508_v39, 1  ;;  %v2039_v46 = vsel %vm10480_vm9, 0, %v1928_v6  ;;  %v4513_v4 = vshrl.u32 %v13947_v33, 16  ;;  %v1202_v32 = vshrl.u32 %v13952_v37, 16  ;;  %v13978_v0 = vld [vmem:[#allocation29_spill] sm:$0xff] }
 0x243   : > { %v4498_v31 = vrot.slane %v4496_v43, 1  ;;  %v4517_v26 = vrot.slane %v4515_v45, 1  ;;  %v7459_v3 = vcombine.low %v2039_v46, %v2039_v46  ;;  %v2036_v14 = vsel %vm10480_vm9, 0, %v1925_v18  ;;  %v13954_v45 = vld [vmem:[#allocation60_spill] sm:$0xff]  ;;  %v10649_v46 = vpop.permute.xlu0 %4248 }
 0x244   : > { %v10635_v22 = vsel %vm3859_vm7, %v4506_v42, %v4510_v28  ;;  %v7458_v39 = vcombine.low %v2036_v14, %v2036_v14  ;;  %v4530_v6 = vor.u32 %v4529_v27, %v4525_v58  ;;  %v13953_v42 = vld [vmem:[#allocation78_spill] sm:$0xff]  ;;  %v1174_v28 = vshrl.u32 %v13954_v45, 16  ;;  %13955 = vst [vmem:[#allocation147_spill] sm:$0xff] %v10649_v46  ;;  %v10655_v27 = vpop.permute.xlu1 %4246 }
 0x245   : > { %13950 = vst [vmem:[#allocation167_spill] sm:$0xff] %v10635_v22  ;;  %4804 = vrot.lane.b32.xlu0 %v10635_v22, %s7841_s29  ;;  %v10642_v30 = vsel %vm3859_vm7, %v4494_v57, %v4498_v31  ;;  %v4532_v43 = vshll.u32 %v7459_v3, 16  ;;  %v4551_v47 = vshll.u32 %v13953_v42, 16  ;;  %v4518_v18 = vor.u32 %v4517_v26, %v4513_v4  ;;  %v13957_v57 = vld [vmem:[#allocation70_spill] sm:$0xff]  ;;  %13959 = vst [vmem:[#allocation154_spill] sm:$0xff] %v10655_v27 }
 0x246   : > { %13951 = vst [vmem:[#allocation166_spill] sm:$0xff] %v10642_v30  ;;  %4802 = vrot.lane.b32.xlu1 %v10642_v30, %s7841_s29  ;;  %v4520_v8 = vshll.u32 %v7458_v39, 16  ;;  %v1934_v41 = vadd.bf16 %v1202_v32, %v13956_v2  ;;  %v4539_v31 = vshll.u32 %v13957_v57, 16  ;;  %v4549_v37 = vshrl.u32 %v13953_v42, 16  ;;  %v13962_v32 = vld [vmem:[#allocation84_spill] sm:$0xff]  ;;  %v13968_v30 = vld [vmem:[#allocation21_spill] sm:$0xff] }
 0x247   : > { %v4534_v14 = vrot.slane %v4532_v43, 1  ;;  %v4553_v63 = vrot.slane %v4551_v47, 1  ;;  %v1931_v36 = vadd.bf16 %v1174_v28, %v13958_v59  ;;  %v4537_v45 = vshrl.u32 %v13957_v57, 16 }
 0x248   : > { %v4522_v58 = vrot.slane %v4520_v8, 1  ;;  %v2045_v3 = vsel %vm10480_vm9, 0, %v1934_v41  ;;  %v4541_v4 = vrot.slane %v4539_v31, 1  ;;  %v1258_v43 = vshrl.u32 %v13962_v32, 16  ;;  %v13964_v31 = vld [vmem:[#allocation76_spill] sm:$0xff] }
 0x249   : > { %v10661_v26 = vsel %vm3859_vm7, %v4530_v6, %v4534_v14  ;;  %v7461_v2 = vcombine.low %v2045_v3, %v2045_v3  ;;  %v2042_v39 = vsel %vm10480_vm9, 0, %v1931_v36  ;;  %v4554_v41 = vor.u32 %v4553_v63, %v4549_v37  ;;  %v13963_v6 = vld [vmem:[#allocation94_spill] sm:$0xff]  ;;  %v10675_v3 = vpop.permute.xlu0 %4252  ;;  %v10681_v63 = vpop.permute.xlu1 %4250 }
 0x24a   : > { %13960 = vst [vmem:[#allocation159_spill] sm:$0xff] %v10661_v26  ;;  %4808 = vrot.lane.b32.xlu0 %v10661_v26, %s7841_s29  ;;  %v10668_v59 = vsel %vm3859_vm7, %v4518_v18, %v4522_v58  ;;  %v7460_v8 = vcombine.low %v2042_v39, %v2042_v39  ;;  %v4575_v28 = vshll.u32 %v13963_v6, 16  ;;  %v1230_v14 = vshrl.u32 %v13964_v31, 16  ;;  %13965 = vst [vmem:[#allocation175_spill] sm:$0xff] %v10675_v3  ;;  %v13966_v26 = vld [vmem:[#allocation32_spill] sm:$0xff]  ;;  %v13967_v18 = vld [vmem:[#allocation85_spill] sm:$0xff] }
 0x24b   : > { %13961 = vst [vmem:[#allocation172_spill] sm:$0xff] %v10668_v59  ;;  %4806 = vrot.lane.b32.xlu1 %v10668_v59, %s7841_s29  ;;  %v4556_v47 = vshll.u32 %v7461_v2, 16  ;;  %v4542_v36 = vor.u32 %v4541_v4, %v4537_v45  ;;  %v1940_v27 = vadd.bf16 %v1258_v43, %v13966_v26  ;;  %v4563_v58 = vshll.u32 %v13967_v18, 16  ;;  %13969 = vst [vmem:[#allocation174_spill] sm:$0xff] %v10681_v63  ;;  %v13972_v43 = vld [vmem:[#allocation100_spill] sm:$0xff] }
 0x24c   : > { %v4544_v46 = vshll.u32 %v7460_v8, 16  ;;  %v4573_v32 = vshrl.u32 %v13963_v6, 16  ;;  %v4577_v22 = vrot.slane %v4575_v28, 1  ;;  %v1937_v59 = vadd.bf16 %v1230_v14, %v13968_v30 }
 0x24d   : > { %v4558_v39 = vrot.slane %v4556_v47, 1  ;;  %v2051_v2 = vsel %vm10480_vm9, 0, %v1940_v27  ;;  %v4561_v31 = vshrl.u32 %v13967_v18, 16  ;;  %v4565_v45 = vrot.slane %v4563_v58, 1  ;;  %v13974_v58 = vld [vmem:[#allocation93_spill] sm:$0xff] }
 0x24e   : > { %v4546_v37 = vrot.slane %v4544_v46, 1  ;;  %v7463_v26 = vcombine.low %v2051_v2, %v2051_v2  ;;  %v2048_v8 = vsel %vm10480_vm9, 0, %v1937_v59  ;;  %v1314_v47 = vshrl.u32 %v13972_v43, 16  ;;  %v10701_v2 = vpop.permute.xlu0 %4256 }
 0x24f   : > { %v10687_v4 = vsel %vm3859_vm7, %v4554_v41, %v4558_v39  ;;  %v7462_v46 = vcombine.low %v2048_v8, %v2048_v8  ;;  %v4578_v27 = vor.u32 %v4577_v22, %v4573_v32  ;;  %v13973_v41 = vld [vmem:[#allocation109_spill] sm:$0xff]  ;;  %v1286_v39 = vshrl.u32 %v13974_v58, 16  ;;  %13975 = vst [vmem:[#allocation182_spill] sm:$0xff] %v10701_v2  ;;  %v10707_v22 = vpop.permute.xlu1 %4254 }
 0x250   : > { %13970 = vst [vmem:[#allocation155_spill] sm:$0xff] %v10687_v4  ;;  %4812 = vrot.lane.b32.xlu0 %v10687_v4, %s7841_s29  ;;  %v10694_v30 = vsel %vm3859_vm7, %v4542_v36, %v4546_v37  ;;  %v4580_v28 = vshll.u32 %v7463_v26, 16  ;;  %v4599_v14 = vshll.u32 %v13973_v41, 16  ;;  %v4566_v59 = vor.u32 %v4565_v45, %v4561_v31  ;;  %v13976_v4 = vld [vmem:[#allocation39_spill] sm:$0xff]  ;;  %v13977_v36 = vld [vmem:[#allocation102_spill] sm:$0xff]  ;;  %13979 = vst [vmem:[#allocation163_spill] sm:$0xff] %v10707_v22 }
 0x251   : > { %13971 = vst [vmem:[#allocation162_spill] sm:$0xff] %v10694_v30  ;;  %4810 = vrot.lane.b32.xlu1 %v10694_v30, %s7841_s29  ;;  %v4568_v3 = vshll.u32 %v7462_v46, 16  ;;  %v1946_v63 = vadd.bf16 %v1314_v47, %v13976_v4  ;;  %v4587_v37 = vshll.u32 %v13977_v36, 16  ;;  %v4597_v43 = vshrl.u32 %v13973_v41, 16  ;;  %v13982_v47 = vld [vmem:[#allocation117_spill] sm:$0xff] }
 0x252   : > { %v4582_v8 = vrot.slane %v4580_v28, 1  ;;  %v4601_v44 = vrot.slane %v4599_v14, 1  ;;  %v1943_v30 = vadd.bf16 %v1286_v39, %v13978_v0  ;;  %v4585_v58 = vshrl.u32 %v13977_v36, 16 }
 0x253   : > { %v4570_v32 = vrot.slane %v4568_v3, 1  ;;  %v2057_v26 = vsel %vm10480_vm9, 0, %v1946_v63  ;;  %v4589_v31 = vrot.slane %v4587_v37, 1  ;;  %v1370_v28 = vshrl.u32 %v13982_v47, 16  ;;  %v13984_v37 = vld [vmem:[#allocation108_spill] sm:$0xff] }
 0x254   : > { %v10713_v45 = vsel %vm3859_vm7, %v4578_v27, %v4582_v8  ;;  %v7465_v4 = vcombine.low %v2057_v26, %v2057_v26  ;;  %v2054_v46 = vsel %vm10480_vm9, 0, %v1943_v30  ;;  %v4602_v63 = vor.u32 %v4601_v44, %v4597_v43  ;;  %v13983_v27 = vld [vmem:[#allocation126_spill] sm:$0xff]  ;;  %v10727_v26 = vpop.permute.xlu0 %4260  ;;  %v10733_v44 = vpop.permute.xlu1 %4258 }
 0x255   : > { %13980 = vst [vmem:[#allocation168_spill] sm:$0xff] %v10713_v45  ;;  %4816 = vrot.lane.b32.xlu0 %v10713_v45, %s7841_s29  ;;  %v10720_v0 = vsel %vm3859_vm7, %v4566_v59, %v4570_v32  ;;  %v7464_v3 = vcombine.low %v2054_v46, %v2054_v46  ;;  %v4623_v39 = vshll.u32 %v13983_v27, 16  ;;  %v1342_v8 = vshrl.u32 %v13984_v37, 16  ;;  %13985 = vst [vmem:[#allocation184_spill] sm:$0xff] %v10727_v26  ;;  %v13986_v45 = vld [vmem:[#allocation44_spill] sm:$0xff]  ;;  %v13987_v59 = vld [vmem:[#allocation118_spill] sm:$0xff] }
 0x256   : > { %13981 = vst [vmem:[#allocation181_spill] sm:$0xff] %v10720_v0  ;;  %4814 = vrot.lane.b32.xlu1 %v10720_v0, %s7841_s29  ;;  %v4604_v14 = vshll.u32 %v7465_v4, 16  ;;  %v4590_v30 = vor.u32 %v4589_v31, %v4585_v58  ;;  %v1952_v22 = vadd.bf16 %v1370_v28, %v13986_v45  ;;  %v4611_v32 = vshll.u32 %v13987_v59, 16  ;;  %13989 = vst [vmem:[#allocation176_spill] sm:$0xff] %v10733_v44  ;;  %v13992_v28 = vld [vmem:[#allocation132_spill] sm:$0xff] }
 0x257   : > { %v4592_v2 = vshll.u32 %v7464_v3, 16  ;;  %v4621_v47 = vshrl.u32 %v13983_v27, 16  ;;  %v4625_v62 = vrot.slane %v4623_v39, 1  ;;  %v1949_v0 = vadd.bf16 %v1342_v8, %v13988_v60 }
 0x258   : > { %v4606_v46 = vrot.slane %v4604_v14, 1  ;;  %v2063_v4 = vsel %vm10480_vm9, 0, %v1952_v22  ;;  %v4609_v37 = vshrl.u32 %v13987_v59, 16  ;;  %v4613_v58 = vrot.slane %v4611_v32, 1  ;;  %v13994_v32 = vld [vmem:[#allocation124_spill] sm:$0xff] }
 0x259   : > { %v4594_v43 = vrot.slane %v4592_v2, 1  ;;  %v7467_v45 = vcombine.low %v2063_v4, %v2063_v4  ;;  %v2060_v3 = vsel %vm10480_vm9, 0, %v1949_v0  ;;  %v1426_v14 = vshrl.u32 %v13992_v28, 16  ;;  %v10753_v4 = vpop.permute.xlu0 %4264 }
 0x25a   : > { %v10739_v31 = vsel %vm3859_vm7, %v4602_v63, %v4606_v46  ;;  %v7466_v2 = vcombine.low %v2060_v3, %v2060_v3  ;;  %v4626_v22 = vor.u32 %v4625_v62, %v4621_v47  ;;  %v13993_v63 = vld [vmem:[#allocation142_spill] sm:$0xff]  ;;  %v1398_v46 = vshrl.u32 %v13994_v32, 16  ;;  %13995 = vst [vmem:[#allocation189_spill] sm:$0xff] %v10753_v4  ;;  %v10759_v62 = vpop.permute.xlu1 %4262 }
 0x25b   : > { %13990 = vst [vmem:[#allocation169_spill] sm:$0xff] %v10739_v31  ;;  %4820 = vrot.lane.b32.xlu0 %v10739_v31, %s7841_s29  ;;  %v10746_v60 = vsel %vm3859_vm7, %v4590_v30, %v4594_v43  ;;  %v4628_v39 = vshll.u32 %v7467_v45, 16  ;;  %v4647_v8 = vshll.u32 %v13993_v63, 16  ;;  %v4614_v0 = vor.u32 %v4613_v58, %v4609_v37  ;;  %v13996_v31 = vld [vmem:[#allocation43_spill] sm:$0xff]  ;;  %v13997_v30 = vld [vmem:[#allocation133_spill] sm:$0xff]  ;;  %13999 = vst [vmem:[#allocation170_spill] sm:$0xff] %v10759_v62 }
 0x25c   : > { %13991 = vst [vmem:[#allocation190_spill] sm:$0xff] %v10746_v60  ;;  %4818 = vrot.lane.b32.xlu1 %v10746_v60, %s7841_s29  ;;  %v4616_v26 = vshll.u32 %v7466_v2, 16  ;;  %v1958_v44 = vadd.bf16 %v1426_v14, %v13996_v31  ;;  %v4635_v43 = vshll.u32 %v13997_v30, 16  ;;  %v4645_v28 = vshrl.u32 %v13993_v63, 16 }
 0x25d   : > { %v4630_v3 = vrot.slane %v4628_v39, 1  ;;  %v4649_v35 = vrot.slane %v4647_v8, 1  ;;  %v1955_v60 = vadd.bf16 %v1398_v46, %v13998_v51  ;;  %v4633_v32 = vshrl.u32 %v13997_v30, 16 }
 0x25e   : > { %v4618_v47 = vrot.slane %v4616_v26, 1  ;;  %v2069_v45 = vsel %vm10480_vm9, 0, %v1958_v44  ;;  %v4637_v37 = vrot.slane %v4635_v43, 1  ;;  %v1482_v14 = vshrl.u32 %v13815_v55, 16  ;;  %v10779_v43 = vpop.permute.xlu0 %4268 }
 0x25f   : > { %v10765_v58 = vsel %vm3859_vm7, %v4626_v22, %v4630_v3  ;;  %v7469_v31 = vcombine.low %v2069_v45, %v2069_v45  ;;  %v2066_v2 = vsel %vm10480_vm9, 0, %v1955_v60  ;;  %v4650_v44 = vor.u32 %v4649_v35, %v4645_v28  ;;  %v14002_v22 = vld [vmem:[#allocation157_spill] sm:$0xff]  ;;  %14003 = vst [vmem:[#allocation178_spill] sm:$0xff] %v10779_v43  ;;  %v14004_v45 = vld [vmem:[#allocation79_spill] sm:$0xff]  ;;  %v10785_v35 = vpop.permute.xlu1 %4266 }
 0x260   : > { %14000 = vst [vmem:[#allocation197_spill] sm:$0xff] %v10765_v58  ;;  %4824 = vrot.lane.b32.xlu0 %v10765_v58, %s7841_s29  ;;  %v10772_v51 = vsel %vm3859_vm7, %v4614_v0, %v4618_v47  ;;  %v7468_v26 = vcombine.low %v2066_v2, %v2066_v2  ;;  %v4671_v8 = vshll.u32 %v14002_v22, 16  ;;  %v1454_v46 = vshrl.u32 %v13803_v21, 16  ;;  %v14005_v0 = vld [vmem:[#allocation150_spill] sm:$0xff]  ;;  %v14006_v58 = vld [vmem:[#allocation71_spill] sm:$0xff]  ;;  %14007 = vst [vmem:[#allocation179_spill] sm:$0xff] %v10785_v35 }
 0x261   : > { %14001 = vst [vmem:[#allocation177_spill] sm:$0xff] %v10772_v51  ;;  %4822 = vrot.lane.b32.xlu1 %v10772_v51, %s7841_s29  ;;  %v4652_v39 = vshll.u32 %v7469_v31, 16  ;;  %v4638_v60 = vor.u32 %v4637_v37, %v4633_v32  ;;  %v1964_v4 = vadd.bf16 %v1482_v14, %v14004_v45  ;;  %v4659_v47 = vshll.u32 %v14005_v0, 16  ;;  %v14014_v35 = vld [vmem:[#allocation87_spill] sm:$0xff] }
 0x262   : > { %v4640_v3 = vshll.u32 %v7468_v26, 16  ;;  %v4669_v55 = vshrl.u32 %v14002_v22, 16  ;;  %v4673_v62 = vrot.slane %v4671_v8, 1  ;;  %v1961_v51 = vadd.bf16 %v1454_v46, %v14006_v58  ;;  %v14010_v8 = vld [vmem:[#allocation164_spill] sm:$0xff] }
 0x263   : > { %v4654_v2 = vrot.slane %v4652_v39, 1  ;;  %v2075_v21 = vsel %vm10480_vm9, 0, %v1964_v4  ;;  %v4657_v31 = vshrl.u32 %v14005_v0, 16  ;;  %v4661_v32 = vrot.slane %v4659_v47, 1  ;;  %v14012_v47 = vld [vmem:[#allocation156_spill] sm:$0xff] }
 0x264   : > { %v4642_v28 = vrot.slane %v4640_v3, 1  ;;  %v7471_v26 = vcombine.low %v2075_v21, %v2075_v21  ;;  %v2072_v14 = vsel %vm10480_vm9, 0, %v1961_v51  ;;  %v1538_v46 = vshrl.u32 %v14010_v8, 16  ;;  %v10805_v21 = vpop.permute.xlu0 %4272 }
 0x265   : > { %v10791_v37 = vsel %vm3859_vm7, %v4650_v44, %v4654_v2  ;;  %v7470_v39 = vcombine.low %v2072_v14, %v2072_v14  ;;  %v4674_v4 = vor.u32 %v4673_v62, %v4669_v55  ;;  %v14011_v44 = vld [vmem:[#allocation173_spill] sm:$0xff]  ;;  %v1510_v2 = vshrl.u32 %v14012_v47, 16  ;;  %14013 = vst [vmem:[#allocation198_spill] sm:$0xff] %v10805_v21  ;;  %v10811_v62 = vpop.permute.xlu1 %4270  ;;  %v14023_v21 = vld [vmem:[#allocation180_spill] sm:$0xff] }
 0x266   : > { %14008 = vst [vmem:[#allocation183_spill] sm:$0xff] %v10791_v37  ;;  %4828 = vrot.lane.b32.xlu0 %v10791_v37, %s7841_s29  ;;  %v10798_v58 = vsel %vm3859_vm7, %v4638_v60, %v4642_v28  ;;  %v4676_v3 = vshll.u32 %v7471_v26, 16  ;;  %v4695_v45 = vshll.u32 %v14011_v44, 16  ;;  %v4662_v51 = vor.u32 %v4661_v32, %v4657_v31  ;;  %v14015_v60 = vld [vmem:[#allocation165_spill] sm:$0xff]  ;;  %14017 = vst [vmem:[#allocation185_spill] sm:$0xff] %v10811_v62 }
 0x267   : > { %14009 = vst [vmem:[#allocation193_spill] sm:$0xff] %v10798_v58  ;;  %4826 = vrot.lane.b32.xlu1 %v10798_v58, %s7841_s29  ;;  %v4664_v43 = vshll.u32 %v7470_v39, 16  ;;  %v1970_v37 = vadd.bf16 %v1538_v46, %v14014_v35  ;;  %v4683_v28 = vshll.u32 %v14015_v60, 16  ;;  %v4693_v8 = vshrl.u32 %v14011_v44, 16 }
 0x268   : > { %v4678_v14 = vrot.slane %v4676_v3, 1  ;;  %v4697_v5 = vrot.slane %v4695_v45, 1  ;;  %v1967_v58 = vadd.bf16 %v1510_v2, %v14016_v20  ;;  %v4681_v47 = vshrl.u32 %v14015_v60, 16  ;;  %v10830_v2 = vpop.permute.xlu0 %4276 }
 0x269   : > { %v4666_v55 = vrot.slane %v4664_v43, 1  ;;  %v2081_v26 = vsel %vm10480_vm9, 0, %v1970_v37  ;;  %v4685_v31 = vrot.slane %v4683_v28, 1  ;;  %v1594_v3 = vshrl.u32 %v13867_v49, 16  ;;  %14021 = vst [vmem:[#allocation208_spill] sm:$0xff] %v10830_v2  ;;  %v14026_v49 = vld [vmem:[#allocation96_spill] sm:$0xff] }
 0x26a   : > { %v10817_v32 = vsel %vm3859_vm7, %v4674_v4, %v4678_v14  ;;  %v7473_v35 = vcombine.low %v2081_v26, %v2081_v26  ;;  %v2078_v39 = vsel %vm10480_vm9, 0, %v1967_v58  ;;  %v4698_v37 = vor.u32 %v4697_v5, %v4693_v8  ;;  %v14020_v4 = vld [vmem:[#allocation188_spill] sm:$0xff]  ;;  %v14022_v14 = vld [vmem:[#allocation171_spill] sm:$0xff]  ;;  %v10836_v5 = vpop.permute.xlu1 %4274 }
 0x26b   : > { %14018 = vst [vmem:[#allocation187_spill] sm:$0xff] %v10817_v32  ;;  %4832 = vrot.lane.b32.xlu0 %v10817_v32, %s7841_s29  ;;  %v10824_v20 = vsel %vm3859_vm7, %v4662_v51, %v4666_v55  ;;  %v7472_v43 = vcombine.low %v2078_v39, %v2078_v39  ;;  %v4719_v45 = vshll.u32 %v14020_v4, 16  ;;  %v4686_v28 = vor.u32 %v4685_v31, %v4681_v47  ;;  %v14024_v55 = vld [vmem:[#allocation82_spill] sm:$0xff] }
 0x26c   : > { %14019 = vst [vmem:[#allocation191_spill] sm:$0xff] %v10824_v20  ;;  %4830 = vrot.lane.b32.xlu1 %v10824_v20, %s7841_s29  ;;  %v4700_v46 = vshll.u32 %v7473_v35, 16  ;;  %v1566_v26 = vshrl.u32 %v14022_v14, 16  ;;  %v4707_v62 = vshll.u32 %v14023_v21, 16  ;;  %v1976_v39 = vadd.bf16 %v1594_v3, %v14024_v55  ;;  %14025 = vst [vmem:[#allocation207_spill] sm:$0xff] %v10836_v5 }
 0x26d   : > { %v4688_v58 = vshll.u32 %v7472_v43, 16  ;;  %v4717_v32 = vshrl.u32 %v14020_v4, 16  ;;  %v4721_v20 = vrot.slane %v4719_v45, 1  ;;  %v4705_v44 = vshrl.u32 %v14023_v21, 16 }
 0x26e   : > { %v4702_v51 = vrot.slane %v4700_v46, 1  ;;  %v1973_v35 = vadd.bf16 %v1566_v26, %v14026_v49  ;;  %v2087_v31 = vsel %vm10480_vm9, 0, %v1976_v39  ;;  %v4709_v43 = vrot.slane %v4707_v62, 1  ;;  %v14029_v62 = vld [vmem:[#allocation204_spill] sm:$0xff] }
 0x26f   : > { %v4690_v8 = vrot.slane %v4688_v58, 1  ;;  %v1650_v46 = vshrl.u32 %v13887_v40, 16  ;;  %v7475_v45 = vcombine.low %v2087_v31, %v2087_v31  ;;  %v10857_v40 = vpop.permute.xlu0 %4280  ;;  %v4741_v39 = vshrl.u32 %v14029_v62, 16 }
 0x270   : > { %v10841_v47 = vsel %vm3859_vm7, %v4698_v37, %v4702_v51  ;;  %v2084_v58 = vsel %vm10480_vm9, 0, %v1973_v35  ;;  %v4722_v37 = vor.u32 %v4721_v20, %v4717_v32  ;;  %v4743_v51 = vshll.u32 %v14029_v62, 16  ;;  %14030 = vst [vmem:[#allocation195_spill] sm:$0xff] %v10857_v40  ;;  %v10864_v20 = vpop.permute.xlu1 %4278 }
 0x271   : > { %14027 = vst [vmem:[#allocation186_spill] sm:$0xff] %v10841_v47  ;;  %4836 = vrot.lane.b32.xlu0 %v10841_v47, %s7841_s29  ;;  %v10849_v3 = vsel %vm3859_vm7, %v4686_v28, %v4690_v8  ;;  %v7474_v14 = vcombine.low %v2084_v58, %v2084_v58  ;;  %v1982_v26 = vadd.bf16 %v1650_v46, %v10339_v56  ;;  %v4724_v55 = vshll.u32 %v7475_v45, 16  ;;  %v14031_v8 = vld [vmem:[#allocation196_spill] sm:$0xff]  ;;  %v14033_v58 = vld [vmem:[#allocation113_spill] sm:$0xff] }
 0x272   : > { %14028 = vst [vmem:[#allocation192_spill] sm:$0xff] %v10849_v3  ;;  %4834 = vrot.lane.b32.xlu1 %v10849_v3, %s7841_s29  ;;  %v1622_v28 = vshrl.u32 %v13876_v12, 16  ;;  %v4731_v49 = vshll.u32 %v14031_v8, 16  ;;  %v4710_v31 = vor.u32 %v4709_v43, %v4705_v44  ;;  %v4745_v32 = vrot.slane %v4743_v51, 1  ;;  %14032 = vst [vmem:[#allocation194_spill] sm:$0xff] %v10864_v20 }
 0x273   : > { %v4712_v35 = vshll.u32 %v7474_v14, 16  ;;  %v2093_v5 = vsel %vm10480_vm9, 0, %v1982_v26  ;;  %v4726_v56 = vrot.slane %v4724_v55, 1  ;;  %v4729_v45 = vshrl.u32 %v14031_v8, 16  ;;  %v10880_v55 = vpop.permute.xlu0 %4284 }
 0x274   : > { %v7477_v46 = vcombine.low %v2093_v5, %v2093_v5  ;;  %v1979_v2 = vadd.bf16 %v1622_v28, %v14033_v58  ;;  %v4733_v47 = vrot.slane %v4731_v49, 1  ;;  %v1706_v12 = vshrl.u32 %v13901_v29, 16  ;;  %14036 = vst [vmem:[#allocation209_spill] sm:$0xff] %v10880_v55 }
 0x275   : > { %v4714_v40 = vrot.slane %v4712_v35, 1  ;;  %v10870_v3 = vsel %vm3859_vm7, %v4722_v37, %v4726_v56  ;;  %v4746_v44 = vor.u32 %v4745_v32, %v4741_v39  ;;  %v14037_v37 = vld [vmem:[#allocation216_spill] sm:$0xff] }
 0x276   : > { %14034 = vst [vmem:[#allocation199_spill] sm:$0xff] %v10870_v3  ;;  %v4748_v43 = vshll.u32 %v7477_v46, 16  ;;  %v2090_v14 = vsel %vm10480_vm9, 0, %v1979_v2  ;;  %4840 = vrot.lane.b32.xlu0 %v10870_v3, %s7841_s29  ;;  %v1988_v51 = vadd.bf16 %v1706_v12, %v10410_v50  ;;  %v4765_v39 = vshrl.u32 %v14037_v37, 16  ;;  %v10890_v50 = vpop.permute.xlu1 %4282 }
 0x277   : > { %v10877_v5 = vsel %vm3859_vm7, %v4710_v31, %v4714_v40  ;;  %v7476_v26 = vcombine.low %v2090_v14, %v2090_v14  ;;  %v4767_v28 = vshll.u32 %v14037_v37, 16  ;;  %v1678_v2 = vshrl.u32 %v13895_v15, 16  ;;  %v14038_v31 = vld [vmem:[#allocation213_spill] sm:$0xff]  ;;  %14039 = vst [vmem:[#allocation202_spill] sm:$0xff] %v10890_v50 }
 0x278   : > { %14035 = vst [vmem:[#allocation200_spill] sm:$0xff] %v10877_v5  ;;  %4838 = vrot.lane.b32.xlu1 %v10877_v5, %s7841_s29  ;;  %v4750_v29 = vrot.slane %v4748_v43, 1  ;;  %v4734_v49 = vor.u32 %v4733_v47, %v4729_v45  ;;  %v2099_v40 = vsel %vm10480_vm9, 0, %v1988_v51  ;;  %v4755_v32 = vshll.u32 %v14038_v31, 16 }
 0x279   : > { %v4736_v35 = vshll.u32 %v7476_v26, 16  ;;  %v7479_v46 = vcombine.low %v2099_v40, %v2099_v40  ;;  %v4769_v58 = vrot.slane %v4767_v28, 1  ;;  %v1985_v12 = vadd.bf16 %v1678_v2, %v10388_v52  ;;  %v10906_v28 = vpop.permute.xlu0 %4288 }
 0x27a   : > { %v10893_v56 = vsel %vm3859_vm7, %v4746_v44, %v4750_v29  ;;  %v4753_v47 = vshrl.u32 %v14038_v31, 16  ;;  %v4757_v45 = vrot.slane %v4755_v32, 1  ;;  %v1734_v43 = vshrl.u32 %v13912_v53, 16  ;;  %14042 = vst [vmem:[#allocation212_spill] sm:$0xff] %v10906_v28 }
 0x27b   : > { %14040 = vst [vmem:[#allocation201_spill] sm:$0xff] %v10893_v56  ;;  %4844 = vrot.lane.b32.xlu0 %v10893_v56, %s7841_s29  ;;  %v4738_v15 = vrot.slane %v4736_v35, 1  ;;  %v4770_v14 = vor.u32 %v4769_v58, %v4765_v39  ;;  %v4772_v26 = vshll.u32 %v7479_v46, 16  ;;  %v2096_v51 = vsel %vm10480_vm9, 0, %v1985_v12  ;;  %v14043_v35 = vld [vmem:[#allocation217_spill] sm:$0xff]  ;;  %v10914_v46 = vpop.permute.xlu1 %4286 }
 0x27c   : > { %v7478_v29 = vcombine.low %v2096_v51, %v2096_v51  ;;  %v1991_v52 = vadd.bf16 %v1734_v43, %v10460_v7  ;;  %v4777_v53 = vshrl.u32 %v14043_v35, 16  ;;  %v4779_v39 = vshll.u32 %v14043_v35, 16  ;;  %14044 = vst [vmem:[#allocation211_spill] sm:$0xff] %v10914_v46  ;;  %v307_v51 = vld [vmem:[%s7919_s26 + $0xcc] sm:$0xf] }
 0x27d   : > { %v10903_v44 = vsel %vm3859_vm7, %v4734_v49, %v4738_v15  ;;  %v4774_v2 = vrot.slane %v4772_v26, 1  ;;  %v4758_v40 = vor.u32 %v4757_v45, %v4753_v47  ;;  %v10924_v45 = vpop.permute.xlu0 %4292  ;;  %v14056_v28 = vmul.bf16 1061175104, %v14055_v34  ;;  %v14065_v46 = vld [vmem:[#allocation20_spill] sm:$0xff] }
 0x27e   : > { %14041 = vst [vmem:[#allocation210_spill] sm:$0xff] %v10903_v44  ;;  %4842 = vrot.lane.b32.xlu1 %v10903_v44, %s7841_s29  ;;  %v4760_v32 = vshll.u32 %v7478_v29, 16  ;;  %v2102_v49 = vsel %vm10480_vm9, 0, %v1991_v52  ;;  %v4781_v12 = vrot.slane %v4779_v39, 1  ;;  %14047 = vst [vmem:[#allocation5_spill] sm:$0xff] %v10924_v45 }
 0x27f   : > { %v10917_v7 = vsel %vm3859_vm7, %v4770_v14, %v4774_v2  ;;  %v7480_v58 = vcombine.low %v2102_v49, %v2102_v49  ;;  %v308_v29 = vld [vmem:[%s7919_s26 + $0xd0] sm:$0xf]  ;;  %v309_v52 = vld [vmem:[%s7919_s26 + $0xd4] sm:$0x1]  ;;  %v14048_v2 = vld [vmem:[#allocation219_spill] sm:$0xff]  ;;  %v10933_v39 = vpop.permute.xlu1 %4290 }
 0x280   : > { %14045 = vst [vmem:[#allocation215_spill] sm:$0xff] %v10917_v7  ;;  %4848 = vrot.lane.b32.xlu0 %v10917_v7, %s7841_s29  ;;  %v4762_v15 = vrot.slane %v4760_v32, 1  ;;  %v4782_v43 = vor.u32 %v4781_v12, %v4777_v53  ;;  %14049 = vst [vmem:[#allocation6_spill] sm:$0xff] %v10933_v39  ;;  %v467_v32 = vmul.bf16 1048592000, %v308_v29  ;;  %v14057_v7 = vld [vmem:[#allocation206_spill] sm:$0xff] }
 0x281   : > { %v4784_v26 = vshll.u32 %v7480_v58, 16  ;;  %v468_v49 = vmul.bf16 1048592000, %v309_v52  ;;  %v14051_v58 = vld [vmem:[#allocation17_spill] sm:$0xff] }
 0x282   : > { %v10922_v47 = vsel %vm3859_vm7, %v4758_v40, %v4762_v15  ;;  %v466_v40 = vmul.bf16 1048592000, %v307_v51  ;;  %v14053_v15 = vld [vmem:[#allocation203_spill] sm:$0xff]  ;;  %v518_v39 = vadd.bf16 %v467_v32, %v14056_v28 }
 0x283   : > { %14046 = vst [vmem:[#allocation214_spill] sm:$0xff] %v10922_v47  ;;  %4846 = vrot.lane.b32.xlu1 %v10922_v47, %s7841_s29  ;;  %v4786_v14 = vrot.slane %v4784_v26, 1  ;;  %v14054_v26 = vmul.bf16 1061175104, %v14053_v15  ;;  %v10950_v51 = vpop.permute.xlu1 %4294  ;;  %v14062_v15 = vld [vmem:[#allocation18_spill] sm:$0xff] }
 0x284   : > { %4857 = vrot.lane.b32.xlu0 %v14048_v2, %s7842_s30  ;;  %v10942_v12 = vpop.permute.xlu0 %4296  ;;  %14059 = vst [vmem:[#allocation31_spill] sm:$0xff] %v10950_v51  ;;  %v10954_v52 = vmul.bf16 1061175104, %v518_v39 }
 0x285   : > { %v10936_v53 = vsel %vm3859_vm7, %v4782_v43, %v4786_v14  ;;  %14052 = vst [vmem:[#allocation10_spill] sm:$0xff] %v10942_v12  ;;  %v517_v45 = vadd.bf16 %v466_v40, %v14054_v26  ;;  %v14058_v43 = vmul.bf16 1061175104, %v14057_v7  ;;  %v14064_v26 = vld [vmem:[#allocation12_spill] sm:$0xff] }
 0x286   : > { %14050 = vst [vmem:[#allocation16_spill] sm:$0xff] %v10936_v53  ;;  %v1748_v7 = vshll.u32 %v10954_v52, 16  ;;  %v1752_v12 = vshrl.u32 %v10954_v52, 16 }
 0x287   : > { %4850 = vrot.lane.b32.xlu1 %v10936_v53, %s7841_s29  ;;  %v519_v14 = vadd.bf16 %v468_v49, %v14058_v43  ;;  %v10952_v29 = vmul.bf16 1061175104, %v517_v45  ;;  %v14060_v53 = vld [vmem:[#allocation220_spill] sm:$0xff]  ;;  %s12300_s29 = scalar_lea.vmem %s12840_s5, %s7592_s27 }
 0x288   : > { %4861 = vrot.lane.b32.xlu0 %v14051_v58, %s7842_s30  ;;  %v1750_v43 = vrot.slane %v1748_v7, 5  ;;  %v1754_v44 = vrot.slane %v1752_v12, 4  ;;  %v14068_v7 = vld [vmem:[#allocation19_spill] sm:$0xff]  ;;  %v732_v12 = vmul.bf16 1048592000, %v518_v39 }
 0x289   : > { %v10958_v47 = vmul.bf16 1061175104, %v519_v14  ;;  %v1739_v34 = vshrl.u32 %v10952_v29, 16  ;;  %v1742_v28 = vshll.u32 %v10952_v29, 16 }
 0x28b   : > { %4859 = vrot.lane.b32.xlu1 %v14060_v53, %s7842_s30  ;;  %14061 = vst [vmem:[#allocation23_spill] sm:$0xff] %v10958_v47  ;;  %v1741_v32 = vrot.slane %v1739_v34, 4  ;;  %v1744_v49 = vrot.slane %v1742_v28, 5  ;;  %v1758_v51 = vshll.u32 %v10958_v47, 16  ;;  %v731_v34 = vmul.bf16 1048592000, %v517_v45 }
 0x28c   : > { %4865 = vrot.lane.b32.xlu0 %v14062_v15, %s7842_s30  ;;  %v10973_v55 = vpop.permute.xlu1 %4298  ;;  %v1755_v28 = vor.u32 %v1754_v44, %v1750_v43  ;;  %v14072_v45 = vld [vmem:[#allocation28_spill] sm:$0xff] }
 0x28d   : > { %14066 = vst [vmem:[#allocation37_spill] sm:$0xff] %v10973_v55  ;;  %v1745_v56 = vor.u32 %v1744_v49, %v1741_v32  ;;  %v1760_v3 = vrot.slane %v1758_v51, 5 }
 0x28e   : > { %v1756_v20 = vrot.slane %v1755_v28, 4 }
 0x28f   : > { %4863 = vrot.lane.b32.xlu1 %v14064_v26, %s7842_s30  ;;  %v1746_v50 = vrot.slane %v1745_v56, 4  ;;  %v14071_v56 = vld [vmem:[#allocation38_spill] sm:$0xff] }
 0x290   : > { %4869 = vrot.lane.b32.xlu0 %v14065_v46, %s7842_s30  ;;  %v1761_v44 = vsel %vm7912_vm2, %v1756_v20, %v1760_v3  ;;  %v14078_v20 = vld [vmem:[#allocation41_spill] sm:$0xff] }
 0x291   : > { %v10965_v40 = vpop.permute.xlu0 %4300  ;;  %v1751_v47 = vsel %vm7912_vm2, %v1746_v50, %v1750_v43  ;;  %v1993_v51 = vadd.bf16 %v1761_v44, %v732_v12  ;;  %v14076_v43 = vld [vmem:[#allocation47_spill] sm:$0xff] }
 0x292   : > { %14063 = vst [vmem:[#allocation45_spill] sm:$0xff] %v10965_v40  ;;  %v14067_v40 = vld [vmem:[#allocation25_spill] sm:$0xff]  ;;  %v1992_v2 = vadd.bf16 %v1751_v47, %v731_v34  ;;  %v14074_v47 = vld [vmem:[#allocation40_spill] sm:$0xff] }
 0x293   : > { %4867 = vrot.lane.b32.xlu1 %v14067_v40, %s7842_s30  ;;  %v2104_v50 = vsel %vm7938_vm4, 0, %v1993_v51  ;;  %v14082_v51 = vld [vmem:[#allocation53_spill] sm:$0xff] }
 0x294   : > { %4873 = vrot.lane.b32.xlu0 %v14068_v7, %s7842_s30  ;;  %v2103_v32 = vsel %vm7938_vm4, 0, %v1992_v2  ;;  %v14079_v2 = vld [vmem:[#allocation55_spill] sm:$0xff] }
 0x295   : > { %v10999_v39 = vcombine.low %v2103_v32, %v2104_v50  ;;  %v14083_v32 = vld [vmem:[#allocation49_spill] sm:$0xff] }
 0x297   : > { %v10983_v55 = vpop.permute.xlu1 %4302  ;;  %4871 = vrot.lane.b32.xlu1 %v14071_v56, %s7842_s30  ;;  %14075 = vst [vmem:[#allocation13_spill] sm:$0xff] %v10999_v39 }
 0x298   : > { %14070 = vst [vmem:[#allocation27_spill] sm:$0xff] %v10983_v55  ;;  %4877 = vrot.lane.b32.xlu0 %v14072_v45, %s7842_s30  ;;  %v14087_v55 = vld [vmem:[#allocation51_spill] sm:$0xff]  ;;  %v14088_v45 = vld [vmem:[#allocation50_spill] sm:$0xff] }
 0x29b   : > { %4875 = vrot.lane.b32.xlu1 %v14074_v47, %s7842_s30 }
 0x29c   : > { %v10979_v5 = vpop.permute.xlu0 %4304  ;;  %4881 = vrot.lane.b32.xlu0 %v14076_v43, %s7842_s30  ;;  %v3012_v43 = vshll.u32 %v731_v34, 16 }
 0x29d   : > { %14069 = vst [vmem:[#allocation61_spill] sm:$0xff] %v10979_v5 }
 0x29f   : > { %4879 = vrot.lane.b32.xlu1 %v14078_v20, %s7842_s30  ;;  %v3018_v20 = vshll.u32 %v732_v12, 16 }
 0x2a0   : > { %v10993_v49 = vpop.permute.xlu0 %4788  ;;  %4885 = vrot.lane.b32.xlu0 %v14079_v2, %s7842_s30  ;;  %v3009_v2 = vshrl.u32 %v731_v34, 16  ;;  %v14093_v34 = vld [vmem:[#allocation64_spill] sm:$0xff] }
 0x2a1   : > { %14073 = vst [vmem:[#allocation54_spill] sm:$0xff] %v10993_v49 }
 0x2a3   : > { %4883 = vrot.lane.b32.xlu1 %v14082_v51, %s7842_s30  ;;  %v14089_v51 = vld [vmem:[#allocation59_spill] sm:$0xff] }
 0x2a4   : > { %v11003_v3 = vpop.permute.xlu1 %4306  ;;  %4889 = vrot.lane.b32.xlu0 %v14083_v32, %s7842_s30 }
 0x2a5   : > { %14077 = vst [vmem:[#allocation69_spill] sm:$0xff] %v11003_v3  ;;  %v11009_v28 = vpop.permute.xlu0 %4792  ;;  %v14085_v3 = vld [vmem:[#allocation35_spill] sm:$0xff] }
 0x2a6   : > { %14080 = vst [vmem:[#allocation60_spill] sm:$0xff] %v11009_v28  ;;  %v3022_v28 = vshrl.u32 %v732_v12, 16  ;;  %v14094_v12 = vld [vmem:[#allocation75_spill] sm:$0xff] }
 0x2a7   : > { %4887 = vrot.lane.b32.xlu1 %v14085_v3, %s7842_s30  ;;  %v3014_v3 = vrot.slane %v3012_v43, 5  ;;  %v14098_v43 = vld [vmem:[#allocation97_spill] sm:$0xff] }
 0x2a8   : > { %v11011_v44 = vpop.permute.xlu1 %4790  ;;  %4893 = vrot.lane.b32.xlu0 %v14087_v55, %s7842_s30  ;;  %v3024_v49 = vrot.slane %v3022_v28, 4 }
 0x2a9   : > { %14081 = vst [vmem:[#allocation34_spill] sm:$0xff] %v11011_v44  ;;  %v3020_v44 = vrot.slane %v3018_v20, 5 }
 0x2ab   : > { %v11017_v50 = vpop.permute.xlu0 %4796  ;;  %4891 = vrot.lane.b32.xlu1 %v14088_v45, %s7842_s30  ;;  %v3025_v56 = vor.u32 %v3024_v49, %v3020_v44 }
 0x2ac   : > { %14084 = vst [vmem:[#allocation70_spill] sm:$0xff] %v11017_v50  ;;  %4897 = vrot.lane.b32.xlu0 %v14089_v51, %s7842_s30  ;;  %v11031_v50 = vmul.bf16 1048592000, %v519_v14  ;;  %v14096_v14 = vld [vmem:[#allocation68_spill] sm:$0xff] }
 0x2ad   : > { %v11021_v5 = vpop.permute.xlu1 %4794 }
 0x2ae   : > { %14086 = vst [vmem:[#allocation22_spill] sm:$0xff] %v11021_v5  ;;  %14091 = vst [vmem:[#allocation76_spill] sm:$0xff] %v11031_v50  ;;  %v3011_v5 = vrot.slane %v3009_v2, 4  ;;  %v3028_v46 = vshll.u32 %v11031_v50, 16  ;;  %v3026_v2 = vrot.slane %v3025_v56, 4 }
 0x2af   : > { %4895 = vrot.lane.b32.xlu1 %v14093_v34, %s7842_s30 }
 0x2b0   : > { %4901 = vrot.lane.b32.xlu0 %v14094_v12, %s7842_s30  ;;  %v3015_v7 = vor.u32 %v3014_v3, %v3011_v5  ;;  %v3030_v28 = vrot.slane %v3028_v46, 5  ;;  %v14100_v5 = vld [vmem:[#allocation120_spill] sm:$0xff] }
 0x2b1   : > { %v11029_v47 = vpop.permute.xlu0 %4800 }
 0x2b2   : > { %14090 = vst [vmem:[#allocation84_spill] sm:$0xff] %v11029_v47  ;;  %v3016_v20 = vrot.slane %v3015_v7, 4  ;;  %v14103_v7 = vld [vmem:[#allocation92_spill] sm:$0xff] }
 0x2b3   : > { %v11033_v32 = vpop.permute.xlu1 %4798  ;;  %4899 = vrot.lane.b32.xlu1 %v14096_v14, %s7842_s30 }
 0x2b4   : > { %14092 = vst [vmem:[#allocation32_spill] sm:$0xff] %v11033_v32  ;;  %4905 = vrot.lane.b32.xlu0 %v14098_v43, %s7842_s30  ;;  %v14099_v32 = vld [vmem:[#allocation103_spill] sm:$0xff]  ;;  %v3021_v3 = vsel %vm7912_vm2, %v3016_v20, %v3020_v44 }
 0x2b5   : > { %v3262_v46 = vadd.bf16 %v3021_v3, %v10952_v29 }
 0x2b7   : > { %v11040_v40 = vpop.permute.xlu0 %4804  ;;  %4903 = vrot.lane.b32.xlu1 %v14099_v32, %s7842_s30  ;;  %v3373_v9 = vsel %vm9507_vm6, 0, %v3262_v46  ;;  %vm6183_vm6 = vcmask 392192  }
 0x2b8   : > { %14095 = vst [vmem:[#allocation21_spill] sm:$0xff] %v11040_v40  ;;  %v11044_v47 = vpop.permute.xlu1 %4802  ;;  %4909 = vrot.lane.b32.xlu0 %v14100_v5, %s7842_s30  ;;  %v3031_v40 = vsel %vm7912_vm2, %v3026_v2, %v3030_v28  ;;  %vm5964_vm2 = vcmask 293888  }
 0x2b9   : > { %14097 = vst [vmem:[#allocation100_spill] sm:$0xff] %v11044_v47  ;;  %v3263_v56 = vadd.bf16 %v3031_v40, %v10954_v52 }
 0x2bb   : > { %4907 = vrot.lane.b32.xlu1 %v14103_v7, %s7842_s30  ;;  %v3374_v20 = vsel %vm7938_vm4, 0, %v3263_v56 }
 0x2bc   : > { %v11052_v49 = vpop.permute.xlu0 %4808  ;;  %4913 = vrot.lane.b32.xlu0 %v10440_v11, %s7842_s30  ;;  %v11080_v29 = vcombine.low %v3373_v9, %v3374_v20  ;;  %v14157_v11 = vld [vmem:[#allocation42_spill] sm:$0xff] }
 0x2bd   : > { %14101 = vst [vmem:[#allocation93_spill] sm:$0xff] %v11052_v49  ;;  %v11058_v50 = vpop.permute.xlu1 %4806  ;;  %v14105_v49 = vld [vmem:[#allocation112_spill] sm:$0xff] }
 0x2be   : > { %14102 = vst [vmem:[#allocation39_spill] sm:$0xff] %v11058_v50  ;;  %14107 = vst [vmem:[#allocation126_spill] sm:$0xff] %v11080_v29  ;;  %v14129_v50 = vld [vmem:[#allocation11_spill] sm:$0xff] }
 0x2bf   : > { %4911 = vrot.lane.b32.xlu1 %v14105_v49, %s7842_s30 }
 0x2c0   : > { %4917 = vrot.lane.b32.xlu0 %v10511_v54, %s7842_s30 }
 0x2c2   : > { %v11066_v47 = vpop.permute.xlu0 %4812 }
 0x2c3   : > { %14104 = vst [vmem:[#allocation29_spill] sm:$0xff] %v11066_v47  ;;  %v11070_v44 = vpop.permute.xlu1 %4810  ;;  %4915 = vrot.lane.b32.xlu1 %v10470_v24, %s7842_s30 }
 0x2c4   : > { %14106 = vst [vmem:[#allocation117_spill] sm:$0xff] %v11070_v44  ;;  %4926 = vrot.lane.b32.xlu0 %v13923_v19, %s7843_s6 }
 0x2c7   : > { %v11084_v52 = vpop.permute.xlu0 %4816  ;;  %4919 = vrot.lane.b32.xlu1 %v11080_v29, %s7842_s30 }
 0x2c8   : > { %14108 = vst [vmem:[#allocation108_spill] sm:$0xff] %v11084_v52  ;;  %v11086_v40 = vpop.permute.xlu1 %4814  ;;  %4930 = vrot.lane.b32.xlu0 %v13928_v48, %s7843_s6 }
 0x2c9   : > { %14109 = vst [vmem:[#allocation44_spill] sm:$0xff] %v11086_v40 }
 0x2cb   : > { %4928 = vrot.lane.b32.xlu1 %v13920_v10, %s7843_s6 }
 0x2cc   : > { %4934 = vrot.lane.b32.xlu0 %v13934_v61, %s7843_s6 }
 0x2cd   : > { %v11092_v25 = vpop.permute.xlu0 %4820 }
 0x2ce   : > { %v11096_v2 = vpop.permute.xlu1 %4818 }
 0x2cf   : > { %14110 = vst [vmem:[#allocation36_spill] sm:$0xff] %v11096_v2  ;;  %4932 = vrot.lane.b32.xlu1 %v13925_v13, %s7843_s6 }
 0x2d0   : > { %4938 = vrot.lane.b32.xlu0 %v13940_v38, %s7843_s6 }
 0x2d2   : > { %v11104_v19 = vpop.permute.xlu0 %4824 }
 0x2d3   : > { %14111 = vst [vmem:[#allocation132_spill] sm:$0xff] %v11104_v19  ;;  %v11106_v28 = vpop.permute.xlu1 %4822  ;;  %4936 = vrot.lane.b32.xlu1 %v13932_v1, %s7843_s6 }
 0x2d4   : > { %4942 = vrot.lane.b32.xlu0 %v13947_v33, %s7843_s6 }
 0x2d7   : > { %4940 = vrot.lane.b32.xlu1 %v13938_v23, %s7843_s6 }
 0x2d8   : > { %v11112_v3 = vpop.permute.xlu0 %4828  ;;  %4946 = vrot.lane.b32.xlu0 %v13957_v57, %s7843_s6 }
 0x2d9   : > { %14112 = vst [vmem:[#allocation142_spill] sm:$0xff] %v11112_v3  ;;  %v11116_v46 = vpop.permute.xlu1 %4826  ;;  %v14151_v3 = vld [vmem:[#allocation56_spill] sm:$0xff] }
 0x2da   : > { %14113 = vst [vmem:[#allocation124_spill] sm:$0xff] %v11116_v46 }
 0x2db   : > { %4944 = vrot.lane.b32.xlu1 %v13944_v16, %s7843_s6 }
 0x2dc   : > { %4950 = vrot.lane.b32.xlu0 %v13967_v18, %s7843_s6  ;;  %v14154_v18 = vld [vmem:[#allocation63_spill] sm:$0xff] }
 0x2dd   : > { %v11124_v56 = vpop.permute.xlu0 %4832 }
 0x2de   : > { %14114 = vst [vmem:[#allocation43_spill] sm:$0xff] %v11124_v56  ;;  %v11126_v9 = vpop.permute.xlu1 %4830 }
 0x2df   : > { %14115 = vst [vmem:[#allocation133_spill] sm:$0xff] %v11126_v9  ;;  %4948 = vrot.lane.b32.xlu1 %v13953_v42, %s7843_s6  ;;  %v14147_v9 = vld [vmem:[#allocation48_spill] sm:$0xff]  ;;  %v14158_v42 = vld [vmem:[#allocation57_spill] sm:$0xff] }
 0x2e0   : > { %4954 = vrot.lane.b32.xlu0 %v13977_v36, %s7843_s6  ;;  %v14136_v36 = vld [vmem:[#allocation8_spill] sm:$0xff] }
 0x2e3   : > { %v11132_v20 = vpop.permute.xlu0 %4836  ;;  %4952 = vrot.lane.b32.xlu1 %v13963_v6, %s7843_s6 }
 0x2e4   : > { %14116 = vst [vmem:[#allocation62_spill] sm:$0xff] %v11132_v20  ;;  %v11136_v2 = vpop.permute.xlu1 %4834  ;;  %4958 = vrot.lane.b32.xlu0 %v13987_v59, %s7843_s6 }
 0x2e5   : > { %14117 = vst [vmem:[#allocation157_spill] sm:$0xff] %v11136_v2 }
 0x2e7   : > { %4956 = vrot.lane.b32.xlu1 %v13973_v41, %s7843_s6 }
 0x2e8   : > { %4962 = vrot.lane.b32.xlu0 %v13997_v30, %s7843_s6  ;;  %v11144_v52 = vpop.permute.xlu0 %4840 }
 0x2e9   : > { %14118 = vst [vmem:[#allocation79_spill] sm:$0xff] %v11144_v52 }
 0x2ea   : > { %v11146_v40 = vpop.permute.xlu1 %4838 }
 0x2eb   : > { %14119 = vst [vmem:[#allocation150_spill] sm:$0xff] %v11146_v40  ;;  %4960 = vrot.lane.b32.xlu1 %v13983_v27, %s7843_s6 }
 0x2ec   : > { %4966 = vrot.lane.b32.xlu0 %v14005_v0, %s7843_s6 }
 0x2ed   : > { %v11152_v47 = vpop.permute.xlu0 %4844 }
 0x2ee   : > { %14120 = vst [vmem:[#allocation71_spill] sm:$0xff] %v11152_v47  ;;  %v14124_v47 = vld [vmem:[#allocation173_spill] sm:$0xff] }
 0x2ef   : > { %4964 = vrot.lane.b32.xlu1 %v13993_v63, %s7843_s6 }
 0x2f0   : > { %v11156_v44 = vpop.permute.xlu1 %4842  ;;  %4970 = vrot.lane.b32.xlu0 %v14015_v60, %s7843_s6 }
 0x2f1   : > { %14121 = vst [vmem:[#allocation164_spill] sm:$0xff] %v11156_v44 }
 0x2f2   : > { %v11160_v59 = vpop.permute.xlu0 %4848 }
 0x2f3   : > { %14122 = vst [vmem:[#allocation156_spill] sm:$0xff] %v11160_v59  ;;  %4968 = vrot.lane.b32.xlu1 %v14002_v22, %s7843_s6 }
 0x2f4   : > { %4974 = vrot.lane.b32.xlu0 %v14023_v21, %s7843_s6 }
 0x2f5   : > { %v11166_v52 = vpop.permute.xlu1 %4846 }
 0x2f6   : > { %14123 = vst [vmem:[#allocation87_spill] sm:$0xff] %v11166_v52  ;;  %v11168_v40 = vpop.permute.xlu0 %4857 }
 0x2f7   : > { %4972 = vrot.lane.b32.xlu1 %v14124_v47, %s7843_s6 }
 0x2f8   : > { %4978 = vrot.lane.b32.xlu0 %v14031_v8, %s7843_s6 }
 0x2f9   : > { %v11174_v44 = vpop.permute.xlu1 %4850 }
 0x2fa   : > { %14125 = vst [vmem:[#allocation165_spill] sm:$0xff] %v11174_v44  ;;  %v11176_v20 = vpop.permute.xlu0 %4861 }
 0x2fb   : > { %4976 = vrot.lane.b32.xlu1 %v14020_v4, %s7843_s6  ;;  %v14183_v4 = vld [vmem:[#allocation115_spill] sm:$0xff] }
 0x2fc   : > { %4982 = vrot.lane.b32.xlu0 %v14038_v31, %s7843_s6 }
 0x2fd   : > { %v11182_v59 = vpop.permute.xlu1 %4859 }
 0x2fe   : > { %v11184_v52 = vpop.permute.xlu0 %4865 }
 0x2ff   : > { %14126 = vst [vmem:[#allocation73_spill] sm:$0xff] %v11184_v52  ;;  %4980 = vrot.lane.b32.xlu1 %v14029_v62, %s7843_s6  ;;  %v14153_v62 = vld [vmem:[#allocation33_spill] sm:$0xff] }
 0x300   : > { %4986 = vrot.lane.b32.xlu0 %v14043_v35, %s7843_s6  ;;  %v14132_v35 = vld [vmem:[#allocation9_spill] sm:$0xff] }
 0x301   : > { %v11190_v41 = vpop.permute.xlu1 %4863 }
 0x302   : > { %14127 = vst [vmem:[#allocation171_spill] sm:$0xff] %v11190_v41  ;;  %v11192_v44 = vpop.permute.xlu0 %4869 }
 0x303   : > { %14128 = vst [vmem:[#allocation180_spill] sm:$0xff] %v11192_v44  ;;  %4984 = vrot.lane.b32.xlu1 %v14037_v37, %s7843_s6  ;;  %v14135_v37 = vld [vmem:[#allocation7_spill] sm:$0xff]  ;;  %v14144_v44 = vld [vmem:[#allocation46_spill] sm:$0xff] }
 0x304   : > { %5005 = vrot.lane.b32.xlu0 %v14129_v50, %s7844_s7 }
 0x305   : > { %v11198_v29 = vpop.permute.xlu1 %4867 }
 0x306   : > { %14130 = vst [vmem:[#allocation82_spill] sm:$0xff] %v11198_v29  ;;  %v11200_v17 = vpop.permute.xlu0 %4873 }
 0x307   : > { %14131 = vst [vmem:[#allocation96_spill] sm:$0xff] %v11200_v17  ;;  %4988 = vrot.lane.b32.xlu1 %v10999_v39, %s7843_s6  ;;  %v14139_v17 = vld [vmem:[#allocation24_spill] sm:$0xff]  ;;  %v14140_v39 = vld [vmem:[#allocation14_spill] sm:$0xff] }
 0x308   : > { %5009 = vrot.lane.b32.xlu0 %v14132_v35, %s7844_s7 }
 0x309   : > { %v11206_v2 = vpop.permute.xlu1 %4871 }
 0x30a   : > { %14133 = vst [vmem:[#allocation113_spill] sm:$0xff] %v11206_v2  ;;  %v11208_v56 = vpop.permute.xlu0 %4877 }
 0x30b   : > { %14134 = vst [vmem:[#allocation17_spill] sm:$0xff] %v11208_v56  ;;  %5007 = vrot.lane.b32.xlu1 %v14135_v37, %s7844_s7  ;;  %v14143_v56 = vld [vmem:[#allocation15_spill] sm:$0xff] }
 0x30c   : > { %5013 = vrot.lane.b32.xlu0 %v14136_v36, %s7844_s7 }
 0x30d   : > { %v11214_v50 = vpop.permute.xlu1 %4875 }
 0x30e   : > { %14137 = vst [vmem:[#allocation203_spill] sm:$0xff] %v11214_v50  ;;  %v11216_v54 = vpop.permute.xlu0 %4881 }
 0x30f   : > { %14138 = vst [vmem:[#allocation205_spill] sm:$0xff] %v11216_v54  ;;  %5011 = vrot.lane.b32.xlu1 %v14139_v17, %s7844_s7  ;;  %v14146_v54 = vld [vmem:[#allocation26_spill] sm:$0xff] }
 0x310   : > { %5017 = vrot.lane.b32.xlu0 %v14140_v39, %s7844_s7 }
 0x311   : > { %v11222_v6 = vpop.permute.xlu1 %4879 }
 0x312   : > { %14141 = vst [vmem:[#allocation206_spill] sm:$0xff] %v11222_v6  ;;  %v11224_v2 = vpop.permute.xlu0 %4885 }
 0x313   : > { %14142 = vst [vmem:[#allocation220_spill] sm:$0xff] %v11224_v2  ;;  %5015 = vrot.lane.b32.xlu1 %v14143_v56, %s7844_s7  ;;  %v14150_v2 = vld [vmem:[#allocation30_spill] sm:$0xff] }
 0x314   : > { %5021 = vrot.lane.b32.xlu0 %v14144_v44, %s7844_s7 }
 0x315   : > { %v11230_v24 = vpop.permute.xlu1 %4883 }
 0x316   : > { %14145 = vst [vmem:[#allocation18_spill] sm:$0xff] %v11230_v24  ;;  %v11232_v50 = vpop.permute.xlu0 %4889 }
 0x317   : > { %5019 = vrot.lane.b32.xlu1 %v14146_v54, %s7844_s7 }
 0x318   : > { %5025 = vrot.lane.b32.xlu0 %v14147_v9, %s7844_s7  ;;  %v14174_v9 = vld [vmem:[#allocation119_spill] sm:$0xff] }
 0x319   : > { %v11238_v31 = vpop.permute.xlu1 %4887 }
 0x31a   : > { %14148 = vst [vmem:[#allocation12_spill] sm:$0xff] %v11238_v31  ;;  %v11240_v6 = vpop.permute.xlu0 %4893 }
 0x31b   : > { %14149 = vst [vmem:[#allocation51_spill] sm:$0xff] %v11240_v6  ;;  %5023 = vrot.lane.b32.xlu1 %v14150_v2, %s7844_s7  ;;  %v14177_v6 = vld [vmem:[#allocation125_spill] sm:$0xff]  ;;  %v14181_v2 = vld [vmem:[#allocation131_spill] sm:$0xff] }
 0x31c   : > { %5029 = vrot.lane.b32.xlu0 %v14151_v3, %s7844_s7 }
 0x31d   : > { %v11246_v29 = vpop.permute.xlu1 %4891 }
 0x31e   : > { %v11248_v24 = vpop.permute.xlu0 %4897 }
 0x31f   : > { %14152 = vst [vmem:[#allocation50_spill] sm:$0xff] %v11248_v24  ;;  %5027 = vrot.lane.b32.xlu1 %v14153_v62, %s7844_s7  ;;  %v14161_v24 = vld [vmem:[#allocation65_spill] sm:$0xff]  ;;  %v14162_v62 = vld [vmem:[#allocation80_spill] sm:$0xff] }
 0x320   : > { %5033 = vrot.lane.b32.xlu0 %v14154_v18, %s7844_s7 }
 0x321   : > { %v11254_v52 = vpop.permute.xlu1 %4895 }
 0x322   : > { %14155 = vst [vmem:[#allocation120_spill] sm:$0xff] %v11254_v52  ;;  %v11256_v31 = vpop.permute.xlu0 %4901 }
 0x323   : > { %14156 = vst [vmem:[#allocation92_spill] sm:$0xff] %v11256_v31  ;;  %5031 = vrot.lane.b32.xlu1 %v14157_v11, %s7844_s7  ;;  %v14165_v31 = vld [vmem:[#allocation72_spill] sm:$0xff]  ;;  %v14166_v11 = vld [vmem:[#allocation81_spill] sm:$0xff] }
 0x324   : > { %5037 = vrot.lane.b32.xlu0 %v14158_v42, %s7844_s7 }
 0x325   : > { %v11262_v3 = vpop.permute.xlu1 %4899 }
 0x326   : > { %14159 = vst [vmem:[#allocation173_spill] sm:$0xff] %v11262_v3  ;;  %v11264_v49 = vpop.permute.xlu0 %4905 }
 0x327   : > { %14160 = vst [vmem:[#allocation11_spill] sm:$0xff] %v11264_v49  ;;  %5035 = vrot.lane.b32.xlu1 %v14161_v24, %s7844_s7  ;;  %v14169_v49 = vld [vmem:[#allocation86_spill] sm:$0xff]  ;;  %v14170_v24 = vld [vmem:[#allocation83_spill] sm:$0xff] }
 0x328   : > { %5041 = vrot.lane.b32.xlu0 %v14162_v62, %s7844_s7 }
 0x329   : > { %v11270_v18 = vpop.permute.xlu1 %4903 }
 0x32a   : > { %14163 = vst [vmem:[#allocation9_spill] sm:$0xff] %v11270_v18  ;;  %v11272_v52 = vpop.permute.xlu0 %4909 }
 0x32b   : > { %14164 = vst [vmem:[#allocation7_spill] sm:$0xff] %v11272_v52  ;;  %5039 = vrot.lane.b32.xlu1 %v14165_v31, %s7844_s7  ;;  %v14173_v52 = vld [vmem:[#allocation88_spill] sm:$0xff] }
 0x32c   : > { %5045 = vrot.lane.b32.xlu0 %v14166_v11, %s7844_s7 }
 0x32d   : > { %v11278_v42 = vpop.permute.xlu1 %4907 }
 0x32e   : > { %14167 = vst [vmem:[#allocation8_spill] sm:$0xff] %v11278_v42  ;;  %v11280_v3 = vpop.permute.xlu0 %4913 }
 0x32f   : > { %14168 = vst [vmem:[#allocation24_spill] sm:$0xff] %v11280_v3  ;;  %5043 = vrot.lane.b32.xlu1 %v14169_v49, %s7844_s7  ;;  %v14176_v3 = vld [vmem:[#allocation110_spill] sm:$0xff] }
 0x330   : > { %5049 = vrot.lane.b32.xlu0 %v14170_v24, %s7844_s7 }
 0x331   : > { %v11286_v46 = vpop.permute.xlu1 %4911 }
 0x332   : > { %14171 = vst [vmem:[#allocation14_spill] sm:$0xff] %v11286_v46  ;;  %v11288_v18 = vpop.permute.xlu0 %4917 }
 0x333   : > { %14172 = vst [vmem:[#allocation15_spill] sm:$0xff] %v11288_v18  ;;  %5047 = vrot.lane.b32.xlu1 %v14173_v52, %s7844_s7  ;;  %v14180_v18 = vld [vmem:[#allocation114_spill] sm:$0xff] }
 0x334   : > { %5053 = vrot.lane.b32.xlu0 %v14174_v9, %s7844_s7 }
 0x335   : > { %v11294_v8 = vpop.permute.xlu1 %4915 }
 0x336   : > { %14175 = vst [vmem:[#allocation46_spill] sm:$0xff] %v11294_v8  ;;  %v11296_v42 = vpop.permute.xlu0 %4926 }
 0x337   : > { %5051 = vrot.lane.b32.xlu1 %v14176_v3, %s7844_s7 }
 0x338   : > { %5057 = vrot.lane.b32.xlu0 %v14177_v6, %s7844_s7  ;;  %v14184_v6 = vld [vmem:[#allocation152_spill] sm:$0xff] }
 0x339   : > { %v11302_v19 = vpop.permute.xlu1 %4919 }
 0x33a   : > { %14178 = vst [vmem:[#allocation26_spill] sm:$0xff] %v11302_v19  ;;  %v11304_v46 = vpop.permute.xlu0 %4930 }
 0x33b   : > { %14179 = vst [vmem:[#allocation80_spill] sm:$0xff] %v11304_v46  ;;  %5055 = vrot.lane.b32.xlu1 %v14180_v18, %s7844_s7  ;;  %v14187_v18 = vld [vmem:[#allocation177_spill] sm:$0xff] }
 0x33c   : > { %5084 = vrot.lane.b32.xlu0 %v14181_v2, %s7845_s8 }
 0x33d   : > { %v11310_v8 = vpop.permute.xlu1 %4928 }
 0x33e   : > { %v11312_v41 = vpop.permute.xlu0 %4934 }
 0x33f   : > { %14182 = vst [vmem:[#allocation72_spill] sm:$0xff] %v11312_v41  ;;  %5059 = vrot.lane.b32.xlu1 %v14183_v4, %s7844_s7  ;;  %v14190_v4 = vld [vmem:[#allocation197_spill] sm:$0xff] }
 0x340   : > { %5086 = vrot.lane.b32.xlu0 %v14184_v6, %s7845_s8 }
 0x341   : > { %v11318_v19 = vpop.permute.xlu1 %4932 }
 0x342   : > { %14185 = vst [vmem:[#allocation81_spill] sm:$0xff] %v11318_v19  ;;  %v11320_v46 = vpop.permute.xlu0 %4938 }
 0x343   : > { %14186 = vst [vmem:[#allocation86_spill] sm:$0xff] %v11320_v46  ;;  %5116 = vrot.lane.b32.xlu1 %v14187_v18, %s7845_s8  ;;  %v7807_v18 = vld [vmem:[%s12836_s1 + $0x10] sm:$0xff]  }
 0x344   : > { %5153 = vrot.lane.b32.xlu0 %v14060_v53, %s7846_s9  ;;  %7692 = vmatprep.subr.bf16.mxu0 %v7807_v18 }
 0x345   : > { %v11326_v2 = vpop.permute.xlu1 %4936  ;;  %7693 = vmatpush3.bf16.msra.mxu0 %v7807_v18  ;;  %7762 = vmatprep.subr.bf16.mxu1 %v7807_v18 }
 0x346   : > { %14188 = vst [vmem:[#allocation83_spill] sm:$0xff] %v11326_v2  ;;  %v11328_v41 = vpop.permute.xlu0 %4942  ;;  %7765 = vmatpush3.bf16.msra.mxu1 %v7807_v18 }
 0x347   : > { %14189 = vst [vmem:[#allocation88_spill] sm:$0xff] %v11328_v41  ;;  %5118 = vrot.lane.b32.xlu1 %v14190_v4, %s7845_s8 }
 0x348   : > { %5155 = vrot.lane.b32.xlu0 %v14051_v58, %s7846_s9 }
 0x349   : > { %v11334_v19 = vpop.permute.xlu1 %4940 }
 0x34a   : > { %14191 = vst [vmem:[#allocation119_spill] sm:$0xff] %v11334_v19  ;;  %v11339_v46 = vpop.permute.xlu0 %4946  ;;  %v7808_v19 = vld [vmem:[%s12836_s1 + $0x8] sm:$0xff]  }
 0x34b   : > { %14192 = vst [vmem:[#allocation110_spill] sm:$0xff] %v11339_v46  ;;  %5185 = vrot.lane.b32.xlu1 %v14088_v45, %s7846_s9  ;;  %7694 = vmatprep.subr.bf16.mxu0 %v7808_v19  ;;  %v7809_v46 = vld [vmem:[%s12836_s1] sm:$0xff]  }
 0x34c   : > { %5222 = vrot.lane.b32.xlu0 %v13920_v10, %s7847_s12  ;;  %7695 = vmatpush3.bf16.msra.mxu0 %v7808_v19 }
 0x34d   : > { %v11345_v41 = vpop.permute.xlu1 %4944  ;;  %7763 = vmatprep.subr.bf16.mxu1 %v7808_v19  ;;  %7696 = vmatprep.subr.bf16.mxu0 %v7809_v46 }
 0x34e   : > { %14193 = vst [vmem:[#allocation131_spill] sm:$0xff] %v11345_v41  ;;  %v11350_v2 = vpop.permute.xlu0 %4950  ;;  %7766 = vmatpush3.bf16.msra.mxu1 %v7808_v19 }
 0x34f   : > { %14194 = vst [vmem:[#allocation152_spill] sm:$0xff] %v11350_v2  ;;  %5187 = vrot.lane.b32.xlu1 %v14087_v55, %s7846_s9  ;;  %7764 = vmatprep.subr.bf16.mxu1 %v7809_v46 }
 0x350   : > { %5224 = vrot.lane.b32.xlu0 %v13928_v48, %s7847_s12  ;;  %7697 = vmatpush3.bf16.msra.mxu0 %v7809_v46 }
 0x351   : > { %v11356_v10 = vpop.permute.xlu1 %4948 }
 0x352   : > { %14195 = vst [vmem:[#allocation197_spill] sm:$0xff] %v11356_v10  ;;  %v11361_v41 = vpop.permute.xlu0 %4954  ;;  %7767 = vmatpush3.bf16.msra.mxu1 %v7809_v46  ;;  %v14210_v10 = vld [vmem:[#allocation183_spill] sm:$0xff] }
 0x353   : > { %14196 = vst [vmem:[#allocation222_spill] sm:$0xff] %v11361_v41  ;;  %5254 = vrot.lane.b32.xlu1 %v13983_v27, %s7847_s12  ;;  %v14204_v41 = vld [vmem:[#allocation193_spill] sm:$0xff] }
 0x354   : > { %5301 = vrot.lane.b32.xlu0 %v14135_v37, %s7848_s17 }
 0x355   : > { %v11367_v48 = vpop.permute.xlu1 %4952 }
 0x356   : > { %14197 = vst [vmem:[#allocation223_spill] sm:$0xff] %v11367_v48  ;;  %v11369_v18 = vpop.permute.xlu0 %4958 }
 0x357   : > { %5256 = vrot.lane.b32.xlu1 %v13997_v30, %s7847_s12  ;;  %v14200_v30 = vld [vmem:[#allocation158_spill] sm:$0xff] }
 0x358   : > { %5303 = vrot.lane.b32.xlu0 %v14132_v35, %s7848_s17 }
 0x359   : > { %v11375_v19 = vpop.permute.xlu1 %4956 }
 0x35a   : > { %14198 = vst [vmem:[#allocation224_spill] sm:$0xff] %v11375_v19  ;;  %v11377_v27 = vpop.permute.xlu0 %4962 }
 0x35b   : > { %5333 = vrot.lane.b32.xlu1 %v14165_v31, %s7848_s17 }
 0x35c   : > { %5380 = vrot.lane.b32.xlu0 %v14184_v6, %s7849_s18 }
 0x35d   : > { %v11383_v37 = vpop.permute.xlu1 %4960 }
 0x35e   : > { %v11385_v46 = vpop.permute.xlu0 %4966 }
 0x35f   : > { %14199 = vst [vmem:[#allocation225_spill] sm:$0xff] %v11385_v46  ;;  %5335 = vrot.lane.b32.xlu1 %v14162_v62, %s7848_s17  ;;  %v14205_v62 = vld [vmem:[#allocation145_spill] sm:$0xff] }
 0x360   : > { %5382 = vrot.lane.b32.xlu0 %v14200_v30, %s7849_s18 }
 0x361   : > { %v11391_v35 = vpop.permute.xlu1 %4964 }
 0x362   : > { %v11393_v19 = vpop.permute.xlu0 %4970 }
 0x363   : > { %14201 = vst [vmem:[#allocation158_spill] sm:$0xff] %v11393_v19  ;;  %5412 = vrot.lane.b32.xlu1 %v14190_v4, %s7849_s18 }
 0x364   : > { %5088 = vrot.lane.b32.xlu0 %v14200_v30, %s7845_s8 }
 0x365   : > { %v11399_v6 = vpop.permute.xlu1 %4968 }
 0x366   : > { %14202 = vst [vmem:[#allocation226_spill] sm:$0xff] %v11399_v6  ;;  %v11401_v31 = vpop.permute.xlu0 %4974 }
 0x367   : > { %14203 = vst [vmem:[#allocation227_spill] sm:$0xff] %v11401_v31  ;;  %5414 = vrot.lane.b32.xlu1 %v14204_v41, %s7849_s18 }
 0x368   : > { %5090 = vrot.lane.b32.xlu0 %v14205_v62, %s7845_s8 }
 0x369   : > { %v11407_v48 = vpop.permute.xlu1 %4972 }
 0x36a   : > { %14206 = vst [vmem:[#allocation193_spill] sm:$0xff] %v11407_v48  ;;  %v11409_v2 = vpop.permute.xlu0 %4978 }
 0x36b   : > { %14207 = vst [vmem:[#allocation145_spill] sm:$0xff] %v11409_v2  ;;  %5120 = vrot.lane.b32.xlu1 %v14204_v41, %s7845_s8 }
 0x36c   : > { %5157 = vrot.lane.b32.xlu0 %v14064_v26, %s7846_s9 }
 0x36d   : > { %v11415_v4 = vpop.permute.xlu1 %4976 }
 0x36e   : > { %14208 = vst [vmem:[#allocation228_spill] sm:$0xff] %v11415_v4  ;;  %v11417_v30 = vpop.permute.xlu0 %4982  ;;  %v14223_v4 = vld [vmem:[#allocation191_spill] sm:$0xff] }
 0x36f   : > { %14209 = vst [vmem:[#allocation229_spill] sm:$0xff] %v11417_v30  ;;  %5122 = vrot.lane.b32.xlu1 %v14210_v10, %s7845_s8 }
 0x370   : > { %5159 = vrot.lane.b32.xlu0 %v14062_v15, %s7846_s9 }
 0x371   : > { %v11423_v31 = vpop.permute.xlu1 %4980 }
 0x372   : > { %14211 = vst [vmem:[#allocation183_spill] sm:$0xff] %v11423_v31  ;;  %v11425_v48 = vpop.permute.xlu0 %4986 }
 0x373   : > { %14212 = vst [vmem:[#allocation230_spill] sm:$0xff] %v11425_v48  ;;  %5189 = vrot.lane.b32.xlu1 %v14093_v34, %s7846_s9 }
 0x374   : > { %5226 = vrot.lane.b32.xlu0 %v13925_v13, %s7847_s12 }
 0x375   : > { %v11431_v41 = vpop.permute.xlu1 %4984 }
 0x376   : > { %14213 = vst [vmem:[#allocation231_spill] sm:$0xff] %v11431_v41  ;;  %v11433_v2 = vpop.permute.xlu0 %5005 }
 0x377   : > { %5191 = vrot.lane.b32.xlu1 %v14089_v51, %s7846_s9  ;;  %v14249_v51 = vld [vmem:[#allocation54_spill] sm:$0xff] }
 0x378   : > { %5228 = vrot.lane.b32.xlu0 %v13934_v61, %s7847_s12 }
 0x379   : > { %v11439_v30 = vpop.permute.xlu1 %4988 }
 0x37a   : > { %14214 = vst [vmem:[#allocation232_spill] sm:$0xff] %v11439_v30  ;;  %v11441_v31 = vpop.permute.xlu0 %5009 }
 0x37b   : > { %5258 = vrot.lane.b32.xlu1 %v13993_v63, %s7847_s12 }
 0x37c   : > { %5305 = vrot.lane.b32.xlu0 %v14139_v17, %s7848_s17 }
 0x37d   : > { %v11447_v13 = vpop.permute.xlu1 %5007 }
 0x37e   : > { %v11449_v48 = vpop.permute.xlu0 %5013 }
 0x37f   : > { %5260 = vrot.lane.b32.xlu1 %v14005_v0, %s7847_s12  ;;  %v14218_v0 = vld [vmem:[#allocation148_spill] sm:$0xff] }
 0x380   : > { %5307 = vrot.lane.b32.xlu0 %v14136_v36, %s7848_s17 }
 0x381   : > { %v11455_v61 = vpop.permute.xlu1 %5011 }
 0x382   : > { %v11457_v30 = vpop.permute.xlu0 %5017 }
 0x383   : > { %14215 = vst [vmem:[#allocation233_spill] sm:$0xff] %v11457_v30  ;;  %5337 = vrot.lane.b32.xlu1 %v14169_v49, %s7848_s17  ;;  %v14245_v30 = vld [vmem:[#allocation19_spill] sm:$0xff] }
 0x384   : > { %5384 = vrot.lane.b32.xlu0 %v14205_v62, %s7849_s18 }
 0x385   : > { %v11463_v17 = vpop.permute.xlu1 %5015 }
 0x386   : > { %14216 = vst [vmem:[#allocation234_spill] sm:$0xff] %v11463_v17  ;;  %v11465_v63 = vpop.permute.xlu0 %5021 }
 0x387   : > { %14217 = vst [vmem:[#allocation235_spill] sm:$0xff] %v11465_v63  ;;  %5339 = vrot.lane.b32.xlu1 %v14166_v11, %s7848_s17  ;;  %v14224_v11 = vld [vmem:[#allocation146_spill] sm:$0xff] }
 0x388   : > { %5386 = vrot.lane.b32.xlu0 %v14218_v0, %s7849_s18 }
 0x389   : > { %v11471_v36 = vpop.permute.xlu1 %5019 }
 0x38a   : > { %14219 = vst [vmem:[#allocation148_spill] sm:$0xff] %v11471_v36  ;;  %v11473_v41 = vpop.permute.xlu0 %5025 }
 0x38b   : > { %14220 = vst [vmem:[#allocation236_spill] sm:$0xff] %v11473_v41  ;;  %5416 = vrot.lane.b32.xlu1 %v14210_v10, %s7849_s18  ;;  %v14227_v10 = vld [vmem:[#allocation25_spill] sm:$0xff] }
 0x38c   : > { %5092 = vrot.lane.b32.xlu0 %v14218_v0, %s7845_s8 }
 0x38d   : > { %v11479_v49 = vpop.permute.xlu1 %5023 }
 0x38e   : > { %14221 = vst [vmem:[#allocation237_spill] sm:$0xff] %v11479_v49  ;;  %v11481_v62 = vpop.permute.xlu0 %5029  ;;  %v14230_v49 = vld [vmem:[#allocation20_spill] sm:$0xff] }
 0x38f   : > { %14222 = vst [vmem:[#allocation238_spill] sm:$0xff] %v11481_v62  ;;  %5418 = vrot.lane.b32.xlu1 %v14223_v4, %s7849_s18  ;;  %v14229_v62 = vld [vmem:[#allocation187_spill] sm:$0xff] }
 0x390   : > { %5094 = vrot.lane.b32.xlu0 %v14224_v11, %s7845_s8 }
 0x391   : > { %v11487_v63 = vpop.permute.xlu1 %5027 }
 0x392   : > { %14225 = vst [vmem:[#allocation191_spill] sm:$0xff] %v11487_v63  ;;  %v11489_v19 = vpop.permute.xlu0 %5033 }
 0x393   : > { %14226 = vst [vmem:[#allocation146_spill] sm:$0xff] %v11489_v19  ;;  %5124 = vrot.lane.b32.xlu1 %v14223_v4, %s7845_s8 }
 0x394   : > { %5161 = vrot.lane.b32.xlu0 %v14227_v10, %s7846_s9 }
 0x395   : > { %v11495_v0 = vpop.permute.xlu1 %5031 }
 0x396   : > { %14228 = vst [vmem:[#allocation239_spill] sm:$0xff] %v11495_v0  ;;  %v11497_v41 = vpop.permute.xlu0 %5037 }
 0x397   : > { %5126 = vrot.lane.b32.xlu1 %v14229_v62, %s7845_s8 }
 0x398   : > { %5163 = vrot.lane.b32.xlu0 %v14230_v49, %s7846_s9 }
 0x399   : > { %v11503_v36 = vpop.permute.xlu1 %5035 }
 0x39a   : > { %14231 = vst [vmem:[#allocation187_spill] sm:$0xff] %v11503_v36  ;;  %v11505_v63 = vpop.permute.xlu0 %5041 }
 0x39b   : > { %5193 = vrot.lane.b32.xlu1 %v14096_v14, %s7846_s9 }
 0x39c   : > { %5230 = vrot.lane.b32.xlu0 %v13932_v1, %s7847_s12 }
 0x39d   : > { %v11511_v4 = vpop.permute.xlu1 %5039 }
 0x39e   : > { %v11513_v19 = vpop.permute.xlu0 %5045 }
 0x39f   : > { %14232 = vst [vmem:[#allocation240_spill] sm:$0xff] %v11513_v19  ;;  %5195 = vrot.lane.b32.xlu1 %v14094_v12, %s7846_s9  ;;  %v14248_v19 = vld [vmem:[#allocation153_spill] sm:$0xff] }
 0x3a0   : > { %5232 = vrot.lane.b32.xlu0 %v13940_v38, %s7847_s12 }
 0x3a1   : > { %v11519_v0 = vpop.permute.xlu1 %5043 }
 0x3a2   : > { %v11521_v36 = vpop.permute.xlu0 %5049 }
 0x3a3   : > { %14233 = vst [vmem:[#allocation241_spill] sm:$0xff] %v11521_v36  ;;  %5262 = vrot.lane.b32.xlu1 %v14002_v22, %s7847_s12  ;;  %v14244_v36 = vld [vmem:[#allocation186_spill] sm:$0xff] }
 0x3a4   : > { %5309 = vrot.lane.b32.xlu0 %v14143_v56, %s7848_s17 }
 0x3a5   : > { %v11527_v1 = vpop.permute.xlu1 %5047 }
 0x3a6   : > { %14234 = vst [vmem:[#allocation242_spill] sm:$0xff] %v11527_v1  ;;  %v11529_v14 = vpop.permute.xlu0 %5053 }
 0x3a7   : > { %14235 = vst [vmem:[#allocation243_spill] sm:$0xff] %v11529_v14  ;;  %5264 = vrot.lane.b32.xlu1 %v14015_v60, %s7847_s12  ;;  %v14239_v60 = vld [vmem:[#allocation166_spill] sm:$0xff] }
 0x3a8   : > { %5311 = vrot.lane.b32.xlu0 %v14140_v39, %s7848_s17 }
 0x3a9   : > { %v11535_v38 = vpop.permute.xlu1 %5051 }
 0x3aa   : > { %14236 = vst [vmem:[#allocation244_spill] sm:$0xff] %v11535_v38  ;;  %v11537_v12 = vpop.permute.xlu0 %5057 }
 0x3ab   : > { %14237 = vst [vmem:[#allocation245_spill] sm:$0xff] %v11537_v12  ;;  %5341 = vrot.lane.b32.xlu1 %v14173_v52, %s7848_s17  ;;  %v14241_v12 = vld [vmem:[#allocation192_spill] sm:$0xff] }
 0x3ac   : > { %5388 = vrot.lane.b32.xlu0 %v14224_v11, %s7849_s18 }
 0x3ad   : > { %v11543_v22 = vpop.permute.xlu1 %5055 }
 0x3ae   : > { %14238 = vst [vmem:[#allocation246_spill] sm:$0xff] %v11543_v22  ;;  %v5085_v56 = vpop.permute.xlu0 %5084 }
 0x3af   : > { %5343 = vrot.lane.b32.xlu1 %v14170_v24, %s7848_s17  ;;  %v14242_v24 = vld [vmem:[#allocation167_spill] sm:$0xff] }
 0x3b0   : > { %5390 = vrot.lane.b32.xlu0 %v14239_v60, %s7849_s18 }
 0x3b1   : > { %v11549_v39 = vpop.permute.xlu1 %5059 }
 0x3b2   : > { %14240 = vst [vmem:[#allocation166_spill] sm:$0xff] %v11549_v39  ;;  %v5087_v14 = vpop.permute.xlu0 %5086 }
 0x3b3   : > { %5420 = vrot.lane.b32.xlu1 %v14229_v62, %s7849_s18  ;;  %v14243_v62 = vld [vmem:[#allocation38_spill] sm:$0xff] }
 0x3b4   : > { %5096 = vrot.lane.b32.xlu0 %v14239_v60, %s7845_s8 }
 0x3b5   : > { %v11555_v52 = vpop.permute.xlu1 %5116 }
 0x3b6   : > { %v5154_v11 = vpop.permute.xlu0 %5153 }
 0x3b7   : > { %5422 = vrot.lane.b32.xlu1 %v14241_v12, %s7849_s18 }
 0x3b8   : > { %5098 = vrot.lane.b32.xlu0 %v14242_v24, %s7845_s8 }
 0x3b9   : > { %v11561_v22 = vpop.permute.xlu1 %5118 }
 0x3ba   : > { %v5156_v38 = vpop.permute.xlu0 %5155 }
 0x3bb   : > { %5128 = vrot.lane.b32.xlu1 %v14241_v12, %s7845_s8  ;;  %v14246_v12 = vld [vmem:[#allocation52_spill] sm:$0xff] }
 0x3bc   : > { %5165 = vrot.lane.b32.xlu0 %v14243_v62, %s7846_s9  ;;  %v14247_v62 = vld [vmem:[#allocation218_spill] sm:$0xff] }
 0x3bd   : > { %v11567_v39 = vpop.permute.xlu1 %5185  ;;  %v5446_v1 = vsel %vm5444_vm10, %v14247_v62, %v14246_v12  ;;  %v14250_v12 = vld [vmem:[#allocation66_spill] sm:$0xff]  ;;  %v14251_v62 = vld [vmem:[#allocation219_spill] sm:$0xff] }
 0x3be   : > { %v5223_v60 = vpop.permute.xlu0 %5222 }
 0x3bf   : > { %5130 = vrot.lane.b32.xlu1 %v14244_v36, %s7845_s8 }
 0x3c0   : > { %5167 = vrot.lane.b32.xlu0 %v14245_v30, %s7846_s9  ;;  %v5511_v30 = vsel %vm5509_vm11, %v5446_v1, %v14248_v19  ;;  %v5448_v19 = vsel %vm5444_vm10, %v14251_v62, %v14250_v12  ;;  %v14255_v62 = vld [vmem:[#allocation35_spill] sm:$0xff] }
 0x3c1   : > { %v11573_v49 = vpop.permute.xlu1 %5187  ;;  %v5576_v17 = vsel %vm5574_vm12, %v5511_v30, %v14249_v51  ;;  %v14252_v30 = vld [vmem:[#allocation154_spill] sm:$0xff] }
 0x3c2   : > { %v5225_v10 = vpop.permute.xlu0 %5224 }
 0x3c3   : > { %5197 = vrot.lane.b32.xlu1 %v14099_v32, %s7846_s9  ;;  %v5513_v32 = vsel %vm5509_vm11, %v5448_v19, %v14252_v30 }
 0x3c4   : > { %5234 = vrot.lane.b32.xlu0 %v13938_v23, %s7847_s12  ;;  %v5641_v23 = vsel %vm5639_vm13, %v5576_v17, %v11168_v40  ;;  %v14253_v17 = vld [vmem:[#allocation34_spill] sm:$0xff] }
 0x3c5   : > { %v5255_v6 = vpop.permute.xlu1 %5254  ;;  %v5706_v1 = vsel %vm5704_vm14, %v5641_v23, %v11296_v42  ;;  %v14254_v42 = vld [vmem:[#allocation99_spill] sm:$0xff] }
 0x3c6   : > { %v5302_v46 = vpop.permute.xlu0 %5301  ;;  %v5478_v23 = vsel %vm5444_vm10, %v14255_v62, %v14254_v42 }
 0x3c7   : > { %5199 = vrot.lane.b32.xlu1 %v14098_v43, %s7846_s9  ;;  %v5771_v43 = vsel %vm5769_vm15, %v5706_v1, %v11433_v2 }
 0x3c8   : > { %5236 = vrot.lane.b32.xlu0 %v13947_v33, %s7847_s12  ;;  %v5578_v33 = vsel %vm5574_vm12, %v5513_v32, %v14253_v17  ;;  %v5836_v34 = vsel %vm5834_vm0, %v5771_v43, %v5085_v56  ;;  %v14256_v32 = vld [vmem:[#allocation208_spill] sm:$0xff]  ;;  %v14258_v17 = vld [vmem:[#allocation49_spill] sm:$0xff] }
 0x3c9   : > { %v5257_v51 = vpop.permute.xlu1 %5256  ;;  %v5643_v12 = vsel %vm5639_vm13, %v5578_v33, %v11182_v59  ;;  %v5901_v2 = vsel %vm5899_vm1, %v5836_v34, %v5154_v11  ;;  %v5543_v43 = vsel %vm5509_vm11, %v5478_v23, %v14256_v32 }
 0x3ca   : > { %v5304_v40 = vpop.permute.xlu0 %5303  ;;  %v5708_v56 = vsel %vm5704_vm14, %v5643_v12, %v11310_v8  ;;  %v5608_v1 = vsel %vm5574_vm12, %v5543_v43, %v11092_v25 }
 0x3cb   : > { %5266 = vrot.lane.b32.xlu1 %v14124_v47, %s7847_s12  ;;  %v5966_v47 = vsel %vm5964_vm2, %v5901_v2, %v5223_v60  ;;  %v5773_v59 = vsel %vm5769_vm15, %v5708_v56, %v11447_v13  ;;  %v5673_v11 = vsel %vm5639_vm13, %v5608_v1, %v11232_v50  ;;  %v14257_v60 = vld [vmem:[#allocation128_spill] sm:$0xff] }
 0x3cc   : > { %5313 = vrot.lane.b32.xlu0 %v14146_v54, %s7848_s17  ;;  %v6031_v34 = vsel %vm6029_vm3, %v5966_v47, %v5302_v46  ;;  %v5838_v30 = vsel %vm5834_vm0, %v5773_v59, %v5087_v14  ;;  %v5480_v25 = vsel %vm5444_vm10, %v14258_v17, %v14257_v60  ;;  %v5738_v13 = vsel %vm5704_vm14, %v5673_v11, %v11369_v18  ;;  %v14259_v14 = vld [vmem:[#allocation194_spill] sm:$0xff]  ;;  %v14262_v47 = vld [vmem:[#allocation159_spill] sm:$0xff]  ;;  %v14265_v11 = vld [vmem:[#allocation28_spill] sm:$0xff] }
 0x3cd   : > { %v5334_v19 = vpop.permute.xlu1 %5333  ;;  %v5903_v46 = vsel %vm5899_vm1, %v5838_v30, %v5156_v38  ;;  %v5545_v50 = vsel %vm5509_vm11, %v5480_v25, %v14259_v14  ;;  %v14266_v60 = vld [vmem:[#allocation58_spill] sm:$0xff] }
 0x3ce   : > { %v5381_v54 = vpop.permute.xlu0 %5380  ;;  %v5968_v33 = vsel %vm5964_vm2, %v5903_v46, %v5225_v10  ;;  %v5610_v23 = vsel %vm5574_vm12, %v5545_v50, %v11106_v28  ;;  %v5450_v25 = vsel %vm5444_vm10, %v14060_v53, %v14266_v60  ;;  %v14267_v46 = vld [vmem:[#allocation147_spill] sm:$0xff] }
 0x3cf   : > { %5268 = vrot.lane.b32.xlu1 %v14023_v21, %s7847_s12  ;;  %v6096_v8 = vsel %vm6094_vm5, %v6031_v34, %v5381_v54  ;;  %v5803_v21 = vsel %vm5769_vm15, %v5738_v13, %v11497_v41  ;;  %v6033_v38 = vsel %vm6029_vm3, %v5968_v33, %v5304_v40  ;;  %v5675_v12 = vsel %vm5639_vm13, %v5610_v23, %v11246_v29  ;;  %v14264_v54 = vld [vmem:[#allocation199_spill] sm:$0xff]  ;;  %v14270_v23 = vld [vmem:[#allocation80_spill] sm:$0xff] }
 0x3d0   : > { %5315 = vrot.lane.b32.xlu0 %v14144_v44, %s7848_s17  ;;  %7698 = vmatprep.mubr.msk.bf16.mxu0 %vm6183_vm6, %v6096_v8  ;;  %v5868_v18 = vsel %vm5834_vm0, %v5803_v21, %v11555_v52  ;;  %v5740_v28 = vsel %vm5704_vm14, %v5675_v12, %v11383_v37  ;;  %v5515_v14 = vsel %vm5509_vm11, %v5450_v25, %v14267_v46  ;;  %v14268_v21 = vld [vmem:[#allocation60_spill] sm:$0xff]  ;;  %v14280_v60 = vld [vmem:[#allocation51_spill] sm:$0xff] }
 0x3d1   : > { %v5336_v42 = vpop.permute.xlu1 %5335  ;;  %v5933_v2 = vsel %vm5899_vm1, %v5868_v18, %v11567_v39  ;;  %v5805_v29 = vsel %vm5769_vm15, %v5740_v28, %v11511_v4  ;;  %v14260_v4 = vld [vmem:[#allocation172_spill] sm:$0xff]  ;;  %v5580_v33 = vsel %vm5574_vm12, %v5515_v14, %v14268_v21  ;;  %v14272_v28 = vld [vmem:[#allocation22_spill] sm:$0xff] }
 0x3d2   : > { %v5383_v44 = vpop.permute.xlu0 %5382  ;;  %v5998_v10 = vsel %vm5964_vm2, %v5933_v2, %v5255_v6  ;;  %v14281_v14 = vld [vmem:[#allocation196_spill] sm:$0xff]  ;;  %v14282_v21 = vld [vmem:[#allocation134_spill] sm:$0xff] }
 0x3d3   : > { %5345 = vrot.lane.b32.xlu1 %v14176_v3, %s7848_s17  ;;  %v6098_v41 = vsel %vm6094_vm5, %v6033_v38, %v5383_v44  ;;  %v6063_v39 = vsel %vm6029_vm3, %v5998_v10, %v5334_v19  ;;  %v5870_v3 = vsel %vm5834_vm0, %v5805_v29, %v11561_v22  ;;  %v14271_v44 = vld [vmem:[#allocation174_spill] sm:$0xff]  ;;  %v14273_v10 = vld [vmem:[#allocation188_spill] sm:$0xff] }
 0x3d4   : > { %5392 = vrot.lane.b32.xlu0 %v14242_v24, %s7849_s18  ;;  %7699 = vmatmul.mubr.msk.bf16.vlgmr.msra.gmra.mxu0 %vm6183_vm6, %v6098_v41  ;;  %v5935_v37 = vsel %vm5899_vm1, %v5870_v3, %v11573_v49 }
 0x3d5   : > { %v5413_v52 = vpop.permute.xlu1 %5412  ;;  %v6000_v6 = vsel %vm5964_vm2, %v5935_v37, %v5257_v51  ;;  %v14261_v51 = vld [vmem:[#allocation200_spill] sm:$0xff] }
 0x3d6   : > { %v6128_v40 = vsel %vm6094_vm5, %v6063_v39, %v5413_v52  ;;  %v5089_v32 = vpop.permute.xlu0 %5088  ;;  %v6065_v24 = vsel %vm6029_vm3, %v6000_v6, %v5336_v42  ;;  %v5645_v42 = vsel %vm5639_vm13, %v5580_v33, %v11176_v20  ;;  %v14275_v39 = vld [vmem:[#allocation171_spill] sm:$0xff]  ;;  %v14278_v6 = vld [vmem:[#allocation81_spill] sm:$0xff]  ;;  %v5484_v33 = vsel %vm5444_vm10, %v14087_v55, %v14282_v21  ;;  %v14285_v55 = vld [vmem:[#allocation124_spill] sm:$0xff] }
 0x3d7   : > { %5347 = vrot.lane.b32.xlu1 %v14174_v9, %s7848_s17  ;;  %7730 = vmatprep.mubr.msk.bf16.mxu1 %vm6183_vm6, %v6128_v40  ;;  %v5710_v18 = vsel %vm5704_vm14, %v5645_v42, %v14270_v23  ;;  %v14277_v40 = vld [vmem:[#allocation195_spill] sm:$0xff]  ;;  %v14283_v42 = vld [vmem:[#allocation48_spill] sm:$0xff] }
 0x3d8   : > { %5394 = vrot.lane.b32.xlu0 %v14260_v4, %s7849_s18  ;;  %v5775_v2 = vsel %vm5769_vm15, %v5710_v18, %v11441_v31  ;;  %v14276_v31 = vld [vmem:[#allocation30_spill] sm:$0xff] }
 0x3d9   : > { %v5415_v43 = vpop.permute.xlu1 %5414 }
 0x3da   : > { %v6130_v22 = vsel %vm6094_vm5, %v6065_v24, %v5415_v43  ;;  %v5091_v56 = vpop.permute.xlu0 %5090  ;;  %v14279_v43 = vld [vmem:[#allocation132_spill] sm:$0xff] }
 0x3db   : > { %5424 = vrot.lane.b32.xlu1 %v14244_v36, %s7849_s18  ;;  %7731 = vmatmul.mubr.msk.bf16.vlgmr.msra.gmra.mxu1 %vm6183_vm6, %v6130_v22  ;;  %v14263_v36 = vld [vmem:[#allocation40_spill] sm:$0xff] }
 0x3dc   : > { %5100 = vrot.lane.b32.xlu0 %v14260_v4, %s7845_s8 }
 0x3dd   : > { %v5121_v9 = vpop.permute.xlu1 %5120 }
 0x3de   : > { %v5158_v49 = vpop.permute.xlu0 %5157 }
 0x3df   : > { %5426 = vrot.lane.b32.xlu1 %v14261_v51, %s7849_s18 }
 0x3e0   : > { %5102 = vrot.lane.b32.xlu0 %v14262_v47, %s7845_s8 }
 0x3e1   : > { %v11687_v19 = vpop.permute.xlu1 %5122 }
 0x3e2   : > { %v5160_v1 = vpop.permute.xlu0 %5159 }
 0x3e3   : > { %5132 = vrot.lane.b32.xlu1 %v14261_v51, %s7845_s8 }
 0x3e4   : > { %5169 = vrot.lane.b32.xlu0 %v14263_v36, %s7846_s9 }
 0x3e5   : > { %v5190_v59 = vpop.permute.xlu1 %5189 }
 0x3e6   : > { %v5227_v34 = vpop.permute.xlu0 %5226 }
 0x3e7   : > { %5134 = vrot.lane.b32.xlu1 %v14264_v54, %s7845_s8 }
 0x3e8   : > { %5171 = vrot.lane.b32.xlu0 %v14265_v11, %s7846_s9 }
 0x3e9   : > { %v11697_v30 = vpop.permute.xlu1 %5191 }
 0x3ea   : > { %v5229_v8 = vpop.permute.xlu0 %5228 }
 0x3eb   : > { %5201 = vrot.lane.b32.xlu1 %v14103_v7, %s7846_s9 }
 0x3ec   : > { %5238 = vrot.lane.b32.xlu0 %v13944_v16, %s7847_s12  ;;  %v14269_v16 = vld [vmem:[#allocation67_spill] sm:$0xff] }
 0x3ed   : > { %v5259_v13 = vpop.permute.xlu1 %5258  ;;  %v5452_v53 = vsel %vm5444_vm10, %v14051_v58, %v14269_v16  ;;  %v14274_v58 = vld [vmem:[#allocation127_spill] sm:$0xff] }
 0x3ee   : > { %v5306_v50 = vpop.permute.xlu0 %5305  ;;  %v5517_v12 = vsel %vm5509_vm11, %v5452_v53, %v14271_v44  ;;  %v5482_v29 = vsel %vm5444_vm10, %v14088_v45, %v14274_v58 }
 0x3ef   : > { %5203 = vrot.lane.b32.xlu1 %v14100_v5, %s7846_s9  ;;  %v5582_v20 = vsel %vm5574_vm12, %v5517_v12, %v14272_v28  ;;  %v5547_v37 = vsel %vm5509_vm11, %v5482_v29, %v14277_v40 }
 0x3f0   : > { %5240 = vrot.lane.b32.xlu0 %v13957_v57, %s7847_s12  ;;  %v5840_v57 = vsel %vm5834_vm0, %v5775_v2, %v5089_v32  ;;  %v5647_v52 = vsel %vm5639_vm13, %v5582_v20, %v14275_v39  ;;  %v5612_v45 = vsel %vm5574_vm12, %v5547_v37, %v14279_v43  ;;  %v14286_v2 = vld [vmem:[#allocation120_spill] sm:$0xff]  ;;  %v14291_v37 = vld [vmem:[#allocation155_spill] sm:$0xff]  ;;  %v14293_v43 = vld [vmem:[#allocation201_spill] sm:$0xff] }
 0x3f1   : > { %v5261_v38 = vpop.permute.xlu1 %5260  ;;  %v5905_v3 = vsel %vm5899_vm1, %v5840_v57, %v5158_v49  ;;  %v5712_v32 = vsel %vm5704_vm14, %v5647_v52, %v14278_v6  ;;  %v5677_v25 = vsel %vm5639_vm13, %v5612_v45, %v14280_v60  ;;  %v14287_v57 = vld [vmem:[#allocation114_spill] sm:$0xff]  ;;  %v14294_v45 = vld [vmem:[#allocation47_spill] sm:$0xff] }
 0x3f2   : > { %v5308_v41 = vpop.permute.xlu0 %5307  ;;  %v5970_v4 = vsel %vm5964_vm2, %v5905_v3, %v5227_v34  ;;  %v5777_v22 = vsel %vm5769_vm15, %v5712_v32, %v11455_v61  ;;  %v5742_v61 = vsel %vm5704_vm14, %v5677_v25, %v11377_v27  ;;  %v14296_v60 = vld [vmem:[#allocation78_spill] sm:$0xff]  ;;  %v14297_v25 = vld [vmem:[#allocation77_spill] sm:$0xff] }
 0x3f3   : > { %5270 = vrot.lane.b32.xlu1 %v14273_v10, %s7847_s12  ;;  %v6035_v49 = vsel %vm6029_vm3, %v5970_v4, %v5306_v50  ;;  %v5842_v46 = vsel %vm5834_vm0, %v5777_v22, %v5091_v56  ;;  %v14284_v56 = vld [vmem:[#allocation202_spill] sm:$0xff]  ;;  %v5807_v53 = vsel %vm5769_vm15, %v5742_v61, %v11505_v63 }
 0x3f4   : > { %5317 = vrot.lane.b32.xlu0 %v14276_v31, %s7848_s17  ;;  %v5907_v50 = vsel %vm5899_vm1, %v5842_v46, %v5160_v1  ;;  %v5549_v16 = vsel %vm5509_vm11, %v5484_v33, %v14284_v56  ;;  %v5872_v27 = vsel %vm5834_vm0, %v5807_v53, %v5121_v9  ;;  %v5454_v46 = vsel %vm5444_vm10, %v14064_v26, %v14297_v25  ;;  %v14299_v61 = vld [vmem:[#allocation70_spill] sm:$0xff]  ;;  %v14301_v56 = vld [vmem:[#allocation73_spill] sm:$0xff] }
 0x3f5   : > { %v5338_v24 = vpop.permute.xlu1 %5337  ;;  %v5972_v23 = vsel %vm5964_vm2, %v5907_v50, %v5229_v8  ;;  %v5614_v44 = vsel %vm5574_vm12, %v5549_v16, %v14285_v55  ;;  %v5937_v20 = vsel %vm5899_vm1, %v5872_v27, %v5190_v59  ;;  %v14302_v53 = vld [vmem:[#allocation85_spill] sm:$0xff]  ;;  %v14305_v27 = vld [vmem:[#allocation163_spill] sm:$0xff] }
 0x3f6   : > { %v5385_v51 = vpop.permute.xlu0 %5384  ;;  %v6037_v1 = vsel %vm6029_vm3, %v5972_v23, %v5308_v41  ;;  %v5679_v28 = vsel %vm5639_vm13, %v5614_v44, %v14286_v2  ;;  %v6002_v10 = vsel %vm5964_vm2, %v5937_v20, %v5259_v13  ;;  %v14288_v13 = vld [vmem:[#allocation125_spill] sm:$0xff]  ;;  %v14303_v23 = vld [vmem:[#allocation74_spill] sm:$0xff] }
 0x3f7   : > { %5272 = vrot.lane.b32.xlu1 %v14281_v14, %s7847_s12  ;;  %v6100_v34 = vsel %vm6094_vm5, %v6035_v49, %v5385_v51  ;;  %v5744_v8 = vsel %vm5704_vm14, %v5679_v28, %v11391_v35  ;;  %v6067_v59 = vsel %vm6029_vm3, %v6002_v10, %v5338_v24  ;;  %v14295_v51 = vld [vmem:[#allocation112_spill] sm:$0xff]  ;;  %v5456_v26 = vsel %vm5444_vm10, %v14062_v15, %v14303_v23  ;;  %v14308_v15 = vld [vmem:[#allocation121_spill] sm:$0xff] }
 0x3f8   : > { %5319 = vrot.lane.b32.xlu0 %v14283_v42, %s7848_s17  ;;  %7702 = vmatprep.mubr.msk.bf16.mxu0 %vm6183_vm6, %v6100_v34  ;;  %v5809_v9 = vsel %vm5769_vm15, %v5744_v8, %v11519_v0  ;;  %v14289_v0 = vld [vmem:[#allocation162_spill] sm:$0xff]  ;;  %v14298_v34 = vld [vmem:[#allocation175_spill] sm:$0xff]  ;;  %v14306_v28 = vld [vmem:[#allocation32_spill] sm:$0xff] }
 0x3f9   : > { %v5340_v18 = vpop.permute.xlu1 %5339  ;;  %v5874_v58 = vsel %vm5834_vm0, %v5809_v9, %v11687_v19  ;;  %v5519_v21 = vsel %vm5509_vm11, %v5454_v46, %v14298_v34  ;;  %v14300_v42 = vld [vmem:[#allocation107_spill] sm:$0xff]  ;;  %v14309_v8 = vld [vmem:[#allocation64_spill] sm:$0xff]  ;;  %v14310_v9 = vld [vmem:[#allocation82_spill] sm:$0xff] }
 0x3fa   : > { %v5387_v12 = vpop.permute.xlu0 %5386  ;;  %v5939_v35 = vsel %vm5899_vm1, %v5874_v58, %v11697_v30  ;;  %v5584_v50 = vsel %vm5574_vm12, %v5519_v21, %v14299_v61  ;;  %v5486_v10 = vsel %vm5444_vm10, %v14309_v8, %v14308_v15  ;;  %v14312_v58 = vld [vmem:[#allocation209_spill] sm:$0xff]  ;;  %v14319_v61 = vld [vmem:[#allocation59_spill] sm:$0xff] }
 0x3fb   : > { %5349 = vrot.lane.b32.xlu1 %v14287_v57, %s7848_s17  ;;  %v6102_v63 = vsel %vm6094_vm5, %v6037_v1, %v5387_v12  ;;  %v5649_v16 = vsel %vm5639_vm13, %v5584_v50, %v14301_v56  ;;  %v5521_v1 = vsel %vm5509_vm11, %v5456_v26, %v14305_v27  ;;  %v14317_v34 = vld [vmem:[#allocation213_spill] sm:$0xff]  ;;  %v14323_v26 = vld [vmem:[#allocation240_spill] sm:$0xff]  ;;  %v14326_v8 = vld [vmem:[#allocation115_spill] sm:$0xff] }
 0x3fc   : > { %5396 = vrot.lane.b32.xlu0 %v14262_v47, %s7849_s18  ;;  %7703 = vmatmul.mubr.msk.bf16.gmra.mxu0 %vm6183_vm6, %v6102_v63  ;;  %v6004_v47 = vsel %vm5964_vm2, %v5939_v35, %v5261_v38  ;;  %v14290_v38 = vld [vmem:[#allocation210_spill] sm:$0xff]  ;;  %v5586_v20 = vsel %vm5574_vm12, %v5521_v1, %v14306_v28  ;;  %v14307_v63 = vld [vmem:[#allocation204_spill] sm:$0xff]  ;;  %v14313_v35 = vld [vmem:[#allocation83_spill] sm:$0xff] }
 0x3fd   : > { %v5417_v41 = vpop.permute.xlu1 %5416  ;;  %v6069_v52 = vsel %vm6029_vm3, %v6004_v47, %v5340_v18  ;;  %v14304_v18 = vld [vmem:[#allocation72_spill] sm:$0xff]  ;;  %v14318_v21 = vld [vmem:[#allocation129_spill] sm:$0xff] }
 0x3fe   : > { %v6132_v29 = vsel %vm6094_vm5, %v6067_v59, %v5417_v41  ;;  %v5093_v39 = vpop.permute.xlu0 %5092  ;;  %v5714_v55 = vsel %vm5704_vm14, %v5649_v16, %v14304_v18  ;;  %v5651_v59 = vsel %vm5639_vm13, %v5586_v20, %v14310_v9  ;;  %v5488_v50 = vsel %vm5444_vm10, %v14319_v61, %v14318_v21  ;;  %v14320_v56 = vld [vmem:[#allocation225_spill] sm:$0xff]  ;;  %v14336_v21 = vld [vmem:[#allocation55_spill] sm:$0xff] }
 0x3ff   : > { %5351 = vrot.lane.b32.xlu1 %v14288_v13, %s7848_s17  ;;  %7734 = vmatprep.mubr.msk.bf16.mxu1 %vm6183_vm6, %v6132_v29  ;;  %v5779_v12 = vsel %vm5769_vm15, %v5714_v55, %v11449_v48  ;;  %v14311_v48 = vld [vmem:[#allocation33_spill] sm:$0xff]  ;;  %v5551_v29 = vsel %vm5509_vm11, %v5486_v10, %v14312_v58 }
 0x400   : > { %5398 = vrot.lane.b32.xlu0 %v14289_v0, %s7849_s18  ;;  %v5844_v57 = vsel %vm5834_vm0, %v5779_v12, %v5093_v39  ;;  %v5716_v39 = vsel %vm5704_vm14, %v5651_v59, %v14313_v35  ;;  %v14324_v1 = vld [vmem:[#allocation133_spill] sm:$0xff]  ;;  %v14329_v35 = vld [vmem:[#allocation122_spill] sm:$0xff] }
 0x401   : > { %v5419_v3 = vpop.permute.xlu1 %5418  ;;  %v14337_v61 = vld [vmem:[#allocation89_spill] sm:$0xff] }
 0x402   : > { %v6134_v19 = vsel %vm6094_vm5, %v6069_v52, %v5419_v3  ;;  %v5095_v31 = vpop.permute.xlu0 %5094  ;;  %v14315_v3 = vld [vmem:[#allocation234_spill] sm:$0xff] }
 0x403   : > { %5428 = vrot.lane.b32.xlu1 %v14264_v54, %s7849_s18  ;;  %7735 = vmatmul.mubr.msk.bf16.gmra.mxu1 %vm6183_vm6, %v6134_v19  ;;  %v14292_v54 = vld [vmem:[#allocation41_spill] sm:$0xff]  ;;  %v5781_v19 = vsel %vm5769_vm15, %v5716_v39, %v14315_v3 }
 0x404   : > { %5104 = vrot.lane.b32.xlu0 %v14289_v0, %s7845_s8  ;;  %v14314_v0 = vld [vmem:[#allocation142_spill] sm:$0xff]  ;;  %v5846_v46 = vsel %vm5834_vm0, %v5781_v19, %v5095_v31  ;;  %v14322_v31 = vld [vmem:[#allocation211_spill] sm:$0xff]  ;;  %v14330_v39 = vld [vmem:[#allocation181_spill] sm:$0xff] }
 0x405   : > { %v5125_v30 = vpop.permute.xlu1 %5124  ;;  %v5616_v52 = vsel %vm5574_vm12, %v5551_v29, %v14314_v0  ;;  %v5553_v23 = vsel %vm5509_vm11, %v5488_v50, %v14322_v31  ;;  %v14338_v50 = vld [vmem:[#allocation25_spill] sm:$0xff] }
 0x406   : > { %v5162_v40 = vpop.permute.xlu0 %5161  ;;  %v5618_v12 = vsel %vm5574_vm12, %v5553_v23, %v14324_v1  ;;  %v14340_v23 = vld [vmem:[#allocation84_spill] sm:$0xff]  ;;  %v14343_v1 = vld [vmem:[#allocation94_spill] sm:$0xff] }
 0x407   : > { %5430 = vrot.lane.b32.xlu1 %v14290_v38, %s7849_s18  ;;  %v5909_v41 = vsel %vm5899_vm1, %v5844_v57, %v5162_v40  ;;  %v14325_v57 = vld [vmem:[#allocation173_spill] sm:$0xff] }
 0x408   : > { %5106 = vrot.lane.b32.xlu0 %v14291_v37, %s7845_s8 }
 0x409   : > { %v11809_v6 = vpop.permute.xlu1 %5126 }
 0x40a   : > { %v5164_v32 = vpop.permute.xlu0 %5163 }
 0x40b   : > { %5136 = vrot.lane.b32.xlu1 %v14290_v38, %s7845_s8 }
 0x40c   : > { %5173 = vrot.lane.b32.xlu0 %v14292_v54, %s7846_s9 }
 0x40d   : > { %v5194_v4 = vpop.permute.xlu1 %5193 }
 0x40e   : > { %v5231_v24 = vpop.permute.xlu0 %5230 }
 0x40f   : > { %5138 = vrot.lane.b32.xlu1 %v14293_v43, %s7845_s8  ;;  %v5974_v13 = vsel %vm5964_vm2, %v5909_v41, %v5231_v24 }
 0x410   : > { %5175 = vrot.lane.b32.xlu0 %v14294_v45, %s7846_s9 }
 0x411   : > { %v11819_v22 = vpop.permute.xlu1 %5195 }
 0x412   : > { %v5233_v49 = vpop.permute.xlu0 %5232 }
 0x413   : > { %5205 = vrot.lane.b32.xlu1 %v14295_v51, %s7846_s9 }
 0x414   : > { %5242 = vrot.lane.b32.xlu0 %v14296_v60, %s7847_s12  ;;  %v14316_v60 = vld [vmem:[#allocation50_spill] sm:$0xff] }
 0x415   : > { %v5263_v14 = vpop.permute.xlu1 %5262  ;;  %v5681_v25 = vsel %vm5639_vm13, %v5616_v52, %v14316_v60 }
 0x416   : > { %v5310_v33 = vpop.permute.xlu0 %5309  ;;  %v5746_v16 = vsel %vm5704_vm14, %v5681_v25, %v14320_v56  ;;  %v14334_v25 = vld [vmem:[#allocation53_spill] sm:$0xff]  ;;  %v5458_v56 = vsel %vm5444_vm10, %v14338_v50, %v14337_v61  ;;  %v14357_v50 = vld [vmem:[#allocation76_spill] sm:$0xff] }
 0x417   : > { %5207 = vrot.lane.b32.xlu1 %v14300_v42, %s7846_s9  ;;  %v6039_v40 = vsel %vm6029_vm3, %v5974_v13, %v5310_v33  ;;  %v5911_v33 = vsel %vm5899_vm1, %v5846_v46, %v5164_v32  ;;  %v5811_v18 = vsel %vm5769_vm15, %v5746_v16, %v14323_v26 }
 0x418   : > { %5244 = vrot.lane.b32.xlu0 %v14302_v53, %s7847_s12  ;;  %v14321_v53 = vld [vmem:[#allocation56_spill] sm:$0xff]  ;;  %v5976_v55 = vsel %vm5964_vm2, %v5911_v33, %v5233_v49  ;;  %v5876_v28 = vsel %vm5834_vm0, %v5811_v18, %v5125_v30  ;;  %v14327_v49 = vld [vmem:[#allocation226_spill] sm:$0xff]  ;;  %v14341_v18 = vld [vmem:[#allocation137_spill] sm:$0xff] }
 0x419   : > { %v5265_v44 = vpop.permute.xlu1 %5264  ;;  %v5941_v15 = vsel %vm5899_vm1, %v5876_v28, %v5194_v4  ;;  %v14328_v30 = vld [vmem:[#allocation242_spill] sm:$0xff]  ;;  %v14345_v28 = vld [vmem:[#allocation20_spill] sm:$0xff] }
 0x41a   : > { %v5312_v2 = vpop.permute.xlu0 %5311  ;;  %v6006_v59 = vsel %vm5964_vm2, %v5941_v15, %v5263_v14  ;;  %v14339_v33 = vld [vmem:[#allocation182_spill] sm:$0xff]  ;;  %v14347_v15 = vld [vmem:[#allocation176_spill] sm:$0xff] }
 0x41b   : > { %5274 = vrot.lane.b32.xlu1 %v14307_v63, %s7847_s12  ;;  %v6041_v32 = vsel %vm6029_vm3, %v5976_v55, %v5312_v2  ;;  %v5683_v63 = vsel %vm5639_vm13, %v5618_v12, %v14325_v57  ;;  %v14342_v55 = vld [vmem:[#allocation180_spill] sm:$0xff]  ;;  %v14344_v12 = vld [vmem:[#allocation90_spill] sm:$0xff] }
 0x41c   : > { %5321 = vrot.lane.b32.xlu0 %v14311_v48, %s7848_s17  ;;  %v5748_v9 = vsel %vm5704_vm14, %v5683_v63, %v14327_v49 }
 0x41d   : > { %v5342_v47 = vpop.permute.xlu1 %5341  ;;  %v5813_v2 = vsel %vm5769_vm15, %v5748_v9, %v14328_v30 }
 0x41e   : > { %v5389_v38 = vpop.permute.xlu0 %5388  ;;  %v6071_v4 = vsel %vm6029_vm3, %v6006_v59, %v5342_v47  ;;  %v5878_v48 = vsel %vm5834_vm0, %v5813_v2, %v11809_v6  ;;  %v14349_v59 = vld [vmem:[#allocation100_spill] sm:$0xff] }
 0x41f   : > { %5276 = vrot.lane.b32.xlu1 %v14317_v34, %s7847_s12  ;;  %v6104_v24 = vsel %vm6094_vm5, %v6039_v40, %v5389_v38  ;;  %v5943_v14 = vsel %vm5899_vm1, %v5878_v48, %v11819_v22  ;;  %v14332_v40 = vld [vmem:[#allocation138_spill] sm:$0xff]  ;;  %v14352_v48 = vld [vmem:[#allocation68_spill] sm:$0xff] }
 0x420   : > { %5323 = vrot.lane.b32.xlu0 %v14321_v53, %s7848_s17  ;;  %7706 = vmatprep.mubr.msk.bf16.mxu0 %vm6183_vm6, %v6104_v24  ;;  %v14335_v24 = vld [vmem:[#allocation215_spill] sm:$0xff]  ;;  %v5523_v53 = vsel %vm5509_vm11, %v5458_v56, %v14339_v33  ;;  %v3032_v56 = vshrl.u32 %v14357_v50, 16 }
 0x421   : > { %v5344_v27 = vpop.permute.xlu1 %5343  ;;  %v5588_v26 = vsel %vm5574_vm12, %v5523_v53, %v14340_v23  ;;  %v14358_v33 = vld [vmem:[#allocation43_spill] sm:$0xff]  ;;  %v14359_v23 = vld [vmem:[#allocation148_spill] sm:$0xff] }
 0x422   : > { %v5391_v20 = vpop.permute.xlu0 %5390 }
 0x423   : > { %5353 = vrot.lane.b32.xlu1 %v14326_v8, %s7848_s17  ;;  %v6106_v10 = vsel %vm6094_vm5, %v6041_v32, %v5391_v20  ;;  %v5460_v32 = vsel %vm5444_vm10, %v14345_v28, %v14344_v12  ;;  %v14346_v20 = vld [vmem:[#allocation86_spill] sm:$0xff]  ;;  %v14361_v28 = vld [vmem:[#allocation216_spill] sm:$0xff] }
 0x424   : > { %5400 = vrot.lane.b32.xlu0 %v14291_v37, %s7849_s18  ;;  %7707 = vmatmul.mubr.msk.bf16.gmra.mxu0 %vm6183_vm6, %v6106_v10  ;;  %v6008_v37 = vsel %vm5964_vm2, %v5943_v14, %v5265_v44  ;;  %v14331_v44 = vld [vmem:[#allocation214_spill] sm:$0xff]  ;;  %v5525_v8 = vsel %vm5509_vm11, %v5460_v32, %v14347_v15  ;;  %v14348_v10 = vld [vmem:[#allocation233_spill] sm:$0xff] }
 0x425   : > { %v5421_v41 = vpop.permute.xlu1 %5420  ;;  %v6073_v13 = vsel %vm6029_vm3, %v6008_v37, %v5344_v27  ;;  %v5653_v27 = vsel %vm5639_vm13, %v5588_v26, %v14342_v55  ;;  %v5590_v30 = vsel %vm5574_vm12, %v5525_v8, %v14349_v59  ;;  %v14353_v14 = vld [vmem:[#allocation113_spill] sm:$0xff]  ;;  %v14362_v32 = vld [vmem:[#allocation130_spill] sm:$0xff] }
 0x426   : > { %v6136_v58 = vsel %vm6094_vm5, %v6071_v4, %v5421_v41  ;;  %v5097_v29 = vpop.permute.xlu0 %5096  ;;  %v5718_v57 = vsel %vm5704_vm14, %v5653_v27, %v14346_v20  ;;  %v14350_v4 = vld [vmem:[#allocation144_spill] sm:$0xff]  ;;  %v14363_v20 = vld [vmem:[#allocation75_spill] sm:$0xff]  ;;  %v14364_v15 = vld [vmem:[#allocation158_spill] sm:$0xff] }
 0x427   : > { %5355 = vrot.lane.b32.xlu1 %v14329_v35, %s7848_s17  ;;  %7738 = vmatprep.mubr.msk.bf16.mxu1 %vm6183_vm6, %v6136_v58  ;;  %v5783_v49 = vsel %vm5769_vm15, %v5718_v57, %v14348_v10  ;;  %v14351_v41 = vld [vmem:[#allocation116_spill] sm:$0xff]  ;;  %v5492_v57 = vsel %vm5444_vm10, %v14363_v20, %v14362_v32  ;;  %v14365_v10 = vld [vmem:[#allocation42_spill] sm:$0xff]  ;;  %v14367_v59 = vld [vmem:[#allocation241_spill] sm:$0xff] }
 0x428   : > { %5402 = vrot.lane.b32.xlu0 %v14330_v39, %s7849_s18  ;;  %v5848_v2 = vsel %vm5834_vm0, %v5783_v49, %v5097_v29  ;;  %v5490_v58 = vsel %vm5444_vm10, %v14352_v48, %v14351_v41  ;;  %v14360_v27 = vld [vmem:[#allocation92_spill] sm:$0xff]  ;;  %v14368_v48 = vld [vmem:[#allocation23_spill] sm:$0xff] }
 0x429   : > { %v5423_v47 = vpop.permute.xlu1 %5422 }
 0x42a   : > { %v6138_v6 = vsel %vm6094_vm5, %v6073_v13, %v5423_v47  ;;  %v5099_v0 = vpop.permute.xlu0 %5098  ;;  %v14355_v13 = vld [vmem:[#allocation212_spill] sm:$0xff] }
 0x42b   : > { %5432 = vrot.lane.b32.xlu1 %v14293_v43, %s7849_s18  ;;  %7739 = vmatmul.mubr.msk.bf16.gmra.mxu1 %vm6183_vm6, %v6138_v6  ;;  %v14333_v43 = vld [vmem:[#allocation168_spill] sm:$0xff]  ;;  %v5555_v47 = vsel %vm5509_vm11, %v5490_v58, %v14355_v13  ;;  %v14356_v6 = vld [vmem:[#allocation119_spill] sm:$0xff]  ;;  %v3264_v58 = vadd.bf16 %v3032_v56, %v14368_v48  ;;  %v14370_v13 = vld [vmem:[#allocation9_spill] sm:$0xff] }
 0x42c   : > { %5061 = vrot.lane.b32.xlu0 %v14329_v35, %s7844_s7  ;;  %v5655_v35 = vsel %vm5639_vm13, %v5590_v30, %v14353_v14  ;;  %v5620_v53 = vsel %vm5574_vm12, %v5555_v47, %v14358_v33  ;;  %v14369_v14 = vld [vmem:[#allocation157_spill] sm:$0xff] }
 0x42d   : > { %v5129_v22 = vpop.permute.xlu1 %5128  ;;  %v5720_v29 = vsel %vm5704_vm14, %v5655_v35, %v14356_v6 }
 0x42e   : > { %v5166_v52 = vpop.permute.xlu0 %5165 }
 0x42f   : > { %5434 = vrot.lane.b32.xlu1 %v14331_v44, %s7849_s18  ;;  %v5913_v37 = vsel %vm5899_vm1, %v5848_v2, %v5166_v52  ;;  %v5785_v52 = vsel %vm5769_vm15, %v5720_v29, %v14359_v23  ;;  %v14371_v29 = vld [vmem:[#allocation217_spill] sm:$0xff] }
 0x430   : > { %5108 = vrot.lane.b32.xlu0 %v14330_v39, %s7845_s8  ;;  %v14354_v39 = vld [vmem:[#allocation102_spill] sm:$0xff]  ;;  %v5850_v12 = vsel %vm5834_vm0, %v5785_v52, %v5099_v0 }
 0x431   : > { %v11931_v3 = vpop.permute.xlu1 %5130  ;;  %v14366_v0 = vld [vmem:[#allocation6_spill] sm:$0xff] }
 0x432   : > { %v5168_v19 = vpop.permute.xlu0 %5167  ;;  %v5557_v49 = vsel %vm5509_vm11, %v5492_v57, %v14366_v0  ;;  %v14394_v0 = vld [vmem:[#allocation143_spill] sm:$0xff] }
 0x433   : > { %5063 = vrot.lane.b32.xlu1 %v14332_v40, %s7844_s7  ;;  %v5622_v35 = vsel %vm5574_vm12, %v5557_v49, %v14369_v14 }
 0x434   : > { %5110 = vrot.lane.b32.xlu0 %v14333_v43, %s7845_s8  ;;  %v5687_v47 = vsel %vm5639_vm13, %v5622_v35, %v14370_v13  ;;  %v14381_v35 = vld [vmem:[#allocation16_spill] sm:$0xff] }
 0x435   : > { %v5198_v38 = vpop.permute.xlu1 %5197 }
 0x436   : > { %v5235_v60 = vpop.permute.xlu0 %5234 }
 0x437   : > { %5140 = vrot.lane.b32.xlu1 %v14331_v44, %s7845_s8  ;;  %v5978_v44 = vsel %vm5964_vm2, %v5913_v37, %v5235_v60 }
 0x438   : > { %5177 = vrot.lane.b32.xlu0 %v14334_v25, %s7846_s9 }
 0x439   : > { %v11941_v46 = vpop.permute.xlu1 %5199 }
 0x43a   : > { %v5237_v34 = vpop.permute.xlu0 %5236 }
 0x43b   : > { %5142 = vrot.lane.b32.xlu1 %v14335_v24, %s7845_s8 }
 0x43c   : > { %5179 = vrot.lane.b32.xlu0 %v14336_v21, %s7846_s9 }
 0x43d   : > { %v5267_v16 = vpop.permute.xlu1 %5266 }
 0x43e   : > { %v5314_v31 = vpop.permute.xlu0 %5313 }
 0x43f   : > { %5209 = vrot.lane.b32.xlu1 %v14341_v18, %s7846_s9  ;;  %v6043_v26 = vsel %vm6029_vm3, %v5978_v44, %v5314_v31  ;;  %v5915_v31 = vsel %vm5899_vm1, %v5850_v12, %v5168_v19  ;;  %v14372_v44 = vld [vmem:[#allocation193_spill] sm:$0xff] }
 0x440   : > { %5246 = vrot.lane.b32.xlu0 %v14343_v1, %s7847_s12  ;;  %v5685_v1 = vsel %vm5639_vm13, %v5620_v53, %v14360_v27  ;;  %v5980_v2 = vsel %vm5964_vm2, %v5915_v31, %v5237_v34  ;;  %v5752_v56 = vsel %vm5704_vm14, %v5687_v47, %v14372_v44 }
 0x441   : > { %v5269_v63 = vpop.permute.xlu1 %5268  ;;  %v5750_v8 = vsel %vm5704_vm14, %v5685_v1, %v14364_v15 }
 0x442   : > { %v5316_v9 = vpop.permute.xlu0 %5315  ;;  %v5815_v30 = vsel %vm5769_vm15, %v5750_v8, %v14367_v59 }
 0x443   : > { %5211 = vrot.lane.b32.xlu1 %v14350_v4, %s7846_s9  ;;  %v5880_v19 = vsel %vm5834_vm0, %v5815_v30, %v5129_v22  ;;  %v6045_v37 = vsel %vm6029_vm3, %v5980_v2, %v5316_v9  ;;  %v14373_v22 = vld [vmem:[#allocation63_spill] sm:$0xff]  ;;  %v14374_v9 = vld [vmem:[#allocation244_spill] sm:$0xff] }
 0x444   : > { %5248 = vrot.lane.b32.xlu0 %v14354_v39, %s7847_s12  ;;  %v5945_v6 = vsel %vm5899_vm1, %v5880_v19, %v5198_v38  ;;  %v5817_v53 = vsel %vm5769_vm15, %v5752_v56, %v14374_v9  ;;  %v14384_v9 = vld [vmem:[#allocation38_spill] sm:$0xff] }
 0x445   : > { %v5346_v61 = vpop.permute.xlu1 %5345  ;;  %v6010_v33 = vsel %vm5964_vm2, %v5945_v6, %v5267_v16  ;;  %v5882_v27 = vsel %vm5834_vm0, %v5817_v53, %v11931_v3  ;;  %v14382_v6 = vld [vmem:[#allocation169_spill] sm:$0xff] }
 0x446   : > { %v5393_v55 = vpop.permute.xlu0 %5392  ;;  %v6075_v38 = vsel %vm6029_vm3, %v6010_v33, %v5346_v61  ;;  %v5947_v12 = vsel %vm5899_vm1, %v5882_v27, %v11941_v46 }
 0x447   : > { %5278 = vrot.lane.b32.xlu1 %v14361_v28, %s7847_s12  ;;  %v6108_v60 = vsel %vm6094_vm5, %v6043_v26, %v5393_v55  ;;  %v3375_v26 = vsel %vm7938_vm4, 0, %v3264_v58  ;;  %v1762_v55 = vshrl.u32 %v14368_v48, 16  ;;  %v6012_v61 = vsel %vm5964_vm2, %v5947_v12, %v5269_v63  ;;  %v14378_v63 = vld [vmem:[#allocation190_spill] sm:$0xff]  ;;  %v14388_v12 = vld [vmem:[#allocation104_spill] sm:$0xff] }
 0x448   : > { %5325 = vrot.lane.b32.xlu0 %v14365_v10, %s7848_s17  ;;  %7710 = vmatprep.mubr.msk.bf16.mxu0 %vm6183_vm6, %v6108_v60  ;;  %v7483_v28 = vcombine.low %v3375_v26, %v3375_v26  ;;  %v14376_v60 = vld [vmem:[#allocation126_spill] sm:$0xff] }
 0x449   : > { %v5348_v41 = vpop.permute.xlu1 %5347  ;;  %v4996_v3 = vshll.u32 %v14376_v60, 16  ;;  %v1994_v57 = vadd.bf16 %v1762_v55, %v14357_v50  ;;  %v14386_v55 = vld [vmem:[#allocation21_spill] sm:$0xff] }
 0x44a   : > { %v5395_v39 = vpop.permute.xlu0 %5394  ;;  %v6077_v32 = vsel %vm6029_vm3, %v6012_v61, %v5348_v41  ;;  %v5001_v31 = vshll.u32 %v7483_v28, 16  ;;  %v14380_v41 = vld [vmem:[#allocation13_spill] sm:$0xff]  ;;  %v14389_v61 = vld [vmem:[#allocation19_spill] sm:$0xff] }
 0x44b   : > { %5280 = vrot.lane.b32.xlu1 %v14371_v29, %s7847_s12  ;;  %v6110_v34 = vsel %vm6094_vm5, %v6045_v37, %v5395_v39  ;;  %v4998_v8 = vrot.slane %v4996_v3, 1  ;;  %v2105_v50 = vsel %vm10480_vm9, 0, %v1994_v57  ;;  %v5075_v48 = vshll.u32 %v14380_v41, 16  ;;  %v14390_v3 = vld [vmem:[#allocation88_spill] sm:$0xff]  ;;  %v14391_v57 = vld [vmem:[#allocation170_spill] sm:$0xff] }
 0x44c   : > { %5327 = vrot.lane.b32.xlu0 %v14373_v22, %s7848_s17  ;;  %7711 = vmatmul.mubr.msk.bf16.gmra.mxu0 %vm6183_vm6, %v6110_v34  ;;  %v5003_v30 = vrot.slane %v5001_v31, 1  ;;  %v7484_v2 = vcombine.low %v2105_v50, %v2105_v50  ;;  %v14383_v22 = vld [vmem:[#allocation95_spill] sm:$0xff]  ;;  %v5464_v28 = vsel %vm5444_vm10, %v14389_v61, %v14388_v12  ;;  %v14405_v12 = vld [vmem:[#allocation97_spill] sm:$0xff] }
 0x44d   : > { %v5425_v23 = vpop.permute.xlu1 %5424  ;;  %v5077_v37 = vrot.slane %v5075_v48, 1  ;;  %v5462_v53 = vsel %vm5444_vm10, %v14384_v9, %v14383_v22  ;;  %v14395_v50 = vld [vmem:[#allocation103_spill] sm:$0xff]  ;;  %v14401_v9 = vld [vmem:[#allocation237_spill] sm:$0xff] }
 0x44e   : > { %v6140_v16 = vsel %vm6094_vm5, %v6075_v38, %v5425_v23  ;;  %v12039_v1 = vpop.permute.xlu0 %5100  ;;  %v5080_v39 = vshll.u32 %v7484_v2, 16  ;;  %v14385_v23 = vld [vmem:[#allocation184_spill] sm:$0xff] }
 0x44f   : > { %5357 = vrot.lane.b32.xlu1 %v14332_v40, %s7848_s17  ;;  %7742 = vmatprep.mubr.msk.bf16.mxu1 %vm6183_vm6, %v6140_v16  ;;  %v14377_v40 = vld [vmem:[#allocation151_spill] sm:$0xff]  ;;  %v5527_v52 = vsel %vm5509_vm11, %v5462_v53, %v14385_v23  ;;  %v14387_v16 = vld [vmem:[#allocation96_spill] sm:$0xff] }
 0x450   : > { %5404 = vrot.lane.b32.xlu0 %v14333_v43, %s7849_s18  ;;  %v4994_v43 = vshrl.u32 %v14376_v60, 16  ;;  %v5082_v34 = vrot.slane %v5080_v39, 1  ;;  %v5592_v27 = vsel %vm5574_vm12, %v5527_v52, %v14386_v55  ;;  %v14399_v39 = vld [vmem:[#allocation131_spill] sm:$0xff] }
 0x451   : > { %v5427_v20 = vpop.permute.xlu1 %5426  ;;  %v14402_v52 = vld [vmem:[#allocation11_spill] sm:$0xff] }
 0x452   : > { %v6142_v46 = vsel %vm6094_vm5, %v6077_v32, %v5427_v20  ;;  %v12053_v15 = vpop.permute.xlu0 %5102  ;;  %v4999_v59 = vor.u32 %v4998_v8, %v4994_v43  ;;  %v14393_v8 = vld [vmem:[#allocation39_spill] sm:$0xff] }
 0x453   : > { %5359 = vrot.lane.b32.xlu1 %v14377_v40, %s7848_s17  ;;  %7743 = vmatmul.mubr.msk.bf16.gmra.mxu1 %vm6183_vm6, %v6142_v46  ;;  %v5529_v46 = vsel %vm5509_vm11, %v5464_v28, %v14391_v57  ;;  %v14406_v28 = vld [vmem:[#allocation227_spill] sm:$0xff] }
 0x454   : > { %5406 = vrot.lane.b32.xlu0 %v14378_v63, %s7849_s18  ;;  %v12077_v19 = vsel %vm3859_vm7, %v4999_v59, %v5003_v30  ;;  %v5594_v31 = vsel %vm5574_vm12, %v5529_v46, %v14393_v8  ;;  %v5494_v59 = vsel %vm5444_vm10, %v14395_v50, %v14394_v0  ;;  %v14396_v30 = vld [vmem:[#allocation203_spill] sm:$0xff] }
 0x455   : > { %v12061_v10 = vpop.permute.xlu1 %5132  ;;  %v5659_v2 = vsel %vm5639_vm13, %v5594_v31, %v14396_v30  ;;  %v14409_v46 = vld [vmem:[#allocation243_spill] sm:$0xff]  ;;  %v14410_v31 = vld [vmem:[#allocation150_spill] sm:$0xff] }
 0x456   : > { %v5170_v49 = vpop.permute.xlu0 %5169 }
 0x457   : > { %5436 = vrot.lane.b32.xlu1 %v14335_v24, %s7849_s18  ;;  %v5073_v24 = vshrl.u32 %v14380_v41, 16 }
 0x458   : > { %5065 = vrot.lane.b32.xlu0 %v14377_v40, %s7844_s7  ;;  %v14392_v40 = vld [vmem:[#allocation235_spill] sm:$0xff] }
 0x459   : > { %v12070_v58 = vpop.permute.xlu1 %5134  ;;  %v5078_v29 = vor.u32 %v5077_v37, %v5073_v24  ;;  %v14398_v24 = vld [vmem:[#allocation5_spill] sm:$0xff] }
 0x45a   : > { %v5172_v14 = vpop.permute.xlu0 %5171  ;;  %v5559_v37 = vsel %vm5509_vm11, %v5494_v59, %v14398_v24  ;;  %v14411_v59 = vld [vmem:[#allocation8_spill] sm:$0xff] }
 0x45b   : > { %5438 = vrot.lane.b32.xlu1 %v14381_v35, %s7849_s18  ;;  %v12091_v33 = vsel %vm3859_vm7, %v5078_v29, %v5082_v34  ;;  %v14400_v34 = vld [vmem:[#allocation62_spill] sm:$0xff]  ;;  %vm7129_vm7 = vcmask 125952  }
 0x45c   : > { %5112 = vrot.lane.b32.xlu0 %v14378_v63, %s7845_s8  ;;  %v5624_v22 = vsel %vm5574_vm12, %v5559_v37, %v14400_v34  ;;  %v14415_v34 = vld [vmem:[#allocation4_spill] sm:$0xff] }
 0x45d   : > { %v5202_v13 = vpop.permute.xlu1 %5201  ;;  %v5689_v55 = vsel %vm5639_vm13, %v5624_v22, %v14402_v52  ;;  %v14418_v52 = vld [vmem:[#allocation177_spill] sm:$0xff] }
 0x45e   : > { %v5239_v47 = vpop.permute.xlu0 %5238 }
 0x45f   : > { %5067 = vrot.lane.b32.xlu1 %v12077_v19, %s7844_s7 }
 0x460   : > { %5114 = vrot.lane.b32.xlu0 %v14382_v6, %s7845_s8 }
 0x461   : > { %v12084_v44 = vpop.permute.xlu1 %5203 }
 0x462   : > { %v5241_v56 = vpop.permute.xlu0 %5240 }
 0x463   : > { %5144 = vrot.lane.b32.xlu1 %v14381_v35, %s7845_s8  ;;  %v14397_v35 = vld [vmem:[#allocation109_spill] sm:$0xff] }
 0x464   : > { %5181 = vrot.lane.b32.xlu0 %v14255_v62, %s7846_s9  ;;  %v5657_v62 = vsel %vm5639_vm13, %v5592_v27, %v14387_v16  ;;  %v14403_v16 = vld [vmem:[#allocation218_spill] sm:$0xff] }
 0x465   : > { %v5271_v38 = vpop.permute.xlu1 %5270  ;;  %v5722_v32 = vsel %vm5704_vm14, %v5657_v62, %v14390_v3  ;;  %v14404_v62 = vld [vmem:[#allocation149_spill] sm:$0xff]  ;;  %v5754_v3 = vsel %vm5704_vm14, %v5689_v55, %v14406_v28 }
 0x466   : > { %v5318_v26 = vpop.permute.xlu0 %5317  ;;  %v5787_v63 = vsel %vm5769_vm15, %v5722_v32, %v14392_v40  ;;  %v5496_v61 = vsel %vm5444_vm10, %v14405_v12, %v14404_v62  ;;  %v14407_v32 = vld [vmem:[#allocation118_spill] sm:$0xff]  ;;  %v5819_v40 = vsel %vm5769_vm15, %v5754_v3, %v14409_v46  ;;  %v14420_v12 = vld [vmem:[#allocation101_spill] sm:$0xff] }
 0x467   : > { %5146 = vrot.lane.b32.xlu1 %v12091_v33, %s7845_s8  ;;  %v14421_v3 = vld [vmem:[#allocation189_spill] sm:$0xff] }
 0x468   : > { %5183 = vrot.lane.b32.xlu0 %v14258_v17, %s7846_s9  ;;  %v5852_v17 = vsel %vm5834_vm0, %v5787_v63, %v12039_v1  ;;  %v5724_v1 = vsel %vm5704_vm14, %v5659_v2, %v14399_v39 }
 0x469   : > { %v5273_v20 = vpop.permute.xlu1 %5272  ;;  %v5917_v48 = vsel %vm5899_vm1, %v5852_v17, %v5170_v49  ;;  %v5789_v53 = vsel %vm5769_vm15, %v5724_v1, %v14401_v9  ;;  %v14416_v9 = vld [vmem:[#allocation57_spill] sm:$0xff] }
 0x46a   : > { %v5320_v43 = vpop.permute.xlu0 %5319  ;;  %v5854_v27 = vsel %vm5834_vm0, %v5789_v53, %v12053_v15  ;;  %v14408_v15 = vld [vmem:[#allocation31_spill] sm:$0xff] }
 0x46b   : > { %5213 = vrot.lane.b32.xlu1 %v14376_v60, %s7846_s9  ;;  %v5982_v60 = vsel %vm5964_vm2, %v5917_v48, %v5239_v47  ;;  %v5561_v57 = vsel %vm5509_vm11, %v5496_v61, %v14408_v15  ;;  %v14412_v48 = vld [vmem:[#allocation228_spill] sm:$0xff]  ;;  %v5466_v61 = vsel %vm5444_vm10, %v14263_v36, %v14420_v12  ;;  %v14422_v15 = vld [vmem:[#allocation111_spill] sm:$0xff] }
 0x46c   : > { %5250 = vrot.lane.b32.xlu0 %v14397_v35, %s7847_s12  ;;  %v6047_v49 = vsel %vm6029_vm3, %v5982_v60, %v5318_v26  ;;  %v5919_v26 = vsel %vm5899_vm1, %v5854_v27, %v5172_v14  ;;  %v5626_v17 = vsel %vm5574_vm12, %v5561_v57, %v14410_v31  ;;  %v5884_v14 = vsel %vm5834_vm0, %v5819_v40, %v12061_v10  ;;  %v14413_v10 = vld [vmem:[#allocation65_spill] sm:$0xff]  ;;  %v14424_v40 = vld [vmem:[#allocation136_spill] sm:$0xff]  ;;  %v14426_v31 = vld [vmem:[#allocation179_spill] sm:$0xff] }
 0x46d   : > { %v5350_v29 = vpop.permute.xlu1 %5349  ;;  %v5984_v63 = vsel %vm5964_vm2, %v5919_v26, %v5241_v56  ;;  %v5691_v30 = vsel %vm5639_vm13, %v5626_v17, %v14411_v59  ;;  %v5949_v2 = vsel %vm5899_vm1, %v5884_v14, %v5202_v13  ;;  %v5531_v26 = vsel %vm5509_vm11, %v5466_v61, %v14421_v3  ;;  %v14423_v57 = vld [vmem:[#allocation93_spill] sm:$0xff]  ;;  %v14440_v12 = vld [vmem:[#allocation183_spill] sm:$0xff] }
 0x46e   : > { %v5397_v23 = vpop.permute.xlu0 %5396  ;;  %v6049_v0 = vsel %vm6029_vm3, %v5984_v63, %v5320_v43  ;;  %v5756_v35 = vsel %vm5704_vm14, %v5691_v30, %v14412_v48  ;;  %v6014_v24 = vsel %vm5964_vm2, %v5949_v2, %v5271_v38  ;;  %v14414_v43 = vld [vmem:[#allocation246_spill] sm:$0xff]  ;;  %v5596_v46 = vsel %vm5574_vm12, %v5531_v26, %v14423_v57  ;;  %v14427_v14 = vld [vmem:[#allocation17_spill] sm:$0xff]  ;;  %v14441_v3 = vld [vmem:[#allocation191_spill] sm:$0xff] }
 0x46f   : > { %5215 = vrot.lane.b32.xlu1 %v14403_v16, %s7846_s9  ;;  %v6112_v47 = vsel %vm6094_vm5, %v6047_v49, %v5397_v23  ;;  %v5821_v37 = vsel %vm5769_vm15, %v5756_v35, %v14414_v43  ;;  %v6079_v13 = vsel %vm6029_vm3, %v6014_v24, %v5350_v29  ;;  %v5498_v63 = vsel %vm5444_vm10, %v14103_v7, %v14424_v40  ;;  %v14429_v59 = vld [vmem:[#allocation37_spill] sm:$0xff]  ;;  %v14431_v7 = vld [vmem:[#allocation110_spill] sm:$0xff]  ;;  %v12268_v57 = vld [vmem:[%s12838_s3] ss:$0 sm:$0xff] }
 0x470   : > { %5252 = vrot.lane.b32.xlu0 %v14407_v32, %s7847_s12  ;;  %7714 = vmatprep.mubr.msk.bf16.mxu0 %vm6183_vm6, %v6112_v47  ;;  %v14419_v47 = vld [vmem:[#allocation123_spill] sm:$0xff]  ;;  %v14430_v2 = vld [vmem:[#allocation117_spill] sm:$0xff]  ;;  %v14443_v40 = vld [vmem:[#allocation166_spill] sm:$0xff] }
 0x471   : > { %v5352_v8 = vpop.permute.xlu1 %5351 }
 0x472   : > { %v5399_v50 = vpop.permute.xlu0 %5398 }
 0x473   : > { %5282 = vrot.lane.b32.xlu1 %v14380_v41, %s7847_s12  ;;  %v6114_v56 = vsel %vm6094_vm5, %v6049_v0, %v5399_v50  ;;  %v5886_v41 = vsel %vm5834_vm0, %v5821_v37, %v12070_v58  ;;  %v5661_v0 = vsel %vm5639_vm13, %v5596_v46, %v14427_v14  ;;  %v14428_v50 = vld [vmem:[#allocation10_spill] sm:$0xff]  ;;  %v14442_v46 = vld [vmem:[#allocation245_spill] sm:$0xff] }
 0x474   : > { %5329 = vrot.lane.b32.xlu0 %v14413_v10, %s7848_s17  ;;  %7715 = vmatmul.mubr.msk.bf16.gmra.mxu0 %vm6183_vm6, %v6114_v56  ;;  %v5951_v38 = vsel %vm5899_vm1, %v5886_v41, %v12084_v44  ;;  %v5726_v48 = vsel %vm5704_vm14, %v5661_v0, %v14431_v7  ;;  %v14433_v10 = vld [vmem:[#allocation164_spill] sm:$0xff]  ;;  %v14434_v37 = vld [vmem:[#allocation206_spill] sm:$0xff]  ;;  %v12280_v0 = vstv %s12211_s19 }
 0x475   : > { %v5429_v39 = vpop.permute.xlu1 %5428  ;;  %v6016_v22 = vsel %vm5964_vm2, %v5951_v38, %v5273_v20  ;;  %v14417_v20 = vld [vmem:[#allocation221_spill] sm:$0xff]  ;;  %v12249_v38 = vld [vmem:[%s12837_s2] ss:$0 sm:$0xff] }
 0x476   : > { %v6144_v1 = vsel %vm6094_vm5, %v6079_v13, %v5429_v39  ;;  %v5105_v60 = vpop.permute.xlu0 %5104  ;;  %v6081_v29 = vsel %vm6029_vm3, %v6016_v22, %v5352_v8  ;;  %v14425_v8 = vld [vmem:[#allocation141_spill] sm:$0xff]  ;;  %v14435_v39 = vld [vmem:[#allocation236_spill] sm:$0xff] }
 0x477   : > { %5284 = vrot.lane.b32.xlu1 %v14415_v34, %s7847_s12  ;;  %7746 = vmatprep.mubr.msk.bf16.mxu1 %vm6183_vm6, %v6144_v1  ;;  %v5500_v36 = vsel %vm5444_vm10, %v14100_v5, %v14425_v8  ;;  %v14432_v5 = vld [vmem:[#allocation79_spill] sm:$0xff]  ;;  %v5791_v41 = vsel %vm5769_vm15, %v5726_v48, %v14435_v39 }
 0x478   : > { %5331 = vrot.lane.b32.xlu0 %v14416_v9, %s7848_s17  ;;  %v5565_v30 = vsel %vm5509_vm11, %v5500_v36, %v14429_v59  ;;  %v14436_v34 = vld [vmem:[#allocation7_spill] sm:$0xff]  ;;  %v14437_v9 = vld [vmem:[#allocation14_spill] sm:$0xff] }
 0x479   : > { %v5431_v53 = vpop.permute.xlu1 %5430  ;;  %v5630_v43 = vsel %vm5574_vm12, %v5565_v30, %v14433_v10 }
 0x47a   : > { %v6146_v58 = vsel %vm6094_vm5, %v6081_v29, %v5431_v53  ;;  %v5107_v49 = vpop.permute.xlu0 %5106  ;;  %v5695_v29 = vsel %vm5639_vm13, %v5630_v43, %v14437_v9  ;;  %v14438_v53 = vld [vmem:[#allocation197_spill] sm:$0xff] }
 0x47b   : > { %5361 = vrot.lane.b32.xlu1 %v12077_v19, %s7848_s17  ;;  %7747 = vmatmul.mubr.msk.bf16.gmra.mxu1 %vm6183_vm6, %v6146_v58  ;;  %v5760_v61 = vsel %vm5704_vm14, %v5695_v29, %v14440_v12 }
 0x47c   : > { %5408 = vrot.lane.b32.xlu0 %v14382_v6, %s7849_s18 }
 0x47d   : > { %v5137_v44 = vpop.permute.xlu1 %5136 }
 0x47e   : > { %v5174_v23 = vpop.permute.xlu0 %5173 }
 0x47f   : > { %5363 = vrot.lane.b32.xlu1 %v14417_v20, %s7848_s17  ;;  %v5856_v20 = vsel %vm5834_vm0, %v5791_v41, %v5105_v60 }
 0x480   : > { %5410 = vrot.lane.b32.xlu0 %v14418_v52, %s7849_s18  ;;  %v14439_v52 = vld [vmem:[#allocation145_spill] sm:$0xff] }
 0x481   : > { %v5139_v55 = vpop.permute.xlu1 %5138 }
 0x482   : > { %v5176_v27 = vpop.permute.xlu0 %5175 }
 0x483   : > { %5440 = vrot.lane.b32.xlu1 %v12091_v33, %s7849_s18  ;;  %v5468_v33 = vsel %vm5444_vm10, %v14265_v11, %v14422_v15  ;;  %v5563_v11 = vsel %vm5509_vm11, %v5498_v63, %v14428_v50  ;;  %v5921_v15 = vsel %vm5899_vm1, %v5856_v20, %v5174_v23  ;;  %v5825_v63 = vsel %vm5769_vm15, %v5760_v61, %v14443_v40 }
 0x484   : > { %v5533_v17 = vsel %vm5509_vm11, %v5468_v33, %v14426_v31  ;;  %v5628_v24 = vsel %vm5574_vm12, %v5563_v11, %v14432_v5 }
 0x485   : > { %v5206_v16 = vpop.permute.xlu1 %5205  ;;  %v5598_v56 = vsel %vm5574_vm12, %v5533_v17, %v14430_v2  ;;  %v5693_v22 = vsel %vm5639_vm13, %v5628_v24, %v14436_v34 }
 0x486   : > { %v5243_v19 = vpop.permute.xlu0 %5242  ;;  %v5663_v13 = vsel %vm5639_vm13, %v5598_v56, %v14434_v37  ;;  %v5890_v56 = vsel %vm5834_vm0, %v5825_v63, %v5139_v55 }
 0x487   : > { %5442 = vrot.lane.b32.xlu1 %v14419_v47, %s7849_s18  ;;  %v5728_v58 = vsel %vm5704_vm14, %v5663_v13, %v14438_v53  ;;  %v5758_v47 = vsel %vm5704_vm14, %v5693_v22, %v14439_v52  ;;  %v5986_v8 = vsel %vm5964_vm2, %v5921_v15, %v5243_v19 }
 0x488   : > { %v5793_v26 = vsel %vm5769_vm15, %v5728_v58, %v14441_v3  ;;  %v5823_v60 = vsel %vm5769_vm15, %v5758_v47, %v14442_v46 }
 0x489   : > { %v5208_v62 = vpop.permute.xlu1 %5207  ;;  %v5858_v23 = vsel %vm5834_vm0, %v5793_v26, %v5107_v49  ;;  %v5888_v17 = vsel %vm5834_vm0, %v5823_v60, %v5137_v44 }
 0x48a   : > { %v5245_v6 = vpop.permute.xlu0 %5244  ;;  %v5923_v59 = vsel %vm5899_vm1, %v5858_v23, %v5176_v27  ;;  %v5953_v49 = vsel %vm5899_vm1, %v5888_v17, %v5206_v16  ;;  %v5955_v24 = vsel %vm5899_vm1, %v5890_v56, %v5208_v62 }
 0x48b   : > { %v5988_v44 = vsel %vm5964_vm2, %v5923_v59, %v5245_v6 }
 0x48d   : > { %v5275_v28 = vpop.permute.xlu1 %5274 }
 0x48e   : > { %v5322_v32 = vpop.permute.xlu0 %5321  ;;  %v6018_v10 = vsel %vm5964_vm2, %v5953_v49, %v5275_v28 }
 0x48f   : > { %v6051_v14 = vsel %vm6029_vm3, %v5986_v8, %v5322_v32 }
 0x491   : > { %v12236_v35 = vpop.permute.xlu1 %5276 }
 0x492   : > { %v5324_v1 = vpop.permute.xlu0 %5323  ;;  %v6020_v61 = vsel %vm5964_vm2, %v5955_v24, %v12236_v35 }
 0x493   : > { %v6053_v55 = vsel %vm6029_vm3, %v5988_v44, %v5324_v1 }
 0x494   : > { %v7700_v33 = vpop.f32.mrf.mxu0 }
 0x495   : > { %v5354_v36 = vpop.permute.xlu1 %5353  ;;  %v6546_v31 = vmul.f32 %v7700_v33, %v12249_v38 }
 0x496   : > { %v5401_v50 = vpop.permute.xlu0 %5400  ;;  %v6282_v11 = vpop.f32.mrf.mxu0  ;;  %v6083_v34 = vsel %vm6029_vm3, %v6018_v10, %v5354_v36 }
 0x497   : > { %v6617_v30 = vadd.f32 %v12268_v57, %v6546_v31  ;;  %v6116_v2 = vsel %vm6094_vm5, %v6051_v14, %v5401_v50  ;;  %v6544_v19 = vmul.f32 %v12249_v38, %v6282_v11 }
 0x498   : > { %v7701_v32 = vpop.f32.mrf.mxu0  ;;  %7718 = vmatprep.mubr.msk.bf16.mxu0 %vm6183_vm6, %v6116_v2 }
 0x499   : > { %vm6682_vm4 = vcmp.gt.f32.partialorder %v6617_v30, 0.0  ;;  %v6747_v7 = vmul.f32 %v12280_v0, %v6617_v30  ;;  %v6615_v27 = vadd.f32 %v12268_v57, %v6544_v19  ;;  %v5356_v48 = vpop.permute.xlu1 %5355  ;;  %v6547_v5 = vmul.f32 %v7701_v32, %v12249_v38 }
 0x49a   : > { %v5403_v16 = vpop.permute.xlu0 %5402  ;;  %v6285_v6 = vpop.f32.mrf.mxu0  ;;  %v6085_v60 = vsel %vm6029_vm3, %v6020_v61, %v5356_v48  ;;  %v14450_v61 = vld [vmem:[#allocation45_spill] sm:$0xff] }
 0x49b   : > { %v6811_v43 = vsel %vm6682_vm4, %v6617_v30, %v6747_v7  ;;  %vm6680_vm8 = vcmp.gt.f32.partialorder %v6615_v27, 0.0  ;;  %v6745_v37 = vmul.f32 %v12280_v0, %v6615_v27  ;;  %v6618_v13 = vadd.f32 %v12268_v57, %v6547_v5  ;;  %v7732_v62 = vpop.f32.mrf.mxu1 }
 0x49c   : > { %v7595_v39 = vpack.c.bf16 %v6811_v43, %v6811_v43  ;;  %v6578_v28 = vmul.f32 %v7732_v62, %v12249_v38  ;;  %v6118_v41 = vsel %vm6094_vm5, %v6053_v55, %v5403_v16  ;;  %v6545_v1 = vmul.f32 %v12249_v38, %v6285_v6 }
 0x49d   : > { %v6809_v22 = vsel %vm6680_vm8, %v6615_v27, %v6745_v37  ;;  %vm6683_vm9 = vcmp.gt.f32.partialorder %v6618_v13, 0.0  ;;  %v6748_v9 = vmul.f32 %v12280_v0, %v6618_v13  ;;  %v6410_v29 = vpop.f32.mrf.mxu1  ;;  %v5433_v53 = vpop.permute.xlu1 %5432  ;;  %7719 = vmatmul.mubr.msk.bf16.gmra.mxu0 %vm6183_vm6, %v6118_v41 }
 0x49e   : > { %7132 = vst.msk [vmem:[%s12300_s29 + $0x8] sm:$0xf] %vm7129_vm7, %v7595_v39  ;;  %v7593_v58 = vpack.c.bf16 %v6809_v22, %v6809_v22  ;;  %v6649_v20 = vadd.f32 %v12268_v57, %v6578_v28  ;;  %v6616_v52 = vadd.f32 %v12268_v57, %v6545_v1  ;;  %v6576_v47 = vmul.f32 %v12249_v38, %v6410_v29  ;;  %v12315_v12 = vpop.permute.xlu0 %5061  ;;  %v14444_v28 = vld [vmem:[#allocation91_spill] sm:$0xff]  ;;  %v14445_v1 = vld [vmem:[#allocation105_spill] sm:$0xff]  ;;  %v14447_v29 = vld [vmem:[#allocation178_spill] sm:$0xff] }
 0x49f   : > { %v6812_v3 = vsel %vm6683_vm9, %v6618_v13, %v6748_v9  ;;  %v6148_v26 = vsel %vm6094_vm5, %v6083_v34, %v5433_v53  ;;  %v7733_v15 = vpop.f32.mrf.mxu1  ;;  %v5470_v41 = vsel %vm5444_vm10, %v14292_v54, %v14444_v28  ;;  %v5472_v34 = vsel %vm5444_vm10, %v14294_v45, %v14445_v1  ;;  %v14446_v22 = vld [vmem:[#allocation139_spill] sm:$0xff]  ;;  %v14451_v45 = vld [vmem:[#allocation29_spill] sm:$0xff] }
 0x4a0   : > { %7130 = vst.msk [vmem:[%s12300_s29] sm:$0xf] %vm7129_vm7, %v7593_v58  ;;  %v7596_v33 = vpack.c.bf16 %v6812_v3, %v6812_v3  ;;  %vm6714_vm4 = vcmp.gt.f32.partialorder %v6649_v20, 0.0  ;;  %v6779_v46 = vmul.f32 %v12280_v0, %v6649_v20  ;;  %vm6681_vm8 = vcmp.gt.f32.partialorder %v6616_v52, 0.0  ;;  %7750 = vmatprep.mubr.msk.bf16.mxu1 %vm6183_vm6, %v6148_v26  ;;  %v14464_v28 = vld [vmem:[#allocation239_spill] sm:$0xff] }
 0x4a1   : > { %v6746_v40 = vmul.f32 %v12280_v0, %v6616_v52  ;;  %v6647_v35 = vadd.f32 %v12268_v57, %v6576_v47  ;;  %v6579_v63 = vmul.f32 %v7733_v15, %v12249_v38  ;;  %v6413_v8 = vpop.f32.mrf.mxu1  ;;  %v5435_v36 = vpop.permute.xlu1 %5434  ;;  %v5502_v9 = vsel %vm5444_vm10, %v14295_v51, %v14446_v22  ;;  %v14449_v47 = vld [vmem:[#allocation185_spill] sm:$0xff]  ;;  %v14452_v51 = vld [vmem:[#allocation27_spill] sm:$0xff] }
 0x4a2   : > { %7133 = vst.msk [vmem:[%s12300_s29 + $0xc] sm:$0xf] %vm7129_vm7, %v7596_v33  ;;  %v6843_v31 = vsel %vm6714_vm4, %v6649_v20, %v6779_v46  ;;  %v6577_v23 = vmul.f32 %v12249_v38, %v6413_v8  ;;  %v6150_v17 = vsel %vm6094_vm5, %v6085_v60, %v5435_v36  ;;  %v5109_v14 = vpop.permute.xlu0 %5108  ;;  %v5535_v53 = vsel %vm5509_vm11, %v5470_v41, %v14447_v29  ;;  %v14448_v20 = vld [vmem:[#allocation140_spill] sm:$0xff]  ;;  %v14456_v8 = vld [vmem:[#allocation87_spill] sm:$0xff] }
 0x4a3   : > { %v7627_v50 = vpack.c.bf16 %v6843_v31, %v6843_v31  ;;  %v6810_v11 = vsel %vm6681_vm8, %v6616_v52, %v6746_v40  ;;  %vm6712_vm9 = vcmp.gt.f32.partialorder %v6647_v35, 0.0  ;;  %v6777_v59 = vmul.f32 %v12280_v0, %v6647_v35  ;;  %7751 = vmatmul.mubr.msk.bf16.gmra.mxu1 %vm6183_vm6, %v6150_v17  ;;  %v14453_v46 = vld [vmem:[#allocation44_spill] sm:$0xff]  ;;  %v14454_v40 = vld [vmem:[#allocation71_spill] sm:$0xff]  ;;  %v14457_v31 = vld [vmem:[#allocation18_spill] sm:$0xff] }
 0x4a4   : > { %v7594_v30 = vpack.c.bf16 %v6810_v11, %v6810_v11  ;;  %v6650_v2 = vadd.f32 %v12268_v57, %v6579_v63  ;;  %v6648_v19 = vadd.f32 %v12268_v57, %v6577_v23  ;;  %v5504_v52 = vsel %vm5444_vm10, %v14300_v42, %v14448_v20  ;;  %v14455_v42 = vld [vmem:[#allocation205_spill] sm:$0xff]  ;;  %v14458_v17 = vld [vmem:[#allocation24_spill] sm:$0xff] }
 0x4a5   : > { %7164 = vst.msk [vmem:[%s12300_s29 + $0x88] sm:$0xf] %vm7129_vm7, %v7627_v50  ;;  %v6841_v56 = vsel %vm6712_vm9, %v6647_v35, %v6777_v59  ;;  %v12338_v49 = vpop.permute.xlu1 %5063  ;;  %v5537_v54 = vsel %vm5509_vm11, %v5472_v34, %v14449_v47  ;;  %v5567_v3 = vsel %vm5509_vm11, %v5502_v9, %v14450_v61  ;;  %v5600_v26 = vsel %vm5574_vm12, %v5535_v53, %v14451_v45  ;;  %v14459_v11 = vld [vmem:[#allocation152_spill] sm:$0xff]  ;;  %v14465_v47 = vld [vmem:[#allocation231_spill] sm:$0xff] }
 0x4a6   : > { %7131 = vst.msk [vmem:[%s12300_s29 + $0x4] sm:$0xf] %vm7129_vm7, %v7594_v30  ;;  %v7625_v44 = vpack.c.bf16 %v6841_v56, %v6841_v56  ;;  %vm6715_vm4 = vcmp.gt.f32.partialorder %v6650_v2, 0.0  ;;  %v6780_v32 = vmul.f32 %v12280_v0, %v6650_v2  ;;  %vm6713_vm8 = vcmp.gt.f32.partialorder %v6648_v19, 0.0  ;;  %v5111_v7 = vpop.permute.xlu0 %5110  ;;  %v14461_v56 = vld [vmem:[#allocation229_spill] sm:$0xff] }
 0x4a7   : > { %v6778_v27 = vmul.f32 %v12280_v0, %v6648_v19  ;;  %v5569_v33 = vsel %vm5509_vm11, %v5504_v52, %v14452_v51  ;;  %v5602_v60 = vsel %vm5574_vm12, %v5537_v54, %v14453_v46  ;;  %v5632_v35 = vsel %vm5574_vm12, %v5567_v3, %v14454_v40 }
 0x4a8   : > { %7162 = vst.msk [vmem:[%s12300_s29 + $0x80] sm:$0xf] %vm7129_vm7, %v7625_v44  ;;  %v6844_v48 = vsel %vm6715_vm4, %v6650_v2, %v6780_v32  ;;  %v5665_v63 = vsel %vm5639_vm13, %v5600_v26, %v14455_v42  ;;  %v5634_v36 = vsel %vm5574_vm12, %v5569_v33, %v14456_v8  ;;  %v5667_v23 = vsel %vm5639_vm13, %v5602_v60, %v14457_v31  ;;  %v14460_v2 = vld [vmem:[#allocation223_spill] sm:$0xff]  ;;  %v14462_v32 = vld [vmem:[#allocation238_spill] sm:$0xff] }
 0x4a9   : > { %v7628_v5 = vpack.c.bf16 %v6844_v48, %v6844_v48  ;;  %v6842_v24 = vsel %vm6713_vm8, %v6648_v19, %v6778_v27  ;;  %v5141_v10 = vpop.permute.xlu1 %5140  ;;  %v5697_v50 = vsel %vm5639_vm13, %v5632_v35, %v14458_v17  ;;  %v5730_v59 = vsel %vm5704_vm14, %v5665_v63, %v14459_v11 }
 0x4aa   : > { %v7626_v55 = vpack.c.bf16 %v6842_v24, %v6842_v24  ;;  %v5178_v16 = vpop.permute.xlu0 %5177  ;;  %v5732_v19 = vsel %vm5704_vm14, %v5667_v23, %v14460_v2  ;;  %v5762_v44 = vsel %vm5704_vm14, %v5697_v50, %v14461_v56  ;;  %v5795_v27 = vsel %vm5769_vm15, %v5730_v59, %v14462_v32  ;;  %v14463_v24 = vld [vmem:[#allocation46_spill] sm:$0xff] }
 0x4ab   : > { %7165 = vst.msk [vmem:[%s12300_s29 + $0x8c] sm:$0xf] %vm7129_vm7, %v7628_v5  ;;  %v5797_v41 = vsel %vm5769_vm15, %v5732_v19, %v14464_v28  ;;  %v5827_v1 = vsel %vm5769_vm15, %v5762_v44, %v12315_v12  ;;  %v5860_v34 = vsel %vm5834_vm0, %v5795_v27, %v5109_v14 }
 0x4ac   : > { %7163 = vst.msk [vmem:[%s12300_s29 + $0x84] sm:$0xf] %vm7129_vm7, %v7626_v55  ;;  %v5699_v55 = vsel %vm5639_vm13, %v5634_v36, %v14463_v24  ;;  %v5862_v29 = vsel %vm5834_vm0, %v5797_v41, %v5111_v7  ;;  %v5925_v53 = vsel %vm5899_vm1, %v5860_v34, %v5178_v16  ;;  %v5892_v61 = vsel %vm5834_vm0, %v5827_v1, %v5141_v10 }
 0x4ad   : > { %v12350_v6 = vpop.permute.xlu1 %5142  ;;  %v5764_v54 = vsel %vm5704_vm14, %v5699_v55, %v14465_v47 }
 0x4ae   : > { %v5180_v43 = vpop.permute.xlu0 %5179  ;;  %v5829_v51 = vsel %vm5769_vm15, %v5764_v54, %v12338_v49 }
 0x4af   : > { %v5927_v3 = vsel %vm5899_vm1, %v5862_v29, %v5180_v43  ;;  %v5894_v2 = vsel %vm5834_vm0, %v5829_v51, %v12350_v6 }
 0x4b1   : > { %v5210_v37 = vpop.permute.xlu1 %5209 }
 0x4b2   : > { %v5247_v13 = vpop.permute.xlu0 %5246  ;;  %v5957_v33 = vsel %vm5899_vm1, %v5892_v61, %v5210_v37 }
 0x4b3   : > { %v5990_v12 = vsel %vm5964_vm2, %v5925_v53, %v5247_v13 }
 0x4b5   : > { %v12352_v62 = vpop.permute.xlu1 %5211 }
 0x4b6   : > { %v5249_v39 = vpop.permute.xlu0 %5248  ;;  %v5959_v1 = vsel %vm5899_vm1, %v5894_v2, %v12352_v62  ;;  %v14471_v2 = vld [vmem:[#allocation207_spill] sm:$0xff] }
 0x4b7   : > { %v5992_v10 = vsel %vm5964_vm2, %v5927_v3, %v5249_v39 }
 0x4b9   : > { %v12365_v58 = vpop.permute.xlu1 %5278 }
 0x4ba   : > { %v5326_v15 = vpop.permute.xlu0 %5325  ;;  %v6022_v19 = vsel %vm5964_vm2, %v5957_v33, %v12365_v58 }
 0x4bb   : > { %v6055_v43 = vsel %vm6029_vm3, %v5990_v12, %v5326_v15 }
 0x4bc   : > { %v7704_v30 = vpop.f32.mrf.mxu0 }
 0x4bd   : > { %v12398_v48 = vpop.permute.xlu1 %5280  ;;  %v6550_v5 = vmul.f32 %v7704_v30, %v12249_v38 }
 0x4be   : > { %v5328_v22 = vpop.permute.xlu0 %5327  ;;  %v6298_v9 = vpop.f32.mrf.mxu0  ;;  %v6024_v62 = vsel %vm5964_vm2, %v5959_v1, %v12398_v48  ;;  %v14479_v1 = vld [vmem:[#allocation12_spill] sm:$0xff] }
 0x4bf   : > { %v6621_v20 = vadd.f32 %v12268_v57, %v6550_v5  ;;  %v6548_v52 = vmul.f32 %v12249_v38, %v6298_v9  ;;  %v6057_v39 = vsel %vm6029_vm3, %v5992_v10, %v5328_v22 }
 0x4c0   : > { %v7705_v14 = vpop.f32.mrf.mxu0 }
 0x4c1   : > { %vm6686_vm9 = vcmp.gt.f32.partialorder %v6621_v20, 0.0  ;;  %v6751_v45 = vmul.f32 %v12280_v0, %v6621_v20  ;;  %v6619_v7 = vadd.f32 %v12268_v57, %v6548_v52  ;;  %v5358_v16 = vpop.permute.xlu1 %5357  ;;  %v6551_v26 = vmul.f32 %v7705_v14, %v12249_v38 }
 0x4c2   : > { %v5405_v46 = vpop.permute.xlu0 %5404  ;;  %v6301_v13 = vpop.f32.mrf.mxu0  ;;  %v6087_v24 = vsel %vm6029_vm3, %v6022_v19, %v5358_v16  ;;  %v14472_v19 = vld [vmem:[#allocation61_spill] sm:$0xff] }
 0x4c3   : > { %v6815_v60 = vsel %vm6686_vm9, %v6621_v20, %v6751_v45  ;;  %vm6684_vm4 = vcmp.gt.f32.partialorder %v6619_v7, 0.0  ;;  %v6749_v40 = vmul.f32 %v12280_v0, %v6619_v7  ;;  %v6622_v35 = vadd.f32 %v12268_v57, %v6551_v26  ;;  %v7736_v42 = vpop.f32.mrf.mxu1 }
 0x4c4   : > { %v7599_v63 = vpack.c.bf16 %v6815_v60, %v6815_v60  ;;  %v6582_v8 = vmul.f32 %v7736_v42, %v12249_v38  ;;  %v6120_v49 = vsel %vm6094_vm5, %v6055_v43, %v5405_v46  ;;  %v6549_v37 = vmul.f32 %v12249_v38, %v6301_v13 }
 0x4c5   : > { %v6813_v15 = vsel %vm6684_vm4, %v6619_v7, %v6749_v40  ;;  %vm6687_vm8 = vcmp.gt.f32.partialorder %v6622_v35, 0.0  ;;  %v6752_v36 = vmul.f32 %v12280_v0, %v6622_v35  ;;  %v6426_v31 = vpop.f32.mrf.mxu1  ;;  %v5360_v23 = vpop.permute.xlu1 %5359  ;;  %7722 = vmatprep.mubr.msk.bf16.mxu0 %vm6183_vm6, %v6120_v49 }
 0x4c6   : > { %7136 = vst.msk [vmem:[%s12300_s29 + $0x18] sm:$0xf] %vm7129_vm7, %v7599_v63  ;;  %v7597_v17 = vpack.c.bf16 %v6813_v15, %v6813_v15  ;;  %v6653_v50 = vadd.f32 %v12268_v57, %v6582_v8  ;;  %v6620_v11 = vadd.f32 %v12268_v57, %v6549_v37  ;;  %v6580_v59 = vmul.f32 %v12249_v38, %v6426_v31  ;;  %v5407_v30 = vpop.permute.xlu0 %5406  ;;  %v14466_v37 = vld [vmem:[#allocation98_spill] sm:$0xff]  ;;  %v14468_v31 = vld [vmem:[#allocation160_spill] sm:$0xff] }
 0x4c7   : > { %v6816_v56 = vsel %vm6687_vm8, %v6622_v35, %v6752_v36  ;;  %v7737_v44 = vpop.f32.mrf.mxu1  ;;  %v6122_v32 = vsel %vm6094_vm5, %v6057_v39, %v5407_v30  ;;  %v6089_v12 = vsel %vm6029_vm3, %v6024_v62, %v5360_v23  ;;  %v5474_v39 = vsel %vm5444_vm10, %v14334_v25, %v14466_v37  ;;  %v14467_v15 = vld [vmem:[#allocation106_spill] sm:$0xff]  ;;  %v14487_v37 = vld [vmem:[#allocation187_spill] sm:$0xff] }
 0x4c8   : > { %7134 = vst.msk [vmem:[%s12300_s29 + $0x10] sm:$0xf] %vm7129_vm7, %v7597_v17  ;;  %v7600_v27 = vpack.c.bf16 %v6816_v56, %v6816_v56  ;;  %vm6718_vm9 = vcmp.gt.f32.partialorder %v6653_v50, 0.0  ;;  %v6783_v5 = vmul.f32 %v12280_v0, %v6653_v50  ;;  %vm6685_vm4 = vcmp.gt.f32.partialorder %v6620_v11, 0.0  ;;  %7723 = vmatmul.mubr.msk.bf16.gmra.mxu0 %vm6183_vm6, %v6122_v32  ;;  %v14474_v32 = vld [vmem:[#allocation108_spill] sm:$0xff] }
 0x4c9   : > { %v6750_v6 = vmul.f32 %v12280_v0, %v6620_v11  ;;  %v6651_v58 = vadd.f32 %v12268_v57, %v6580_v59  ;;  %v6583_v55 = vmul.f32 %v7737_v44, %v12249_v38  ;;  %v6429_v28 = vpop.f32.mrf.mxu1  ;;  %v5437_v41 = vpop.permute.xlu1 %5436  ;;  %v5476_v36 = vsel %vm5444_vm10, %v14336_v21, %v14467_v15  ;;  %v14470_v59 = vld [vmem:[#allocation198_spill] sm:$0xff]  ;;  %v14473_v21 = vld [vmem:[#allocation69_spill] sm:$0xff] }
 0x4ca   : > { %7137 = vst.msk [vmem:[%s12300_s29 + $0x1c] sm:$0xf] %vm7129_vm7, %v7600_v27  ;;  %v6847_v34 = vsel %vm6718_vm9, %v6653_v50, %v6783_v5  ;;  %v6581_v22 = vmul.f32 %v12249_v38, %v6429_v28  ;;  %v6152_v9 = vsel %vm6094_vm5, %v6087_v24, %v5437_v41  ;;  %v12457_v29 = vpop.permute.xlu0 %5065  ;;  %v5506_v23 = vsel %vm5444_vm10, %v14341_v18, %v14468_v31  ;;  %v14469_v50 = vld [vmem:[#allocation161_spill] sm:$0xff]  ;;  %v14475_v27 = vld [vmem:[#allocation36_spill] sm:$0xff] }
 0x4cb   : > { %v7631_v53 = vpack.c.bf16 %v6847_v34, %v6847_v34  ;;  %v6814_v20 = vsel %vm6685_vm4, %v6620_v11, %v6750_v6  ;;  %vm6716_vm8 = vcmp.gt.f32.partialorder %v6651_v58, 0.0  ;;  %v6781_v52 = vmul.f32 %v12280_v0, %v6651_v58  ;;  %7754 = vmatprep.mubr.msk.bf16.mxu1 %vm6183_vm6, %v6152_v9  ;;  %v14476_v24 = vld [vmem:[#allocation156_spill] sm:$0xff] }
 0x4cc   : > { %v7598_v47 = vpack.c.bf16 %v6814_v20, %v6814_v20  ;;  %v6654_v54 = vadd.f32 %v12268_v57, %v6583_v55  ;;  %v6652_v61 = vadd.f32 %v12268_v57, %v6581_v22  ;;  %v5508_v11 = vsel %vm5444_vm10, %v14350_v4, %v14469_v50  ;;  %v14478_v28 = vld [vmem:[#allocation220_spill] sm:$0xff] }
 0x4cd   : > { %7168 = vst.msk [vmem:[%s12300_s29 + $0x98] sm:$0xf] %vm7129_vm7, %v7631_v53  ;;  %v6845_v3 = vsel %vm6716_vm8, %v6651_v58, %v6781_v52  ;;  %v5439_v14 = vpop.permute.xlu1 %5438  ;;  %v5539_v30 = vsel %vm5509_vm11, %v5474_v39, %v14470_v59  ;;  %v5541_v25 = vsel %vm5509_vm11, %v5476_v36, %v14471_v2  ;;  %v5571_v56 = vsel %vm5509_vm11, %v5506_v23, %v14472_v19  ;;  %v14477_v58 = vld [vmem:[#allocation165_spill] sm:$0xff]  ;;  %v14480_v53 = vld [vmem:[#allocation15_spill] sm:$0xff]  ;;  %v14481_v52 = vld [vmem:[#allocation26_spill] sm:$0xff] }
 0x4ce   : > { %7135 = vst.msk [vmem:[%s12300_s29 + $0x14] sm:$0xf] %vm7129_vm7, %v7598_v47  ;;  %v7629_v45 = vpack.c.bf16 %v6845_v3, %v6845_v3  ;;  %vm6719_vm9 = vcmp.gt.f32.partialorder %v6654_v54, 0.0  ;;  %v6784_v48 = vmul.f32 %v12280_v0, %v6654_v54  ;;  %vm6717_vm4 = vcmp.gt.f32.partialorder %v6652_v61, 0.0  ;;  %v5113_v7 = vpop.permute.xlu0 %5112  ;;  %v14482_v47 = vld [vmem:[#allocation222_spill] sm:$0xff] }
 0x4cf   : > { %v6782_v16 = vmul.f32 %v12280_v0, %v6652_v61  ;;  %v6154_v26 = vsel %vm6094_vm5, %v6089_v12, %v5439_v14  ;;  %v5573_v44 = vsel %vm5509_vm11, %v5508_v11, %v14473_v21  ;;  %v5604_v18 = vsel %vm5574_vm12, %v5539_v30, %v14474_v32 }
 0x4d0   : > { %7166 = vst.msk [vmem:[%s12300_s29 + $0x90] sm:$0xf] %vm7129_vm7, %v7629_v45  ;;  %v6848_v51 = vsel %vm6719_vm9, %v6654_v54, %v6784_v48  ;;  %7755 = vmatmul.mubr.msk.bf16.gmra.mxu1 %vm6183_vm6, %v6154_v26  ;;  %v5606_v5 = vsel %vm5574_vm12, %v5541_v25, %v14475_v27  ;;  %v5636_v4 = vsel %vm5574_vm12, %v5571_v56, %v14476_v24  ;;  %v14484_v45 = vld [vmem:[#allocation230_spill] sm:$0xff] }
 0x4d1   : > { %v7632_v33 = vpack.c.bf16 %v6848_v51, %v6848_v51  ;;  %v6846_v10 = vsel %vm6717_vm4, %v6652_v61, %v6782_v16  ;;  %v5068_v43 = vpop.permute.xlu1 %5067  ;;  %v5638_v55 = vsel %vm5574_vm12, %v5573_v44, %v14477_v58  ;;  %v5669_v41 = vsel %vm5639_vm13, %v5604_v18, %v14478_v28  ;;  %v14483_v61 = vld [vmem:[#allocation224_spill] sm:$0xff]  ;;  %v14485_v16 = vld [vmem:[#allocation146_spill] sm:$0xff] }
 0x4d2   : > { %v7630_v46 = vpack.c.bf16 %v6846_v10, %v6846_v10  ;;  %v5115_v13 = vpop.permute.xlu0 %5114  ;;  %v5671_v34 = vsel %vm5639_vm13, %v5606_v5, %v14479_v1  ;;  %v5701_v20 = vsel %vm5639_vm13, %v5636_v4, %v14480_v53  ;;  %v5703_v62 = vsel %vm5639_vm13, %v5638_v55, %v14481_v52  ;;  %v14486_v10 = vld [vmem:[#allocation232_spill] sm:$0xff] }
 0x4d3   : > { %7169 = vst.msk [vmem:[%s12300_s29 + $0x9c] sm:$0xf] %vm7129_vm7, %v7632_v33  ;;  %v5734_v54 = vsel %vm5704_vm14, %v5669_v41, %v14482_v47  ;;  %v5736_v3 = vsel %vm5704_vm14, %v5671_v34, %v14483_v61  ;;  %v5766_v48 = vsel %vm5704_vm14, %v5701_v20, %v14484_v45 }
 0x4d4   : > { %7167 = vst.msk [vmem:[%s12300_s29 + $0x94] sm:$0xf] %vm7129_vm7, %v7630_v46  ;;  %v5799_v26 = vsel %vm5769_vm15, %v5734_v54, %v14485_v16  ;;  %v5768_v46 = vsel %vm5704_vm14, %v5703_v62, %v14486_v10  ;;  %v5801_v39 = vsel %vm5769_vm15, %v5736_v3, %v14487_v37  ;;  %v5831_v15 = vsel %vm5769_vm15, %v5766_v48, %v12457_v29 }
 0x4d5   : > { %v5145_v60 = vpop.permute.xlu1 %5144  ;;  %v5864_v36 = vsel %vm5834_vm0, %v5799_v26, %v5113_v7  ;;  %v5833_v30 = vsel %vm5769_vm15, %v5768_v46, %v5068_v43  ;;  %v5866_v2 = vsel %vm5834_vm0, %v5801_v39, %v5115_v13 }
 0x4d6   : > { %v5182_v40 = vpop.permute.xlu0 %5181  ;;  %v5896_v25 = vsel %vm5834_vm0, %v5831_v15, %v5145_v60 }
 0x4d7   : > { %v5929_v29 = vsel %vm5899_vm1, %v5864_v36, %v5182_v40 }
 0x4d9   : > { %v12480_v35 = vpop.permute.xlu1 %5146 }
 0x4da   : > { %v12482_v42 = vpop.permute.xlu0 %5183  ;;  %v5898_v46 = vsel %vm5834_vm0, %v5833_v30, %v12480_v35 }
 0x4db   : > { %v5931_v41 = vsel %vm5899_vm1, %v5866_v2, %v12482_v42 }
 0x4dd   : > { %v12484_v63 = vpop.permute.xlu1 %5213 }
 0x4de   : > { %v5251_v8 = vpop.permute.xlu0 %5250  ;;  %v5961_v1 = vsel %vm5899_vm1, %v5896_v25, %v12484_v63 }
 0x4df   : > { %v5994_v18 = vsel %vm5964_vm2, %v5929_v29, %v5251_v8 }
 0x4e1   : > { %v12486_v49 = vpop.permute.xlu1 %5215 }
 0x4e2   : > { %v12497_v17 = vpop.permute.xlu0 %5252  ;;  %v5963_v35 = vsel %vm5899_vm1, %v5898_v46, %v12486_v49 }
 0x4e3   : > { %v5996_v42 = vsel %vm5964_vm2, %v5931_v41, %v12497_v17 }
 0x4e4   : > { %v7708_v6 = vpop.f32.mrf.mxu0 }
 0x4e5   : > { %v12522_v22 = vpop.permute.xlu1 %5282  ;;  %v6554_v9 = vmul.f32 %v7708_v6, %v12249_v38 }
 0x4e6   : > { %v5330_v12 = vpop.permute.xlu0 %5329  ;;  %v6314_v14 = vpop.f32.mrf.mxu0  ;;  %v6026_v3 = vsel %vm5964_vm2, %v5961_v1, %v12522_v22 }
 0x4e7   : > { %v6625_v51 = vadd.f32 %v12268_v57, %v6554_v9  ;;  %v6552_v33 = vmul.f32 %v12249_v38, %v6314_v14  ;;  %v6059_v60 = vsel %vm6029_vm3, %v5994_v18, %v5330_v12 }
 0x4e8   : > { %v7709_v31 = vpop.f32.mrf.mxu0 }
 0x4e9   : > { %vm6690_vm10 = vcmp.gt.f32.partialorder %v6625_v51, 0.0  ;;  %v6755_v23 = vmul.f32 %v12280_v0, %v6625_v51  ;;  %v6623_v50 = vadd.f32 %v12268_v57, %v6552_v33  ;;  %v12548_v11 = vpop.permute.xlu1 %5284  ;;  %v6555_v59 = vmul.f32 %v7709_v31, %v12249_v38 }
 0x4ea   : > { %v5332_v19 = vpop.permute.xlu0 %5331  ;;  %v6317_v7 = vpop.f32.mrf.mxu0 }
 0x4eb   : > { %v6819_v56 = vsel %vm6690_vm10, %v6625_v51, %v6755_v23  ;;  %vm6688_vm11 = vcmp.gt.f32.partialorder %v6623_v50, 0.0  ;;  %v6753_v21 = vmul.f32 %v12280_v0, %v6623_v50  ;;  %v6626_v44 = vadd.f32 %v12268_v57, %v6555_v59  ;;  %v7740_v32 = vpop.f32.mrf.mxu1 }
 0x4ec   : > { %v7603_v27 = vpack.c.bf16 %v6819_v56, %v6819_v56  ;;  %v6586_v43 = vmul.f32 %v7740_v32, %v12249_v38  ;;  %v6553_v13 = vmul.f32 %v12249_v38, %v6317_v7  ;;  %v6061_v14 = vsel %vm6029_vm3, %v5996_v42, %v5332_v19 }
 0x4ed   : > { %v6817_v40 = vsel %vm6688_vm11, %v6623_v50, %v6753_v21  ;;  %vm6691_vm12 = vcmp.gt.f32.partialorder %v6626_v44, 0.0  ;;  %v6756_v5 = vmul.f32 %v12280_v0, %v6626_v44  ;;  %v6442_v24 = vpop.f32.mrf.mxu1  ;;  %v5362_v4 = vpop.permute.xlu1 %5361  ;;  %v6028_v59 = vsel %vm5964_vm2, %v5963_v35, %v12548_v11 }
 0x4ee   : > { %7140 = vst.msk [vmem:[%s12300_s29 + $0x28] sm:$0xf] %vm7129_vm7, %v7603_v27  ;;  %v7601_v6 = vpack.c.bf16 %v6817_v40, %v6817_v40  ;;  %v6657_v58 = vadd.f32 %v12268_v57, %v6586_v43  ;;  %v6624_v8 = vadd.f32 %v12268_v57, %v6553_v13  ;;  %v6584_v55 = vmul.f32 %v12249_v38, %v6442_v24  ;;  %v5409_v28 = vpop.permute.xlu0 %5408 }
 0x4ef   : > { %v6820_v34 = vsel %vm6691_vm12, %v6626_v44, %v6756_v5  ;;  %v7741_v9 = vpop.f32.mrf.mxu1  ;;  %v6124_v53 = vsel %vm6094_vm5, %v6059_v60, %v5409_v28  ;;  %v6091_v39 = vsel %vm6029_vm3, %v6026_v3, %v5362_v4 }
 0x4f0   : > { %7138 = vst.msk [vmem:[%s12300_s29 + $0x20] sm:$0xf] %vm7129_vm7, %v7601_v6  ;;  %v7604_v20 = vpack.c.bf16 %v6820_v34, %v6820_v34  ;;  %vm6722_vm13 = vcmp.gt.f32.partialorder %v6657_v58, 0.0  ;;  %v6787_v52 = vmul.f32 %v12280_v0, %v6657_v58  ;;  %vm6689_vm14 = vcmp.gt.f32.partialorder %v6624_v8, 0.0  ;;  %7726 = vmatprep.mubr.msk.bf16.mxu0 %vm6183_vm6, %v6124_v53 }
 0x4f1   : > { %v6754_v62 = vmul.f32 %v12280_v0, %v6624_v8  ;;  %v6655_v63 = vadd.f32 %v12268_v57, %v6584_v55  ;;  %v6587_v47 = vmul.f32 %v7741_v9, %v12249_v38  ;;  %v6445_v54 = vpop.f32.mrf.mxu1  ;;  %v5364_v61 = vpop.permute.xlu1 %5363 }
 0x4f2   : > { %7141 = vst.msk [vmem:[%s12300_s29 + $0x2c] sm:$0xf] %vm7129_vm7, %v7604_v20  ;;  %v6851_v12 = vsel %vm6722_vm13, %v6657_v58, %v6787_v52  ;;  %v6585_v45 = vmul.f32 %v12249_v38, %v6445_v54  ;;  %v5411_v17 = vpop.permute.xlu0 %5410  ;;  %v6093_v29 = vsel %vm6029_vm3, %v6028_v59, %v5364_v61 }
 0x4f3   : > { %v7635_v48 = vpack.c.bf16 %v6851_v12, %v6851_v12  ;;  %v6818_v16 = vsel %vm6689_vm14, %v6624_v8, %v6754_v62  ;;  %vm6720_vm15 = vcmp.gt.f32.partialorder %v6655_v63, 0.0  ;;  %v6785_v26 = vmul.f32 %v12280_v0, %v6655_v63 }
 0x4f4   : > { %v7602_v51 = vpack.c.bf16 %v6818_v16, %v6818_v16  ;;  %v6658_v33 = vadd.f32 %v12268_v57, %v6587_v47  ;;  %v6656_v10 = vadd.f32 %v12268_v57, %v6585_v45  ;;  %v6126_v22 = vsel %vm6094_vm5, %v6061_v14, %v5411_v17 }
 0x4f5   : > { %7172 = vst.msk [vmem:[%s12300_s29 + $0xa8] sm:$0xf] %vm7129_vm7, %v7635_v48  ;;  %v6849_v37 = vsel %vm6720_vm15, %v6655_v63, %v6785_v26  ;;  %v5441_v15 = vpop.permute.xlu1 %5440  ;;  %7727 = vmatmul.mubr.msk.bf16.gmra.mxu0 %vm6183_vm6, %v6126_v22 }
 0x4f6   : > { %7139 = vst.msk [vmem:[%s12300_s29 + $0x24] sm:$0xf] %vm7129_vm7, %v7602_v51  ;;  %v7633_v36 = vpack.c.bf16 %v6849_v37, %v6849_v37  ;;  %vm6723_vm8 = vcmp.gt.f32.partialorder %v6658_v33, 0.0  ;;  %v6788_v31 = vmul.f32 %v12280_v0, %v6658_v33  ;;  %vm6721_vm9 = vcmp.gt.f32.partialorder %v6656_v10, 0.0 }
 0x4f7   : > { %v6786_v23 = vmul.f32 %v12280_v0, %v6656_v10  ;;  %v6156_v50 = vsel %vm6094_vm5, %v6091_v39, %v5441_v15 }
 0x4f8   : > { %7170 = vst.msk [vmem:[%s12300_s29 + $0xa0] sm:$0xf] %vm7129_vm7, %v7633_v36  ;;  %v6852_v30 = vsel %vm6723_vm8, %v6658_v33, %v6788_v31  ;;  %7758 = vmatprep.mubr.msk.bf16.mxu1 %vm6183_vm6, %v6156_v50 }
 0x4f9   : > { %v7636_v2 = vpack.c.bf16 %v6852_v30, %v6852_v30  ;;  %v6850_v25 = vsel %vm6721_vm9, %v6656_v10, %v6786_v23  ;;  %v5443_v19 = vpop.permute.xlu1 %5442 }
 0x4fa   : > { %v7634_v7 = vpack.c.bf16 %v6850_v25, %v6850_v25  ;;  %v6158_v49 = vsel %vm6094_vm5, %v6093_v29, %v5443_v19 }
 0x4fb   : > { %7173 = vst.msk [vmem:[%s12300_s29 + $0xac] sm:$0xf] %vm7129_vm7, %v7636_v2  ;;  %7759 = vmatmul.mubr.msk.bf16.gmra.mxu1 %vm6183_vm6, %v6158_v49 }
 0x4fc   : > { %7171 = vst.msk [vmem:[%s12300_s29 + $0xa4] sm:$0xf] %vm7129_vm7, %v7634_v7 }
 0x50c   : > { %v7712_v11 = vpop.f32.mrf.mxu0 }
 0x50d   : > { %v6558_v56 = vmul.f32 %v7712_v11, %v12249_v38 }
 0x50e   : > { %v6330_v21 = vpop.f32.mrf.mxu0 }
 0x50f   : > { %v6629_v44 = vadd.f32 %v12268_v57, %v6558_v56  ;;  %v6556_v32 = vmul.f32 %v12249_v38, %v6330_v21 }
 0x510   : > { %v7713_v18 = vpop.f32.mrf.mxu0 }
 0x511   : > { %vm6694_vm0 = vcmp.gt.f32.partialorder %v6629_v44, 0.0  ;;  %v6759_v27 = vmul.f32 %v12280_v0, %v6629_v44  ;;  %v6627_v43 = vadd.f32 %v12268_v57, %v6556_v32  ;;  %v6559_v13 = vmul.f32 %v7713_v18, %v12249_v38 }
 0x512   : > { %v6333_v60 = vpop.f32.mrf.mxu0 }
 0x513   : > { %v6823_v40 = vsel %vm6694_vm0, %v6629_v44, %v6759_v27  ;;  %vm6692_vm1 = vcmp.gt.f32.partialorder %v6627_v43, 0.0  ;;  %v6757_v5 = vmul.f32 %v12280_v0, %v6627_v43  ;;  %v6630_v24 = vadd.f32 %v12268_v57, %v6559_v13  ;;  %v7744_v4 = vpop.f32.mrf.mxu1 }
 0x514   : > { %v7607_v6 = vpack.c.bf16 %v6823_v40, %v6823_v40  ;;  %v6590_v58 = vmul.f32 %v7744_v4, %v12249_v38  ;;  %v6557_v8 = vmul.f32 %v12249_v38, %v6333_v60 }
 0x515   : > { %v6821_v55 = vsel %vm6692_vm1, %v6627_v43, %v6757_v5  ;;  %vm6695_vm2 = vcmp.gt.f32.partialorder %v6630_v24, 0.0  ;;  %v6760_v28 = vmul.f32 %v12280_v0, %v6630_v24  ;;  %v6458_v41 = vpop.f32.mrf.mxu1 }
 0x516   : > { %7144 = vst.msk [vmem:[%s12300_s29 + $0x38] sm:$0xf] %vm7129_vm7, %v7607_v6  ;;  %v7605_v1 = vpack.c.bf16 %v6821_v55, %v6821_v55  ;;  %v6661_v34 = vadd.f32 %v12268_v57, %v6590_v58  ;;  %v6628_v9 = vadd.f32 %v12268_v57, %v6557_v8  ;;  %v6588_v53 = vmul.f32 %v12249_v38, %v6458_v41 }
 0x517   : > { %v6824_v20 = vsel %vm6695_vm2, %v6630_v24, %v6760_v28  ;;  %v7745_v52 = vpop.f32.mrf.mxu1 }
 0x518   : > { %7142 = vst.msk [vmem:[%s12300_s29 + $0x30] sm:$0xf] %vm7129_vm7, %v7605_v1  ;;  %v7608_v42 = vpack.c.bf16 %v6824_v20, %v6824_v20  ;;  %vm6726_vm3 = vcmp.gt.f32.partialorder %v6661_v34, 0.0  ;;  %v6791_v62 = vmul.f32 %v12280_v0, %v6661_v34  ;;  %vm6693_vm5 = vcmp.gt.f32.partialorder %v6628_v9, 0.0 }
 0x519   : > { %v6758_v63 = vmul.f32 %v12280_v0, %v6628_v9  ;;  %v6659_v47 = vadd.f32 %v12268_v57, %v6588_v53  ;;  %v6591_v54 = vmul.f32 %v7745_v52, %v12249_v38  ;;  %v6461_v61 = vpop.f32.mrf.mxu1 }
 0x51a   : > { %7145 = vst.msk [vmem:[%s12300_s29 + $0x3c] sm:$0xf] %vm7129_vm7, %v7608_v42  ;;  %v6855_v3 = vsel %vm6726_vm3, %v6661_v34, %v6791_v62  ;;  %v6589_v12 = vmul.f32 %v12249_v38, %v6461_v61 }
 0x51b   : > { %v7639_v14 = vpack.c.bf16 %v6855_v3, %v6855_v3  ;;  %v6822_v45 = vsel %vm6693_vm5, %v6628_v9, %v6758_v63  ;;  %vm6724_vm6 = vcmp.gt.f32.partialorder %v6659_v47, 0.0  ;;  %v6789_v17 = vmul.f32 %v12280_v0, %v6659_v47 }
 0x51c   : > { %v7606_v48 = vpack.c.bf16 %v6822_v45, %v6822_v45  ;;  %v6662_v16 = vadd.f32 %v12268_v57, %v6591_v54  ;;  %v6660_v26 = vadd.f32 %v12268_v57, %v6589_v12 }
 0x51d   : > { %7176 = vst.msk [vmem:[%s12300_s29 + $0xb8] sm:$0xf] %vm7129_vm7, %v7639_v14  ;;  %v6853_v51 = vsel %vm6724_vm6, %v6659_v47, %v6789_v17 }
 0x51e   : > { %7143 = vst.msk [vmem:[%s12300_s29 + $0x34] sm:$0xf] %vm7129_vm7, %v7606_v48  ;;  %v7637_v33 = vpack.c.bf16 %v6853_v51, %v6853_v51  ;;  %vm6727_vm4 = vcmp.gt.f32.partialorder %v6662_v16, 0.0  ;;  %v6792_v10 = vmul.f32 %v12280_v0, %v6662_v16  ;;  %vm6725_vm10 = vcmp.gt.f32.partialorder %v6660_v26, 0.0 }
 0x51f   : > { %v6790_v22 = vmul.f32 %v12280_v0, %v6660_v26 }
 0x520   : > { %7174 = vst.msk [vmem:[%s12300_s29 + $0xb0] sm:$0xf] %vm7129_vm7, %v7637_v33  ;;  %v6856_v46 = vsel %vm6727_vm4, %v6662_v16, %v6792_v10 }
 0x521   : > { %v7640_v37 = vpack.c.bf16 %v6856_v46, %v6856_v46  ;;  %v6854_v39 = vsel %vm6725_vm10, %v6660_v26, %v6790_v22  ;;  %v12704_v22 = vld [vmem:[%s12837_s2] ss:$0 sm:$0xff] }
 0x522   : > { %v7638_v15 = vpack.c.bf16 %v6854_v39, %v6854_v39 }
 0x523   : > { %7177 = vst.msk [vmem:[%s12300_s29 + $0xbc] sm:$0xf] %vm7129_vm7, %v7640_v37 }
 0x524   : > { %7175 = vst.msk [vmem:[%s12300_s29 + $0xb4] sm:$0xf] %vm7129_vm7, %v7638_v15 }
 0x534   : > { %v7716_v36 = vpop.f32.mrf.mxu0 }
 0x535   : > { %v6562_v31 = vmul.f32 %v7716_v36, %v12249_v38 }
 0x536   : > { %v6346_v35 = vpop.f32.mrf.mxu0 }
 0x537   : > { %v6633_v23 = vadd.f32 %v12268_v57, %v6562_v31  ;;  %v6560_v50 = vmul.f32 %v12249_v38, %v6346_v35 }
 0x538   : > { %v7717_v59 = vpop.f32.mrf.mxu0 }
 0x539   : > { %vm6698_vm11 = vcmp.gt.f32.partialorder %v6633_v23, 0.0  ;;  %v6763_v30 = vmul.f32 %v12280_v0, %v6633_v23  ;;  %v6631_v2 = vadd.f32 %v12268_v57, %v6560_v50  ;;  %v6563_v25 = vmul.f32 %v7717_v59, %v12249_v38 }
 0x53a   : > { %v6349_v29 = vpop.f32.mrf.mxu0 }
 0x53b   : > { %v6827_v19 = vsel %vm6698_vm11, %v6633_v23, %v6763_v30  ;;  %vm6696_vm12 = vcmp.gt.f32.partialorder %v6631_v2, 0.0  ;;  %v6761_v7 = vmul.f32 %v12280_v0, %v6631_v2  ;;  %v6634_v49 = vadd.f32 %v12268_v57, %v6563_v25  ;;  %v7748_v11 = vpop.f32.mrf.mxu1 }
 0x53c   : > { %v7611_v56 = vpack.c.bf16 %v6827_v19, %v6827_v19  ;;  %v6594_v21 = vmul.f32 %v7748_v11, %v12249_v38  ;;  %v6561_v44 = vmul.f32 %v12249_v38, %v6349_v29 }
 0x53d   : > { %v6825_v32 = vsel %vm6696_vm12, %v6631_v2, %v6761_v7  ;;  %vm6699_vm13 = vcmp.gt.f32.partialorder %v6634_v49, 0.0  ;;  %v6764_v18 = vmul.f32 %v12280_v0, %v6634_v49  ;;  %v6474_v27 = vpop.f32.mrf.mxu1 }
 0x53e   : > { %7148 = vst.msk [vmem:[%s12300_s29 + $0x48] sm:$0xf] %vm7129_vm7, %v7611_v56  ;;  %v7609_v43 = vpack.c.bf16 %v6825_v32, %v6825_v32  ;;  %v6665_v13 = vadd.f32 %v12268_v57, %v6594_v21  ;;  %v6632_v60 = vadd.f32 %v12268_v57, %v6561_v44  ;;  %v6592_v40 = vmul.f32 %v12249_v38, %v6474_v27 }
 0x53f   : > { %v6828_v5 = vsel %vm6699_vm13, %v6634_v49, %v6764_v18  ;;  %v7749_v24 = vpop.f32.mrf.mxu1 }
 0x540   : > { %7146 = vst.msk [vmem:[%s12300_s29 + $0x40] sm:$0xf] %vm7129_vm7, %v7609_v43  ;;  %v7612_v4 = vpack.c.bf16 %v6828_v5, %v6828_v5  ;;  %vm6730_vm14 = vcmp.gt.f32.partialorder %v6665_v13, 0.0  ;;  %v6795_v6 = vmul.f32 %v12280_v0, %v6665_v13  ;;  %vm6697_vm15 = vcmp.gt.f32.partialorder %v6632_v60, 0.0 }
 0x541   : > { %v6762_v58 = vmul.f32 %v12280_v0, %v6632_v60  ;;  %v6663_v8 = vadd.f32 %v12268_v57, %v6592_v40  ;;  %v6595_v55 = vmul.f32 %v7749_v24, %v12249_v38  ;;  %v6477_v28 = vpop.f32.mrf.mxu1 }
 0x542   : > { %7149 = vst.msk [vmem:[%s12300_s29 + $0x4c] sm:$0xf] %vm7129_vm7, %v7612_v4  ;;  %v6859_v41 = vsel %vm6730_vm14, %v6665_v13, %v6795_v6  ;;  %v6593_v1 = vmul.f32 %v12249_v38, %v6477_v28 }
 0x543   : > { %v7643_v34 = vpack.c.bf16 %v6859_v41, %v6859_v41  ;;  %v6826_v9 = vsel %vm6697_vm15, %v6632_v60, %v6762_v58  ;;  %vm6728_vm8 = vcmp.gt.f32.partialorder %v6663_v8, 0.0  ;;  %v6793_v53 = vmul.f32 %v12280_v0, %v6663_v8 }
 0x544   : > { %v7610_v20 = vpack.c.bf16 %v6826_v9, %v6826_v9  ;;  %v6666_v52 = vadd.f32 %v12268_v57, %v6595_v55  ;;  %v6664_v42 = vadd.f32 %v12268_v57, %v6593_v1 }
 0x545   : > { %7180 = vst.msk [vmem:[%s12300_s29 + $0xc8] sm:$0xf] %vm7129_vm7, %v7643_v34  ;;  %v6857_v62 = vsel %vm6728_vm8, %v6663_v8, %v6793_v53 }
 0x546   : > { %7147 = vst.msk [vmem:[%s12300_s29 + $0x44] sm:$0xf] %vm7129_vm7, %v7610_v20  ;;  %v7641_v63 = vpack.c.bf16 %v6857_v62, %v6857_v62  ;;  %vm6731_vm9 = vcmp.gt.f32.partialorder %v6666_v52, 0.0  ;;  %v6796_v47 = vmul.f32 %v12280_v0, %v6666_v52  ;;  %vm6729_vm0 = vcmp.gt.f32.partialorder %v6664_v42, 0.0 }
 0x547   : > { %v6794_v54 = vmul.f32 %v12280_v0, %v6664_v42 }
 0x548   : > { %7178 = vst.msk [vmem:[%s12300_s29 + $0xc0] sm:$0xf] %vm7129_vm7, %v7641_v63  ;;  %v6860_v61 = vsel %vm6731_vm9, %v6666_v52, %v6796_v47 }
 0x549   : > { %v7644_v3 = vpack.c.bf16 %v6860_v61, %v6860_v61  ;;  %v6858_v12 = vsel %vm6729_vm0, %v6664_v42, %v6794_v54 }
 0x54a   : > { %v7642_v14 = vpack.c.bf16 %v6858_v12, %v6858_v12 }
 0x54b   : > { %7181 = vst.msk [vmem:[%s12300_s29 + $0xcc] sm:$0xf] %vm7129_vm7, %v7644_v3 }
 0x54c   : > { %7179 = vst.msk [vmem:[%s12300_s29 + $0xc4] sm:$0xf] %vm7129_vm7, %v7642_v14 }
 0x55d   : > { %v7720_v45 = vpop.f32.mrf.mxu0 }
 0x55e   : > { %v6566_v17 = vmul.f32 %v7720_v45, %v12249_v38 }
 0x55f   : > { %v6362_v48 = vpop.f32.mrf.mxu0 }
 0x560   : > { %v6637_v16 = vadd.f32 %v12268_v57, %v6566_v17  ;;  %v6564_v26 = vmul.f32 %v12249_v38, %v6362_v48 }
 0x561   : > { %v7721_v51 = vpop.f32.mrf.mxu0 }
 0x562   : > { %vm6702_vm1 = vcmp.gt.f32.partialorder %v6637_v16, 0.0  ;;  %v6767_v33 = vmul.f32 %v12280_v0, %v6637_v16  ;;  %v6635_v10 = vadd.f32 %v12268_v57, %v6564_v26  ;;  %v6567_v46 = vmul.f32 %v12704_v22, %v7721_v51 }
 0x563   : > { %v7752_v37 = vpop.f32.mrf.mxu1  ;;  %v6365_v39 = vpop.f32.mrf.mxu0 }
 0x564   : > { %v6831_v15 = vsel %vm6702_vm1, %v6637_v16, %v6767_v33  ;;  %vm6700_vm2 = vcmp.gt.f32.partialorder %v6635_v10, 0.0  ;;  %v6765_v38 = vmul.f32 %v12280_v0, %v6635_v10  ;;  %v6638_v36 = vadd.f32 %v12268_v57, %v6567_v46  ;;  %v12718_v57 = vld [vmem:[%s12838_s3] ss:$0 sm:$0xff] }
 0x565   : > { %v7615_v31 = vpack.c.bf16 %v6831_v15, %v6831_v15  ;;  %v6598_v35 = vmul.f32 %v12704_v22, %v7752_v37  ;;  %v6565_v23 = vmul.f32 %v12704_v22, %v6365_v39  ;;  %v6490_v50 = vpop.f32.mrf.mxu1 }
 0x566   : > { %v6829_v59 = vsel %vm6700_vm2, %v6635_v10, %v6765_v38  ;;  %vm6703_vm3 = vcmp.gt.f32.partialorder %v6638_v36, 0.0  ;;  %v6768_v30 = vmul.f32 %v12280_v0, %v6638_v36  ;;  %v6596_v2 = vmul.f32 %v12704_v22, %v6490_v50 }
 0x567   : > { %7152 = vst.msk [vmem:[%s12300_s29 + $0x58] sm:$0xf] %vm7129_vm7, %v7615_v31  ;;  %v7613_v25 = vpack.c.bf16 %v6829_v59, %v6829_v59  ;;  %v6669_v29 = vadd.f32 %v12718_v57, %v6598_v35  ;;  %v6636_v19 = vadd.f32 %v12718_v57, %v6565_v23  ;;  %v7753_v7 = vpop.f32.mrf.mxu1 }
 0x568   : > { %v6832_v49 = vsel %vm6703_vm3, %v6638_v36, %v6768_v30  ;;  %v6667_v11 = vadd.f32 %v12718_v57, %v6596_v2  ;;  %v6599_v56 = vmul.f32 %v12704_v22, %v7753_v7 }
 0x569   : > { %7150 = vst.msk [vmem:[%s12300_s29 + $0x50] sm:$0xf] %vm7129_vm7, %v7613_v25  ;;  %v7616_v21 = vpack.c.bf16 %v6832_v49, %v6832_v49  ;;  %vm6734_vm5 = vcmp.gt.f32.partialorder %v6669_v29, 0.0  ;;  %v6799_v44 = vmul.f32 %v12280_v0, %v6669_v29  ;;  %vm6701_vm6 = vcmp.gt.f32.partialorder %v6636_v19, 0.0  ;;  %v6493_v32 = vpop.f32.mrf.mxu1 }
 0x56a   : > { %v6766_v18 = vmul.f32 %v12280_v0, %v6636_v19  ;;  %vm6732_vm4 = vcmp.gt.f32.partialorder %v6667_v11, 0.0  ;;  %v6797_v27 = vmul.f32 %v12280_v0, %v6667_v11  ;;  %v6670_v43 = vadd.f32 %v12718_v57, %v6599_v56 }
 0x56b   : > { %7153 = vst.msk [vmem:[%s12300_s29 + $0x5c] sm:$0xf] %vm7129_vm7, %v7616_v21  ;;  %v6863_v13 = vsel %vm6734_vm5, %v6669_v29, %v6799_v44  ;;  %v6597_v60 = vmul.f32 %v12704_v22, %v6493_v32 }
 0x56c   : > { %v7647_v40 = vpack.c.bf16 %v6863_v13, %v6863_v13  ;;  %v6830_v5 = vsel %vm6701_vm6, %v6636_v19, %v6766_v18  ;;  %v6861_v24 = vsel %vm6732_vm4, %v6667_v11, %v6797_v27  ;;  %vm6735_vm10 = vcmp.gt.f32.partialorder %v6670_v43, 0.0 }
 0x56d   : > { %v7614_v4 = vpack.c.bf16 %v6830_v5, %v6830_v5  ;;  %v7645_v6 = vpack.c.bf16 %v6861_v24, %v6861_v24  ;;  %v6800_v58 = vmul.f32 %v12280_v0, %v6670_v43  ;;  %v6668_v8 = vadd.f32 %v12718_v57, %v6597_v60 }
 0x56e   : > { %7184 = vst.msk [vmem:[%s12300_s29 + $0xd8] sm:$0xf] %vm7129_vm7, %v7647_v40 }
 0x56f   : > { %7151 = vst.msk [vmem:[%s12300_s29 + $0x54] sm:$0xf] %vm7129_vm7, %v7614_v4  ;;  %7182 = vst.msk [vmem:[%s12300_s29 + $0xd0] sm:$0xf] %vm7129_vm7, %v7645_v6  ;;  %v6864_v55 = vsel %vm6735_vm10, %v6670_v43, %v6800_v58  ;;  %vm6733_vm11 = vcmp.gt.f32.partialorder %v6668_v8, 0.0  ;;  %v6798_v28 = vmul.f32 %v12280_v0, %v6668_v8 }
 0x570   : > { %v7648_v41 = vpack.c.bf16 %v6864_v55, %v6864_v55 }
 0x571   : > { %v6862_v1 = vsel %vm6733_vm11, %v6668_v8, %v6798_v28 }
 0x572   : > { %7185 = vst.msk [vmem:[%s12300_s29 + $0xdc] sm:$0xf] %vm7129_vm7, %v7648_v41  ;;  %v7646_v34 = vpack.c.bf16 %v6862_v1, %v6862_v1 }
 0x574   : > { %7183 = vst.msk [vmem:[%s12300_s29 + $0xd4] sm:$0xf] %vm7129_vm7, %v7646_v34 }
 0x588   : > { %v7724_v9 = vpop.f32.mrf.mxu0 }
 0x589   : > { %v6570_v53 = vmul.f32 %v12704_v22, %v7724_v9 }
 0x58a   : > { %v6378_v20 = vpop.f32.mrf.mxu0 }
 0x58b   : > { %v6641_v52 = vadd.f32 %v12718_v57, %v6570_v53  ;;  %v6568_v42 = vmul.f32 %v12704_v22, %v6378_v20 }
 0x58c   : > { %v7725_v62 = vpop.f32.mrf.mxu0 }
 0x58d   : > { %vm6706_vm12 = vcmp.gt.f32.partialorder %v6641_v52, 0.0  ;;  %v6771_v63 = vmul.f32 %v12280_v0, %v6641_v52  ;;  %v6639_v47 = vadd.f32 %v12718_v57, %v6568_v42  ;;  %v6571_v54 = vmul.f32 %v12704_v22, %v7725_v62 }
 0x58e   : > { %v6381_v61 = vpop.f32.mrf.mxu0 }
 0x58f   : > { %v6835_v3 = vsel %vm6706_vm12, %v6641_v52, %v6771_v63  ;;  %vm6704_vm13 = vcmp.gt.f32.partialorder %v6639_v47, 0.0  ;;  %v6769_v12 = vmul.f32 %v12280_v0, %v6639_v47  ;;  %v6642_v14 = vadd.f32 %v12718_v57, %v6571_v54 }
 0x590   : > { %v7619_v45 = vpack.c.bf16 %v6835_v3, %v6835_v3  ;;  %v7756_v17 = vpop.f32.mrf.mxu1  ;;  %v6569_v48 = vmul.f32 %v12704_v22, %v6381_v61 }
 0x591   : > { %v6833_v16 = vsel %vm6704_vm13, %v6639_v47, %v6769_v12  ;;  %vm6707_vm14 = vcmp.gt.f32.partialorder %v6642_v14, 0.0  ;;  %v6772_v26 = vmul.f32 %v12280_v0, %v6642_v14  ;;  %v6602_v51 = vmul.f32 %v12704_v22, %v7756_v17 }
 0x592   : > { %7156 = vst.msk [vmem:[%s12300_s29 + $0x68] sm:$0xf] %vm7129_vm7, %v7619_v45  ;;  %v7617_v33 = vpack.c.bf16 %v6833_v16, %v6833_v16  ;;  %v6640_v10 = vadd.f32 %v12718_v57, %v6569_v48  ;;  %v6506_v46 = vpop.f32.mrf.mxu1 }
 0x593   : > { %v6836_v37 = vsel %vm6707_vm14, %v6642_v14, %v6772_v26  ;;  %v6673_v39 = vadd.f32 %v12718_v57, %v6602_v51  ;;  %v6600_v15 = vmul.f32 %v12704_v22, %v6506_v46 }
 0x594   : > { %7154 = vst.msk [vmem:[%s12300_s29 + $0x60] sm:$0xf] %vm7129_vm7, %v7617_v33  ;;  %v7620_v38 = vpack.c.bf16 %v6836_v37, %v6836_v37  ;;  %vm6705_vm15 = vcmp.gt.f32.partialorder %v6640_v10, 0.0  ;;  %v6770_v36 = vmul.f32 %v12280_v0, %v6640_v10  ;;  %v7757_v31 = vpop.f32.mrf.mxu1 }
 0x595   : > { %vm6738_vm8 = vcmp.gt.f32.partialorder %v6673_v39, 0.0  ;;  %v6803_v35 = vmul.f32 %v12280_v0, %v6673_v39  ;;  %v6671_v23 = vadd.f32 %v12718_v57, %v6600_v15  ;;  %v6603_v50 = vmul.f32 %v12704_v22, %v7757_v31 }
 0x596   : > { %7157 = vst.msk [vmem:[%s12300_s29 + $0x6c] sm:$0xf] %vm7129_vm7, %v7620_v38  ;;  %v6834_v59 = vsel %vm6705_vm15, %v6640_v10, %v6770_v36  ;;  %v6509_v30 = vpop.f32.mrf.mxu1 }
 0x597   : > { %v6867_v2 = vsel %vm6738_vm8, %v6673_v39, %v6803_v35  ;;  %v7618_v25 = vpack.c.bf16 %v6834_v59, %v6834_v59  ;;  %vm6736_vm9 = vcmp.gt.f32.partialorder %v6671_v23, 0.0  ;;  %v6801_v29 = vmul.f32 %v12280_v0, %v6671_v23 }
 0x598   : > { %v7651_v19 = vpack.c.bf16 %v6867_v2, %v6867_v2  ;;  %v6674_v7 = vadd.f32 %v12718_v57, %v6603_v50  ;;  %v6601_v49 = vmul.f32 %v12704_v22, %v6509_v30 }
 0x599   : > { %7155 = vst.msk [vmem:[%s12300_s29 + $0x64] sm:$0xf] %vm7129_vm7, %v7618_v25  ;;  %v6865_v11 = vsel %vm6736_vm9, %v6671_v23, %v6801_v29 }
 0x59a   : > { %7188 = vst.msk [vmem:[%s12300_s29 + $0xe8] sm:$0xf] %vm7129_vm7, %v7651_v19  ;;  %v7649_v56 = vpack.c.bf16 %v6865_v11, %v6865_v11  ;;  %vm6739_vm0 = vcmp.gt.f32.partialorder %v6674_v7, 0.0  ;;  %v6804_v21 = vmul.f32 %v12280_v0, %v6674_v7  ;;  %v6672_v44 = vadd.f32 %v12718_v57, %v6601_v49 }
 0x59c   : > { %7186 = vst.msk [vmem:[%s12300_s29 + $0xe0] sm:$0xf] %vm7129_vm7, %v7649_v56  ;;  %v6868_v32 = vsel %vm6739_vm0, %v6674_v7, %v6804_v21  ;;  %vm6737_vm1 = vcmp.gt.f32.partialorder %v6672_v44, 0.0  ;;  %v6802_v18 = vmul.f32 %v12280_v0, %v6672_v44 }
 0x59d   : > { %v7652_v27 = vpack.c.bf16 %v6868_v32, %v6868_v32 }
 0x59e   : > { %v6866_v43 = vsel %vm6737_vm1, %v6672_v44, %v6802_v18 }
 0x59f   : > { %7189 = vst.msk [vmem:[%s12300_s29 + $0xec] sm:$0xf] %vm7129_vm7, %v7652_v27  ;;  %v7650_v13 = vpack.c.bf16 %v6866_v43, %v6866_v43 }
 0x5a1   : > { %7187 = vst.msk [vmem:[%s12300_s29 + $0xe4] sm:$0xf] %vm7129_vm7, %v7650_v13 }
 0x5b5   : > { %v7728_v60 = vpop.f32.mrf.mxu0 }
 0x5b6   : > { %v6574_v40 = vmul.f32 %v12704_v22, %v7728_v60 }
 0x5b7   : > { %v6394_v5 = vpop.f32.mrf.mxu0 }
 0x5b8   : > { %v6645_v24 = vadd.f32 %v12718_v57, %v6574_v40  ;;  %v6572_v4 = vmul.f32 %v12704_v22, %v6394_v5 }
 0x5b9   : > { %v7729_v6 = vpop.f32.mrf.mxu0 }
 0x5ba   : > { %vm6710_vm2 = vcmp.gt.f32.partialorder %v6645_v24, 0.0  ;;  %v6775_v58 = vmul.f32 %v12280_v0, %v6645_v24  ;;  %v6643_v8 = vadd.f32 %v12718_v57, %v6572_v4  ;;  %v6575_v55 = vmul.f32 %v12704_v22, %v7729_v6 }
 0x5bb   : > { %v7760_v28 = vpop.f32.mrf.mxu1  ;;  %v6397_v41 = vpop.f32.mrf.mxu0 }
 0x5bc   : > { %v6839_v1 = vsel %vm6710_vm2, %v6645_v24, %v6775_v58  ;;  %vm6708_vm3 = vcmp.gt.f32.partialorder %v6643_v8, 0.0  ;;  %v6773_v34 = vmul.f32 %v12280_v0, %v6643_v8  ;;  %v6646_v9 = vadd.f32 %v12718_v57, %v6575_v55 }
 0x5bd   : > { %v7623_v53 = vpack.c.bf16 %v6839_v1, %v6839_v1  ;;  %v6606_v20 = vmul.f32 %v12704_v22, %v7760_v28  ;;  %v6573_v52 = vmul.f32 %v12704_v22, %v6397_v41  ;;  %v6522_v42 = vpop.f32.mrf.mxu1 }
 0x5be   : > { %v6837_v62 = vsel %vm6708_vm3, %v6643_v8, %v6773_v34  ;;  %vm6711_vm5 = vcmp.gt.f32.partialorder %v6646_v9, 0.0  ;;  %v6776_v63 = vmul.f32 %v12280_v0, %v6646_v9  ;;  %v6604_v47 = vmul.f32 %v12704_v22, %v6522_v42 }
 0x5bf   : > { %7160 = vst.msk [vmem:[%s12300_s29 + $0x78] sm:$0xf] %vm7129_vm7, %v7623_v53  ;;  %v7621_v54 = vpack.c.bf16 %v6837_v62, %v6837_v62  ;;  %v6677_v61 = vadd.f32 %v12718_v57, %v6606_v20  ;;  %v6644_v3 = vadd.f32 %v12718_v57, %v6573_v52  ;;  %v7761_v12 = vpop.f32.mrf.mxu1 }
 0x5c0   : > { %v6840_v14 = vsel %vm6711_vm5, %v6646_v9, %v6776_v63  ;;  %v6675_v45 = vadd.f32 %v12718_v57, %v6604_v47  ;;  %v6607_v17 = vmul.f32 %v12704_v22, %v7761_v12 }
 0x5c1   : > { %7158 = vst.msk [vmem:[%s12300_s29 + $0x70] sm:$0xf] %vm7129_vm7, %v7621_v54  ;;  %v7624_v48 = vpack.c.bf16 %v6840_v14, %v6840_v14  ;;  %vm6742_vm6 = vcmp.gt.f32.partialorder %v6677_v61, 0.0  ;;  %v6807_v16 = vmul.f32 %v12280_v0, %v6677_v61  ;;  %vm6709_vm4 = vcmp.gt.f32.partialorder %v6644_v3, 0.0  ;;  %v6525_v26 = vpop.f32.mrf.mxu1 }
 0x5c2   : > { %v6774_v51 = vmul.f32 %v12280_v0, %v6644_v3  ;;  %vm6740_vm10 = vcmp.gt.f32.partialorder %v6675_v45, 0.0  ;;  %v6805_v33 = vmul.f32 %v12280_v0, %v6675_v45  ;;  %v6678_v10 = vadd.f32 %v12718_v57, %v6607_v17 }
 0x5c3   : > { %7161 = vst.msk [vmem:[%s12300_s29 + $0x7c] sm:$0xf] %vm7129_vm7, %v7624_v48  ;;  %v6871_v46 = vsel %vm6742_vm6, %v6677_v61, %v6807_v16  ;;  %v6605_v37 = vmul.f32 %v12704_v22, %v6525_v26 }
 0x5c4   : > { %v7655_v39 = vpack.c.bf16 %v6871_v46, %v6871_v46  ;;  %v6838_v15 = vsel %vm6709_vm4, %v6644_v3, %v6774_v51  ;;  %v6869_v38 = vsel %vm6740_vm10, %v6675_v45, %v6805_v33  ;;  %vm6743_vm11 = vcmp.gt.f32.partialorder %v6678_v10, 0.0 }
 0x5c5   : > { %v7622_v36 = vpack.c.bf16 %v6838_v15, %v6838_v15  ;;  %v7653_v31 = vpack.c.bf16 %v6869_v38, %v6869_v38  ;;  %v6808_v35 = vmul.f32 %v12280_v0, %v6678_v10  ;;  %v6676_v23 = vadd.f32 %v12718_v57, %v6605_v37 }
 0x5c6   : > { %7192 = vst.msk [vmem:[%s12300_s29 + $0xf8] sm:$0xf] %vm7129_vm7, %v7655_v39 }
 0x5c7   : > { %7159 = vst.msk [vmem:[%s12300_s29 + $0x74] sm:$0xf] %vm7129_vm7, %v7622_v36  ;;  %7190 = vst.msk [vmem:[%s12300_s29 + $0xf0] sm:$0xf] %vm7129_vm7, %v7653_v31  ;;  %v6872_v50 = vsel %vm6743_vm11, %v6678_v10, %v6808_v35  ;;  %vm6741_vm12 = vcmp.gt.f32.partialorder %v6676_v23, 0.0  ;;  %v6806_v22 = vmul.f32 %v12280_v0, %v6676_v23 }
 0x5c8   : > { %v7656_v59 = vpack.c.bf16 %v6872_v50, %v6872_v50 }
 0x5c9   : > { %v6870_v30 = vsel %vm6741_vm12, %v6676_v23, %v6806_v22 }
 0x5ca   : > { %7193 = vst.msk [vmem:[%s12300_s29 + $0xfc] sm:$0xf] %vm7129_vm7, %v7656_v59  ;;  %v7654_v2 = vpack.c.bf16 %v6870_v30, %v6870_v30 }
 0x5cc   : > { %7191 = vst.msk [vmem:[%s12300_s29 + $0xf4] sm:$0xf] %vm7129_vm7, %v7654_v2 }
 0x5cd PF: > { %s16_s22 = sadd.s32 1, %s7834_s22   ;;  %s14488_s20 = smov %s7830_s21 }
 0x5ce   : > { %p13_p5 = scmp.ge.s32.totalorder %s16_s22, 4   ;;  %s14489_s21 = smov %s14491_s4 }
 0x5d0   :  { %15 = sbr.rel (!%p13_p5) target bundleno = 2 (0x2), region = 71 }

</bundles_post_ra>
